<compile_context>
chip_gen: v7x
topology: tpu7x:2x2x1
jax: 0.10.0
libtpu: 0.0.40
codegen_flags: <defaults>
</compile_context>

<pallas_src>
import functools

import jax
import jax.numpy as jnp
from jax.experimental import pallas as pl
from jax.experimental.pallas import tpu as pltpu

EPS = 1e-5
LANE = 128


def _round_up(x, m):
    return (x + m - 1) // m * m


# ----------------------------------------------------------------------------
# Fused ResBlock kernel: one grid step == one batch image.
# ----------------------------------------------------------------------------
def _resblock_kernel(xp_ref, w1_ref, w2_ref, m1_ref, s1_ref, m2_ref, s2_ref,
                     out_ref, cols_ref, h1_ref, *, H, W, Cp):
    HW = H * W

    def build_cols(tap_fn):
        # Fill the (H*W, 9*Cp) bf16 im2col scratch, tap-major columns.
        for t in range(9):
            dy, dx = t // 3, t % 3
            tap = tap_fn(dy, dx)                              # (H, W, Cp) bf16
            cols_ref[:, t * Cp:(t + 1) * Cp] = tap.reshape(HW, Cp)

    def adain(h, mean_s, std_s):
        # One-pass stats: E[x^2] - E[x]^2 with unbiased (n-1) correction
        # (matches torch.std), eps added to std, EUP reciprocal.
        s1 = jnp.sum(h, axis=0, keepdims=True)                # (1, Cp)
        s2 = jnp.sum(h * h, axis=0, keepdims=True)            # (1, Cp)
        mu = s1 * (1.0 / HW)
        var = (s2 - HW * mu * mu) * (1.0 / (HW - 1))
        var = jnp.maximum(var, 0.0)
        inv = pl.reciprocal(jnp.sqrt(var) + EPS, approx=True)
        return std_s * (h - mu) * inv + mean_s

    # ---- stage 1: conv1 -> adaIN -> ReLU ------------------------------------
    build_cols(lambda dy, dx: xp_ref[dy:dy + H, dx:dx + W, :])
    h = jnp.dot(cols_ref[...], w1_ref[...], preferred_element_type=jnp.float32)
    h = adain(h, m1_ref[...], s1_ref[...])
    h = jnp.maximum(h, 0.0)

    # Stash stage-1 result in a zero-haloed padded VMEM scratch (no HBM trip).
    h1_ref[...] = jnp.zeros_like(h1_ref)
    h1_ref[1:H + 1, 1:W + 1, :] = h.reshape(H, W, Cp).astype(h1_ref.dtype)

    # ---- stage 2: conv2 -> adaIN -> + residual ------------------------------
    build_cols(lambda dy, dx: h1_ref[dy:dy + H, dx:dx + W, :])
    h = jnp.dot(cols_ref[...], w2_ref[...], preferred_element_type=jnp.float32)
    h = adain(h, m2_ref[...], s2_ref[...])
    # Residual straight from the resident input tile (interior of the halo pad).
    res = xp_ref[1:H + 1, 1:W + 1, :].reshape(HW, Cp).astype(jnp.float32)
    h = h + res

    out_ref[...] = h.reshape(H, W, Cp).astype(out_ref.dtype)


# ----------------------------------------------------------------------------
# pallas_call wrapper
# ----------------------------------------------------------------------------
def _res_block_fused(xp, w1s, w2s, mean1, std1, mean2, std2):
    """xp: (B, H+2, W+2, Cp) bf16; w*: (9*Cp, Cp) bf16; stats: (B, 1, Cp) f32."""
    B, Hp2, Wp2, Cp = xp.shape
    H, W = Hp2 - 2, Wp2 - 2

    kernel = functools.partial(_resblock_kernel, H=H, W=W, Cp=Cp)

    stat_spec = pl.BlockSpec((None, 1, Cp), lambda b: (b, 0, 0))
    in_specs = [
        pl.BlockSpec((None, Hp2, Wp2, Cp), lambda b: (b, 0, 0, 0)),  # activation
        pl.BlockSpec((9 * Cp, Cp), lambda b: (0, 0)),                # w1 (const)
        pl.BlockSpec((9 * Cp, Cp), lambda b: (0, 0)),                # w2 (const)
        stat_spec, stat_spec, stat_spec, stat_spec,                  # adaIN stats
    ]

    return pl.pallas_call(
        kernel,
        out_shape=jax.ShapeDtypeStruct((B, H, W, Cp), jnp.float32),
        grid=(B,),
        in_specs=in_specs,
        out_specs=pl.BlockSpec((None, H, W, Cp), lambda b: (b, 0, 0, 0)),
        scratch_shapes=[
            pltpu.VMEM((H * W, 9 * Cp), jnp.bfloat16),   # im2col scratch
            pltpu.VMEM((Hp2, Wp2, Cp), jnp.bfloat16),    # stage-1 result (haloed)
        ],
        compiler_params=pltpu.CompilerParams(
            dimension_semantics=("parallel",),
            vmem_limit_bytes=32 * 1024 * 1024,
        ),
    )(xp, w1s, w2s, mean1, std1, mean2, std2)


def prepare_conv_params(w_hwio, Cp):
    """Pad HWIO weights to lane-dense Cp channels and K-stack taps -> (9*Cp, Cp) bf16.

    Conv bias is intentionally dropped: adaIN's spatial-mean subtraction cancels
    a per-channel bias exactly, so it is dead compute.
    """
    kh, kw, Cin, Cout = w_hwio.shape
    w = jnp.pad(w_hwio, ((0, 0), (0, 0), (0, Cp - Cin), (0, Cp - Cout)))
    return w.reshape(kh * kw * Cp, Cp).astype(jnp.bfloat16)


def res_block(x_nchw, psi_slice, params):
    """ResBlock forward.  x: (B, C, H, W), psi_slice: (B, 4*C, 1)."""
    B, C, H, W = x_nchw.shape
    Cp = params["w1"].shape[-1]

    mean1 = psi_slice[:, 0:C, 0]
    std1 = psi_slice[:, C:2 * C, 0]
    mean2 = psi_slice[:, 2 * C:3 * C, 0]
    std2 = psi_slice[:, 3 * C:4 * C, 0]
    pad_c = lambda s: jnp.pad(s, ((0, 0), (0, Cp - C))).reshape(B, 1, Cp).astype(jnp.float32)
    mean1, std1, mean2, std2 = map(pad_c, (mean1, std1, mean2, std2))

    # NCHW -> NHWC once, pad channels to lane width, 1-px spatial halo, cast to
    # bf16 once (activation DMA'd to the kernel in half width).
    x_nhwc = jnp.transpose(x_nchw, (0, 2, 3, 1))
    xp = jnp.pad(x_nhwc, ((0, 0), (1, 1), (1, 1), (0, Cp - C))).astype(jnp.bfloat16)

    out = _res_block_fused(xp, params["w1"], params["w2"],
                           mean1, std1, mean2, std2)
    out = out[..., :C]
    return jnp.transpose(out, (0, 3, 1, 2))


# ----------------------------------------------------------------------------
# Pure-JAX reference (f32) for verification — mirrors the torch module,
# including conv biases (which cancel under adaIN) but not spectral norm.
# ----------------------------------------------------------------------------
def _adain_ref(x, mean_s, std_s):
    B, C, H, W = x.shape
    f = x.reshape(B, C, H * W)
    mu = jnp.mean(f, axis=2, keepdims=True)
    std = jnp.std(f, axis=2, keepdims=True, ddof=1) + EPS
    return (std_s * (f - mu) / std + mean_s).reshape(B, C, H, W)


def res_block_ref(x, psi, w1_hwio, b1, w2_hwio, b2):
    B, C, H, W = x.shape
    conv = lambda t, w, b: jax.lax.conv_general_dilated(
        t, w, (1, 1), ((1, 1), (1, 1)),
        dimension_numbers=("NCHW", "HWIO", "NCHW")) + b.reshape(1, -1, 1, 1)
    mean1 = psi[:, 0:C, :]
    std1 = psi[:, C:2 * C, :]
    mean2 = psi[:, 2 * C:3 * C, :]
    std2 = psi[:, 3 * C:4 * C, :]
    out = conv(x, w1_hwio, b1)
    out = jnp.maximum(_adain_ref(out, mean1, std1), 0.0)
    out = conv(out, w2_hwio, b2)
    out = _adain_ref(out, mean2, std2)
    return out + x


# ----------------------------------------------------------------------------
if __name__ == "__main__":
    B, C, H, W = 2, 4, 16, 16

    key = jax.random.PRNGKey(0)
    kx, kp, k1, k2, k3, k4 = jax.random.split(key, 6)

    x = jax.random.normal(kx, (B, C, H, W), dtype=jnp.float32)
    psi = jax.random.normal(kp, (B, 4 * C, 1), dtype=jnp.float32)

    # Synthetic conv weights; quantized to bf16 once so kernel and reference use
    # identical effective weights (spectral norm skipped, see TODO above).
    w1 = (0.2 * jax.random.normal(k1, (3, 3, C, C), jnp.float32)).astype(jnp.bfloat16).astype(jnp.float32)
    b1 = 0.1 * jax.random.normal(k2, (C,), dtype=jnp.float32)
    w2 = (0.2 * jax.random.normal(k3, (3, 3, C, C), jnp.float32)).astype(jnp.bfloat16).astype(jnp.float32)
    b2 = 0.1 * jax.random.normal(k4, (C,), dtype=jnp.float32)

    Cp = _round_up(max(C, LANE), LANE)   # lane-dense channel padding
    params = {"w1": prepare_conv_params(w1, Cp),
              "w2": prepare_conv_params(w2, Cp)}

    fwd = jax.jit(functools.partial(res_block, params=params))
    out = jax.block_until_ready(fwd(x, psi))
    assert out.shape == (B, C, H, W), out.shape

    ref = jax.block_until_ready(res_block_ref(x, psi, w1, b1, w2, b2))
    if not jnp.allclose(out, ref, atol=1e-1, rtol=5e-2):
        err = float(jnp.max(jnp.abs(out - ref)))
        raise AssertionError(f"Pallas ResBlock does not match reference (max abs err={err})")

    print("KERNEL_OK")
</pallas_src>

<mosaic_0001>
module attributes {stable_mosaic.version = 11 : i64} {
  func.func @_resblock_kernel(%arg0: i32, %arg1: memref<1x18x18x128xbf16, #tpu.memory_space<vmem>>, %arg2: memref<1152x128xbf16, #tpu.memory_space<vmem>>, %arg3: memref<1152x128xbf16, #tpu.memory_space<vmem>>, %arg4: memref<1x1x128xf32, #tpu.memory_space<vmem>>, %arg5: memref<1x1x128xf32, #tpu.memory_space<vmem>>, %arg6: memref<1x1x128xf32, #tpu.memory_space<vmem>>, %arg7: memref<1x1x128xf32, #tpu.memory_space<vmem>>, %arg8: memref<1x16x16x128xf32, #tpu.memory_space<vmem>>, %arg9: memref<256x1152xbf16, #tpu.memory_space<vmem>>, %arg10: memref<18x18x128xbf16, #tpu.memory_space<vmem>>) attributes {dimension_semantics = [#tpu.dimension_semantics<parallel>], iteration_bounds = array<i64: 2>, scalar_prefetch = 0 : i64, scratch_operands = 2 : i64, tpu.core_type = #tpu.core_type<tc>, window_params = [{transform_indices = @transform_0, window_bounds = array<i64: 1, 18, 18, 128>}, {pipeline_mode = #tpu.pipeline_mode<synchronous>, transform_indices = @transform_1, window_bounds = array<i64: 1152, 128>}, {pipeline_mode = #tpu.pipeline_mode<synchronous>, transform_indices = @transform_2, window_bounds = array<i64: 1152, 128>}, {transform_indices = @transform_3, window_bounds = array<i64: 1, 1, 128>}, {transform_indices = @transform_4, window_bounds = array<i64: 1, 1, 128>}, {transform_indices = @transform_5, window_bounds = array<i64: 1, 1, 128>}, {transform_indices = @transform_6, window_bounds = array<i64: 1, 1, 128>}, {transform_indices = @transform_7, window_bounds = array<i64: 1, 16, 16, 128>}]} {
    %c0 = arith.constant 0 : index
    %c0_0 = arith.constant 0 : index
    %c0_1 = arith.constant 0 : index
    %c0_2 = arith.constant 0 : index
    %0 = vector.load %arg1[%c0, %c0_0, %c0_1, %c0_2] : memref<1x18x18x128xbf16, #tpu.memory_space<vmem>>, vector<1x16x16x128xbf16>
    %1 = vector.shape_cast %0 : vector<1x16x16x128xbf16> to vector<16x16x128xbf16>
    %2 = vector.shape_cast %1 : vector<16x16x128xbf16> to vector<256x128xbf16>
    %c0_3 = arith.constant 0 : index
    %c0_4 = arith.constant 0 : index
    %3 = vector.load %arg9[%c0_3, %c0_4] : memref<256x1152xbf16, #tpu.memory_space<vmem>>, vector<256x128xbf16>
    tpu.vector_store %arg9[%c0_3, %c0_4], %2 {strides = array<i32>} : memref<256x1152xbf16, #tpu.memory_space<vmem>>, vector<256x128xbf16>,
    %c0_5 = arith.constant 0 : index
    %c0_6 = arith.constant 0 : index
    %c1 = arith.constant 1 : index
    %c0_7 = arith.constant 0 : index
    %4 = vector.load %arg1[%c0_5, %c0_6, %c1, %c0_7] : memref<1x18x18x128xbf16, #tpu.memory_space<vmem>>, vector<1x16x16x128xbf16>
    %5 = vector.shape_cast %4 : vector<1x16x16x128xbf16> to vector<16x16x128xbf16>
    %6 = vector.shape_cast %5 : vector<16x16x128xbf16> to vector<256x128xbf16>
    %c0_8 = arith.constant 0 : index
    %c128 = arith.constant 128 : index
    %7 = vector.load %arg9[%c0_8, %c128] : memref<256x1152xbf16, #tpu.memory_space<vmem>>, vector<256x128xbf16>
    tpu.vector_store %arg9[%c0_8, %c128], %6 {strides = array<i32>} : memref<256x1152xbf16, #tpu.memory_space<vmem>>, vector<256x128xbf16>,
    %c0_9 = arith.constant 0 : index
    %c0_10 = arith.constant 0 : index
    %c2 = arith.constant 2 : index
    %c0_11 = arith.constant 0 : index
    %8 = vector.load %arg1[%c0_9, %c0_10, %c2, %c0_11] : memref<1x18x18x128xbf16, #tpu.memory_space<vmem>>, vector<1x16x16x128xbf16>
    %9 = vector.shape_cast %8 : vector<1x16x16x128xbf16> to vector<16x16x128xbf16>
    %10 = vector.shape_cast %9 : vector<16x16x128xbf16> to vector<256x128xbf16>
    %c0_12 = arith.constant 0 : index
    %c256 = arith.constant 256 : index
    %11 = vector.load %arg9[%c0_12, %c256] : memref<256x1152xbf16, #tpu.memory_space<vmem>>, vector<256x128xbf16>
    tpu.vector_store %arg9[%c0_12, %c256], %10 {strides = array<i32>} : memref<256x1152xbf16, #tpu.memory_space<vmem>>, vector<256x128xbf16>,
    %c0_13 = arith.constant 0 : index
    %c1_14 = arith.constant 1 : index
    %c0_15 = arith.constant 0 : index
    %c0_16 = arith.constant 0 : index
    %12 = vector.load %arg1[%c0_13, %c1_14, %c0_15, %c0_16] : memref<1x18x18x128xbf16, #tpu.memory_space<vmem>>, vector<1x16x16x128xbf16>
    %13 = vector.shape_cast %12 : vector<1x16x16x128xbf16> to vector<16x16x128xbf16>
    %14 = vector.shape_cast %13 : vector<16x16x128xbf16> to vector<256x128xbf16>
    %c0_17 = arith.constant 0 : index
    %c384 = arith.constant 384 : index
    %15 = vector.load %arg9[%c0_17, %c384] : memref<256x1152xbf16, #tpu.memory_space<vmem>>, vector<256x128xbf16>
    tpu.vector_store %arg9[%c0_17, %c384], %14 {strides = array<i32>} : memref<256x1152xbf16, #tpu.memory_space<vmem>>, vector<256x128xbf16>,
    %c0_18 = arith.constant 0 : index
    %c1_19 = arith.constant 1 : index
    %c1_20 = arith.constant 1 : index
    %c0_21 = arith.constant 0 : index
    %16 = vector.load %arg1[%c0_18, %c1_19, %c1_20, %c0_21] : memref<1x18x18x128xbf16, #tpu.memory_space<vmem>>, vector<1x16x16x128xbf16>
    %17 = vector.shape_cast %16 : vector<1x16x16x128xbf16> to vector<16x16x128xbf16>
    %18 = vector.shape_cast %17 : vector<16x16x128xbf16> to vector<256x128xbf16>
    %c0_22 = arith.constant 0 : index
    %c512 = arith.constant 512 : index
    %19 = vector.load %arg9[%c0_22, %c512] : memref<256x1152xbf16, #tpu.memory_space<vmem>>, vector<256x128xbf16>
    tpu.vector_store %arg9[%c0_22, %c512], %18 {strides = array<i32>} : memref<256x1152xbf16, #tpu.memory_space<vmem>>, vector<256x128xbf16>,
    %c0_23 = arith.constant 0 : index
    %c1_24 = arith.constant 1 : index
    %c2_25 = arith.constant 2 : index
    %c0_26 = arith.constant 0 : index
    %20 = vector.load %arg1[%c0_23, %c1_24, %c2_25, %c0_26] : memref<1x18x18x128xbf16, #tpu.memory_space<vmem>>, vector<1x16x16x128xbf16>
    %21 = vector.shape_cast %20 : vector<1x16x16x128xbf16> to vector<16x16x128xbf16>
    %22 = vector.shape_cast %21 : vector<16x16x128xbf16> to vector<256x128xbf16>
    %c0_27 = arith.constant 0 : index
    %c640 = arith.constant 640 : index
    %23 = vector.load %arg9[%c0_27, %c640] : memref<256x1152xbf16, #tpu.memory_space<vmem>>, vector<256x128xbf16>
    tpu.vector_store %arg9[%c0_27, %c640], %22 {strides = array<i32>} : memref<256x1152xbf16, #tpu.memory_space<vmem>>, vector<256x128xbf16>,
    %c0_28 = arith.constant 0 : index
    %c2_29 = arith.constant 2 : index
    %c0_30 = arith.constant 0 : index
    %c0_31 = arith.constant 0 : index
    %24 = vector.load %arg1[%c0_28, %c2_29, %c0_30, %c0_31] : memref<1x18x18x128xbf16, #tpu.memory_space<vmem>>, vector<1x16x16x128xbf16>
    %25 = vector.shape_cast %24 : vector<1x16x16x128xbf16> to vector<16x16x128xbf16>
    %26 = vector.shape_cast %25 : vector<16x16x128xbf16> to vector<256x128xbf16>
    %c0_32 = arith.constant 0 : index
    %c768 = arith.constant 768 : index
    %27 = vector.load %arg9[%c0_32, %c768] : memref<256x1152xbf16, #tpu.memory_space<vmem>>, vector<256x128xbf16>
    tpu.vector_store %arg9[%c0_32, %c768], %26 {strides = array<i32>} : memref<256x1152xbf16, #tpu.memory_space<vmem>>, vector<256x128xbf16>,
    %c0_33 = arith.constant 0 : index
    %c2_34 = arith.constant 2 : index
    %c1_35 = arith.constant 1 : index
    %c0_36 = arith.constant 0 : index
    %28 = vector.load %arg1[%c0_33, %c2_34, %c1_35, %c0_36] : memref<1x18x18x128xbf16, #tpu.memory_space<vmem>>, vector<1x16x16x128xbf16>
    %29 = vector.shape_cast %28 : vector<1x16x16x128xbf16> to vector<16x16x128xbf16>
    %30 = vector.shape_cast %29 : vector<16x16x128xbf16> to vector<256x128xbf16>
    %c0_37 = arith.constant 0 : index
    %c896 = arith.constant 896 : index
    %31 = vector.load %arg9[%c0_37, %c896] : memref<256x1152xbf16, #tpu.memory_space<vmem>>, vector<256x128xbf16>
    tpu.vector_store %arg9[%c0_37, %c896], %30 {strides = array<i32>} : memref<256x1152xbf16, #tpu.memory_space<vmem>>, vector<256x128xbf16>,
    %c0_38 = arith.constant 0 : index
    %c2_39 = arith.constant 2 : index
    %c2_40 = arith.constant 2 : index
    %c0_41 = arith.constant 0 : index
    %32 = vector.load %arg1[%c0_38, %c2_39, %c2_40, %c0_41] : memref<1x18x18x128xbf16, #tpu.memory_space<vmem>>, vector<1x16x16x128xbf16>
    %33 = vector.shape_cast %32 : vector<1x16x16x128xbf16> to vector<16x16x128xbf16>
    %34 = vector.shape_cast %33 : vector<16x16x128xbf16> to vector<256x128xbf16>
    %c0_42 = arith.constant 0 : index
    %c1024 = arith.constant 1024 : index
    %35 = vector.load %arg9[%c0_42, %c1024] : memref<256x1152xbf16, #tpu.memory_space<vmem>>, vector<256x128xbf16>
    tpu.vector_store %arg9[%c0_42, %c1024], %34 {strides = array<i32>} : memref<256x1152xbf16, #tpu.memory_space<vmem>>, vector<256x128xbf16>,
    %c0_43 = arith.constant 0 : index
    %c0_44 = arith.constant 0 : index
    %36 = vector.load %arg9[%c0_43, %c0_44] : memref<256x1152xbf16, #tpu.memory_space<vmem>>, vector<256x1152xbf16>
    %c0_45 = arith.constant 0 : index
    %c0_46 = arith.constant 0 : index
    %37 = vector.load %arg2[%c0_45, %c0_46] : memref<1152x128xbf16, #tpu.memory_space<vmem>>, vector<1152x128xbf16>
    %cst = arith.constant dense<0.000000e+00> : vector<256x128xf32>
    %38 = tpu.matmul %36, %37, %cst {dimension_numbers = #tpu.dot_dimension_numbers<[1], [0], [0], [1], [0, 0, 1, 1], [], []>} : vector<256x1152xbf16>, vector<1152x128xbf16>, vector<256x128xf32> -> vector<256x128xf32>
    %c0_47 = arith.constant 0 : index
    %c0_48 = arith.constant 0 : index
    %c0_49 = arith.constant 0 : index
    %39 = vector.load %arg4[%c0_47, %c0_48, %c0_49] : memref<1x1x128xf32, #tpu.memory_space<vmem>>, vector<1x1x128xf32>
    %40 = vector.shape_cast %39 : vector<1x1x128xf32> to vector<1x128xf32>
    %c0_50 = arith.constant 0 : index
    %c0_51 = arith.constant 0 : index
    %c0_52 = arith.constant 0 : index
    %41 = vector.load %arg5[%c0_50, %c0_51, %c0_52] : memref<1x1x128xf32, #tpu.memory_space<vmem>>, vector<1x1x128xf32>
    %42 = vector.shape_cast %41 : vector<1x1x128xf32> to vector<1x128xf32>
    %cst_53 = arith.constant dense<0.000000e+00> : vector<128xf32>
    %43 = vector.multi_reduction <add>, %38, %cst_53 [0] : vector<256x128xf32> to vector<128xf32>
    %44 = vector.shape_cast %43 : vector<128xf32> to vector<1x128xf32>
    %45 = arith.mulf %38, %38 : vector<256x128xf32>
    %cst_54 = arith.constant dense<0.000000e+00> : vector<128xf32>
    %46 = vector.multi_reduction <add>, %45, %cst_54 [0] : vector<256x128xf32> to vector<128xf32>
    %47 = vector.shape_cast %46 : vector<128xf32> to vector<1x128xf32>
    %cst_55 = arith.constant 3.906250e-03 : f32
    %48 = vector.broadcast %cst_55 : f32 to vector<1x128xf32>
    %49 = arith.mulf %44, %48 : vector<1x128xf32>
    %cst_56 = arith.constant 2.560000e+02 : f32
    %50 = vector.broadcast %cst_56 : f32 to vector<1x128xf32>
    %51 = arith.mulf %50, %49 : vector<1x128xf32>
    %52 = arith.mulf %51, %49 : vector<1x128xf32>
    %53 = arith.subf %47, %52 : vector<1x128xf32>
    %cst_57 = arith.constant 0.00392156886 : f32
    %54 = vector.broadcast %cst_57 : f32 to vector<1x128xf32>
    %55 = arith.mulf %53, %54 : vector<1x128xf32>
    %cst_58 = arith.constant 0.000000e+00 : f32
    %56 = vector.broadcast %cst_58 : f32 to vector<1x128xf32>
    %57 = arith.maximumf %55, %56 : vector<1x128xf32>
    %58 = math.sqrt %57 : vector<1x128xf32>
    %cst_59 = arith.constant 9.99999974E-6 : f32
    %59 = vector.broadcast %cst_59 : f32 to vector<1x128xf32>
    %60 = arith.addf %58, %59 : vector<1x128xf32>
    %61 = tpu.reciprocal %60 {approx = true} : vector<1x128xf32> -> vector<1x128xf32>
    %62 = vector.broadcast %49 : vector<1x128xf32> to vector<256x128xf32>
    %63 = arith.subf %38, %62 : vector<256x128xf32>
    %64 = vector.broadcast %42 : vector<1x128xf32> to vector<256x128xf32>
    %65 = arith.mulf %64, %63 : vector<256x128xf32>
    %66 = vector.broadcast %61 : vector<1x128xf32> to vector<256x128xf32>
    %67 = arith.mulf %65, %66 : vector<256x128xf32>
    %68 = vector.broadcast %40 : vector<1x128xf32> to vector<256x128xf32>
    %69 = arith.addf %67, %68 : vector<256x128xf32>
    %cst_60 = arith.constant 0.000000e+00 : f32
    %70 = vector.broadcast %cst_60 : f32 to vector<256x128xf32>
    %71 = arith.maximumf %69, %70 : vector<256x128xf32>
    %cst_61 = arith.constant 0.000000e+00 : bf16
    %72 = vector.broadcast %cst_61 : bf16 to vector<18x18x128xbf16>
    %c0_62 = arith.constant 0 : index
    %c0_63 = arith.constant 0 : index
    %c0_64 = arith.constant 0 : index
    %73 = vector.load %arg10[%c0_62, %c0_63, %c0_64] : memref<18x18x128xbf16, #tpu.memory_space<vmem>>, vector<18x18x128xbf16>
    tpu.vector_store %arg10[%c0_62, %c0_63, %c0_64], %72 {strides = array<i32>} : memref<18x18x128xbf16, #tpu.memory_space<vmem>>, vector<18x18x128xbf16>,
    %74 = vector.shape_cast %71 : vector<256x128xf32> to vector<16x16x128xf32>
    %75 = arith.truncf %74 : vector<16x16x128xf32> to vector<16x16x128xbf16>
    %c1_65 = arith.constant 1 : index
    %c1_66 = arith.constant 1 : index
    %c0_67 = arith.constant 0 : index
    %76 = vector.load %arg10[%c1_65, %c1_66, %c0_67] : memref<18x18x128xbf16, #tpu.memory_space<vmem>>, vector<16x16x128xbf16>
    tpu.vector_store %arg10[%c1_65, %c1_66, %c0_67], %75 {strides = array<i32>} : memref<18x18x128xbf16, #tpu.memory_space<vmem>>, vector<16x16x128xbf16>,
    %c0_68 = arith.constant 0 : index
    %c0_69 = arith.constant 0 : index
    %c0_70 = arith.constant 0 : index
    %77 = vector.load %arg10[%c0_68, %c0_69, %c0_70] : memref<18x18x128xbf16, #tpu.memory_space<vmem>>, vector<16x16x128xbf16>
    %78 = vector.shape_cast %77 : vector<16x16x128xbf16> to vector<256x128xbf16>
    %c0_71 = arith.constant 0 : index
    %c0_72 = arith.constant 0 : index
    %79 = vector.load %arg9[%c0_71, %c0_72] : memref<256x1152xbf16, #tpu.memory_space<vmem>>, vector<256x128xbf16>
    tpu.vector_store %arg9[%c0_71, %c0_72], %78 {strides = array<i32>} : memref<256x1152xbf16, #tpu.memory_space<vmem>>, vector<256x128xbf16>,
    %c0_73 = arith.constant 0 : index
    %c1_74 = arith.constant 1 : index
    %c0_75 = arith.constant 0 : index
    %80 = vector.load %arg10[%c0_73, %c1_74, %c0_75] : memref<18x18x128xbf16, #tpu.memory_space<vmem>>, vector<16x16x128xbf16>
    %81 = vector.shape_cast %80 : vector<16x16x128xbf16> to vector<256x128xbf16>
    %c0_76 = arith.constant 0 : index
    %c128_77 = arith.constant 128 : index
    %82 = vector.load %arg9[%c0_76, %c128_77] : memref<256x1152xbf16, #tpu.memory_space<vmem>>, vector<256x128xbf16>
    tpu.vector_store %arg9[%c0_76, %c128_77], %81 {strides = array<i32>} : memref<256x1152xbf16, #tpu.memory_space<vmem>>, vector<256x128xbf16>,
    %c0_78 = arith.constant 0 : index
    %c2_79 = arith.constant 2 : index
    %c0_80 = arith.constant 0 : index
    %83 = vector.load %arg10[%c0_78, %c2_79, %c0_80] : memref<18x18x128xbf16, #tpu.memory_space<vmem>>, vector<16x16x128xbf16>
    %84 = vector.shape_cast %83 : vector<16x16x128xbf16> to vector<256x128xbf16>
    %c0_81 = arith.constant 0 : index
    %c256_82 = arith.constant 256 : index
    %85 = vector.load %arg9[%c0_81, %c256_82] : memref<256x1152xbf16, #tpu.memory_space<vmem>>, vector<256x128xbf16>
    tpu.vector_store %arg9[%c0_81, %c256_82], %84 {strides = array<i32>} : memref<256x1152xbf16, #tpu.memory_space<vmem>>, vector<256x128xbf16>,
    %c1_83 = arith.constant 1 : index
    %c0_84 = arith.constant 0 : index
    %c0_85 = arith.constant 0 : index
    %86 = vector.load %arg10[%c1_83, %c0_84, %c0_85] : memref<18x18x128xbf16, #tpu.memory_space<vmem>>, vector<16x16x128xbf16>
    %87 = vector.shape_cast %86 : vector<16x16x128xbf16> to vector<256x128xbf16>
    %c0_86 = arith.constant 0 : index
    %c384_87 = arith.constant 384 : index
    %88 = vector.load %arg9[%c0_86, %c384_87] : memref<256x1152xbf16, #tpu.memory_space<vmem>>, vector<256x128xbf16>
    tpu.vector_store %arg9[%c0_86, %c384_87], %87 {strides = array<i32>} : memref<256x1152xbf16, #tpu.memory_space<vmem>>, vector<256x128xbf16>,
    %c1_88 = arith.constant 1 : index
    %c1_89 = arith.constant 1 : index
    %c0_90 = arith.constant 0 : index
    %89 = vector.load %arg10[%c1_88, %c1_89, %c0_90] : memref<18x18x128xbf16, #tpu.memory_space<vmem>>, vector<16x16x128xbf16>
    %90 = vector.shape_cast %89 : vector<16x16x128xbf16> to vector<256x128xbf16>
    %c0_91 = arith.constant 0 : index
    %c512_92 = arith.constant 512 : index
    %91 = vector.load %arg9[%c0_91, %c512_92] : memref<256x1152xbf16, #tpu.memory_space<vmem>>, vector<256x128xbf16>
    tpu.vector_store %arg9[%c0_91, %c512_92], %90 {strides = array<i32>} : memref<256x1152xbf16, #tpu.memory_space<vmem>>, vector<256x128xbf16>,
    %c1_93 = arith.constant 1 : index
    %c2_94 = arith.constant 2 : index
    %c0_95 = arith.constant 0 : index
    %92 = vector.load %arg10[%c1_93, %c2_94, %c0_95] : memref<18x18x128xbf16, #tpu.memory_space<vmem>>, vector<16x16x128xbf16>
    %93 = vector.shape_cast %92 : vector<16x16x128xbf16> to vector<256x128xbf16>
    %c0_96 = arith.constant 0 : index
    %c640_97 = arith.constant 640 : index
    %94 = vector.load %arg9[%c0_96, %c640_97] : memref<256x1152xbf16, #tpu.memory_space<vmem>>, vector<256x128xbf16>
    tpu.vector_store %arg9[%c0_96, %c640_97], %93 {strides = array<i32>} : memref<256x1152xbf16, #tpu.memory_space<vmem>>, vector<256x128xbf16>,
    %c2_98 = arith.constant 2 : index
    %c0_99 = arith.constant 0 : index
    %c0_100 = arith.constant 0 : index
    %95 = vector.load %arg10[%c2_98, %c0_99, %c0_100] : memref<18x18x128xbf16, #tpu.memory_space<vmem>>, vector<16x16x128xbf16>
    %96 = vector.shape_cast %95 : vector<16x16x128xbf16> to vector<256x128xbf16>
    %c0_101 = arith.constant 0 : index
    %c768_102 = arith.constant 768 : index
    %97 = vector.load %arg9[%c0_101, %c768_102] : memref<256x1152xbf16, #tpu.memory_space<vmem>>, vector<256x128xbf16>
    tpu.vector_store %arg9[%c0_101, %c768_102], %96 {strides = array<i32>} : memref<256x1152xbf16, #tpu.memory_space<vmem>>, vector<256x128xbf16>,
    %c2_103 = arith.constant 2 : index
    %c1_104 = arith.constant 1 : index
    %c0_105 = arith.constant 0 : index
    %98 = vector.load %arg10[%c2_103, %c1_104, %c0_105] : memref<18x18x128xbf16, #tpu.memory_space<vmem>>, vector<16x16x128xbf16>
    %99 = vector.shape_cast %98 : vector<16x16x128xbf16> to vector<256x128xbf16>
    %c0_106 = arith.constant 0 : index
    %c896_107 = arith.constant 896 : index
    %100 = vector.load %arg9[%c0_106, %c896_107] : memref<256x1152xbf16, #tpu.memory_space<vmem>>, vector<256x128xbf16>
    tpu.vector_store %arg9[%c0_106, %c896_107], %99 {strides = array<i32>} : memref<256x1152xbf16, #tpu.memory_space<vmem>>, vector<256x128xbf16>,
    %c2_108 = arith.constant 2 : index
    %c2_109 = arith.constant 2 : index
    %c0_110 = arith.constant 0 : index
    %101 = vector.load %arg10[%c2_108, %c2_109, %c0_110] : memref<18x18x128xbf16, #tpu.memory_space<vmem>>, vector<16x16x128xbf16>
    %102 = vector.shape_cast %101 : vector<16x16x128xbf16> to vector<256x128xbf16>
    %c0_111 = arith.constant 0 : index
    %c1024_112 = arith.constant 1024 : index
    %103 = vector.load %arg9[%c0_111, %c1024_112] : memref<256x1152xbf16, #tpu.memory_space<vmem>>, vector<256x128xbf16>
    tpu.vector_store %arg9[%c0_111, %c1024_112], %102 {strides = array<i32>} : memref<256x1152xbf16, #tpu.memory_space<vmem>>, vector<256x128xbf16>,
    %c0_113 = arith.constant 0 : index
    %c0_114 = arith.constant 0 : index
    %104 = vector.load %arg9[%c0_113, %c0_114] : memref<256x1152xbf16, #tpu.memory_space<vmem>>, vector<256x1152xbf16>
    %c0_115 = arith.constant 0 : index
    %c0_116 = arith.constant 0 : index
    %105 = vector.load %arg3[%c0_115, %c0_116] : memref<1152x128xbf16, #tpu.memory_space<vmem>>, vector<1152x128xbf16>
    %cst_117 = arith.constant dense<0.000000e+00> : vector<256x128xf32>
    %106 = tpu.matmul %104, %105, %cst_117 {dimension_numbers = #tpu.dot_dimension_numbers<[1], [0], [0], [1], [0, 0, 1, 1], [], []>} : vector<256x1152xbf16>, vector<1152x128xbf16>, vector<256x128xf32> -> vector<256x128xf32>
    %c0_118 = arith.constant 0 : index
    %c0_119 = arith.constant 0 : index
    %c0_120 = arith.constant 0 : index
    %107 = vector.load %arg6[%c0_118, %c0_119, %c0_120] : memref<1x1x128xf32, #tpu.memory_space<vmem>>, vector<1x1x128xf32>
    %108 = vector.shape_cast %107 : vector<1x1x128xf32> to vector<1x128xf32>
    %c0_121 = arith.constant 0 : index
    %c0_122 = arith.constant 0 : index
    %c0_123 = arith.constant 0 : index
    %109 = vector.load %arg7[%c0_121, %c0_122, %c0_123] : memref<1x1x128xf32, #tpu.memory_space<vmem>>, vector<1x1x128xf32>
    %110 = vector.shape_cast %109 : vector<1x1x128xf32> to vector<1x128xf32>
    %cst_124 = arith.constant dense<0.000000e+00> : vector<128xf32>
    %111 = vector.multi_reduction <add>, %106, %cst_124 [0] : vector<256x128xf32> to vector<128xf32>
    %112 = vector.shape_cast %111 : vector<128xf32> to vector<1x128xf32>
    %113 = arith.mulf %106, %106 : vector<256x128xf32>
    %cst_125 = arith.constant dense<0.000000e+00> : vector<128xf32>
    %114 = vector.multi_reduction <add>, %113, %cst_125 [0] : vector<256x128xf32> to vector<128xf32>
    %115 = vector.shape_cast %114 : vector<128xf32> to vector<1x128xf32>
    %cst_126 = arith.constant 3.906250e-03 : f32
    %116 = vector.broadcast %cst_126 : f32 to vector<1x128xf32>
    %117 = arith.mulf %112, %116 : vector<1x128xf32>
    %cst_127 = arith.constant 2.560000e+02 : f32
    %118 = vector.broadcast %cst_127 : f32 to vector<1x128xf32>
    %119 = arith.mulf %118, %117 : vector<1x128xf32>
    %120 = arith.mulf %119, %117 : vector<1x128xf32>
    %121 = arith.subf %115, %120 : vector<1x128xf32>
    %cst_128 = arith.constant 0.00392156886 : f32
    %122 = vector.broadcast %cst_128 : f32 to vector<1x128xf32>
    %123 = arith.mulf %121, %122 : vector<1x128xf32>
    %cst_129 = arith.constant 0.000000e+00 : f32
    %124 = vector.broadcast %cst_129 : f32 to vector<1x128xf32>
    %125 = arith.maximumf %123, %124 : vector<1x128xf32>
    %126 = math.sqrt %125 : vector<1x128xf32>
    %cst_130 = arith.constant 9.99999974E-6 : f32
    %127 = vector.broadcast %cst_130 : f32 to vector<1x128xf32>
    %128 = arith.addf %126, %127 : vector<1x128xf32>
    %129 = tpu.reciprocal %128 {approx = true} : vector<1x128xf32> -> vector<1x128xf32>
    %130 = vector.broadcast %117 : vector<1x128xf32> to vector<256x128xf32>
    %131 = arith.subf %106, %130 : vector<256x128xf32>
    %132 = vector.broadcast %110 : vector<1x128xf32> to vector<256x128xf32>
    %133 = arith.mulf %132, %131 : vector<256x128xf32>
    %134 = vector.broadcast %129 : vector<1x128xf32> to vector<256x128xf32>
    %135 = arith.mulf %133, %134 : vector<256x128xf32>
    %136 = vector.broadcast %108 : vector<1x128xf32> to vector<256x128xf32>
    %137 = arith.addf %135, %136 : vector<256x128xf32>
    %c0_131 = arith.constant 0 : index
    %c1_132 = arith.constant 1 : index
    %c1_133 = arith.constant 1 : index
    %c0_134 = arith.constant 0 : index
    %138 = vector.load %arg1[%c0_131, %c1_132, %c1_133, %c0_134] : memref<1x18x18x128xbf16, #tpu.memory_space<vmem>>, vector<1x16x16x128xbf16>
    %139 = vector.shape_cast %138 : vector<1x16x16x128xbf16> to vector<16x16x128xbf16>
    %140 = vector.shape_cast %139 : vector<16x16x128xbf16> to vector<256x128xbf16>
    %141 = arith.extf %140 : vector<256x128xbf16> to vector<256x128xf32>
    %142 = arith.addf %137, %141 : vector<256x128xf32>
    %143 = vector.shape_cast %142 : vector<256x128xf32> to vector<16x16x128xf32>
    %c0_135 = arith.constant 0 : index
    %c0_136 = arith.constant 0 : index
    %c0_137 = arith.constant 0 : index
    %c0_138 = arith.constant 0 : index
    %144 = vector.load %arg8[%c0_135, %c0_136, %c0_137, %c0_138] : memref<1x16x16x128xf32, #tpu.memory_space<vmem>>, vector<1x16x16x128xf32>
    %145 = vector.shape_cast %144 : vector<1x16x16x128xf32> to vector<16x16x128xf32>
    %146 = vector.shape_cast %143 : vector<16x16x128xf32> to vector<1x16x16x128xf32>
    tpu.vector_store %arg8[%c0_135, %c0_136, %c0_137, %c0_138], %146 {strides = array<i32>} : memref<1x16x16x128xf32, #tpu.memory_space<vmem>>, vector<1x16x16x128xf32>,
    return
  }
  func.func @transform_0(%arg0: i32) -> (i32, i32, i32, i32) {
    %c0_i32 = arith.constant 0 : i32
    %c0_i32_0 = arith.constant 0 : i32
    %c0_i32_1 = arith.constant 0 : i32
    %c0_i32_2 = arith.constant 0 : i32
    return %arg0, %c0_i32, %c0_i32_0, %c0_i32_1 : i32, i32, i32, i32
  }
  func.func @transform_1(%arg0: i32) -> (i32, i32) {
    %c0_i32 = arith.constant 0 : i32
    %c0_i32_0 = arith.constant 0 : i32
    %c0_i32_1 = arith.constant 0 : i32
    return %c0_i32, %c0_i32_0 : i32, i32
  }
  func.func @transform_2(%arg0: i32) -> (i32, i32) {
    %c0_i32 = arith.constant 0 : i32
    %c0_i32_0 = arith.constant 0 : i32
    %c0_i32_1 = arith.constant 0 : i32
    return %c0_i32, %c0_i32_0 : i32, i32
  }
  func.func @transform_3(%arg0: i32) -> (i32, i32, i32) {
    %c0_i32 = arith.constant 0 : i32
    %c0_i32_0 = arith.constant 0 : i32
    %c0_i32_1 = arith.constant 0 : i32
    return %arg0, %c0_i32, %c0_i32_0 : i32, i32, i32
  }
  func.func @transform_4(%arg0: i32) -> (i32, i32, i32) {
    %c0_i32 = arith.constant 0 : i32
    %c0_i32_0 = arith.constant 0 : i32
    %c0_i32_1 = arith.constant 0 : i32
    return %arg0, %c0_i32, %c0_i32_0 : i32, i32, i32
  }
  func.func @transform_5(%arg0: i32) -> (i32, i32, i32) {
    %c0_i32 = arith.constant 0 : i32
    %c0_i32_0 = arith.constant 0 : i32
    %c0_i32_1 = arith.constant 0 : i32
    return %arg0, %c0_i32, %c0_i32_0 : i32, i32, i32
  }
  func.func @transform_6(%arg0: i32) -> (i32, i32, i32) {
    %c0_i32 = arith.constant 0 : i32
    %c0_i32_0 = arith.constant 0 : i32
    %c0_i32_1 = arith.constant 0 : i32
    return %arg0, %c0_i32, %c0_i32_0 : i32, i32, i32
  }
  func.func @transform_7(%arg0: i32) -> (i32, i32, i32, i32) {
    %c0_i32 = arith.constant 0 : i32
    %c0_i32_0 = arith.constant 0 : i32
    %c0_i32_1 = arith.constant 0 : i32
    %c0_i32_2 = arith.constant 0 : i32
    return %arg0, %c0_i32, %c0_i32_0, %c0_i32_1 : i32, i32, i32, i32
  }
}

</mosaic_0001>

<bundles_post_ra>
// kernel: res_block.1
= control target key start
LH: loop header
LB: loop body
LE: loop exit
PB: predicated region body
PF: predicated region fallthrough
CT: control target
= control target key end

     0   :  { %s13117_s24 = smov 0   ;;  %s17556_s0 = inlined_call_operand.vmem [shape: bf16[2,18,18,128], index: 0, kind: input, shape index: {}]   ;;  %s17557_s1 = inlined_call_operand.vmem [shape: bf16[1152,128], index: 1, kind: input, shape index: {}]   ;;  %s17558_s2 = inlined_call_operand.vmem [shape: bf16[1152,128], index: 2, kind: input, shape index: {}]   ;;  %s17559_s3 = inlined_call_operand.vmem [shape: f32[2,1,128], index: 3, kind: input, shape index: {}]   ;;  %s17560_s4 = inlined_call_operand.vmem [shape: f32[2,1,128], index: 4, kind: input, shape index: {}]   ;;  %s17561_s5 = inlined_call_operand.vmem [shape: f32[2,1,128], index: 5, kind: input, shape index: {}]   ;;  %s17562_s6 = inlined_call_operand.vmem [shape: f32[2,1,128], index: 6, kind: input, shape index: {}]   ;;  %s17563_s7 = inlined_call_operand.vmem [shape: f32[2,16,16,128], index: 7, kind: output, shape index: {}]  }
   0x1 LB: > { %s10859_s25 = sadd.s32 4294967295, %s13074_s24   ;;  %p10863_p0 = scmp.ge.s32.totalorder %s13074_s24, 1  ;;  %s13074_s24 = sphi %s13117_s24, %s17_s24  }
   0x2   : > { %p269_p1 = scmp.lt.s32.totalorder %s13074_s24, 3 }
   0x4   : > { %p270_p2 = pnand %p10863_p0, %p269_p1 }
   0x6   : > { %273 = sbr.rel (%p270_p2) target bundleno = 1423 (0x58f), region = 48 }
   0xd   : > { %v12820_v0 = vld [vmem:[%s17557_s1 + $0x40] sm:$0xff]   ;;  %v12824_v4 = vld [vmem:[%s17557_s1 + $0x48] sm:$0xff]   ;;  %v12828_v8 = vld [vmem:[%s17557_s1 + $0x50] sm:$0xff]   ;;  %p313_p3 = scmp.lt.s32.totalorder %s10859_s25, 1  ;;  %vm1091_vm0 = vcmask 1042432   ;;  %vm1092_vm1 = vcmask 1046532  }
   0xe   : > { %v12821_v1 = vld [vmem:[%s17557_s1 + $0xc0] sm:$0xff]   ;;  %11770 = vmatprep.subr.bf16.mxu0 %v12820_v0  ;;  %v12825_v5 = vld [vmem:[%s17557_s1 + $0xc8] sm:$0xff]   ;;  %v12829_v9 = vld [vmem:[%s17557_s1 + $0xd0] sm:$0xff]   ;;  %vm528_vm2 = vsmask.f32 3328  ;;  %v17610_v46 = vmov 0 }
   0xf   : > { %v12822_v2 = vld [vmem:[%s17557_s1] sm:$0xff]   ;;  %11882 = vmatprep.subr.bf16.mxu1 %v12821_v1  ;;  %v12826_v6 = vld [vmem:[%s17557_s1 + $0x8] sm:$0xff]   ;;  %v12830_v10 = vld [vmem:[%s17557_s1 + $0x10] sm:$0xff]   ;;  %s17837_s25 = smov (!%p313_p3, %s10859_s25), 1  ;;  %vm529_vm3 = vsmask.f32 7440 }
  0x10   : > { %v12823_v3 = vld [vmem:[%s17557_s1 + $0x80] sm:$0xff]   ;;  %11771 = vmatpush3.bf16.msra.mxu0 %v12822_v2  ;;  %v12827_v7 = vld [vmem:[%s17557_s1 + $0x88] sm:$0xff]   ;;  %v12831_v11 = vld [vmem:[%s17557_s1 + $0x90] sm:$0xff]   ;;  %s12810_s13 = smul.u32 216, %s17837_s25  ;;  %v17613_v51 = vmov 0  ;;  %s323_s16 = scalar_lea.vmem %s17560_s4, %s17837_s25  ;;  %vm5477_vm10 = vcmask 1040384  }
  0x11   : > { %11883 = vmatpush3.bf16.msra.mxu1 %v12823_v3  ;;  %11772 = vmatprep.subr.bf16.mxu0 %v12824_v4  ;;  %v12832_v12 = vld [vmem:[%s17557_s1 + $0x58] sm:$0xff]   ;;  %v12836_v16 = vld [vmem:[%s17557_s1 + $0x60] sm:$0xff]   ;;  %v12840_v20 = vld [vmem:[%s17557_s1 + $0x68] sm:$0xff]   ;;  %s320_s9 = scalar_lea.vmem %s17559_s3, %s17837_s25  ;;  %vm5146_vm8 = vsmask.f32 256  ;;  %vm5470_vm13 = vcmask 1043456   ;;  %s329_s20 = scalar_lea.vmem %s17562_s6, %s17837_s25 }
  0x12   : > { %11884 = vmatprep.subr.bf16.mxu1 %v12825_v5  ;;  %v12833_v13 = vld [vmem:[%s17557_s1 + $0xd8] sm:$0xff]   ;;  %v12837_v17 = vld [vmem:[%s17557_s1 + $0xe0] sm:$0xff]   ;;  %v12841_v21 = vld [vmem:[%s17557_s1 + $0xe8] sm:$0xff]   ;;  %s13225_s26 = scalar_lea.vmem %s17556_s0, %s12810_s13  ;;  %vm5147_vm9 = vsmask.f32 4368  ;;  %s326_s23 = scalar_lea.vmem %s17561_s5, %s17837_s25 }
  0x13   : > { %v12834_v14 = vld [vmem:[%s17557_s1 + $0x18] sm:$0xff]   ;;  %v12838_v18 = vld [vmem:[%s17557_s1 + $0x20] sm:$0xff]   ;;  %v12842_v22 = vld [vmem:[%s17557_s1 + $0x28] sm:$0xff]   ;;  %vm5471_vm14 = vsmask.f32 7938 }
  0x14   : > { %11773 = vmatpush3.bf16.msra.mxu0 %v12826_v6  ;;  %v12835_v15 = vld [vmem:[%s17557_s1 + $0x98] sm:$0xff]   ;;  %v12839_v19 = vld [vmem:[%s17557_s1 + $0xa0] sm:$0xff]   ;;  %v12843_v23 = vld [vmem:[%s17557_s1 + $0xa8] sm:$0xff]  }
  0x15   : > { %11885 = vmatpush3.bf16.msra.mxu1 %v12827_v7  ;;  %11774 = vmatprep.subr.bf16.mxu0 %v12828_v8  ;;  %v12844_v24 = vld [vmem:[%s17557_s1 + $0x70] sm:$0xff]   ;;  %v12848_v28 = vld [vmem:[%s17557_s1 + $0x78] sm:$0xff]   ;;  %v480_v32 = vld [vmem:[%s13225_s26] sm:$0xf] }
  0x16   : > { %11886 = vmatprep.subr.bf16.mxu1 %v12829_v9  ;;  %v12845_v25 = vld [vmem:[%s17557_s1 + $0xf0] sm:$0xff]   ;;  %v12849_v29 = vld [vmem:[%s17557_s1 + $0xf8] sm:$0xff]   ;;  %v481_v33 = vld [vmem:[%s13225_s26 + $0x4] sm:$0xf]  ;;  %v532_v35 = vshrl.u32 %v480_v32, 16  ;;  %v535_v36 = vshll.u32 %v480_v32, 16 }
  0x17   : > { %v12846_v26 = vld [vmem:[%s17557_s1 + $0x30] sm:$0xff]   ;;  %v12850_v30 = vld [vmem:[%s17557_s1 + $0x38] sm:$0xff]   ;;  %v482_v34 = vld [vmem:[%s13225_s26 + $0x8] sm:$0x1]  ;;  %v541_v37 = vshll.u32 %v481_v33, 16  ;;  %v545_v38 = vshrl.u32 %v481_v33, 16 }
  0x18   : > { %11775 = vmatpush3.bf16.msra.mxu0 %v12830_v10  ;;  %v12847_v27 = vld [vmem:[%s17557_s1 + $0xb0] sm:$0xff]   ;;  %v12851_v31 = vld [vmem:[%s17557_s1 + $0xb8] sm:$0xff]   ;;  %v551_v39 = vshll.u32 %v482_v34, 16  ;;  %v534_v41 = vrot.slane %v532_v35, 4  ;;  %v537_v42 = vrot.slane %v535_v36, 5  ;;  %vm13239_vm4 = vmor %vm1091_vm0, %vm1092_vm1 }
  0x19   : > { %11887 = vmatpush3.bf16.msra.mxu1 %v12831_v11  ;;  %11776 = vmatprep.subr.bf16.mxu0 %v12832_v12  ;;  %v12852_v40 = vld [vmem:[%s13225_s26 + $0xc] sm:$0xff]   ;;  %v543_v43 = vrot.slane %v541_v37, 5  ;;  %v547_v44 = vrot.slane %v545_v38, 4  ;;  %v17611_v46 = vsel %vm13239_vm4, 4294967295, %v17610_v46  ;;  %v995_v48 = vld [vmem:[%s13225_s26] sm:$0xe]  ;;  %vm13248_vm5 = vmor %vm528_vm2, %vm529_vm3 }
  0x1a   : > { %11888 = vmatprep.subr.bf16.mxu1 %v12833_v13  ;;  %v553_v45 = vrot.slane %v551_v39, 5  ;;  %4089 = vmatprep.mubr.bf16.mxu1 %v12852_v40  ;;  %17612 = vst [vmem:[#allocation4_spill] sm:$0xff] %v17611_v46  ;;  %v538_v47 = vor.u32 %v537_v42, %v534_v41  ;;  %v996_v49 = vld [vmem:[%s13225_s26 + $0x4] sm:$0xf]  ;;  %v997_v50 = vld [vmem:[%s13225_s26 + $0x8] sm:$0x1]  ;;  %vm15225_vm11 = vmor %vm5146_vm8, %vm5147_vm9 }
  0x1b   : > { %v17614_v51 = vsel %vm13248_vm5, 4294967295, %v17613_v51  ;;  %v548_v52 = vor.u32 %v547_v44, %v543_v43  ;;  %v10899_v53 = vrot.slane %v995_v48, 9  ;;  %v1096_v54 = vrot.slane %v996_v49, 5  ;;  %v12854_v56 = vld [vmem:[%s17557_s1 + $0x140] sm:$0xff]   ;;  %v483_v62 = vld [vmem:[%s13225_s26 + $0xc] sm:$0xf]  ;;  %vm15235_vm12 = vmand %vm5477_vm10, %vm5146_vm8 }
  0x1c   : > { %11777 = vmatpush3.bf16.msra.mxu0 %v12834_v14  ;;  %17615 = vst [vmem:[#allocation5_spill] sm:$0xff] %v17614_v51  ;;  %v1099_v55 = vrot.slane %v997_v50, 5  ;;  %v539_v57 = vrot.slane %v538_v47, 4  ;;  %v12853_v59 = vld [vmem:[%s13225_s26] sm:$0xff]   ;;  %v484_v0 = vld [vmem:[%s13225_s26 + $0x10] sm:$0xf]  ;;  %vm15583_vm15 = vmand %vm5470_vm13, %vm5471_vm14 }
  0x1d   : > { %11889 = vmatpush3.bf16.msra.mxu1 %v12835_v15  ;;  %11778 = vmatprep.subr.bf16.mxu0 %v12836_v16  ;;  %v549_v58 = vrot.slane %v548_v52, 4  ;;  %v1097_v60 = vsel %vm13239_vm4, %v10899_v53, %v1096_v54  ;;  %v1098_v61 = vrot.slane %v1096_v54, 4  ;;  %v485_v1 = vld [vmem:[%s13225_s26 + $0x14] sm:$0x1]  ;;  %v556_v2 = vshrl.u32 %v483_v62, 16  ;;  %v12855_v10 = vld [vmem:[%s17557_s1 + $0x100] sm:$0xff]  }
  0x1e   : > { %11890 = vmatprep.subr.bf16.mxu1 %v12837_v17  ;;  %v544_v63 = vsel %vm13248_vm5, %v539_v57, %v543_v43  ;;  %v559_v3 = vshll.u32 %v483_v62, 16  ;;  %v565_v6 = vshll.u32 %v484_v0, 16  ;;  %v569_v7 = vshrl.u32 %v484_v0, 16  ;;  %v12856_v13 = vld [vmem:[%s13225_s26 + $0x18] sm:$0xff]   ;;  %v12858_v35 = vld [vmem:[%s13225_s26 + $0x24] sm:$0xff]  }
  0x1f   : > { %v554_v4 = vsel %vm13248_vm5, %v549_v58, %v553_v45  ;;  %v1100_v5 = vsel %vm13239_vm4, %v1098_v61, %v1099_v55  ;;  %v558_v11 = vrot.slane %v556_v2, 4  ;;  %v575_v16 = vshll.u32 %v485_v1, 16  ;;  %v12860_v36 = vld [vmem:[%s17557_s1 + $0x148] sm:$0xff]   ;;  %v1001_v52 = vld [vmem:[%s13225_s26 + $0x18] sm:$0xe] }
  0x20   : > { %11779 = vmatpush3.bf16.msra.mxu0 %v12838_v18  ;;  %v10883_v8 = vcombine.low %v544_v63, %v554_v4  ;;  %v10915_v9 = vcombine.low %v1097_v60, %v1100_v5  ;;  %v561_v12 = vrot.slane %v559_v3, 5  ;;  %v567_v14 = vrot.slane %v565_v6, 5  ;;  %v998_v18 = vld [vmem:[%s13225_s26 + $0xc] sm:$0xe]  ;;  %v1002_v53 = vld [vmem:[%s13225_s26 + $0x1c] sm:$0xf] }
  0x21   : > { %11891 = vmatpush3.bf16.msra.mxu1 %v12839_v19  ;;  %11780 = vmatprep.subr.bf16.mxu0 %v12840_v20  ;;  %v571_v15 = vrot.slane %v569_v7, 4  ;;  %v999_v19 = vld [vmem:[%s13225_s26 + $0x10] sm:$0xf]  ;;  %v1000_v20 = vld [vmem:[%s13225_s26 + $0x14] sm:$0x1]  ;;  %v12861_v41 = vld [vmem:[%s17557_s1 + $0x108] sm:$0xff]  }
  0x22   : > { %11892 = vmatprep.subr.bf16.mxu1 %v12841_v21  ;;  %3928 = vmatprep.mubr.bf16.mxu0 %v10883_v8  ;;  %v562_v17 = vor.u32 %v561_v12, %v558_v11  ;;  %v1003_v55 = vld [vmem:[%s13225_s26 + $0x20] sm:$0x1]  ;;  %v1110_v57 = vrot.slane %v1002_v53, 5  ;;  %v489_v1 = vld [vmem:[%s13225_s26 + $0x24] sm:$0xf]  ;;  %v12859_v4 = vld [vmem:[%s13225_s26 + $0x18] sm:$0xff]  }
  0x23   : > { %v572_v21 = vor.u32 %v571_v15, %v567_v14  ;;  %v490_v2 = vld [vmem:[%s13225_s26 + $0x28] sm:$0xf]  ;;  %v491_v6 = vld [vmem:[%s13225_s26 + $0x2c] sm:$0x1]  ;;  %v604_v7 = vshrl.u32 %v489_v1, 16  ;;  %v607_v8 = vshll.u32 %v489_v1, 16 }
  0x24   : > { %11781 = vmatpush3.bf16.msra.mxu0 %v12842_v22  ;;  %v577_v22 = vrot.slane %v575_v16, 5  ;;  %v1112_v63 = vrot.slane %v1110_v57, 4  ;;  %v613_v12 = vshll.u32 %v490_v2, 16 }
  0x25   : > { %11893 = vmatpush3.bf16.msra.mxu1 %v12843_v23  ;;  %11782 = vmatprep.subr.bf16.mxu0 %v12844_v24  ;;  %v10900_v23 = vrot.slane %v998_v18, 9  ;;  %v1103_v24 = vrot.slane %v999_v19, 5  ;;  %v606_v15 = vrot.slane %v604_v7, 4  ;;  %v609_v16 = vrot.slane %v607_v8, 5  ;;  %v12866_v18 = vld [vmem:[%s17557_s1 + $0x150] sm:$0xff]  }
  0x26   : > { %11894 = vmatprep.subr.bf16.mxu1 %v12845_v25  ;;  %v486_v25 = vld [vmem:[%s13225_s26 + $0x18] sm:$0xf]  ;;  %v496_v8 = vld [vmem:[%s13225_s26 + $0x40] sm:$0xf] }
  0x27   : > { %v1104_v32 = vsel %vm13239_vm4, %v10900_v23, %v1103_v24  ;;  %v1105_v33 = vrot.slane %v1103_v24, 4  ;;  %v580_v34 = vshrl.u32 %v486_v25, 16  ;;  %v583_v38 = vshll.u32 %v486_v25, 16  ;;  %v1005_v25 = vld [vmem:[%s13225_s26 + $0x28] sm:$0xf] }
  0x28   : > { %11783 = vmatpush3.bf16.msra.mxu0 %v12846_v26  ;;  %v563_v26 = vrot.slane %v562_v17, 4  ;;  %v623_v17 = vshll.u32 %v491_v6, 16  ;;  %v610_v23 = vor.u32 %v609_v16, %v606_v15  ;;  %v665_v15 = vshrl.u32 %v496_v8, 16 }
  0x29   : > { %11895 = vmatpush3.bf16.msra.mxu1 %v12847_v27  ;;  %11784 = vmatprep.subr.bf16.mxu0 %v12848_v28  ;;  %v1106_v27 = vrot.slane %v1000_v20, 5  ;;  %v487_v28 = vld [vmem:[%s13225_s26 + $0x1c] sm:$0xf]  ;;  %v582_v44 = vrot.slane %v580_v34, 4  ;;  %v585_v49 = vrot.slane %v583_v38, 5  ;;  %v615_v20 = vrot.slane %v613_v12, 5 }
  0x2a   : > { %11896 = vmatprep.subr.bf16.mxu1 %v12849_v29  ;;  %v488_v29 = vld [vmem:[%s13225_s26 + $0x20] sm:$0x1]  ;;  %v568_v37 = vsel %vm13248_vm5, %v563_v26, %v567_v14  ;;  %v589_v39 = vshll.u32 %v487_v28, 16  ;;  %v593_v40 = vshrl.u32 %v487_v28, 16  ;;  %v625_v24 = vrot.slane %v623_v17, 5 }
  0x2b   : > { %v1107_v43 = vsel %vm13239_vm4, %v1105_v33, %v1106_v27  ;;  %v599_v45 = vshll.u32 %v488_v29, 16  ;;  %v586_v58 = vor.u32 %v585_v49, %v582_v44  ;;  %v1006_v26 = vld [vmem:[%s13225_s26 + $0x2c] sm:$0x1]  ;;  %v1117_v29 = vrot.slane %v1005_v25, 5  ;;  %v494_v34 = vld [vmem:[%s13225_s26 + $0x38] sm:$0x1] }
  0x2c   : > { %11785 = vmatpush3.bf16.msra.mxu0 %v12850_v30  ;;  %v573_v30 = vrot.slane %v572_v21, 4  ;;  %v10916_v48 = vcombine.low %v1104_v32, %v1107_v43  ;;  %v591_v50 = vrot.slane %v589_v39, 5  ;;  %v595_v54 = vrot.slane %v593_v40, 4  ;;  %v493_v32 = vld [vmem:[%s13225_s26 + $0x34] sm:$0xf]  ;;  %v12863_v44 = vld [vmem:[%s13225_s26 + $0x24] sm:$0xff]  }
  0x2d   : > { %11897 = vmatpush3.bf16.msra.mxu1 %v12851_v31  ;;  %11994 = vmatprep.subr.bf16.mxu0 %v12854_v56  ;;  %v12857_v31 = vld [vmem:[%s13225_s26 + $0xc] sm:$0xff]   ;;  %v10901_v56 = vrot.slane %v1001_v52, 9  ;;  %v601_v61 = vrot.slane %v599_v45, 5  ;;  %v587_v0 = vrot.slane %v586_v58, 4  ;;  %v611_v33 = vrot.slane %v610_v23, 4  ;;  %v12864_v49 = vld [vmem:[%s13225_s26 + $0x3c] sm:$0xff]  }
  0x2e   : > { %v578_v42 = vsel %vm13248_vm5, %v573_v30, %v577_v22  ;;  %v596_v60 = vor.u32 %v595_v54, %v591_v50  ;;  %v1004_v22 = vld [vmem:[%s13225_s26 + $0x24] sm:$0xe]  ;;  %v1120_v30 = vrot.slane %v1006_v26, 5  ;;  %v1119_v40 = vrot.slane %v1117_v29, 4  ;;  %v1007_v58 = vld [vmem:[%s13225_s26 + $0x30] sm:$0xe] }
  0x2f   : > { %3929 = vmatmul.mubr.bf16.vlgmr.msra.gmra.mrb[0].mxu0 %v12853_v59  ;;  %v10884_v47 = vcombine.low %v568_v37, %v578_v42  ;;  %v1113_v59 = vrot.slane %v1003_v55, 5  ;;  %v1111_v62 = vsel %vm13239_vm4, %v10901_v56, %v1110_v57  ;;  %v10902_v27 = vrot.slane %v1004_v22, 9  ;;  %v12867_v42 = vld [vmem:[%s17557_s1 + $0x110] sm:$0xff]   ;;  %v12868_v26 = vld [vmem:[%s13225_s26 + $0x48] sm:$0xff]  }
  0x30   : > { %4090 = vmatmul.mubr.bf16.vlgmr.msra.gmra.mrb[0].mxu1 %v10915_v9  ;;  %11995 = vmatpush3.bf16.msra.mxu0 %v12855_v10  ;;  %v597_v3 = vrot.slane %v596_v60, 4  ;;  %v12862_v9 = vld [vmem:[%s13225_s26 + $0x30] sm:$0xff]   ;;  %v592_v10 = vsel %vm13248_vm5, %v587_v0, %v591_v50  ;;  %v637_v37 = vshll.u32 %v493_v32, 16  ;;  %v616_v43 = vsel %vm13248_vm5, %v611_v33, %v615_v20  ;;  %v1009_v60 = vld [vmem:[%s13225_s26 + $0x38] sm:$0x1] }
  0x31   : > { %4097 = vmatprep.mubr.bf16.mxu1 %v12856_v13  ;;  %11996 = vmatprep.subr.bf16.mxu0 %v12860_v36  ;;  %v1114_v5 = vsel %vm13239_vm4, %v1112_v63, %v1113_v59  ;;  %v617_v13 = vshrl.u32 %v490_v2, 16  ;;  %v1118_v39 = vsel %vm13239_vm4, %v10902_v27, %v1117_v29  ;;  %v1121_v52 = vsel %vm13239_vm4, %v1119_v40, %v1120_v30  ;;  %v1008_v59 = vld [vmem:[%s13225_s26 + $0x34] sm:$0xf]  ;;  %v1011_v27 = vld [vmem:[%s13225_s26 + $0x40] sm:$0xf] }
  0x32   : > { %3936 = vmatprep.mubr.bf16.mxu0 %v10884_v47  ;;  %v10917_v11 = vcombine.low %v1111_v62, %v1114_v5  ;;  %v602_v14 = vsel %vm13248_vm5, %v597_v3, %v601_v61  ;;  %v647_v54 = vshll.u32 %v494_v34, 16  ;;  %v10918_v56 = vcombine.low %v1118_v39, %v1121_v52  ;;  %v495_v5 = vld [vmem:[%s13225_s26 + $0x3c] sm:$0xf]  ;;  %v498_v34 = vld [vmem:[%s13225_s26 + $0x48] sm:$0xf] }
  0x33   : > { %v10885_v19 = vcombine.low %v592_v10, %v602_v14  ;;  %v619_v21 = vrot.slane %v617_v13, 4  ;;  %v10903_v63 = vrot.slane %v1007_v58, 9  ;;  %v1124_v0 = vrot.slane %v1008_v59, 5  ;;  %v1013_v58 = vld [vmem:[%s13225_s26 + $0x48] sm:$0xe] }
  0x34   : > { %11997 = vmatpush3.bf16.msra.mxu0 %v12861_v41  ;;  %v641_v41 = vshrl.u32 %v493_v32, 16  ;;  %v649_v62 = vrot.slane %v647_v54, 5  ;;  %v1127_v2 = vrot.slane %v1009_v60, 5  ;;  %v652_v10 = vshrl.u32 %v495_v5, 16  ;;  %v1014_v59 = vld [vmem:[%s13225_s26 + $0x4c] sm:$0xf] }
  0x35   : > { %11998 = vmatprep.subr.bf16.mxu0 %v12866_v18  ;;  %v620_v28 = vor.u32 %v619_v21, %v615_v20  ;;  %v1125_v7 = vsel %vm13239_vm4, %v10903_v63, %v1124_v0  ;;  %v661_v14 = vshll.u32 %v496_v8, 16  ;;  %v667_v22 = vrot.slane %v665_v15, 4  ;;  %v12869_v60 = vld [vmem:[%s13225_s26 + $0x3c] sm:$0xff]   ;;  %v12870_v63 = vld [vmem:[%s13225_s26 + $0x54] sm:$0xff]  }
  0x36   : > { %v643_v53 = vrot.slane %v641_v41, 4  ;;  %v654_v17 = vrot.slane %v652_v10, 4  ;;  %v1131_v32 = vrot.slane %v1011_v27, 5  ;;  %v676_v39 = vshrl.u32 %v498_v34, 16  ;;  %v501_v10 = vld [vmem:[%s13225_s26 + $0x54] sm:$0xf] }
  0x37   : > { %3937 = vmatmul.mubr.bf16.gmra.mrb[4].mxu0 %v12857_v31  ;;  %v492_v31 = vld [vmem:[%s13225_s26 + $0x30] sm:$0xf]  ;;  %v621_v38 = vrot.slane %v620_v28, 4  ;;  %v663_v21 = vrot.slane %v661_v14, 5  ;;  %v1012_v28 = vld [vmem:[%s13225_s26 + $0x44] sm:$0x1] }
  0x38   : > { %4098 = vmatmul.mubr.bf16.gmra.mrb[4].mxu1 %v10916_v48  ;;  %3944 = vmatprep.mubr.bf16.mxu0 %v10885_v19  ;;  %v631_v36 = vshll.u32 %v492_v31, 16  ;;  %v639_v48 = vrot.slane %v637_v37, 5  ;;  %v12865_v19 = vld [vmem:[%s13225_s26 + $0x30] sm:$0xff]   ;;  %v1134_v33 = vrot.slane %v1012_v28, 5  ;;  %v499_v37 = vld [vmem:[%s13225_s26 + $0x4c] sm:$0xf] }
  0x39   : > { %4105 = vmatprep.mubr.bf16.mxu1 %v12858_v35  ;;  %v628_v35 = vshrl.u32 %v492_v31, 16  ;;  %v626_v50 = vsel %vm13248_vm5, %v621_v38, %v625_v24  ;;  %11999 = vmatpush3.bf16.msra.mxu0 %v12867_v42  ;;  %v1010_v24 = vld [vmem:[%s13225_s26 + $0x3c] sm:$0xe]  ;;  %v668_v30 = vor.u32 %v667_v22, %v663_v21  ;;  %v500_v38 = vld [vmem:[%s13225_s26 + $0x50] sm:$0x1]  ;;  %v1133_v42 = vrot.slane %v1131_v32, 4 }
  0x3a   : > { %v633_v47 = vrot.slane %v631_v36, 5  ;;  %v10886_v55 = vcombine.low %v616_v43, %v626_v50  ;;  %v644_v61 = vor.u32 %v643_v53, %v639_v48  ;;  %v10904_v29 = vrot.slane %v1010_v24, 9  ;;  %v503_v14 = vld [vmem:[%s13225_s26 + $0x5c] sm:$0x1]  ;;  %v12878_v24 = vld [vmem:[%s17557_s1 + $0x160] sm:$0xff]  }
  0x3b   : > { %v630_v45 = vrot.slane %v628_v35, 4  ;;  %v12872_v35 = vld [vmem:[%s17557_s1 + $0x158] sm:$0xff]   ;;  %v669_v40 = vrot.slane %v668_v30, 4  ;;  %v679_v43 = vshll.u32 %v498_v34, 16  ;;  %v1135_v52 = vsel %vm13239_vm4, %v1133_v42, %v1134_v33  ;;  %v1016_v30 = vld [vmem:[%s13225_s26 + $0x54] sm:$0xe] }
  0x3c   : > { %v645_v3 = vrot.slane %v644_v61, 4  ;;  %v1132_v41 = vsel %vm13239_vm4, %v10904_v29, %v1131_v32  ;;  %12000 = vmatprep.subr.bf16.mxu0 %v12872_v35  ;;  %v695_v54 = vshll.u32 %v500_v38, 16  ;;  %v700_v15 = vshrl.u32 %v501_v10, 16  ;;  %v12874_v29 = vld [vmem:[%s13225_s26 + $0x60] sm:$0xff]   ;;  %v1018_v34 = vld [vmem:[%s13225_s26 + $0x5c] sm:$0x1] }
  0x3d   : > { %v634_v57 = vor.u32 %v633_v47, %v630_v45  ;;  %v678_v47 = vrot.slane %v676_v39, 4  ;;  %v681_v53 = vrot.slane %v679_v43, 5  ;;  %v10920_v61 = vcombine.low %v1132_v41, %v1135_v52  ;;  %v505_v41 = vld [vmem:[%s13225_s26 + $0x64] sm:$0xf] }
  0x3e   : > { %v650_v12 = vsel %vm13248_vm5, %v645_v3, %v649_v62  ;;  %v10906_v35 = vrot.slane %v1016_v30, 9  ;;  %v1148_v39 = vrot.slane %v1018_v34, 5  ;;  %v12880_v42 = vld [vmem:[%s17557_s1 + $0x120] sm:$0xff]   ;;  %v733_v52 = vshll.u32 %v505_v41, 16  ;;  %v1022_v30 = vld [vmem:[%s13225_s26 + $0x6c] sm:$0xe] }
  0x3f   : > { %3945 = vmatmul.mubr.bf16.gmra.mrb[8].mxu0 %v12859_v4  ;;  %v635_v1 = vrot.slane %v634_v57, 4  ;;  %v1126_v4 = vrot.slane %v1124_v0, 4  ;;  %v682_v62 = vor.u32 %v681_v53, %v678_v47  ;;  %v1015_v0 = vld [vmem:[%s13225_s26 + $0x50] sm:$0x1]  ;;  %v737_v53 = vshrl.u32 %v505_v41, 16 }
  0x40   : > { %4106 = vmatmul.mubr.bf16.gmra.mrb[8].mxu1 %v10917_v11  ;;  %3952 = vmatprep.mubr.bf16.mxu0 %v10886_v55  ;;  %v655_v11 = vshll.u32 %v495_v5, 16  ;;  %v1141_v5 = vrot.slane %v1015_v0, 5 }
  0x41   : > { %4113 = vmatprep.mubr.bf16.mxu1 %v12862_v9  ;;  %v640_v6 = vsel %vm13248_vm5, %v635_v1, %v639_v48  ;;  %v497_v9 = vld [vmem:[%s13225_s26 + $0x44] sm:$0x1]  ;;  %v1128_v13 = vsel %vm13239_vm4, %v1126_v4, %v1127_v2  ;;  %v685_v48 = vshll.u32 %v499_v37, 16  ;;  %v10905_v1 = vrot.slane %v1013_v58, 9 }
  0x42   : > { %v10887_v16 = vcombine.low %v640_v6, %v650_v12  ;;  %v657_v18 = vrot.slane %v655_v11, 5  ;;  %v10919_v20 = vcombine.low %v1125_v7, %v1128_v13  ;;  %v671_v23 = vshll.u32 %v497_v9, 16  ;;  %v502_v11 = vld [vmem:[%s13225_s26 + $0x58] sm:$0xf] }
  0x43   : > { %v1138_v2 = vrot.slane %v1014_v59, 5  ;;  %v697_v4 = vrot.slane %v695_v54, 5  ;;  %v683_v6 = vrot.slane %v682_v62, 4  ;;  %v1019_v62 = vld [vmem:[%s13225_s26 + $0x60] sm:$0xe]  ;;  %v739_v0 = vrot.slane %v737_v53, 4 }
  0x44   : > { %v658_v25 = vor.u32 %v657_v18, %v654_v17  ;;  %v673_v31 = vrot.slane %v671_v23, 5  ;;  %v709_v18 = vshll.u32 %v502_v11, 16  ;;  %v719_v23 = vshll.u32 %v503_v14, 16  ;;  %v12886_v53 = vld [vmem:[%s17557_s1 + $0x168] sm:$0xff]  }
  0x45   : > { %v1140_v7 = vrot.slane %v1138_v2, 4  ;;  %v1139_v9 = vsel %vm13239_vm4, %v10905_v1, %v1138_v2  ;;  %v1020_v2 = vld [vmem:[%s13225_s26 + $0x64] sm:$0xf] }
  0x46   : > { %v659_v36 = vrot.slane %v658_v25, 4  ;;  %v674_v50 = vsel %vm13248_vm5, %v669_v40, %v673_v31  ;;  %v12871_v25 = vld [vmem:[%s13225_s26 + $0x48] sm:$0xff]   ;;  %v711_v27 = vrot.slane %v709_v18, 5  ;;  %v1017_v31 = vld [vmem:[%s13225_s26 + $0x58] sm:$0xf]  ;;  %v721_v33 = vrot.slane %v719_v23, 5 }
  0x47   : > { %3953 = vmatmul.mubr.bf16.gmra.mrb[12].mxu0 %v12863_v44  ;;  %v12873_v44 = vld [vmem:[%s17557_s1 + $0x118] sm:$0xff]   ;;  %v1142_v13 = vsel %vm13239_vm4, %v1140_v7, %v1141_v5  ;;  %v504_v40 = vld [vmem:[%s13225_s26 + $0x60] sm:$0xf]  ;;  %v10907_v7 = vrot.slane %v1019_v62, 9  ;;  %v508_v18 = vld [vmem:[%s13225_s26 + $0x70] sm:$0xf] }
  0x48   : > { %4114 = vmatmul.mubr.bf16.gmra.mrb[12].mxu1 %v10918_v56  ;;  %3960 = vmatprep.mubr.bf16.mxu0 %v10887_v16  ;;  %v664_v45 = vsel %vm13248_vm5, %v659_v36, %v663_v21  ;;  %v687_v56 = vrot.slane %v685_v48, 5  ;;  %v703_v16 = vshll.u32 %v501_v10, 16  ;;  %v702_v21 = vrot.slane %v700_v15, 4  ;;  %v12881_v48 = vld [vmem:[%s17557_s1 + $0x180] sm:$0xff]  }
  0x49   : > { %4121 = vmatprep.mubr.bf16.mxu1 %v12864_v49  ;;  %v689_v49 = vshrl.u32 %v499_v37, 16  ;;  %12001 = vmatpush3.bf16.msra.mxu0 %v12873_v44  ;;  %v10888_v55 = vcombine.low %v664_v45, %v674_v50  ;;  %v1145_v36 = vrot.slane %v1017_v31, 5  ;;  %v12879_v37 = vld [vmem:[%s17557_s1 + $0x1c0] sm:$0xff]   ;;  %v506_v45 = vld [vmem:[%s13225_s26 + $0x68] sm:$0x1]  ;;  %v724_v47 = vshrl.u32 %v504_v40, 16 }
  0x4a   : > { %v688_v12 = vsel %vm13248_vm5, %v683_v6, %v687_v56  ;;  %v705_v22 = vrot.slane %v703_v16, 5  ;;  %12002 = vmatprep.subr.bf16.mxu0 %v12878_v24  ;;  %12106 = vmatprep.subr.bf16.mxu1 %v12879_v37  ;;  %v727_v50 = vshll.u32 %v504_v40, 16  ;;  %v12876_v6 = vld [vmem:[%s13225_s26 + $0x6c] sm:$0xff]   ;;  %v12877_v31 = vld [vmem:[%s13225_s26 + $0x60] sm:$0xff]   ;;  %v10908_v40 = vrot.slane %v1022_v30, 9 }
  0x4b   : > { %v691_v57 = vrot.slane %v689_v49, 4  ;;  %v1147_v44 = vrot.slane %v1145_v36, 4  ;;  %12107 = vmatpush3.bf16.msra.mxu1 %v12881_v48 }
  0x4c   : > { %v706_v32 = vor.u32 %v705_v22, %v702_v21 }
  0x4d   : > { %v692_v3 = vor.u32 %v691_v57, %v687_v56  ;;  %12003 = vmatpush3.bf16.msra.mxu0 %v12880_v42  ;;  %v726_v56 = vrot.slane %v724_v47, 4  ;;  %v743_v57 = vshll.u32 %v506_v45, 16  ;;  %v1149_v59 = vsel %vm13239_vm4, %v1147_v44, %v1148_v39  ;;  %v1024_v39 = vld [vmem:[%s13225_s26 + $0x74] sm:$0x1]  ;;  %v510_v42 = vld [vmem:[%s13225_s26 + $0x78] sm:$0xf] }
  0x4e   : > { %v707_v43 = vrot.slane %v706_v32, 4  ;;  %v1162_v44 = vrot.slane %v1024_v39, 5  ;;  %v511_v45 = vld [vmem:[%s13225_s26 + $0x7c] sm:$0xf]  ;;  %v512_v47 = vld [vmem:[%s13225_s26 + $0x80] sm:$0x1]  ;;  %12004 = vmatprep.subr.bf16.mxu0 %v12886_v53 }
  0x4f   : > { %3961 = vmatmul.mubr.bf16.gmra.mrb[16].mxu0 %v12865_v19  ;;  %v693_v8 = vrot.slane %v692_v3, 4  ;;  %v713_v19 = vshrl.u32 %v502_v11, 16  ;;  %v745_v1 = vrot.slane %v743_v57, 5  ;;  %v1021_v3 = vld [vmem:[%s13225_s26 + $0x68] sm:$0x1]  ;;  %v772_v48 = vshrl.u32 %v510_v42, 16 }
  0x50   : > { %4122 = vmatmul.mubr.bf16.gmra.mrb[16].mxu1 %v10919_v20  ;;  %3968 = vmatprep.mubr.bf16.mxu0 %v10888_v55  ;;  %v712_v54 = vsel %vm13248_vm5, %v707_v43, %v711_v27  ;;  %v1146_v55 = vsel %vm13239_vm4, %v10906_v35, %v1145_v36  ;;  %v12882_v35 = vld [vmem:[%s13225_s26 + $0x78] sm:$0xff]   ;;  %v1023_v36 = vld [vmem:[%s13225_s26 + $0x70] sm:$0xf]  ;;  %v785_v57 = vshrl.u32 %v511_v45, 16 }
  0x51   : > { %4129 = vmatprep.mubr.bf16.mxu1 %v12868_v26  ;;  %v698_v17 = vsel %vm13248_vm5, %v693_v8, %v697_v4  ;;  %v10921_v26 = vcombine.low %v1139_v9, %v1142_v13  ;;  %v715_v28 = vrot.slane %v713_v19, 4  ;;  %v12875_v4 = vld [vmem:[%s13225_s26 + $0x54] sm:$0xff]   ;;  %v1152_v8 = vrot.slane %v1020_v2, 5 }
  0x52   : > { %v10889_v20 = vcombine.low %v688_v12, %v698_v17  ;;  %v1155_v9 = vrot.slane %v1021_v3, 5  ;;  %v10922_v10 = vcombine.low %v1146_v55, %v1149_v59  ;;  %v507_v17 = vld [vmem:[%s13225_s26 + $0x6c] sm:$0xf]  ;;  %v509_v19 = vld [vmem:[%s13225_s26 + $0x74] sm:$0x1]  ;;  %v1159_v41 = vrot.slane %v1023_v36, 5 }
  0x53   : > { %v716_v38 = vor.u32 %v715_v28, %v711_v27  ;;  %v1154_v13 = vrot.slane %v1152_v8, 4  ;;  %v1153_v16 = vsel %vm13239_vm4, %v10907_v7, %v1152_v8  ;;  %v748_v22 = vshrl.u32 %v507_v17, 16  ;;  %v1025_v2 = vld [vmem:[%s13225_s26 + $0x78] sm:$0xe]  ;;  %v1026_v3 = vld [vmem:[%s13225_s26 + $0x7c] sm:$0xf] }
  0x54   : > { %v751_v23 = vshll.u32 %v507_v17, 16  ;;  %v767_v27 = vshll.u32 %v509_v19, 16  ;;  %v774_v55 = vrot.slane %v772_v48, 4  ;;  %v1160_v59 = vsel %vm13239_vm4, %v10908_v40, %v1159_v41  ;;  %v1027_v7 = vld [vmem:[%s13225_s26 + $0x80] sm:$0x1]  ;;  %v12888_v19 = vld [vmem:[%s17557_s1 + $0x128] sm:$0xff]  }
  0x55   : > { %v717_v49 = vrot.slane %v716_v38, 4  ;;  %v1156_v21 = vsel %vm13239_vm4, %v1154_v13, %v1155_v9  ;;  %v750_v28 = vrot.slane %v748_v22, 4  ;;  %v10909_v8 = vrot.slane %v1025_v2, 9  ;;  %v12883_v9 = vld [vmem:[%s13225_s26 + $0x6c] sm:$0xff]   ;;  %v513_v22 = vld [vmem:[%s13225_s26 + $0x84] sm:$0xf]  ;;  %12005 = vmatpush3.bf16.msra.mxu0 %v12888_v19 }
  0x56   : > { %v769_v34 = vrot.slane %v767_v27, 5  ;;  %v10923_v37 = vcombine.low %v1153_v16, %v1156_v21  ;;  %v1169_v13 = vrot.slane %v1027_v7, 5  ;;  %v12887_v16 = vld [vmem:[%s17557_s1 + $0x1c8] sm:$0xff]   ;;  %v799_v27 = vshll.u32 %v513_v22, 16  ;;  %v12896_v19 = vld [vmem:[%s17557_s1 + $0x130] sm:$0xff]  }
  0x57   : > { %3969 = vmatmul.mubr.bf16.gmra.mrb[20].mxu0 %v12869_v60  ;;  %v722_v58 = vsel %vm13248_vm5, %v717_v49, %v721_v33  ;;  %v729_v60 = vrot.slane %v727_v50, 5  ;;  %v1161_v50 = vrot.slane %v1159_v41, 4  ;;  %12108 = vmatprep.subr.bf16.mxu1 %v12887_v16  ;;  %v12890_v41 = vld [vmem:[%s13225_s26 + $0x90] sm:$0xff]  }
  0x58   : > { %4130 = vmatmul.mubr.bf16.gmra.mrb[20].mxu1 %v10920_v61  ;;  %3976 = vmatprep.mubr.bf16.mxu0 %v10889_v20  ;;  %v735_v61 = vrot.slane %v733_v52, 5  ;;  %v775_v52 = vshll.u32 %v510_v42, 16  ;;  %v1028_v42 = vld [vmem:[%s13225_s26 + $0x84] sm:$0xe] }
  0x59   : > { %4137 = vmatprep.mubr.bf16.mxu1 %v12870_v63  ;;  %v10890_v63 = vcombine.low %v712_v54, %v722_v58  ;;  %v730_v5 = vor.u32 %v729_v60, %v726_v56  ;;  %v781_v56 = vshll.u32 %v511_v45, 16  ;;  %v10910_v48 = vrot.slane %v1028_v42, 9 }
  0x5a   : > { %v740_v11 = vor.u32 %v739_v0, %v735_v61  ;;  %v777_v60 = vrot.slane %v775_v52, 5 }
  0x5b   : > { %v731_v12 = vrot.slane %v730_v5, 4  ;;  %v783_v0 = vrot.slane %v781_v56, 5 }
  0x5c   : > { %v741_v14 = vrot.slane %v740_v11, 4  ;;  %v778_v5 = vor.u32 %v777_v60, %v774_v55  ;;  %v12884_v11 = vld [vmem:[%s13225_s26 + $0x84] sm:$0xff]   ;;  %v518_v55 = vld [vmem:[%s13225_s26 + $0x98] sm:$0x1] }
  0x5d   : > { %v736_v15 = vsel %vm13248_vm5, %v731_v12, %v735_v61  ;;  %v791_v61 = vshll.u32 %v512_v47, 16  ;;  %v1166_v12 = vrot.slane %v1026_v3, 5  ;;  %v1030_v47 = vld [vmem:[%s13225_s26 + $0x8c] sm:$0x1] }
  0x5e   : > { %v746_v20 = vsel %vm13248_vm5, %v741_v14, %v745_v1  ;;  %v787_v1 = vrot.slane %v785_v57, 4  ;;  %v1176_v53 = vrot.slane %v1030_v47, 5 }
  0x5f   : > { %3977 = vmatmul.mubr.bf16.gmra.mrb[24].mxu0 %v12871_v25  ;;  %v10891_v24 = vcombine.low %v736_v15, %v746_v20  ;;  %v757_v25 = vshll.u32 %v508_v18, 16  ;;  %v779_v15 = vrot.slane %v778_v5, 4  ;;  %v12889_v20 = vld [vmem:[%s17557_s1 + $0x188] sm:$0xff]  }
  0x60   : > { %4138 = vmatmul.mubr.bf16.gmra.mrb[24].mxu1 %v10921_v26  ;;  %3984 = vmatprep.mubr.bf16.mxu0 %v10890_v63  ;;  %v761_v26 = vshrl.u32 %v508_v18, 16  ;;  %v1163_v63 = vsel %vm13239_vm4, %v1161_v50, %v1162_v44  ;;  %v1168_v18 = vrot.slane %v1166_v12, 4  ;;  %v516_v50 = vld [vmem:[%s13225_s26 + $0x90] sm:$0xf] }
  0x61   : > { %4145 = vmatprep.mubr.bf16.mxu1 %v12874_v29  ;;  %v753_v29 = vrot.slane %v751_v23, 5  ;;  %v759_v32 = vrot.slane %v757_v25, 5  ;;  %v10924_v14 = vcombine.low %v1160_v59, %v1163_v63  ;;  %v784_v21 = vsel %vm13248_vm5, %v779_v15, %v783_v0  ;;  %12109 = vmatpush3.bf16.msra.mxu1 %v12889_v20  ;;  %v515_v25 = vld [vmem:[%s13225_s26 + $0x8c] sm:$0x1]  ;;  %v12894_v59 = vld [vmem:[%s17557_s1 + $0x170] sm:$0xff]   ;;  %v12891_v15 = vld [vmem:[%s13225_s26 + $0x84] sm:$0xff]  }
  0x62   : > { %v763_v33 = vrot.slane %v761_v26, 4  ;;  %v796_v26 = vshrl.u32 %v513_v22, 16  ;;  %12006 = vmatprep.subr.bf16.mxu0 %v12894_v59  ;;  %v522_v59 = vld [vmem:[%s13225_s26 + $0xa8] sm:$0xf] }
  0x63   : > { %v754_v38 = vor.u32 %v753_v29, %v750_v28  ;;  %v1167_v29 = vsel %vm13239_vm4, %v10909_v8, %v1166_v12  ;;  %12007 = vmatpush3.bf16.msra.mxu0 %v12896_v19 }
  0x64   : > { %v764_v43 = vor.u32 %v763_v33, %v759_v32  ;;  %v798_v33 = vrot.slane %v796_v26, 4 }
  0x65   : > { %v755_v49 = vrot.slane %v754_v38, 4  ;;  %v12885_v38 = vld [vmem:[%s13225_s26 + $0x78] sm:$0xff]  }
  0x66   : > { %v765_v54 = vrot.slane %v764_v43, 4  ;;  %v1029_v43 = vld [vmem:[%s13225_s26 + $0x88] sm:$0xf] }
  0x67   : > { %3985 = vmatmul.mubr.bf16.gmra.mrb[28].mxu0 %v12875_v4  ;;  %v760_v58 = vsel %vm13248_vm5, %v755_v49, %v759_v32  ;;  %v1170_v32 = vsel %vm13239_vm4, %v1168_v18, %v1169_v13  ;;  %v1173_v49 = vrot.slane %v1029_v43, 5  ;;  %v1033_v13 = vld [vmem:[%s13225_s26 + $0x98] sm:$0x1] }
  0x68   : > { %4146 = vmatmul.mubr.bf16.gmra.mrb[28].mxu1 %v10922_v10  ;;  %3992 = vmatprep.mubr.bf16.mxu0 %v10891_v24  ;;  %v770_v62 = vsel %vm13248_vm5, %v765_v54, %v769_v34  ;;  %v788_v10 = vor.u32 %v787_v1, %v783_v0  ;;  %v514_v24 = vld [vmem:[%s13225_s26 + $0x88] sm:$0xf]  ;;  %v801_v34 = vrot.slane %v799_v27, 5  ;;  %v10925_v44 = vcombine.low %v1167_v29, %v1170_v32  ;;  %v517_v54 = vld [vmem:[%s13225_s26 + $0x94] sm:$0xf] }
  0x69   : > { %4153 = vmatprep.mubr.bf16.mxu1 %v12876_v6  ;;  %v10892_v4 = vcombine.low %v760_v58, %v770_v62  ;;  %v793_v6 = vrot.slane %v791_v61, 5  ;;  %v805_v30 = vshll.u32 %v514_v24, 16  ;;  %v1175_v57 = vrot.slane %v1173_v49, 4  ;;  %v12895_v0 = vld [vmem:[%s17557_s1 + $0x1d0] sm:$0xff]   ;;  %v519_v29 = vld [vmem:[%s13225_s26 + $0x9c] sm:$0xf] }
  0x6a   : > { %v789_v17 = vrot.slane %v788_v10, 4  ;;  %v802_v39 = vor.u32 %v801_v34, %v798_v33  ;;  %v820_v58 = vshrl.u32 %v516_v50, 16  ;;  %v823_v61 = vshll.u32 %v516_v50, 16  ;;  %v1032_v10 = vld [vmem:[%s13225_s26 + $0x94] sm:$0xf]  ;;  %12110 = vmatprep.subr.bf16.mxu1 %v12895_v0 }
  0x6b   : > { %v807_v36 = vrot.slane %v805_v30, 5  ;;  %v829_v62 = vshll.u32 %v517_v54, 16  ;;  %v833_v63 = vshrl.u32 %v517_v54, 16  ;;  %v1174_v2 = vsel %vm13239_vm4, %v10910_v48, %v1173_v49  ;;  %v520_v30 = vld [vmem:[%s13225_s26 + $0xa0] sm:$0xf]  ;;  %v12898_v48 = vld [vmem:[%s13225_s26 + $0xa8] sm:$0xff]  }
  0x6c   : > { %v794_v23 = vsel %vm13248_vm5, %v789_v17, %v793_v6  ;;  %v803_v52 = vrot.slane %v802_v39, 4  ;;  %v822_v3 = vrot.slane %v820_v58, 4  ;;  %v1177_v6 = vsel %vm13239_vm4, %v1175_v57, %v1176_v53  ;;  %v12892_v17 = vld [vmem:[%s13225_s26 + $0x9c] sm:$0xff]   ;;  %v1036_v54 = vld [vmem:[%s13225_s26 + $0xa4] sm:$0x1] }
  0x6d   : > { %v10893_v28 = vcombine.low %v784_v21, %v794_v23  ;;  %v825_v7 = vrot.slane %v823_v61, 5  ;;  %v831_v8 = vrot.slane %v829_v62, 5  ;;  %v10926_v20 = vcombine.low %v1174_v2, %v1177_v6  ;;  %v12897_v23 = vld [vmem:[%s17557_s1 + $0x190] sm:$0xff]   ;;  %v1034_v49 = vld [vmem:[%s13225_s26 + $0x9c] sm:$0xe] }
  0x6e   : > { %v808_v60 = vsel %vm13248_vm5, %v803_v52, %v807_v36  ;;  %v1183_v22 = vrot.slane %v1033_v13, 5  ;;  %12111 = vmatpush3.bf16.msra.mxu1 %v12897_v23  ;;  %v844_v33 = vshrl.u32 %v519_v29, 16  ;;  %v847_v34 = vshll.u32 %v519_v29, 16  ;;  %v1035_v50 = vld [vmem:[%s13225_s26 + $0xa0] sm:$0xf] }
  0x6f   : > { %3993 = vmatmul.mubr.bf16.gmra.mrb[32].mxu0 %v12877_v31  ;;  %v809_v31 = vshrl.u32 %v514_v24, 16  ;;  %v826_v16 = vor.u32 %v825_v7, %v822_v3  ;;  %v857_v39 = vshrl.u32 %v520_v30, 16  ;;  %v1190_v58 = vrot.slane %v1036_v54, 5  ;;  %v523_v0 = vld [vmem:[%s13225_s26 + $0xac] sm:$0xf] }
  0x70   : > { %4154 = vmatmul.mubr.bf16.gmra.mrb[32].mxu1 %v10923_v37  ;;  %4000 = vmatprep.mubr.bf16.mxu0 %v10892_v4  ;;  %v839_v4 = vshll.u32 %v518_v55, 16  ;;  %v849_v42 = vrot.slane %v847_v34, 5  ;;  %v10912_v55 = vrot.slane %v1034_v49, 9  ;;  %v868_v3 = vshrl.u32 %v522_v59, 16  ;;  %v1039_v23 = vld [vmem:[%s13225_s26 + $0xb0] sm:$0x1] }
  0x71   : > { %4161 = vmatprep.mubr.bf16.mxu1 %v12882_v35  ;;  %v815_v35 = vshll.u32 %v515_v25, 16  ;;  %v811_v37 = vrot.slane %v809_v31, 4  ;;  %v827_v24 = vrot.slane %v826_v16, 4  ;;  %v521_v31 = vld [vmem:[%s13225_s26 + $0xa4] sm:$0x1] }
  0x72   : > { %v841_v12 = vrot.slane %v839_v4, 5  ;;  %v871_v4 = vshll.u32 %v522_v59, 16  ;;  %v12906_v34 = vld [vmem:[%s17557_s1 + $0x1e0] sm:$0xff]  }
  0x73   : > { %v817_v40 = vrot.slane %v815_v35, 5  ;;  %v812_v45 = vor.u32 %v811_v37, %v807_v36  ;;  %v832_v27 = vsel %vm13248_vm5, %v827_v24, %v831_v8  ;;  %v853_v35 = vshll.u32 %v520_v30, 16  ;;  %v12900_v36 = vld [vmem:[%s17557_s1 + $0x1d8] sm:$0xff]  }
  0x74   : > { %12112 = vmatprep.subr.bf16.mxu1 %v12900_v36  ;;  %v12905_v30 = vld [vmem:[%s17557_s1 + $0x138] sm:$0xff]   ;;  %v12907_v36 = vld [vmem:[%s17557_s1 + $0x1a0] sm:$0xff]  }
  0x75   : > { %v813_v56 = vrot.slane %v812_v45, 4  ;;  %v855_v43 = vrot.slane %v853_v35, 5  ;;  %v859_v45 = vrot.slane %v857_v39, 4 }
  0x77   : > { %4001 = vmatmul.mubr.bf16.gmra.mrb[36].mxu0 %v12883_v9  ;;  %v818_v1 = vsel %vm13248_vm5, %v813_v56, %v817_v40  ;;  %v1031_v9 = vld [vmem:[%s13225_s26 + $0x90] sm:$0xe]  ;;  %v863_v40 = vshll.u32 %v521_v31, 16  ;;  %v1187_v56 = vrot.slane %v1035_v50, 5  ;;  %v860_v57 = vor.u32 %v859_v45, %v855_v43 }
  0x78   : > { %4162 = vmatmul.mubr.bf16.gmra.mrb[36].mxu1 %v10924_v14  ;;  %4008 = vmatprep.mubr.bf16.mxu0 %v10893_v28  ;;  %v10894_v5 = vcombine.low %v808_v60, %v818_v1  ;;  %v1180_v14 = vrot.slane %v1032_v10, 5  ;;  %v10911_v18 = vrot.slane %v1031_v9, 9  ;;  %v12902_v60 = vld [vmem:[%s17557_s1 + $0x198] sm:$0xff]   ;;  %v524_v1 = vld [vmem:[%s13225_s26 + $0xb0] sm:$0x1] }
  0x79   : > { %4169 = vmatprep.mubr.bf16.mxu1 %v12884_v11  ;;  %v835_v11 = vrot.slane %v833_v63, 4  ;;  %v865_v47 = vrot.slane %v863_v40, 5  ;;  %v1188_v62 = vsel %vm13239_vm4, %v10912_v55, %v1187_v56  ;;  %v1189_v63 = vrot.slane %v1187_v56, 4  ;;  %12113 = vmatpush3.bf16.msra.mxu1 %v12902_v60  ;;  %v12908_v40 = vld [vmem:[%s17557_s1 + $0x1e8] sm:$0xff]  }
  0x7a   : > { %v1182_v25 = vrot.slane %v1180_v14, 4  ;;  %v1181_v28 = vsel %vm13239_vm4, %v10911_v18, %v1180_v14  ;;  %v861_v2 = vrot.slane %v860_v57, 4  ;;  %v887_v9 = vshll.u32 %v524_v1, 16  ;;  %12114 = vmatprep.subr.bf16.mxu1 %v12906_v34  ;;  %v12909_v57 = vld [vmem:[%s13225_s26 + $0xc0] sm:$0xff]  }
  0x7b   : > { %v836_v21 = vor.u32 %v835_v11, %v831_v8  ;;  %v1191_v7 = vsel %vm13239_vm4, %v1189_v63, %v1190_v58  ;;  %v881_v8 = vshrl.u32 %v523_v0, 16  ;;  %v870_v11 = vrot.slane %v868_v3, 4  ;;  %v12910_v58 = vld [vmem:[%s17557_s1 + $0x1a8] sm:$0xff]   ;;  %v1041_v63 = vld [vmem:[%s13225_s26 + $0xb8] sm:$0xf] }
  0x7c   : > { %v866_v10 = vsel %vm13248_vm5, %v861_v2, %v865_v47  ;;  %v889_v16 = vrot.slane %v887_v9, 5  ;;  %v10928_v18 = vcombine.low %v1188_v62, %v1191_v7  ;;  %v12903_v47 = vld [vmem:[%s13225_s26 + $0xa8] sm:$0xff]   ;;  %v1040_v62 = vld [vmem:[%s13225_s26 + $0xb4] sm:$0xe]  ;;  %v1201_v3 = vrot.slane %v1041_v63, 5 }
  0x7d   : > { %v837_v26 = vrot.slane %v836_v21, 4  ;;  %v1037_v21 = vld [vmem:[%s13225_s26 + $0xa8] sm:$0xe]  ;;  %12115 = vmatpush3.bf16.msra.mxu1 %v12907_v36  ;;  %v10914_v2 = vrot.slane %v1040_v62, 9  ;;  %v11048_v63 = vld [vmem:[%s13225_s26 + $0x20] sm:$0x1] }
  0x7e   : > { %12116 = vmatprep.subr.bf16.mxu1 %v12908_v40  ;;  %v1203_v9 = vrot.slane %v1201_v3, 4 }
  0x7f   : > { %4009 = vmatmul.mubr.bf16.gmra.mrb[40].mxu0 %v12885_v38  ;;  %v842_v32 = vsel %vm13248_vm5, %v837_v26, %v841_v12  ;;  %v1184_v38 = vsel %vm13239_vm4, %v1182_v25, %v1183_v22  ;;  %v873_v12 = vrot.slane %v871_v4, 5  ;;  %v1038_v22 = vld [vmem:[%s13225_s26 + $0xac] sm:$0xf]  ;;  %v10913_v25 = vrot.slane %v1037_v21, 9 }
  0x80   : > { %4170 = vmatmul.mubr.bf16.gmra.mrb[40].mxu1 %v10925_v44  ;;  %4016 = vmatprep.mubr.bf16.mxu0 %v10894_v5  ;;  %v10895_v37 = vcombine.low %v832_v27, %v842_v32  ;;  %v12893_v44 = vld [vmem:[%s13225_s26 + $0x90] sm:$0xff]   ;;  %v10927_v52 = vcombine.low %v1181_v28, %v1184_v38  ;;  %v877_v5 = vshll.u32 %v523_v0, 16  ;;  %v1194_v26 = vrot.slane %v1038_v22, 5  ;;  %v12904_v28 = vld [vmem:[%s17557_s1 + $0x178] sm:$0xff]  }
  0x81   : > { %4177 = vmatprep.mubr.bf16.mxu1 %v12890_v41  ;;  %v846_v41 = vrot.slane %v844_v33, 4  ;;  %v874_v19 = vor.u32 %v873_v12, %v870_v11  ;;  %v1197_v27 = vrot.slane %v1039_v23, 5  ;;  %12008 = vmatprep.subr.bf16.mxu0 %v12904_v28  ;;  %v1042_v0 = vld [vmem:[%s13225_s26 + $0xbc] sm:$0x1]  ;;  %v12911_v12 = vld [vmem:[%s13225_s26 + $0xb4] sm:$0xff]  }
  0x82   : > { %v879_v14 = vrot.slane %v877_v5, 5  ;;  %v1196_v32 = vrot.slane %v1194_v26, 4  ;;  %12009 = vmatpush3.bf16.msra.mxu0 %v12905_v30  ;;  %v1195_v38 = vsel %vm13239_vm4, %v10913_v25, %v1194_v26  ;;  %12117 = vmatpush3.bf16.msra.mxu1 %v12910_v58  ;;  %v1204_v4 = vrot.slane %v1042_v0, 5  ;;  %v10980_v25 = vld [vmem:[%s13225_s26 + $0x10] sm:$0xf] }
  0x83   : > { %v850_v53 = vor.u32 %v849_v42, %v846_v41  ;;  %v875_v29 = vrot.slane %v874_v19, 4  ;;  %v525_v41 = vld [vmem:[%s13225_s26 + $0xb4] sm:$0xf]  ;;  %v526_v42 = vld [vmem:[%s13225_s26 + $0xb8] sm:$0xf] }
  0x84   : > { %v1198_v39 = vsel %vm13239_vm4, %v1196_v32, %v1197_v27  ;;  %v895_v45 = vshll.u32 %v525_v41, 16  ;;  %v905_v49 = vshrl.u32 %v526_v42, 16  ;;  %v10981_v26 = vld [vmem:[%s13225_s26 + $0x14] sm:$0x1]  ;;  %v1489_v32 = vshll.u32 %v10980_v25, 16 }
  0x85   : > { %v851_v61 = vrot.slane %v850_v53, 4  ;;  %v880_v33 = vsel %vm13248_vm5, %v875_v29, %v879_v14  ;;  %v1499_v34 = vshll.u32 %v10981_v26, 16 }
  0x86   : > { %v897_v54 = vrot.slane %v895_v45, 5  ;;  %v907_v56 = vrot.slane %v905_v49, 4 }
  0x87   : > { %4017 = vmatmul.mubr.bf16.gmra.mrb[44].mxu0 %v12891_v15  ;;  %v856_v6 = vsel %vm13248_vm5, %v851_v61, %v855_v43  ;;  %v883_v15 = vrot.slane %v881_v8, 4  ;;  %v527_v43 = vld [vmem:[%s13225_s26 + $0xbc] sm:$0x1]  ;;  %v1202_v8 = vsel %vm13239_vm4, %v10914_v2, %v1201_v3 }
  0x88   : > { %4178 = vmatmul.mubr.bf16.gmra.mrb[44].mxu1 %v10926_v20  ;;  %4024 = vmatprep.mubr.bf16.mxu0 %v10895_v37  ;;  %v10896_v13 = vcombine.low %v856_v6, %v866_v10  ;;  %v12901_v20 = vld [vmem:[%s13225_s26 + $0xb4] sm:$0xff]   ;;  %v911_v50 = vshll.u32 %v527_v43, 16  ;;  %v1501_v43 = vrot.slane %v1499_v34, 5  ;;  %v11049_v34 = vld [vmem:[%s13225_s26 + $0x24] sm:$0xe] }
  0x89   : > { %4185 = vmatprep.mubr.bf16.mxu1 %v12892_v17  ;;  %v12899_v17 = vld [vmem:[%s13225_s26 + $0x9c] sm:$0xff]   ;;  %v884_v24 = vor.u32 %v883_v15, %v879_v14  ;;  %v12912_v6 = vld [vmem:[%s17557_s1 + $0x1f0] sm:$0xff]   ;;  %v11043_v14 = vld [vmem:[%s13225_s26 + $0xc] sm:$0xe] }
  0x8a   : > { %v913_v60 = vrot.slane %v911_v50, 5  ;;  %v12913_v10 = vld [vmem:[%s17557_s1 + $0x1b0] sm:$0xff]   ;;  %12118 = vmatprep.subr.bf16.mxu1 %v12912_v6  ;;  %v11091_v19 = vrot.slane %v11043_v14, 9  ;;  %v10983_v6 = vld [vmem:[%s13225_s26 + $0x1c] sm:$0xf] }
  0x8b   : > { %v885_v31 = vrot.slane %v884_v24, 4  ;;  %12119 = vmatpush3.bf16.msra.mxu1 %v12913_v10  ;;  %v10979_v24 = vld [vmem:[%s13225_s26 + $0xc] sm:$0xf] }
  0x8c   : > { %v1480_v29 = vshrl.u32 %v10979_v24, 16  ;;  %v1483_v30 = vshll.u32 %v10979_v24, 16 }
  0x8d   : > { %v890_v35 = vsel %vm13248_vm5, %v885_v31, %v889_v16  ;;  %v1205_v16 = vsel %vm13239_vm4, %v1203_v9, %v1204_v4  ;;  %v13608_v31 = vld [vmem:[%s17557_s1 + $0x200] sm:$0xff]   ;;  %v2051_v4 = vrot.slane %v11048_v63, 5  ;;  %v10987_v63 = vld [vmem:[%s13225_s26 + $0x2c] sm:$0x1] }
  0x8e   : > { %v10897_v37 = vcombine.low %v880_v33, %v890_v35  ;;  %v10930_v21 = vcombine.low %v1202_v8, %v1205_v16  ;;  %v1493_v33 = vshrl.u32 %v10980_v25, 16  ;;  %v1482_v36 = vrot.slane %v1480_v29, 4  ;;  %12714 = vmatprep.subr.bf16.mxu0 %v13608_v31  ;;  %v10984_v9 = vld [vmem:[%s13225_s26 + $0x20] sm:$0x1]  ;;  %v12917_v29 = vld [vmem:[%s13225_s26 + $0x18] sm:$0xff]  }
  0x8f   : > { %4025 = vmatmul.mubr.bf16.gmra.mrb[48].mxu0 %v12893_v44  ;;  %v892_v44 = vshrl.u32 %v525_v41, 16  ;;  %v1491_v41 = vrot.slane %v1489_v32, 5  ;;  %v1517_v25 = vshrl.u32 %v10983_v6, 16  ;;  %v1523_v26 = vshll.u32 %v10984_v9, 16 }
  0x90   : > { %4186 = vmatmul.mubr.bf16.gmra.mrb[48].mxu1 %v10927_v52  ;;  %4032 = vmatprep.mubr.bf16.mxu0 %v10896_v13  ;;  %v10929_v52 = vcombine.low %v1195_v38, %v1198_v39  ;;  %v12914_v13 = vld [vmem:[%s17557_s1 + $0x1f8] sm:$0xff]  }
  0x91   : > { %4193 = vmatprep.mubr.bf16.mxu1 %v12898_v48  ;;  %v901_v48 = vshll.u32 %v526_v42, 16  ;;  %v894_v53 = vrot.slane %v892_v44, 4  ;;  %12120 = vmatprep.subr.bf16.mxu1 %v12914_v13  ;;  %v11171_v38 = vld [vmem:[%s13225_s26 + $0x18] sm:$0xf]  ;;  %v11172_v39 = vld [vmem:[%s13225_s26 + $0x1c] sm:$0xf] }
  0x92   : > { %v1495_v42 = vrot.slane %v1493_v33, 4  ;;  %v11173_v44 = vld [vmem:[%s13225_s26 + $0x20] sm:$0x1]  ;;  %v2434_v49 = vshll.u32 %v11172_v39, 16 }
  0x93   : > { %v903_v55 = vrot.slane %v901_v48, 5  ;;  %v898_v59 = vor.u32 %v897_v54, %v894_v53  ;;  %v2428_v48 = vshll.u32 %v11171_v38, 16  ;;  %v2444_v53 = vshll.u32 %v11173_v44, 16  ;;  %v11046_v54 = vld [vmem:[%s13225_s26 + $0x18] sm:$0xe] }
  0x94   : > { %v1496_v50 = vor.u32 %v1495_v42, %v1491_v41  ;;  %v2436_v58 = vrot.slane %v2434_v49, 5  ;;  %v11092_v0 = vrot.slane %v11046_v54, 9  ;;  %v11093_v49 = vrot.slane %v11049_v34, 9  ;;  %v11054_v34 = vld [vmem:[%s13225_s26 + $0x38] sm:$0x1] }
  0x95   : > { %v908_v61 = vor.u32 %v907_v56, %v903_v55  ;;  %v899_v1 = vrot.slane %v898_v59, 4  ;;  %v11047_v59 = vld [vmem:[%s13225_s26 + $0x1c] sm:$0xf]  ;;  %v2446_v62 = vrot.slane %v2444_v53, 5 }
  0x96   : > { %v2048_v3 = vrot.slane %v11047_v59, 5 }
  0x97   : > { %4033 = vmatmul.mubr.bf16.gmra.mrb[52].mxu0 %v12899_v17  ;;  %v909_v5 = vrot.slane %v908_v61, 4  ;;  %v904_v7 = vsel %vm13248_vm5, %v899_v1, %v903_v55  ;;  %v11044_v17 = vld [vmem:[%s13225_s26 + $0x10] sm:$0xf] }
  0x98   : > { %4194 = vmatmul.mubr.bf16.gmra.mrb[52].mxu1 %v10928_v18  ;;  %4040 = vmatprep.mubr.bf16.mxu0 %v10897_v37  ;;  %v11045_v18 = vld [vmem:[%s13225_s26 + $0x14] sm:$0x1]  ;;  %v2041_v22 = vrot.slane %v11044_v17, 5  ;;  %v1485_v37 = vrot.slane %v1483_v30, 5  ;;  %v2050_v16 = vrot.slane %v2048_v3, 4 }
  0x99   : > { %4201 = vmatprep.mubr.bf16.mxu1 %v12901_v20  ;;  %v914_v11 = vsel %vm13248_vm5, %v909_v5, %v913_v60  ;;  %v12915_v20 = vld [vmem:[%s17557_s1 + $0x1b8] sm:$0xff]   ;;  %v2044_v23 = vrot.slane %v11045_v18, 5  ;;  %v1497_v60 = vrot.slane %v1496_v50, 4  ;;  %v11174_v17 = vld [vmem:[%s13225_s26 + $0x24] sm:$0xf] }
  0x9a   : > { %v10898_v15 = vcombine.low %v904_v7, %v914_v11  ;;  %v2042_v27 = vsel %vm13239_vm4, %v11091_v19, %v2041_v22  ;;  %v2043_v28 = vrot.slane %v2041_v22, 4  ;;  %12121 = vmatpush3.bf16.msra.mxu1 %v12915_v20  ;;  %v1486_v45 = vor.u32 %v1485_v37, %v1482_v36  ;;  %v10982_v5 = vld [vmem:[%s13225_s26 + $0x18] sm:$0xf]  ;;  %v11175_v18 = vld [vmem:[%s13225_s26 + $0x28] sm:$0xf] }
  0x9b   : > { %v1502_v7 = vsel %vm13248_vm5, %v1497_v60, %v1501_v43  ;;  %v1504_v10 = vshrl.u32 %v10982_v5, 16  ;;  %v1507_v11 = vshll.u32 %v10982_v5, 16  ;;  %v1513_v22 = vshll.u32 %v10983_v6, 16  ;;  %v10986_v50 = vld [vmem:[%s13225_s26 + $0x28] sm:$0xf] }
  0x9c   : > { %v2045_v35 = vsel %vm13239_vm4, %v2043_v28, %v2044_v23  ;;  %v1487_v55 = vrot.slane %v1486_v45, 4  ;;  %v2052_v24 = vsel %vm13239_vm4, %v2050_v16, %v2051_v4  ;;  %v1519_v37 = vrot.slane %v1517_v25, 4  ;;  %v11177_v6 = vld [vmem:[%s13225_s26 + $0x30] sm:$0xf]  ;;  %v12925_v16 = vld [vmem:[%s17557_s1 + $0x218] sm:$0xff]  }
  0x9d   : > { %v11107_v40 = vcombine.low %v2042_v27, %v2045_v35  ;;  %v1506_v20 = vrot.slane %v1504_v10, 4  ;;  %v11176_v27 = vld [vmem:[%s13225_s26 + $0x2c] sm:$0x1]  ;;  %v1515_v33 = vrot.slane %v1513_v22, 5  ;;  %v11050_v35 = vld [vmem:[%s13225_s26 + $0x28] sm:$0xf] }
  0x9e   : > { %v1492_v1 = vsel %vm13248_vm5, %v1487_v55, %v1491_v41  ;;  %v2452_v42 = vshll.u32 %v11174_v17, 16  ;;  %v2458_v43 = vshll.u32 %v11175_v18, 16  ;;  %v2462_v44 = vshrl.u32 %v11175_v18, 16  ;;  %v11179_v22 = vld [vmem:[%s13225_s26 + $0x38] sm:$0x1] }
  0x9f   : > { %4041 = vmatmul.mubr.bf16.gmra.mrb[56].mxu0 %v12903_v47  ;;  %v2425_v47 = vshrl.u32 %v11171_v38, 16  ;;  %v11027_v13 = vcombine.low %v1492_v1, %v1502_v7  ;;  %v1525_v38 = vrot.slane %v1523_v26, 5  ;;  %v1520_v45 = vor.u32 %v1519_v37, %v1515_v33 }
  0xa0   : > { %4202 = vmatmul.mubr.bf16.gmra.mrb[56].mxu1 %v10929_v52  ;;  %4048 = vmatprep.mubr.bf16.mxu0 %v10898_v15  ;;  %v2438_v52 = vshrl.u32 %v11172_v39, 16  ;;  %v2049_v15 = vsel %vm13239_vm4, %v11092_v0, %v2048_v3  ;;  %v2449_v39 = vshrl.u32 %v11174_v17, 16  ;;  %v2454_v54 = vrot.slane %v2452_v42, 5 }
  0xa1   : > { %4209 = vmatprep.mubr.bf16.mxu1 %v12909_v57  ;;  %v2427_v56 = vrot.slane %v2425_v47, 4  ;;  %v2430_v57 = vrot.slane %v2428_v48, 5  ;;  %v11108_v30 = vcombine.low %v2049_v15, %v2052_v24  ;;  %v2468_v48 = vshll.u32 %v11176_v27, 16  ;;  %v11178_v15 = vld [vmem:[%s13225_s26 + $0x34] sm:$0xf] }
  0xa2   : > { %v2440_v61 = vrot.slane %v2438_v52, 4  ;;  %v2451_v47 = vrot.slane %v2449_v39, 4  ;;  %v12922_v52 = vld [vmem:[%s17557_s1 + $0x210] sm:$0xff]   ;;  %v2460_v55 = vrot.slane %v2458_v43, 5  ;;  %v2055_v59 = vrot.slane %v11050_v35, 5 }
  0xa3   : > { %v2431_v2 = vor.u32 %v2430_v57, %v2427_v56  ;;  %v2464_v56 = vrot.slane %v2462_v44, 4  ;;  %v1521_v57 = vrot.slane %v1520_v45, 4  ;;  %v1537_v5 = vshll.u32 %v10986_v50, 16  ;;  %v11052_v27 = vld [vmem:[%s13225_s26 + $0x30] sm:$0xe] }
  0xa4   : > { %v2441_v8 = vor.u32 %v2440_v61, %v2436_v58  ;;  %v2455_v61 = vor.u32 %v2454_v54, %v2451_v47  ;;  %v2056_v3 = vsel %vm13239_vm4, %v11093_v49, %v2055_v59  ;;  %v2057_v4 = vrot.slane %v2055_v59, 4  ;;  %v10988_v39 = vld [vmem:[%s13225_s26 + $0x30] sm:$0xf]  ;;  %v12928_v49 = vld [vmem:[%s17557_s1 + $0x220] sm:$0xff]  }
  0xa5   : > { %v2432_v14 = vrot.slane %v2431_v2, 4  ;;  %v1526_v2 = vsel %vm13248_vm5, %v1521_v57, %v1525_v38  ;;  %v2473_v26 = vshrl.u32 %v11177_v6, 16  ;;  %v2492_v38 = vshll.u32 %v11179_v22, 16 }
  0xa6   : > { %v2442_v19 = vrot.slane %v2441_v8, 4  ;;  %v2456_v8 = vrot.slane %v2455_v61, 4  ;;  %v11094_v43 = vrot.slane %v11052_v27, 9  ;;  %v1552_v54 = vshrl.u32 %v10988_v39, 16 }
  0xa7   : > { %4049 = vmatmul.mubr.bf16.gmra.mrb[60].mxu0 %v12911_v12  ;;  %v12919_v12 = vld [vmem:[%s17557_s1 + $0x208] sm:$0xff]   ;;  %v2437_v23 = vsel %vm13248_vm5, %v2432_v14, %v2436_v58  ;;  %v2470_v58 = vrot.slane %v2468_v48, 5  ;;  %v1541_v14 = vshrl.u32 %v10986_v50, 16  ;;  %v2475_v37 = vrot.slane %v2473_v26, 4  ;;  %v10989_v48 = vld [vmem:[%s13225_s26 + $0x34] sm:$0xf] }
  0xa8   : > { %4210 = vmatmul.mubr.bf16.gmra.mrb[60].mxu1 %v10930_v21  ;;  %4250 = vmatprep.mubr.bf16.mxu0 %v11107_v40  ;;  %v1509_v21 = vrot.slane %v1507_v11, 5  ;;  %v2447_v28 = vsel %vm13248_vm5, %v2442_v19, %v2446_v62  ;;  %v11051_v40 = vld [vmem:[%s13225_s26 + $0x2c] sm:$0x1]  ;;  %v2465_v62 = vor.u32 %v2464_v56, %v2460_v55  ;;  %v2461_v17 = vsel %vm13248_vm5, %v2456_v8, %v2460_v55  ;;  %v12918_v19 = vld [vmem:[%s13225_s26 + $0x24] sm:$0xff]  }
  0xa9   : > { %v11219_v36 = vcombine.low %v2437_v23, %v2447_v28  ;;  %v2058_v60 = vrot.slane %v11051_v40, 5  ;;  %v1543_v25 = vrot.slane %v1541_v14, 4  ;;  %v11053_v28 = vld [vmem:[%s13225_s26 + $0x34] sm:$0xf]  ;;  %v2494_v45 = vrot.slane %v2492_v38, 5 }
  0xaa   : > { %v1510_v32 = vor.u32 %v1509_v21, %v1506_v20  ;;  %v2466_v9 = vrot.slane %v2465_v62, 4  ;;  %v1547_v21 = vshll.u32 %v10987_v63, 16  ;;  %v2062_v47 = vrot.slane %v11053_v28, 5  ;;  %v10991_v28 = vld [vmem:[%s13225_s26 + $0x3c] sm:$0xf] }
  0xab   : > { %4411 = vmatprep.mubr.bf16.mxu1 %v11219_v36  ;;  %v2059_v11 = vsel %vm13239_vm4, %v2057_v4, %v2058_v60  ;;  %v1555_v59 = vshll.u32 %v10988_v39, 16  ;;  %v1554_v63 = vrot.slane %v1552_v54, 4  ;;  %v1561_v4 = vshll.u32 %v10989_v48, 16  ;;  %v11183_v54 = vld [vmem:[%s13225_s26 + $0x48] sm:$0xf] }
  0xac   : > { %v1511_v41 = vrot.slane %v1510_v32, 4  ;;  %v2471_v18 = vsel %vm13248_vm5, %v2466_v9, %v2470_v58  ;;  %v11109_v20 = vcombine.low %v2056_v3, %v2059_v11  ;;  %v2482_v32 = vshll.u32 %v11178_v15, 16  ;;  %v10990_v58 = vld [vmem:[%s13225_s26 + $0x38] sm:$0x1]  ;;  %v11182_v11 = vld [vmem:[%s13225_s26 + $0x44] sm:$0x1] }
  0xad   : > { %v11220_v23 = vcombine.low %v2461_v17, %v2471_v18  ;;  %v2063_v56 = vsel %vm13239_vm4, %v11094_v43, %v2062_v47  ;;  %v2064_v57 = vrot.slane %v2062_v47, 4  ;;  %v1557_v3 = vrot.slane %v1555_v59, 5  ;;  %v11056_v18 = vld [vmem:[%s13225_s26 + $0x40] sm:$0xf]  ;;  %v12934_v43 = vld [vmem:[%s17557_s1 + $0x230] sm:$0xff]  }
  0xae   : > { %v1516_v53 = vsel %vm13248_vm5, %v1511_v41, %v1515_v33  ;;  %v2486_v33 = vshrl.u32 %v11178_v15, 16  ;;  %v2484_v41 = vrot.slane %v2482_v32, 5  ;;  %v2516_v27 = vshll.u32 %v11182_v11, 16  ;;  %v11184_v59 = vld [vmem:[%s13225_s26 + $0x4c] sm:$0xf] }
  0xaf   : > { %4251 = vmatmul.mubr.bf16.vlgmr.msra.gmra.mrb[64].mxu0 %v11027_v13  ;;  %v11028_v7 = vcombine.low %v1516_v53, %v1526_v2  ;;  %v1539_v13 = vrot.slane %v1537_v5, 5  ;;  %v2065_v53 = vrot.slane %v11054_v34, 5  ;;  %v1565_v5 = vshrl.u32 %v10989_v48, 16  ;;  %v10992_v34 = vld [vmem:[%s13225_s26 + $0x40] sm:$0xf] }
  0xb0   : > { %12715 = vmatpush3.bf16.msra.mxu0 %v13608_v31  ;;  %4258 = vmatprep.mubr.bf16.mxu0 %v11108_v30  ;;  %v10985_v31 = vld [vmem:[%s13225_s26 + $0x24] sm:$0xf]  ;;  %v2476_v30 = vshll.u32 %v11177_v6, 16  ;;  %v2488_v42 = vrot.slane %v2486_v33, 4  ;;  %v11181_v6 = vld [vmem:[%s13225_s26 + $0x40] sm:$0xf]  ;;  %v1558_v15 = vor.u32 %v1557_v3, %v1554_v63 }
  0xb1   : > { %12716 = vmatprep.subr.bf16.mxu0 %v12919_v12  ;;  %4412 = vmatmul.mubr.bf16.vlgmr.msra.gmra.mrb[64].mxu1 %v12917_v29  ;;  %v1528_v0 = vshrl.u32 %v10985_v31, 16  ;;  %v1531_v1 = vshll.u32 %v10985_v31, 16  ;;  %v1549_v29 = vrot.slane %v1547_v21, 5  ;;  %v1544_v36 = vor.u32 %v1543_v25, %v1539_v13  ;;  %v12921_v3 = vld [vmem:[%s13225_s26 + $0x3c] sm:$0xff]  }
  0xb2   : > { %4419 = vmatprep.mubr.bf16.mxu1 %v11220_v23  ;;  %v2478_v40 = vrot.slane %v2476_v30, 5  ;;  %v2066_v2 = vsel %vm13239_vm4, %v2064_v57, %v2065_v53  ;;  %v1567_v17 = vrot.slane %v1565_v5, 4  ;;  %v2506_v22 = vshll.u32 %v11181_v6, 16  ;;  %v11057_v23 = vld [vmem:[%s13225_s26 + $0x44] sm:$0x1] }
  0xb3   : > { %v1530_v10 = vrot.slane %v1528_v0, 4  ;;  %v1545_v31 = vrot.slane %v1544_v36, 4  ;;  %v11180_v0 = vld [vmem:[%s13225_s26 + $0x3c] sm:$0xf]  ;;  %v11110_v9 = vcombine.low %v2063_v56, %v2066_v2  ;;  %v2510_v26 = vshrl.u32 %v11181_v6, 16 }
  0xb4   : > { %12717 = vmatpush3.bf16.msra.mxu0 %v12919_v12  ;;  %v1533_v12 = vrot.slane %v1531_v1, 5  ;;  %v2479_v50 = vor.u32 %v2478_v40, %v2475_v37  ;;  %v12920_v1 = vld [vmem:[%s13225_s26 + $0x30] sm:$0xff]   ;;  %v2500_v21 = vshll.u32 %v11180_v0, 16  ;;  %v2508_v32 = vrot.slane %v2506_v22, 5  ;;  %v12937_v22 = vld [vmem:[%s17557_s1 + $0x238] sm:$0xff]  }
  0xb5   : > { %12718 = vmatprep.subr.bf16.mxu0 %v12922_v52  ;;  %v1550_v55 = vsel %vm13248_vm5, %v1545_v31, %v1549_v29  ;;  %v2512_v37 = vrot.slane %v2510_v26, 4  ;;  %v2518_v38 = vrot.slane %v2516_v27, 5  ;;  %v2069_v40 = vrot.slane %v11056_v18, 5  ;;  %v10995_v27 = vld [vmem:[%s13225_s26 + $0x4c] sm:$0xf] }
  0xb6   : > { %v1534_v24 = vor.u32 %v1533_v12, %v1530_v10  ;;  %v2480_v61 = vrot.slane %v2479_v50, 4  ;;  %v1571_v10 = vshll.u32 %v10990_v58, 16  ;;  %v11055_v12 = vld [vmem:[%s13225_s26 + $0x3c] sm:$0xe]  ;;  %v2502_v30 = vrot.slane %v2500_v21, 5 }
  0xb7   : > { %4259 = vmatmul.mubr.bf16.gmra.mrb[68].mxu0 %v11028_v7  ;;  %v11095_v33 = vrot.slane %v11055_v12, 9  ;;  %v2513_v31 = vor.u32 %v2512_v37, %v2508_v32  ;;  %v1579_v47 = vshll.u32 %v10991_v28, 16  ;;  %v1585_v48 = vshll.u32 %v10992_v34, 16  ;;  %v10994_v21 = vld [vmem:[%s13225_s26 + $0x48] sm:$0xf] }
  0xb8   : > { %12719 = vmatpush3.bf16.msra.mxu0 %v12922_v52  ;;  %4266 = vmatprep.mubr.bf16.mxu0 %v11109_v20  ;;  %v1535_v35 = vrot.slane %v1534_v24, 4  ;;  %v2489_v52 = vor.u32 %v2488_v42, %v2484_v41  ;;  %v2485_v7 = vsel %vm13248_vm5, %v2480_v61, %v2484_v41  ;;  %v2497_v20 = vshrl.u32 %v11180_v0, 16  ;;  %v11185_v0 = vld [vmem:[%s13225_s26 + $0x50] sm:$0x1] }
  0xb9   : > { %12720 = vmatprep.subr.bf16.mxu0 %v12925_v16  ;;  %4420 = vmatmul.mubr.bf16.gmra.mrb[68].mxu1 %v12918_v19  ;;  %v1573_v19 = vrot.slane %v1571_v10, 5  ;;  %v1559_v24 = vrot.slane %v1558_v15, 4  ;;  %v2072_v41 = vrot.slane %v11057_v23, 5  ;;  %v1576_v42 = vshrl.u32 %v10991_v28, 16 }
  0xba   : > { %v1540_v44 = vsel %vm13248_vm5, %v1535_v35, %v1539_v13  ;;  %v2490_v62 = vrot.slane %v2489_v52, 4  ;;  %v12931_v13 = vld [vmem:[%s17557_s1 + $0x228] sm:$0xff]   ;;  %v2499_v29 = vrot.slane %v2497_v20, 4  ;;  %v2070_v52 = vsel %vm13239_vm4, %v11095_v33, %v2069_v40 }
  0xbb   : > { %v11029_v60 = vcombine.low %v1540_v44, %v1550_v55  ;;  %v2071_v53 = vrot.slane %v2069_v40, 4  ;;  %v2514_v55 = vrot.slane %v2513_v31, 4  ;;  %v1578_v56 = vrot.slane %v1576_v42, 4 }
  0xbc   : > { %12721 = vmatpush3.bf16.msra.mxu0 %v12925_v16  ;;  %v2495_v8 = vsel %vm13248_vm5, %v2490_v62, %v2494_v45  ;;  %v1563_v16 = vrot.slane %v1561_v4, 5  ;;  %v2503_v39 = vor.u32 %v2502_v30, %v2499_v29  ;;  %v10993_v45 = vld [vmem:[%s13225_s26 + $0x44] sm:$0x1]  ;;  %v1581_v57 = vrot.slane %v1579_v47, 5 }
  0xbd   : > { %12722 = vmatprep.subr.bf16.mxu0 %v12928_v49  ;;  %v11221_v14 = vcombine.low %v2485_v7, %v2495_v8  ;;  %v1587_v58 = vrot.slane %v1585_v48, 5  ;;  %v2073_v61 = vsel %vm13239_vm4, %v2071_v53, %v2072_v41  ;;  %v1589_v62 = vshrl.u32 %v10992_v34, 16  ;;  %v11059_v7 = vld [vmem:[%s13225_s26 + $0x4c] sm:$0xf]  ;;  %v11060_v8 = vld [vmem:[%s13225_s26 + $0x50] sm:$0x1] }
  0xbe   : > { %v1568_v25 = vor.u32 %v1567_v17, %v1563_v16  ;;  %v1564_v35 = vsel %vm13248_vm5, %v1559_v24, %v1563_v16  ;;  %v2504_v50 = vrot.slane %v2503_v39, 4  ;;  %v1595_v63 = vshll.u32 %v10993_v45, 16  ;;  %v11188_v53 = vld [vmem:[%s13225_s26 + $0x5c] sm:$0x1] }
  0xbf   : > { %4267 = vmatmul.mubr.bf16.gmra.mrb[72].mxu0 %v11029_v60  ;;  %4427 = vmatprep.mubr.bf16.mxu1 %v11221_v14  ;;  %v2519_v2 = vsel %vm13248_vm5, %v2514_v55, %v2518_v38  ;;  %v11111_v4 = vcombine.low %v2070_v52, %v2073_v61  ;;  %v1582_v5 = vor.u32 %v1581_v57, %v1578_v56  ;;  %v2521_v6 = vshrl.u32 %v11183_v54, 16  ;;  %v11186_v38 = vld [vmem:[%s13225_s26 + $0x54] sm:$0xf]  ;;  %v12923_v56 = vld [vmem:[%s13225_s26 + $0x48] sm:$0xff]  }
  0xc0   : > { %12723 = vmatpush3.bf16.msra.mxu0 %v12928_v49  ;;  %4274 = vmatprep.mubr.bf16.mxu0 %v11110_v9  ;;  %v1569_v36 = vrot.slane %v1568_v25, 4  ;;  %v2509_v60 = vsel %vm13248_vm5, %v2504_v50, %v2508_v32  ;;  %v1591_v10 = vrot.slane %v1589_v62, 4  ;;  %v1597_v11 = vrot.slane %v1595_v63, 5 }
  0xc1   : > { %12724 = vmatprep.subr.bf16.mxu0 %v12931_v13  ;;  %4428 = vmatmul.mubr.bf16.gmra.mrb[72].mxu1 %v12920_v1  ;;  %v11058_v1 = vld [vmem:[%s13225_s26 + $0x48] sm:$0xe]  ;;  %v11222_v9 = vcombine.low %v2509_v60, %v2519_v2  ;;  %v2524_v12 = vshll.u32 %v11183_v54, 16  ;;  %v2523_v14 = vrot.slane %v2521_v6, 4  ;;  %v2530_v15 = vshll.u32 %v11184_v59, 16 }
  0xc2   : > { %v1574_v44 = vsel %vm13248_vm5, %v1569_v36, %v1573_v19  ;;  %v2534_v16 = vshrl.u32 %v11184_v59, 16  ;;  %v1592_v17 = vor.u32 %v1591_v10, %v1587_v58  ;;  %v2540_v19 = vshll.u32 %v11185_v0, 16  ;;  %v10996_v36 = vld [vmem:[%s13225_s26 + $0x50] sm:$0x1]  ;;  %v11061_v54 = vld [vmem:[%s13225_s26 + $0x54] sm:$0xe] }
  0xc3   : > { %v11030_v49 = vcombine.low %v1564_v35, %v1574_v44  ;;  %4435 = vmatprep.mubr.bf16.mxu1 %v11222_v9  ;;  %v2526_v18 = vrot.slane %v2524_v12, 5  ;;  %v11096_v20 = vrot.slane %v11058_v1, 9  ;;  %v2532_v24 = vrot.slane %v2530_v15, 5  ;;  %v11062_v60 = vld [vmem:[%s13225_s26 + $0x58] sm:$0xf] }
  0xc4   : > { %12725 = vmatpush3.bf16.msra.mxu0 %v12931_v13  ;;  %v1583_v13 = vrot.slane %v1582_v5, 4  ;;  %v2536_v25 = vrot.slane %v2534_v16, 4  ;;  %v2076_v26 = vrot.slane %v11059_v7, 5  ;;  %v1593_v28 = vrot.slane %v1592_v17, 4  ;;  %v11063_v5 = vld [vmem:[%s13225_s26 + $0x5c] sm:$0x1] }
  0xc5   : > { %12726 = vmatprep.subr.bf16.mxu0 %v12934_v43  ;;  %v2527_v29 = vor.u32 %v2526_v18, %v2523_v14  ;;  %v2542_v30 = vrot.slane %v2540_v19, 5  ;;  %v2079_v32 = vrot.slane %v11060_v8, 5  ;;  %v1600_v37 = vshrl.u32 %v10994_v21, 16  ;;  %v10997_v10 = vld [vmem:[%s13225_s26 + $0x54] sm:$0xf] }
  0xc6   : > { %v1588_v23 = vsel %vm13248_vm5, %v1583_v13, %v1587_v58  ;;  %v2537_v33 = vor.u32 %v2536_v25, %v2532_v24  ;;  %v2077_v34 = vsel %vm13239_vm4, %v11096_v20, %v2076_v26  ;;  %v2078_v35 = vrot.slane %v2076_v26, 4  ;;  %v10998_v15 = vld [vmem:[%s13225_s26 + $0x58] sm:$0xf]  ;;  %v10999_v25 = vld [vmem:[%s13225_s26 + $0x5c] sm:$0x1] }
  0xc7   : > { %4275 = vmatmul.mubr.bf16.gmra.mrb[76].mxu0 %v11030_v49  ;;  %v1598_v39 = vsel %vm13248_vm5, %v1593_v28, %v1597_v11  ;;  %v2528_v40 = vrot.slane %v2527_v29, 4  ;;  %v1603_v41 = vshll.u32 %v10994_v21, 16  ;;  %v1609_v42 = vshll.u32 %v10995_v27, 16 }
  0xc8   : > { %12727 = vmatpush3.bf16.msra.mxu0 %v12934_v43  ;;  %4282 = vmatprep.mubr.bf16.mxu0 %v11111_v4  ;;  %v11187_v43 = vld [vmem:[%s13225_s26 + $0x58] sm:$0xf]  ;;  %v11031_v44 = vcombine.low %v1588_v23, %v1598_v39  ;;  %v2538_v31 = vrot.slane %v2537_v33, 4  ;;  %v2080_v45 = vsel %vm13239_vm4, %v2078_v35, %v2079_v32  ;;  %v1602_v47 = vrot.slane %v1600_v37, 4  ;;  %v11190_v39 = vld [vmem:[%s13225_s26 + $0x64] sm:$0xf] }
  0xc9   : > { %4436 = vmatmul.mubr.bf16.gmra.mrb[76].mxu1 %v12921_v3  ;;  %12728 = vmatprep.subr.bf16.mxu0 %v12937_v22  ;;  %v2533_v48 = vsel %vm13248_vm5, %v2528_v40, %v2532_v24  ;;  %v11112_v49 = vcombine.low %v2077_v34, %v2080_v45  ;;  %v1605_v50 = vrot.slane %v1603_v41, 5  ;;  %v1611_v52 = vrot.slane %v1609_v42, 5  ;;  %v11189_v34 = vld [vmem:[%s13225_s26 + $0x60] sm:$0xf]  ;;  %v12924_v41 = vld [vmem:[%s13225_s26 + $0x54] sm:$0xff]  }
  0xca   : > { %v2543_v55 = vsel %vm13248_vm5, %v2538_v31, %v2542_v30  ;;  %v1613_v57 = vshrl.u32 %v10995_v27, 16  ;;  %v1619_v58 = vshll.u32 %v10996_v36, 16  ;;  %v2545_v59 = vshrl.u32 %v11186_v38, 16  ;;  %v11191_v31 = vld [vmem:[%s13225_s26 + $0x68] sm:$0x1] }
  0xcb   : > { %v11223_v61 = vcombine.low %v2533_v48, %v2543_v55  ;;  %v1606_v62 = vor.u32 %v1605_v50, %v1602_v47  ;;  %v2548_v63 = vshll.u32 %v11186_v38, 16  ;;  %v2554_v0 = vshll.u32 %v11187_v43, 16  ;;  %v11064_v50 = vld [vmem:[%s13225_s26 + $0x60] sm:$0xe] }
  0xcc   : > { %12729 = vmatpush3.bf16.msra.mxu0 %v12937_v22  ;;  %v1615_v1 = vrot.slane %v1613_v57, 4  ;;  %v1621_v2 = vrot.slane %v1619_v58, 5  ;;  %v2547_v3 = vrot.slane %v2545_v59, 4  ;;  %v2558_v4 = vshrl.u32 %v11187_v43, 16  ;;  %v11066_v57 = vld [vmem:[%s13225_s26 + $0x68] sm:$0x1] }
  0xcd   : > { %4443 = vmatprep.mubr.bf16.mxu1 %v11223_v61  ;;  %v1607_v6 = vrot.slane %v1606_v62, 4  ;;  %v2550_v7 = vrot.slane %v2548_v63, 5  ;;  %v2556_v8 = vrot.slane %v2554_v0, 5  ;;  %v2564_v9 = vshll.u32 %v11188_v53, 16  ;;  %v11000_v62 = vld [vmem:[%s13225_s26 + $0x60] sm:$0xf] }
  0xce   : > { %v1616_v11 = vor.u32 %v1615_v1, %v1611_v52  ;;  %v2560_v12 = vrot.slane %v2558_v4, 4  ;;  %v11097_v13 = vrot.slane %v11061_v54, 9  ;;  %v2083_v14 = vrot.slane %v11062_v60, 5  ;;  %v11001_v63 = vld [vmem:[%s13225_s26 + $0x64] sm:$0xf] }
  0xcf   : > { %4283 = vmatmul.mubr.bf16.gmra.mrb[80].mxu0 %v11031_v44  ;;  %v1612_v16 = vsel %vm13248_vm5, %v1607_v6, %v1611_v52  ;;  %v2551_v17 = vor.u32 %v2550_v7, %v2547_v3  ;;  %v2566_v18 = vrot.slane %v2564_v9, 5  ;;  %v2086_v19 = vrot.slane %v11063_v5, 5 }
  0xd0   : > { %4290 = vmatprep.mubr.bf16.mxu0 %v11112_v49  ;;  %v1617_v20 = vrot.slane %v1616_v11, 4  ;;  %v2561_v21 = vor.u32 %v2560_v12, %v2556_v8  ;;  %v2084_v22 = vsel %vm13239_vm4, %v11097_v13, %v2083_v14  ;;  %v2085_v23 = vrot.slane %v2083_v14, 4  ;;  %v11002_v12 = vld [vmem:[%s13225_s26 + $0x68] sm:$0x1] }
  0xd1   : > { %4444 = vmatmul.mubr.bf16.gmra.mrb[80].mxu1 %v12923_v56  ;;  %v2552_v24 = vrot.slane %v2551_v17, 4  ;;  %v1624_v26 = vshrl.u32 %v10997_v10, 16  ;;  %v1627_v27 = vshll.u32 %v10997_v10, 16  ;;  %v1633_v28 = vshll.u32 %v10998_v15, 16  ;;  %v11065_v56 = vld [vmem:[%s13225_s26 + $0x64] sm:$0xf] }
  0xd2   : > { %v1622_v29 = vsel %vm13248_vm5, %v1617_v20, %v1621_v2  ;;  %v2562_v30 = vrot.slane %v2561_v21, 4  ;;  %v2087_v32 = vsel %vm13239_vm4, %v2085_v23, %v2086_v19  ;;  %v1637_v33 = vshrl.u32 %v10998_v15, 16 }
  0xd3   : > { %v11032_v35 = vcombine.low %v1612_v16, %v1622_v29  ;;  %v2557_v36 = vsel %vm13248_vm5, %v2552_v24, %v2556_v8  ;;  %v11113_v37 = vcombine.low %v2084_v22, %v2087_v32  ;;  %v1626_v38 = vrot.slane %v1624_v26, 4  ;;  %v11192_v26 = vld [vmem:[%s13225_s26 + $0x6c] sm:$0xf] }
  0xd4   : > { %v2567_v40 = vsel %vm13248_vm5, %v2562_v30, %v2566_v18  ;;  %v1629_v42 = vrot.slane %v1627_v27, 5  ;;  %v1635_v43 = vrot.slane %v1633_v28, 5  ;;  %v1639_v44 = vrot.slane %v1637_v33, 4  ;;  %v12926_v18 = vld [vmem:[%s13225_s26 + $0x60] sm:$0xff]   ;;  %v11193_v27 = vld [vmem:[%s13225_s26 + $0x70] sm:$0xf] }
  0xd5   : > { %v11224_v45 = vcombine.low %v2557_v36, %v2567_v40  ;;  %v1643_v47 = vshll.u32 %v10999_v25, 16  ;;  %v2569_v48 = vshrl.u32 %v11189_v34, 16  ;;  %v2572_v49 = vshll.u32 %v11189_v34, 16  ;;  %v11194_v33 = vld [vmem:[%s13225_s26 + $0x74] sm:$0x1] }
  0xd6   : > { %v1630_v52 = vor.u32 %v1629_v42, %v1626_v38  ;;  %v1640_v53 = vor.u32 %v1639_v44, %v1635_v43  ;;  %v2578_v54 = vshll.u32 %v11190_v39, 16  ;;  %v2582_v55 = vshrl.u32 %v11190_v39, 16  ;;  %v11067_v34 = vld [vmem:[%s13225_s26 + $0x6c] sm:$0xe]  ;;  %v11068_v39 = vld [vmem:[%s13225_s26 + $0x70] sm:$0xf] }
  0xd7   : > { %4291 = vmatmul.mubr.bf16.gmra.mrb[84].mxu0 %v11032_v35  ;;  %4451 = vmatprep.mubr.bf16.mxu1 %v11224_v45  ;;  %v1645_v58 = vrot.slane %v1643_v47, 5  ;;  %v2571_v59 = vrot.slane %v2569_v48, 4  ;;  %v2574_v60 = vrot.slane %v2572_v49, 5  ;;  %v2588_v61 = vshll.u32 %v11191_v31, 16  ;;  %v11069_v44 = vld [vmem:[%s13225_s26 + $0x74] sm:$0x1] }
  0xd8   : > { %4298 = vmatprep.mubr.bf16.mxu0 %v11113_v37  ;;  %v1631_v0 = vrot.slane %v1630_v52, 4  ;;  %v1641_v1 = vrot.slane %v1640_v53, 4  ;;  %v2580_v2 = vrot.slane %v2578_v54, 5  ;;  %v2584_v3 = vrot.slane %v2582_v55, 4  ;;  %v11003_v49 = vld [vmem:[%s13225_s26 + $0x6c] sm:$0xf] }
  0xd9   : > { %4452 = vmatmul.mubr.bf16.gmra.mrb[84].mxu1 %v12924_v41  ;;  %v2575_v4 = vor.u32 %v2574_v60, %v2571_v59  ;;  %v2590_v5 = vrot.slane %v2588_v61, 5  ;;  %v11098_v6 = vrot.slane %v11064_v50, 9  ;;  %v2090_v7 = vrot.slane %v11065_v56, 5  ;;  %v11004_v59 = vld [vmem:[%s13225_s26 + $0x70] sm:$0xf] }
  0xda   : > { %v1636_v8 = vsel %vm13248_vm5, %v1631_v0, %v1635_v43  ;;  %v1646_v9 = vsel %vm13248_vm5, %v1641_v1, %v1645_v58  ;;  %v2585_v10 = vor.u32 %v2584_v3, %v2580_v2  ;;  %v2093_v11 = vrot.slane %v11066_v57, 5 }
  0xdb   : > { %v11033_v13 = vcombine.low %v1636_v8, %v1646_v9  ;;  %v2576_v14 = vrot.slane %v2575_v4, 4  ;;  %v2091_v15 = vsel %vm13239_vm4, %v11098_v6, %v2090_v7  ;;  %v2092_v16 = vrot.slane %v2090_v7, 4  ;;  %v11005_v4 = vld [vmem:[%s13225_s26 + $0x74] sm:$0x1]  ;;  %v11195_v9 = vld [vmem:[%s13225_s26 + $0x78] sm:$0xf] }
  0xdc   : > { %v2586_v17 = vrot.slane %v2585_v10, 4  ;;  %v1648_v19 = vshrl.u32 %v11000_v62, 16  ;;  %v1651_v20 = vshll.u32 %v11000_v62, 16  ;;  %v1657_v21 = vshll.u32 %v11001_v63, 16 }
  0xdd   : > { %v2581_v22 = vsel %vm13248_vm5, %v2576_v14, %v2580_v2  ;;  %v2094_v23 = vsel %vm13239_vm4, %v2092_v16, %v2093_v11  ;;  %v1661_v24 = vshrl.u32 %v11001_v63, 16  ;;  %v1667_v25 = vshll.u32 %v11002_v12, 16  ;;  %v11196_v14 = vld [vmem:[%s13225_s26 + $0x7c] sm:$0xf] }
  0xde   : > { %v2591_v28 = vsel %vm13248_vm5, %v2586_v17, %v2590_v5  ;;  %v11114_v29 = vcombine.low %v2091_v15, %v2094_v23  ;;  %v1650_v30 = vrot.slane %v1648_v19, 4  ;;  %v1653_v32 = vrot.slane %v1651_v20, 5  ;;  %v11197_v19 = vld [vmem:[%s13225_s26 + $0x80] sm:$0x1]  ;;  %v11070_v20 = vld [vmem:[%s13225_s26 + $0x78] sm:$0xe] }
  0xdf   : > { %4299 = vmatmul.mubr.bf16.gmra.mrb[88].mxu0 %v11033_v13  ;;  %v11225_v35 = vcombine.low %v2581_v22, %v2591_v28  ;;  %v1659_v36 = vrot.slane %v1657_v21, 5  ;;  %v1663_v37 = vrot.slane %v1661_v24, 4  ;;  %v1669_v38 = vrot.slane %v1667_v25, 5  ;;  %v12927_v22 = vld [vmem:[%s13225_s26 + $0x6c] sm:$0xff]  }
  0xe0   : > { %4306 = vmatprep.mubr.bf16.mxu0 %v11114_v29  ;;  %v1654_v40 = vor.u32 %v1653_v32, %v1650_v30  ;;  %v2593_v41 = vshrl.u32 %v11192_v26, 16  ;;  %v2596_v42 = vshll.u32 %v11192_v26, 16  ;;  %v2602_v43 = vshll.u32 %v11193_v27, 16  ;;  %v11071_v30 = vld [vmem:[%s13225_s26 + $0x7c] sm:$0xf] }
  0xe1   : > { %4459 = vmatprep.mubr.bf16.mxu1 %v11225_v35  ;;  %v1664_v31 = vor.u32 %v1663_v37, %v1659_v36  ;;  %v2606_v45 = vshrl.u32 %v11193_v27, 16  ;;  %v2612_v47 = vshll.u32 %v11194_v33, 16  ;;  %v11099_v48 = vrot.slane %v11067_v34, 9 }
  0xe2   : > { %4460 = vmatmul.mubr.bf16.gmra.mrb[88].mxu1 %v12926_v18  ;;  %v1655_v50 = vrot.slane %v1654_v40, 4  ;;  %v2595_v52 = vrot.slane %v2593_v41, 4  ;;  %v2598_v53 = vrot.slane %v2596_v42, 5  ;;  %v2604_v54 = vrot.slane %v2602_v43, 5  ;;  %v11006_v41 = vld [vmem:[%s13225_s26 + $0x78] sm:$0xf] }
  0xe3   : > { %v1665_v55 = vrot.slane %v1664_v31, 4  ;;  %v2608_v56 = vrot.slane %v2606_v45, 4  ;;  %v2614_v57 = vrot.slane %v2612_v47, 5  ;;  %v2097_v58 = vrot.slane %v11068_v39, 5 }
  0xe4   : > { %v1660_v60 = vsel %vm13248_vm5, %v1655_v50, %v1659_v36  ;;  %v2599_v61 = vor.u32 %v2598_v53, %v2595_v52  ;;  %v2100_v62 = vrot.slane %v11069_v44, 5  ;;  %v1672_v63 = vshrl.u32 %v11003_v49, 16  ;;  %v11072_v36 = vld [vmem:[%s13225_s26 + $0x80] sm:$0x1]  ;;  %v11007_v50 = vld [vmem:[%s13225_s26 + $0x7c] sm:$0xf] }
  0xe5   : > { %v1670_v0 = vsel %vm13248_vm5, %v1665_v55, %v1669_v38  ;;  %v2609_v1 = vor.u32 %v2608_v56, %v2604_v54  ;;  %v2098_v2 = vsel %vm13239_vm4, %v11099_v48, %v2097_v58  ;;  %v2099_v3 = vrot.slane %v2097_v58, 4  ;;  %v11008_v56 = vld [vmem:[%s13225_s26 + $0x80] sm:$0x1] }
  0xe6   : > { %v11034_v5 = vcombine.low %v1660_v60, %v1670_v0  ;;  %v2600_v6 = vrot.slane %v2599_v61, 4  ;;  %v1674_v7 = vrot.slane %v1672_v63, 4  ;;  %v1675_v8 = vshll.u32 %v11003_v49, 16 }
  0xe7   : > { %v2610_v10 = vrot.slane %v2609_v1, 4  ;;  %v2101_v11 = vsel %vm13239_vm4, %v2099_v3, %v2100_v62  ;;  %v1681_v12 = vshll.u32 %v11004_v59, 16  ;;  %v1685_v13 = vshrl.u32 %v11004_v59, 16  ;;  %v11199_v62 = vld [vmem:[%s13225_s26 + $0x88] sm:$0xf] }
  0xe8   : > { %4307 = vmatmul.mubr.bf16.gmra.mrb[92].mxu0 %v11034_v5  ;;  %v2605_v15 = vsel %vm13248_vm5, %v2600_v6, %v2604_v54  ;;  %v11115_v16 = vcombine.low %v2098_v2, %v2101_v11  ;;  %v1677_v17 = vrot.slane %v1675_v8, 5  ;;  %v1691_v18 = vshll.u32 %v11005_v4, 16  ;;  %v11200_v4 = vld [vmem:[%s13225_s26 + $0x8c] sm:$0x1]  ;;  %v11073_v11 = vld [vmem:[%s13225_s26 + $0x84] sm:$0xe] }
  0xe9   : > { %v2615_v21 = vsel %vm13248_vm5, %v2610_v10, %v2614_v57  ;;  %v1683_v23 = vrot.slane %v1681_v12, 5  ;;  %v1687_v24 = vrot.slane %v1685_v13, 4  ;;  %v2617_v25 = vshrl.u32 %v11195_v9, 16  ;;  %v11198_v57 = vld [vmem:[%s13225_s26 + $0x84] sm:$0xf] }
  0xea   : > { %v11226_v26 = vcombine.low %v2605_v15, %v2615_v21  ;;  %4314 = vmatprep.mubr.bf16.mxu0 %v11115_v16  ;;  %v1678_v27 = vor.u32 %v1677_v17, %v1674_v7  ;;  %v1693_v28 = vrot.slane %v1691_v18, 5  ;;  %v2620_v29 = vshll.u32 %v11195_v9, 16  ;;  %v12929_v15 = vld [vmem:[%s13225_s26 + $0x78] sm:$0xff]  }
  0xeb   : > { %v1688_v32 = vor.u32 %v1687_v24, %v1683_v23  ;;  %v2619_v33 = vrot.slane %v2617_v25, 4  ;;  %v2626_v34 = vshll.u32 %v11196_v14, 16  ;;  %v2630_v35 = vshrl.u32 %v11196_v14, 16  ;;  %v11074_v25 = vld [vmem:[%s13225_s26 + $0x88] sm:$0xf] }
  0xec   : > { %4467 = vmatprep.mubr.bf16.mxu1 %v11226_v26  ;;  %v1679_v37 = vrot.slane %v1678_v27, 4  ;;  %v2622_v38 = vrot.slane %v2620_v29, 5  ;;  %v2636_v39 = vshll.u32 %v11197_v19, 16  ;;  %v11100_v40 = vrot.slane %v11070_v20, 9 }
  0xed   : > { %4468 = vmatmul.mubr.bf16.gmra.mrb[92].mxu1 %v12927_v22  ;;  %v1689_v42 = vrot.slane %v1688_v32, 4  ;;  %v2628_v43 = vrot.slane %v2626_v34, 5  ;;  %v2632_v44 = vrot.slane %v2630_v35, 4  ;;  %v2104_v31 = vrot.slane %v11071_v30, 5  ;;  %v11075_v32 = vld [vmem:[%s13225_s26 + $0x8c] sm:$0x1] }
  0xee   : > { %v1684_v45 = vsel %vm13248_vm5, %v1679_v37, %v1683_v23  ;;  %v2623_v47 = vor.u32 %v2622_v38, %v2619_v33  ;;  %v2638_v48 = vrot.slane %v2636_v39, 5  ;;  %v2107_v49 = vrot.slane %v11072_v36, 5  ;;  %v11009_v37 = vld [vmem:[%s13225_s26 + $0x84] sm:$0xf] }
  0xef   : > { %v1694_v52 = vsel %vm13248_vm5, %v1689_v42, %v1693_v28  ;;  %v2633_v53 = vor.u32 %v2632_v44, %v2628_v43  ;;  %v2105_v54 = vsel %vm13239_vm4, %v11100_v40, %v2104_v31  ;;  %v2106_v55 = vrot.slane %v2104_v31, 4  ;;  %v11010_v42 = vld [vmem:[%s13225_s26 + $0x88] sm:$0xf] }
  0xf0   : > { %v11035_v58 = vcombine.low %v1684_v45, %v1694_v52  ;;  %v2624_v59 = vrot.slane %v2623_v47, 4  ;;  %v1696_v60 = vshrl.u32 %v11006_v41, 16  ;;  %v1699_v61 = vshll.u32 %v11006_v41, 16 }
  0xf1   : > { %v2634_v0 = vrot.slane %v2633_v53, 4  ;;  %v2108_v1 = vsel %vm13239_vm4, %v2106_v55, %v2107_v49  ;;  %v1705_v2 = vshll.u32 %v11007_v50, 16  ;;  %v1709_v3 = vshrl.u32 %v11007_v50, 16  ;;  %v11011_v50 = vld [vmem:[%s13225_s26 + $0x8c] sm:$0x1] }
  0xf2   : > { %4315 = vmatmul.mubr.bf16.gmra.mrb[96].mxu0 %v11035_v58  ;;  %v2629_v7 = vsel %vm13248_vm5, %v2624_v59, %v2628_v43  ;;  %v11116_v8 = vcombine.low %v2105_v54, %v2108_v1  ;;  %v1698_v9 = vrot.slane %v1696_v60, 4  ;;  %v1701_v10 = vrot.slane %v1699_v61, 5  ;;  %v11201_v59 = vld [vmem:[%s13225_s26 + $0x90] sm:$0xf] }
  0xf3   : > { %v2639_v14 = vsel %vm13248_vm5, %v2634_v0, %v2638_v48  ;;  %v1707_v16 = vrot.slane %v1705_v2, 5  ;;  %v1711_v17 = vrot.slane %v1709_v3, 4  ;;  %v1715_v18 = vshll.u32 %v11008_v56, 16 }
  0xf4   : > { %v11227_v21 = vcombine.low %v2629_v7, %v2639_v14  ;;  %4322 = vmatprep.mubr.bf16.mxu0 %v11116_v8  ;;  %v1702_v22 = vor.u32 %v1701_v10, %v1698_v9  ;;  %v2641_v23 = vshrl.u32 %v11198_v57, 16  ;;  %v2644_v24 = vshll.u32 %v11198_v57, 16 }
  0xf5   : > { %v1712_v27 = vor.u32 %v1711_v17, %v1707_v16  ;;  %v1717_v28 = vrot.slane %v1715_v18, 5  ;;  %v2650_v29 = vshll.u32 %v11199_v62, 16  ;;  %v2654_v30 = vshrl.u32 %v11199_v62, 16  ;;  %v12930_v17 = vld [vmem:[%s13225_s26 + $0x84] sm:$0xff]  }
  0xf6   : > { %4475 = vmatprep.mubr.bf16.mxu1 %v11227_v21  ;;  %v1703_v33 = vrot.slane %v1702_v22, 4  ;;  %v2643_v34 = vrot.slane %v2641_v23, 4  ;;  %v2646_v35 = vrot.slane %v2644_v24, 5  ;;  %v2660_v36 = vshll.u32 %v11200_v4, 16  ;;  %v11203_v23 = vld [vmem:[%s13225_s26 + $0x98] sm:$0x1] }
  0xf7   : > { %4476 = vmatmul.mubr.bf16.gmra.mrb[96].mxu1 %v12929_v15  ;;  %v1713_v38 = vrot.slane %v1712_v27, 4  ;;  %v2652_v39 = vrot.slane %v2650_v29, 5  ;;  %v2656_v40 = vrot.slane %v2654_v30, 4  ;;  %v11101_v41 = vrot.slane %v11073_v11, 9  ;;  %v11202_v11 = vld [vmem:[%s13225_s26 + $0x94] sm:$0xf] }
  0xf8   : > { %v1708_v43 = vsel %vm13248_vm5, %v1703_v33, %v1707_v16  ;;  %v2647_v44 = vor.u32 %v2646_v35, %v2643_v34  ;;  %v2662_v31 = vrot.slane %v2660_v36, 5  ;;  %v2111_v45 = vrot.slane %v11074_v25, 5  ;;  %v11076_v34 = vld [vmem:[%s13225_s26 + $0x90] sm:$0xe] }
  0xf9   : > { %v1718_v47 = vsel %vm13248_vm5, %v1713_v38, %v1717_v28  ;;  %v2657_v48 = vor.u32 %v2656_v40, %v2652_v39  ;;  %v2114_v49 = vrot.slane %v11075_v32, 5  ;;  %v1720_v52 = vshrl.u32 %v11009_v37, 16 }
  0xfa   : > { %v11036_v55 = vcombine.low %v1708_v43, %v1718_v47  ;;  %v2648_v56 = vrot.slane %v2647_v44, 4  ;;  %v2112_v57 = vsel %vm13239_vm4, %v11101_v41, %v2111_v45  ;;  %v2113_v58 = vrot.slane %v2111_v45, 4  ;;  %v11078_v44 = vld [vmem:[%s13225_s26 + $0x98] sm:$0x1] }
  0xfb   : > { %v2658_v62 = vrot.slane %v2657_v48, 4  ;;  %v1722_v0 = vrot.slane %v1720_v52, 4  ;;  %v1723_v1 = vshll.u32 %v11009_v37, 16  ;;  %v1729_v2 = vshll.u32 %v11010_v42, 16 }
  0xfc   : > { %4323 = vmatmul.mubr.bf16.gmra.mrb[100].mxu0 %v11036_v55  ;;  %v2653_v7 = vsel %vm13248_vm5, %v2648_v56, %v2652_v39  ;;  %v2115_v8 = vsel %vm13239_vm4, %v2113_v58, %v2114_v49  ;;  %v1733_v9 = vshrl.u32 %v11010_v42, 16  ;;  %v1739_v10 = vshll.u32 %v11011_v50, 16  ;;  %v11077_v39 = vld [vmem:[%s13225_s26 + $0x94] sm:$0xf]  ;;  %v11014_v58 = vld [vmem:[%s13225_s26 + $0x98] sm:$0x1] }
  0xfd   : > { %v2663_v16 = vsel %vm13248_vm5, %v2658_v62, %v2662_v31  ;;  %v11117_v18 = vcombine.low %v2112_v57, %v2115_v8  ;;  %v1725_v21 = vrot.slane %v1723_v1, 5  ;;  %v1731_v22 = vrot.slane %v1729_v2, 5  ;;  %v11013_v55 = vld [vmem:[%s13225_s26 + $0x94] sm:$0xf] }
  0xfe   : > { %v11228_v24 = vcombine.low %v2653_v7, %v2663_v16  ;;  %v1735_v25 = vrot.slane %v1733_v9, 4  ;;  %v1741_v27 = vrot.slane %v1739_v10, 5  ;;  %v2665_v28 = vshrl.u32 %v11201_v59, 16 }
  0xff   : > { %4330 = vmatprep.mubr.bf16.mxu0 %v11117_v18  ;;  %v1726_v29 = vor.u32 %v1725_v21, %v1722_v0  ;;  %v2668_v30 = vshll.u32 %v11201_v59, 16  ;;  %v2674_v32 = vshll.u32 %v11202_v11, 16  ;;  %v2678_v33 = vshrl.u32 %v11202_v11, 16  ;;  %v11204_v59 = vld [vmem:[%s13225_s26 + $0x9c] sm:$0xf] }
 0x100   : > { %4483 = vmatprep.mubr.bf16.mxu1 %v11228_v24  ;;  %v1736_v35 = vor.u32 %v1735_v25, %v1731_v22  ;;  %v2667_v36 = vrot.slane %v2665_v28, 4  ;;  %v2684_v37 = vshll.u32 %v11203_v23, 16  ;;  %v1753_v16 = vshll.u32 %v11013_v55, 16  ;;  %v12932_v23 = vld [vmem:[%s13225_s26 + $0x90] sm:$0xff]  }
 0x101   : > { %4484 = vmatmul.mubr.bf16.gmra.mrb[100].mxu1 %v12930_v17  ;;  %v1727_v40 = vrot.slane %v1726_v29, 4  ;;  %v2670_v41 = vrot.slane %v2668_v30, 5  ;;  %v2676_v42 = vrot.slane %v2674_v32, 5  ;;  %v2680_v43 = vrot.slane %v2678_v33, 4  ;;  %v11206_v33 = vld [vmem:[%s13225_s26 + $0xa4] sm:$0x1] }
 0x102   : > { %v13833_v5 = vpop.f32.mrb[0].mxu0  ;;  %v1737_v31 = vrot.slane %v1736_v35, 4  ;;  %v2686_v45 = vrot.slane %v2684_v37, 5  ;;  %v1757_v25 = vshrl.u32 %v11013_v55, 16  ;;  %v1755_v32 = vrot.slane %v1753_v16, 5 }
 0x103   : > { %v13828_v63 = vpop.f32.mrb[0].mxu1  ;;  %v13840_v12 = vpop.f32.mrb[1].mxu0  ;;  %v1732_v48 = vsel %vm13248_vm5, %v1727_v40, %v1731_v22  ;;  %v2671_v49 = vor.u32 %v2670_v41, %v2667_v36  ;;  %v2681_v50 = vor.u32 %v2680_v43, %v2676_v42  ;;  %v1763_v36 = vshll.u32 %v11014_v58, 16  ;;  %v11081_v58 = vld [vmem:[%s13225_s26 + $0xa4] sm:$0x1] }
 0x104   : > { %v13835_v6 = vpop.f32.mrb[1].mxu1  ;;  %v13847_v19 = vpop.f32.mrb[2].mxu0  ;;  %v13893_v38 = vadd.f32 %v13840_v12, %v13833_v5  ;;  %v11012_v12 = vld [vmem:[%s13225_s26 + $0x90] sm:$0xf]  ;;  %v1759_v35 = vrot.slane %v1757_v25, 4  ;;  %v2689_v37 = vshrl.u32 %v11204_v59, 16 }
 0x105   : > { %v13842_v13 = vpop.f32.mrb[2].mxu1  ;;  %v13852_v26 = vpop.f32.mrb[3].mxu0  ;;  %v13899_v47 = vadd.f32 %v13835_v6, %v13828_v63  ;;  %v1742_v63 = vsel %vm13248_vm5, %v1737_v31, %v1741_v27  ;;  %v11102_v6 = vrot.slane %v11076_v34, 9  ;;  %v2682_v1 = vrot.slane %v2681_v50, 4  ;;  %v11205_v27 = vld [vmem:[%s13225_s26 + $0xa0] sm:$0xf] }
 0x106   : > { %v13849_v20 = vpop.f32.mrb[3].mxu1  ;;  %v13903_v5 = vadd.f32 %v13852_v26, %v13847_v19  ;;  %v2118_v19 = vrot.slane %v11077_v39, 5  ;;  %v2121_v26 = vrot.slane %v11078_v44, 5  ;;  %v1744_v2 = vshrl.u32 %v11012_v12, 16  ;;  %v11079_v44 = vld [vmem:[%s13225_s26 + $0x9c] sm:$0xe] }
 0x107   : > { %v13910_v52 = vadd.f32 %v13849_v20, %v13842_v13  ;;  %v11037_v13 = vcombine.low %v1732_v48, %v1742_v63  ;;  %v2672_v20 = vrot.slane %v2671_v49, 4  ;;  %v1747_v11 = vshll.u32 %v11012_v12, 16  ;;  %v11080_v50 = vld [vmem:[%s13225_s26 + $0xa0] sm:$0xf]  ;;  %v11015_v16 = vld [vmem:[%s13225_s26 + $0x9c] sm:$0xf] }
 0x108   : > { %v2119_v9 = vsel %vm13239_vm4, %v11102_v6, %v2118_v19  ;;  %v2120_v10 = vrot.slane %v2118_v19, 4  ;;  %v2687_v22 = vsel %vm13248_vm5, %v2682_v1, %v2686_v45  ;;  %v1746_v24 = vrot.slane %v1744_v2, 4 }
 0x109   : > { %17616 = vst [vmem:[#allocation6_spill] sm:$0xff] %v13910_v52  ;;  %4331 = vmatmul.mubr.bf16.gmra.mrb[104].mxu0 %v11037_v13  ;;  %v2677_v21 = vsel %vm13248_vm5, %v2672_v20, %v2676_v42  ;;  %v1749_v30 = vrot.slane %v1747_v11, 5  ;;  %v2692_v41 = vshll.u32 %v11204_v59, 16  ;;  %v2698_v42 = vshll.u32 %v11205_v27, 16  ;;  %v11235_v52 = vld [vmem:[%s13225_s26 + $0x18] sm:$0xe] }
 0x10a   : > { %v13862_v53 = vpop.f32.mrb[4].mxu0  ;;  %v11229_v28 = vcombine.low %v2677_v21, %v2687_v22  ;;  %v2122_v29 = vsel %vm13239_vm4, %v2120_v10, %v2121_v26  ;;  %v2702_v43 = vshrl.u32 %v11205_v27, 16  ;;  %v1760_v45 = vor.u32 %v1759_v35, %v1755_v32  ;;  %v11207_v35 = vld [vmem:[%s13225_s26 + $0xa8] sm:$0xf] }
 0x10b   : > { %v13864_v54 = vpop.f32.mrb[4].mxu1  ;;  %v13869_v60 = vpop.f32.mrb[5].mxu0  ;;  %v11118_v34 = vcombine.low %v2119_v9, %v2122_v29  ;;  %v1750_v40 = vor.u32 %v1749_v30, %v1746_v24  ;;  %v1765_v12 = vrot.slane %v1763_v36, 5  ;;  %v2691_v48 = vrot.slane %v2689_v37, 4  ;;  %v11017_v30 = vld [vmem:[%s13225_s26 + $0xa4] sm:$0x1] }
 0x10c   : > { %v13871_v61 = vpop.f32.mrb[5].mxu1  ;;  %v13873_v3 = vpop.f32.mrb[6].mxu0  ;;  %4491 = vmatprep.mubr.bf16.mxu1 %v11229_v28  ;;  %v2708_v49 = vshll.u32 %v11206_v33, 16  ;;  %v2694_v6 = vrot.slane %v2692_v41, 5  ;;  %v2700_v19 = vrot.slane %v2698_v42, 5  ;;  %v2704_v26 = vrot.slane %v2702_v43, 4 }
 0x10d   : > { %v13875_v4 = vpop.f32.mrb[6].mxu1  ;;  %v13882_v14 = vpop.f32.mrb[7].mxu0  ;;  %4492 = vmatmul.mubr.bf16.gmra.mrb[104].mxu1 %v12932_v23  ;;  %4338 = vmatprep.mubr.bf16.mxu0 %v11118_v34  ;;  %v1751_v63 = vrot.slane %v1750_v40, 4  ;;  %v1761_v59 = vrot.slane %v1760_v45, 4  ;;  %v13955_v20 = vadd.f32 %v13869_v60, %v13862_v53  ;;  %v13959_v1 = vadd.f32 %v13871_v61, %v13864_v54  ;;  %v11016_v23 = vld [vmem:[%s13225_s26 + $0xa0] sm:$0xf] }
 0x10e   : > { %v13884_v15 = vpop.f32.mrb[7].mxu1  ;;  %v2710_v13 = vrot.slane %v2708_v49, 5  ;;  %v2695_v9 = vor.u32 %v2694_v6, %v2691_v48  ;;  %v2705_v10 = vor.u32 %v2704_v26, %v2700_v19  ;;  %v13965_v11 = vadd.f32 %v13882_v14, %v13873_v3  ;;  %v12933_v28 = vld [vmem:[%s13225_s26 + $0x9c] sm:$0xff]   ;;  %v11208_v43 = vld [vmem:[%s13225_s26 + $0xac] sm:$0xf] }
 0x10f   : > { %17617 = vst [vmem:[#allocation7_spill] sm:$0xff] %v13955_v20  ;;  %17618 = vst [vmem:[#allocation8_spill] sm:$0xff] %v13959_v1  ;;  %v1756_v2 = vsel %vm13248_vm5, %v1751_v63, %v1755_v32  ;;  %v1766_v54 = vsel %vm13248_vm5, %v1761_v59, %v1765_v12  ;;  %v13976_v60 = vadd.f32 %v13884_v15, %v13875_v4  ;;  %v11103_v61 = vrot.slane %v11079_v44, 9  ;;  %v11209_v49 = vld [vmem:[%s13225_s26 + $0xb0] sm:$0x1] }
 0x110   : > { %17619 = vst [vmem:[#allocation9_spill] sm:$0xff] %v13965_v11  ;;  %v2125_v22 = vrot.slane %v11080_v50, 5  ;;  %v11038_v14 = vcombine.low %v1756_v2, %v1766_v54  ;;  %v2696_v25 = vrot.slane %v2695_v9, 4  ;;  %v2706_v27 = vrot.slane %v2705_v10, 4  ;;  %v11082_v9 = vld [vmem:[%s13225_s26 + $0xa8] sm:$0xe] }
 0x111   : > { %17620 = vst [vmem:[#allocation10_spill] sm:$0xff] %v13976_v60  ;;  %v2128_v29 = vrot.slane %v11081_v58, 5  ;;  %v1768_v33 = vshrl.u32 %v11015_v16, 16  ;;  %v1771_v34 = vshll.u32 %v11015_v16, 16  ;;  %v1777_v41 = vshll.u32 %v11016_v23, 16 }
 0x112   : > { %v13913_v56 = vpop.f32.mrb[8].mxu0  ;;  %v2126_v4 = vsel %vm13239_vm4, %v11103_v61, %v2125_v22  ;;  %v2127_v15 = vrot.slane %v2125_v22, 4  ;;  %4339 = vmatmul.mubr.bf16.gmra.mrb[108].mxu0 %v11038_v14  ;;  %v2701_v37 = vsel %vm13248_vm5, %v2696_v25, %v2700_v19  ;;  %v2711_v40 = vsel %vm13248_vm5, %v2706_v27, %v2710_v13  ;;  %v11084_v14 = vld [vmem:[%s13225_s26 + $0xb0] sm:$0x1]  ;;  %v11218_v11 = vld [vmem:[%s13225_s26 + $0xd4] sm:$0x1] }
 0x113   : > { %v13915_v57 = vpop.f32.mrb[8].mxu1  ;;  %v13921_v62 = vpop.f32.mrb[9].mxu0  ;;  %v1781_v42 = vshrl.u32 %v11016_v23, 16  ;;  %v11230_v44 = vcombine.low %v2701_v37, %v2711_v40  ;;  %v1770_v12 = vrot.slane %v1768_v33, 4  ;;  %v1773_v48 = vrot.slane %v1771_v34, 5 }
 0x114   : > { %v13923_v0 = vpop.f32.mrb[9].mxu1  ;;  %v13925_v7 = vpop.f32.mrb[10].mxu0  ;;  %v2129_v45 = vsel %vm13239_vm4, %v2127_v15, %v2128_v29  ;;  %v1779_v63 = vrot.slane %v1777_v41, 5  ;;  %v1787_v26 = vshll.u32 %v11017_v30, 16  ;;  %v2713_v59 = vshrl.u32 %v11207_v35, 16 }
 0x115   : > { %v13927_v8 = vpop.f32.mrb[10].mxu1  ;;  %v13931_v17 = vpop.f32.mrb[11].mxu0  ;;  %v11119_v50 = vcombine.low %v2126_v4, %v2129_v45  ;;  %v1783_v6 = vrot.slane %v1781_v42, 4  ;;  %4499 = vmatprep.mubr.bf16.mxu1 %v11230_v44  ;;  %v1774_v58 = vor.u32 %v1773_v48, %v1770_v12  ;;  %v2716_v13 = vshll.u32 %v11207_v35, 16  ;;  %v11083_v23 = vld [vmem:[%s13225_s26 + $0xac] sm:$0xf] }
 0x116   : > { %v13933_v18 = vpop.f32.mrb[11].mxu1  ;;  %v2722_v2 = vshll.u32 %v11208_v43, 16  ;;  %4500 = vmatmul.mubr.bf16.gmra.mrb[108].mxu1 %v12933_v28  ;;  %v1789_v54 = vrot.slane %v1787_v26, 5  ;;  %v2726_v61 = vshrl.u32 %v11208_v43, 16  ;;  %v2732_v22 = vshll.u32 %v11209_v49, 16 }
 0x117   : > { %4346 = vmatprep.mubr.bf16.mxu0 %v11119_v50  ;;  %v1784_v16 = vor.u32 %v1783_v6, %v1779_v63  ;;  %v1775_v27 = vrot.slane %v1774_v58, 4  ;;  %v2715_v29 = vrot.slane %v2713_v59, 4  ;;  %v2718_v30 = vrot.slane %v2716_v13, 5  ;;  %v11018_v44 = vld [vmem:[%s13225_s26 + $0xa8] sm:$0xf] }
 0x118   : > { %v2724_v4 = vrot.slane %v2722_v2, 5  ;;  %v2728_v33 = vrot.slane %v2726_v61, 4  ;;  %v2734_v34 = vrot.slane %v2732_v22, 5  ;;  %v14011_v28 = vadd.f32 %v13921_v62, %v13913_v56  ;;  %v11019_v56 = vld [vmem:[%s13225_s26 + $0xac] sm:$0xf] }
 0x119   : > { %v1785_v15 = vrot.slane %v1784_v16, 4  ;;  %v1780_v40 = vsel %vm13248_vm5, %v1775_v27, %v1779_v63  ;;  %v2719_v41 = vor.u32 %v2718_v30, %v2715_v29  ;;  %v14021_v42 = vadd.f32 %v13923_v0, %v13915_v57  ;;  %v12935_v58 = vld [vmem:[%s13225_s26 + $0xa8] sm:$0xff]   ;;  %v11020_v59 = vld [vmem:[%s13225_s26 + $0xb0] sm:$0x1]  ;;  %v11210_v61 = vld [vmem:[%s13225_s26 + $0xb4] sm:$0xf] }
 0x11a   : > { %v13944_v39 = vpop.f32.mrb[12].mxu0  ;;  %17621 = vst [vmem:[#allocation11_spill] sm:$0xff] %v14011_v28  ;;  %v14025_v43 = vadd.f32 %v13931_v17, %v13925_v7  ;;  %v2729_v48 = vor.u32 %v2728_v33, %v2724_v4  ;;  %v14037_v57 = vadd.f32 %v13933_v18, %v13927_v8  ;;  %v11104_v0 = vrot.slane %v11082_v9, 9  ;;  %v11211_v22 = vld [vmem:[%s13225_s26 + $0xb8] sm:$0xf] }
 0x11b   : > { %v13947_v31 = vpop.f32.mrb[12].mxu1  ;;  %v13950_v55 = vpop.f32.mrb[13].mxu0  ;;  %17622 = vst [vmem:[#allocation12_spill] sm:$0xff] %v14021_v42  ;;  %v1790_v12 = vsel %vm13248_vm5, %v1785_v15, %v1789_v54  ;;  %v2720_v17 = vrot.slane %v2719_v41, 4  ;;  %v2132_v50 = vrot.slane %v11083_v23, 5  ;;  %v2135_v63 = vrot.slane %v11084_v14, 5 }
 0x11c   : > { %v13968_v21 = vpop.f32.mrb[13].mxu1  ;;  %v13970_v53 = vpop.f32.mrb[14].mxu0  ;;  %17623 = vst [vmem:[#allocation13_spill] sm:$0xff] %v14025_v43  ;;  %17624 = vst [vmem:[#allocation14_spill] sm:$0xff] %v14037_v57  ;;  %v11039_v7 = vcombine.low %v1780_v40, %v1790_v12  ;;  %v2730_v26 = vrot.slane %v2729_v48, 4  ;;  %v1792_v13 = vshrl.u32 %v11018_v44, 16 }
 0x11d   : > { %v13979_v24 = vpop.f32.mrb[14].mxu1  ;;  %v13981_v3 = vpop.f32.mrb[15].mxu0  ;;  %v1795_v2 = vshll.u32 %v11018_v44, 16  ;;  %v1801_v16 = vshll.u32 %v11019_v56, 16  ;;  %v2725_v8 = vsel %vm13248_vm5, %v2720_v17, %v2724_v4  ;;  %v2133_v18 = vsel %vm13239_vm4, %v11104_v0, %v2132_v50  ;;  %v11212_v30 = vld [vmem:[%s13225_s26 + $0xbc] sm:$0x1] }
 0x11e   : > { %v13985_v32 = vpop.f32.mrb[15].mxu1  ;;  %4347 = vmatmul.mubr.bf16.gmra.mrb[112].mxu0 %v11039_v7  ;;  %v2134_v9 = vrot.slane %v2132_v50, 4  ;;  %v1805_v54 = vshrl.u32 %v11019_v56, 16  ;;  %v2735_v23 = vsel %vm13248_vm5, %v2730_v26, %v2734_v34  ;;  %v1794_v14 = vrot.slane %v1792_v13, 4  ;;  %v11085_v13 = vld [vmem:[%s13225_s26 + $0xb4] sm:$0xe] }
 0x11f   : > { %v1797_v27 = vrot.slane %v1795_v2, 5  ;;  %v1803_v29 = vrot.slane %v1801_v16, 5  ;;  %v11231_v33 = vcombine.low %v2725_v8, %v2735_v23  ;;  %v1811_v41 = vshll.u32 %v11020_v59, 16  ;;  %v11090_v42 = vld [vmem:[%s13225_s26 + $0xc8] sm:$0x1] }
 0x120   : > { %v2136_v4 = vsel %vm13239_vm4, %v2134_v9, %v2135_v63  ;;  %v1807_v40 = vrot.slane %v1805_v54, 4  ;;  %v2737_v12 = vshrl.u32 %v11210_v61, 16  ;;  %v2740_v48 = vshll.u32 %v11210_v61, 16 }
 0x121   : > { %v11120_v44 = vcombine.low %v2133_v18, %v2136_v4  ;;  %v1798_v56 = vor.u32 %v1797_v27, %v1794_v14  ;;  %4507 = vmatprep.mubr.bf16.mxu1 %v11231_v33  ;;  %v1813_v17 = vrot.slane %v1811_v41, 5  ;;  %v2746_v50 = vshll.u32 %v11211_v22, 16  ;;  %v11087_v41 = vld [vmem:[%s13225_s26 + $0xbc] sm:$0x1] }
 0x122   : > { %v13990_v36 = vpop.f32.mrb[16].mxu0  ;;  %v1808_v7 = vor.u32 %v1807_v40, %v1803_v29  ;;  %v2750_v26 = vshrl.u32 %v11211_v22, 16  ;;  %4508 = vmatmul.mubr.bf16.gmra.mrb[112].mxu1 %v12935_v58  ;;  %v2739_v16 = vrot.slane %v2737_v12, 4  ;;  %v2742_v8 = vrot.slane %v2740_v48, 5  ;;  %v11086_v58 = vld [vmem:[%s13225_s26 + $0xb8] sm:$0xf] }
 0x123   : > { %v14000_v19 = vpop.f32.mrb[16].mxu1  ;;  %v14003_v10 = vpop.f32.mrb[17].mxu0  ;;  %4354 = vmatprep.mubr.bf16.mxu0 %v11120_v44  ;;  %v1799_v59 = vrot.slane %v1798_v56, 4  ;;  %v2756_v18 = vshll.u32 %v11212_v30, 16  ;;  %v2748_v22 = vrot.slane %v2746_v50, 5  ;;  %v14073_v14 = vadd.f32 %v13950_v55, %v13944_v39 }
 0x124   : > { %v14007_v25 = vpop.f32.mrb[17].mxu1  ;;  %v14013_v35 = vpop.f32.mrb[18].mxu0  ;;  %v1809_v61 = vrot.slane %v1808_v7, 4  ;;  %v2752_v23 = vrot.slane %v2750_v26, 4  ;;  %v2743_v30 = vor.u32 %v2742_v8, %v2739_v16  ;;  %v14082_v40 = vadd.f32 %v13968_v21, %v13947_v31  ;;  %v11021_v44 = vld [vmem:[%s13225_s26 + $0xb4] sm:$0xf] }
 0x125   : > { %v14015_v37 = vpop.f32.mrb[18].mxu1  ;;  %v14029_v62 = vpop.f32.mrb[19].mxu0  ;;  %17625 = vst [vmem:[#allocation15_spill] sm:$0xff] %v14073_v14  ;;  %v1804_v33 = vsel %vm13248_vm5, %v1799_v59, %v1803_v29  ;;  %v2758_v4 = vrot.slane %v2756_v18, 5  ;;  %v14092_v12 = vadd.f32 %v13981_v3, %v13970_v53  ;;  %v14096_v29 = vadd.f32 %v13985_v32, %v13979_v24  ;;  %v11022_v48 = vld [vmem:[%s13225_s26 + $0xb8] sm:$0xf] }
 0x126   : > { %v14031_v45 = vpop.f32.mrb[19].mxu1  ;;  %17626 = vst [vmem:[#allocation16_spill] sm:$0xff] %v14082_v40  ;;  %v1814_v39 = vsel %vm13248_vm5, %v1809_v61, %v1813_v17  ;;  %v2753_v55 = vor.u32 %v2752_v23, %v2748_v22  ;;  %v11023_v7 = vld [vmem:[%s13225_s26 + $0xbc] sm:$0x1]  ;;  %v2744_v26 = vrot.slane %v2743_v30, 4  ;;  %v11105_v17 = vrot.slane %v11085_v13, 9 }
 0x127   : > { %17627 = vst [vmem:[#allocation17_spill] sm:$0xff] %v14092_v12  ;;  %17628 = vst [vmem:[#allocation18_spill] sm:$0xff] %v14096_v29  ;;  %v11040_v50 = vcombine.low %v1804_v33, %v1814_v39  ;;  %v2139_v59 = vrot.slane %v11086_v58, 5  ;;  %v2142_v24 = vrot.slane %v11087_v41, 5  ;;  %v1816_v32 = vshrl.u32 %v11021_v44, 16  ;;  %v12936_v23 = vld [vmem:[%s13225_s26 + $0xb4] sm:$0xff]  }
 0x128   : > { %v2754_v3 = vrot.slane %v2753_v55, 4  ;;  %v1819_v8 = vshll.u32 %v11021_v44, 16  ;;  %v2749_v61 = vsel %vm13248_vm5, %v2744_v26, %v2748_v22  ;;  %v1825_v33 = vshll.u32 %v11022_v48, 16  ;;  %v11213_v30 = vld [vmem:[%s13225_s26 + $0xc0] sm:$0xf] }
 0x129   : > { %4355 = vmatmul.mubr.bf16.gmra.mrb[116].mxu0 %v11040_v50  ;;  %v2140_v13 = vsel %vm13239_vm4, %v11105_v17, %v2139_v59  ;;  %v2141_v58 = vrot.slane %v2139_v59, 4  ;;  %v1818_v41 = vrot.slane %v1816_v32, 4  ;;  %v1829_v44 = vshrl.u32 %v11022_v48, 16  ;;  %v11214_v29 = vld [vmem:[%s13225_s26 + $0xc4] sm:$0xf] }
 0x12a   : > { %v14039_v49 = vpop.f32.mrb[20].mxu0  ;;  %v2759_v39 = vsel %vm13248_vm5, %v2754_v3, %v2758_v4  ;;  %v1821_v55 = vrot.slane %v1819_v8, 5  ;;  %v1827_v26 = vrot.slane %v1825_v33, 5  ;;  %v1835_v17 = vshll.u32 %v11023_v7, 16  ;;  %v11215_v59 = vld [vmem:[%s13225_s26 + $0xc8] sm:$0x1] }
 0x12b   : > { %v14041_v6 = vpop.f32.mrb[20].mxu1  ;;  %v14054_v15 = vpop.f32.mrb[21].mxu0  ;;  %v11232_v50 = vcombine.low %v2749_v61, %v2759_v39  ;;  %v2143_v22 = vsel %vm13239_vm4, %v2141_v58, %v2142_v24  ;;  %v1831_v57 = vrot.slane %v1829_v44, 4  ;;  %v2761_v43 = vshrl.u32 %v11213_v30, 16  ;;  %v11088_v39 = vld [vmem:[%s13225_s26 + $0xc0] sm:$0xe] }
 0x12c   : > { %v14058_v0 = vpop.f32.mrb[21].mxu1  ;;  %v14060_v34 = vpop.f32.mrb[22].mxu0  ;;  %v11121_v40 = vcombine.low %v2140_v13, %v2143_v22  ;;  %v1822_v14 = vor.u32 %v1821_v55, %v1818_v41  ;;  %v1837_v48 = vrot.slane %v1835_v17, 5  ;;  %v2764_v32 = vshll.u32 %v11213_v30, 16  ;;  %v11089_v24 = vld [vmem:[%s13225_s26 + $0xc4] sm:$0xf] }
 0x12d   : > { %v14063_v2 = vpop.f32.mrb[22].mxu1  ;;  %v14065_v63 = vpop.f32.mrb[23].mxu0  ;;  %4515 = vmatprep.mubr.bf16.mxu1 %v11232_v50  ;;  %v2770_v8 = vshll.u32 %v11214_v29, 16  ;;  %v2774_v61 = vshrl.u32 %v11214_v29, 16  ;;  %v1832_v33 = vor.u32 %v1831_v57, %v1827_v26  ;;  %v2763_v41 = vrot.slane %v2761_v43, 4 }
 0x12e   : > { %v14067_v9 = vpop.f32.mrb[23].mxu1  ;;  %4516 = vmatmul.mubr.bf16.gmra.mrb[116].mxu1 %v12936_v23  ;;  %4362 = vmatprep.mubr.bf16.mxu0 %v11121_v40  ;;  %v1823_v13 = vrot.slane %v1822_v14, 4  ;;  %v2780_v55 = vshll.u32 %v11215_v59, 16  ;;  %v2766_v29 = vrot.slane %v2764_v32, 5  ;;  %v14140_v17 = vadd.f32 %v14003_v10, %v13990_v36  ;;  %v11024_v59 = vld [vmem:[%s13225_s26 + $0xc0] sm:$0xf] }
 0x12f   : > { %v2772_v30 = vrot.slane %v2770_v8, 5  ;;  %v2776_v22 = vrot.slane %v2774_v61, 4  ;;  %v1833_v57 = vrot.slane %v1832_v33, 4  ;;  %v14149_v23 = vadd.f32 %v14007_v25, %v14000_v19  ;;  %v11025_v61 = vld [vmem:[%s13225_s26 + $0xc4] sm:$0xf] }
 0x130   : > { %17629 = vst [vmem:[#allocation19_spill] sm:$0xff] %v14140_v17  ;;  %v1828_v43 = vsel %vm13248_vm5, %v1823_v13, %v1827_v26  ;;  %v2782_v14 = vrot.slane %v2780_v55, 5  ;;  %v2767_v32 = vor.u32 %v2766_v29, %v2763_v41  ;;  %v14154_v36 = vadd.f32 %v14029_v62, %v14013_v35  ;;  %v11026_v25 = vld [vmem:[%s13225_s26 + $0xc8] sm:$0x1]  ;;  %v11216_v55 = vld [vmem:[%s13225_s26 + $0xcc] sm:$0xf] }
 0x131   : > { %17630 = vst [vmem:[#allocation20_spill] sm:$0xff] %v14149_v23  ;;  %v2777_v8 = vor.u32 %v2776_v22, %v2772_v30  ;;  %v14158_v10 = vadd.f32 %v14031_v45, %v14015_v37  ;;  %v1838_v26 = vsel %vm13248_vm5, %v1833_v57, %v1837_v48  ;;  %v11106_v13 = vrot.slane %v11088_v39, 9  ;;  %v11217_v17 = vld [vmem:[%s13225_s26 + $0xd0] sm:$0xf] }
 0x132   : > { %v14069_v54 = vpop.f32.mrb[24].mxu0  ;;  %17631 = vst [vmem:[#allocation21_spill] sm:$0xff] %v14154_v36  ;;  %v2146_v33 = vrot.slane %v11089_v24, 5  ;;  %v2149_v19 = vrot.slane %v11090_v42, 5  ;;  %v11041_v35 = vcombine.low %v1828_v43, %v1838_v26  ;;  %v2768_v62 = vrot.slane %v2767_v32, 4  ;;  %v12938_v36 = vld [vmem:[%s13225_s26 + $0xc0] sm:$0xff]  }
 0x133   : > { %v14076_v27 = vpop.f32.mrb[24].mxu1  ;;  %v14086_v56 = vpop.f32.mrb[25].mxu0  ;;  %17632 = vst [vmem:[#allocation22_spill] sm:$0xff] %v14158_v10  ;;  %v2778_v22 = vrot.slane %v2777_v8, 4  ;;  %v1840_v37 = vshrl.u32 %v11024_v59, 16  ;;  %v1843_v39 = vshll.u32 %v11024_v59, 16 }
 0x134   : > { %v14100_v31 = vpop.f32.mrb[25].mxu1  ;;  %v14102_v21 = vpop.f32.mrb[26].mxu0  ;;  %v2147_v48 = vsel %vm13239_vm4, %v11106_v13, %v2146_v33  ;;  %v2148_v42 = vrot.slane %v2146_v33, 4  ;;  %v1849_v24 = vshll.u32 %v11025_v61, 16  ;;  %4363 = vmatmul.mubr.bf16.gmra.mrb[120].mxu0 %v11041_v35  ;;  %v2773_v43 = vsel %vm13248_vm5, %v2768_v62, %v2772_v30 }
 0x135   : > { %v14104_v16 = vpop.f32.mrb[26].mxu1  ;;  %v14106_v53 = vpop.f32.mrb[27].mxu0  ;;  %v2783_v32 = vsel %vm13248_vm5, %v2778_v22, %v2782_v14  ;;  %v1842_v8 = vrot.slane %v1840_v37, 4  ;;  %v1853_v26 = vshrl.u32 %v11025_v61, 16  ;;  %v1845_v60 = vrot.slane %v1843_v39, 5 }
 0x136   : > { %v14108_v18 = vpop.f32.mrb[27].mxu1  ;;  %v11233_v13 = vcombine.low %v2773_v43, %v2783_v32  ;;  %v2150_v33 = vsel %vm13239_vm4, %v2148_v42, %v2149_v19  ;;  %v1851_v35 = vrot.slane %v1849_v24, 5  ;;  %v1859_v62 = vshll.u32 %v11026_v25, 16  ;;  %v11236_v39 = vld [vmem:[%s13225_s26 + $0x1c] sm:$0xf] }
 0x137   : > { %v11122_v1 = vcombine.low %v2147_v48, %v2150_v33  ;;  %v1855_v30 = vrot.slane %v1853_v26, 4  ;;  %v2785_v14 = vshrl.u32 %v11216_v55, 16  ;;  %v1846_v61 = vor.u32 %v1845_v60, %v1842_v8 }
 0x138   : > { %4523 = vmatprep.mubr.bf16.mxu1 %v11233_v13  ;;  %v2788_v22 = vshll.u32 %v11216_v55, 16  ;;  %v2794_v37 = vshll.u32 %v11217_v17, 16  ;;  %v2798_v20 = vshrl.u32 %v11217_v17, 16  ;;  %v1861_v32 = vrot.slane %v1859_v62, 5  ;;  %v11237_v13 = vld [vmem:[%s13225_s26 + $0x20] sm:$0x1] }
 0x139   : > { %4524 = vmatmul.mubr.bf16.gmra.mrb[120].mxu1 %v12938_v36  ;;  %4370 = vmatprep.mubr.bf16.mxu0 %v11122_v1  ;;  %v1856_v43 = vor.u32 %v1855_v30, %v1851_v35  ;;  %v2787_v19 = vrot.slane %v2785_v14, 4  ;;  %v2804_v42 = vshll.u32 %v11218_v11, 16  ;;  %v1847_v48 = vrot.slane %v1846_v61, 4  ;;  %v11239_v61 = vld [vmem:[%s13225_s26 + $0x28] sm:$0xf] }
 0x13a   : > { %v14119_v12 = vpop.f32.mrb[28].mxu0  ;;  %v2790_v26 = vrot.slane %v2788_v22, 5  ;;  %v2796_v25 = vrot.slane %v2794_v37, 5  ;;  %v2800_v60 = vrot.slane %v2798_v20, 4  ;;  %v14202_v8 = vadd.f32 %v14054_v15, %v14039_v49  ;;  %v11238_v15 = vld [vmem:[%s13225_s26 + $0x24] sm:$0xe] }
 0x13b   : > { %v14124_v4 = vpop.f32.mrb[28].mxu1  ;;  %v14126_v3 = vpop.f32.mrb[29].mxu0  ;;  %v1857_v36 = vrot.slane %v1856_v43, 4  ;;  %v2806_v1 = vrot.slane %v2804_v42, 5  ;;  %v14206_v11 = vadd.f32 %v14058_v0, %v14041_v6  ;;  %v1852_v20 = vsel %vm13248_vm5, %v1847_v48, %v1851_v35 }
 0x13c   : > { %v14130_v58 = vpop.f32.mrb[29].mxu1  ;;  %v14132_v7 = vpop.f32.mrb[30].mxu0  ;;  %v2791_v62 = vor.u32 %v2790_v26, %v2787_v19  ;;  %v2801_v14 = vor.u32 %v2800_v60, %v2796_v25  ;;  %v14217_v49 = vadd.f32 %v14065_v63, %v14060_v34  ;;  %v14229_v35 = vadd.f32 %v14067_v9, %v14063_v2  ;;  %v11240_v19 = vld [vmem:[%s13225_s26 + $0x2c] sm:$0x1]  ;;  %v11241_v60 = vld [vmem:[%s13225_s26 + $0x30] sm:$0xe] }
 0x13d   : > { %v14134_v44 = vpop.f32.mrb[30].mxu1  ;;  %v14136_v50 = vpop.f32.mrb[31].mxu0  ;;  %v1862_v22 = vsel %vm13248_vm5, %v1857_v36, %v1861_v32  ;;  %v11283_v37 = vrot.slane %v11235_v52, 9  ;;  %v2986_v43 = vrot.slane %v11236_v39, 5  ;;  %v2989_v26 = vrot.slane %v11237_v13, 5 }
 0x13e   : > { %v14143_v40 = vpop.f32.mrb[31].mxu1  ;;  %v11042_v63 = vcombine.low %v1852_v20, %v1862_v22  ;;  %v2792_v42 = vrot.slane %v2791_v62, 4  ;;  %v2802_v48 = vrot.slane %v2801_v14, 4  ;;  %v11284_v2 = vrot.slane %v11238_v15, 9  ;;  %v11242_v9 = vld [vmem:[%s13225_s26 + $0x34] sm:$0xf] }
 0x13f   : > { %v2987_v32 = vsel %vm13239_vm4, %v11283_v37, %v2986_v43  ;;  %v2988_v36 = vrot.slane %v2986_v43, 4  ;;  %v2993_v52 = vrot.slane %v11239_v61, 5  ;;  %v12939_v62 = vld [vmem:[%s13225_s26 + $0xcc] sm:$0xff]   ;;  %v2996_v13 = vrot.slane %v11240_v19, 5  ;;  %v11243_v15 = vld [vmem:[%s13225_s26 + $0x38] sm:$0x1] }
 0x140   : > { %4371 = vmatmul.mubr.bf16.gmra.mrb[124].mxu0 %v11042_v63  ;;  %v2797_v39 = vsel %vm13248_vm5, %v2792_v42, %v2796_v25  ;;  %v2807_v20 = vsel %vm13248_vm5, %v2802_v48, %v2806_v1  ;;  %v14245_v14 = vadd.f32 %v14086_v56, %v14069_v54  ;;  %v11244_v22 = vld [vmem:[%s13225_s26 + $0x3c] sm:$0xe]  ;;  %v11245_v1 = vld [vmem:[%s13225_s26 + $0x40] sm:$0xf]  ;;  %v11246_v63 = vld [vmem:[%s13225_s26 + $0x44] sm:$0x1]  ;;  %v14259_v54 = vadd.f32 %v14100_v31, %v14076_v27 }
 0x141   : > { %v11234_v61 = vcombine.low %v2797_v39, %v2807_v20  ;;  %v2990_v37 = vsel %vm13239_vm4, %v2988_v36, %v2989_v26  ;;  %v2994_v25 = vsel %vm13239_vm4, %v11284_v2, %v2993_v52  ;;  %v2995_v43 = vrot.slane %v2993_v52, 4  ;;  %v11247_v26 = vld [vmem:[%s13225_s26 + $0x48] sm:$0xe]  ;;  %v11248_v36 = vld [vmem:[%s13225_s26 + $0x4c] sm:$0xf] }
 0x142   : > { %v14165_v41 = vpop.f32.mrb[32].mxu0  ;;  %v11299_v19 = vcombine.low %v2987_v32, %v2990_v37  ;;  %v14263_v56 = vadd.f32 %v14106_v53, %v14102_v21  ;;  %v14267_v48 = vadd.f32 %v14108_v18, %v14104_v16  ;;  %v11249_v2 = vld [vmem:[%s13225_s26 + $0x50] sm:$0x1]  ;;  %v11285_v31 = vrot.slane %v11241_v60, 9 }
 0x143   : > { %v14167_v29 = vpop.f32.mrb[32].mxu1  ;;  %v14169_v45 = vpop.f32.mrb[33].mxu0  ;;  %4531 = vmatprep.mubr.bf16.mxu1 %v11234_v61  ;;  %v2997_v27 = vsel %vm13239_vm4, %v2995_v43, %v2996_v13  ;;  %v3000_v32 = vrot.slane %v11242_v9, 5  ;;  %v3003_v21 = vrot.slane %v11243_v15, 5  ;;  %v11286_v18 = vrot.slane %v11244_v22, 9 }
 0x144   : > { %v14171_v10 = vpop.f32.mrb[33].mxu1  ;;  %v14176_v57 = vpop.f32.mrb[34].mxu0  ;;  %17633 = vst [vmem:[#allocation23_spill] sm:$0xff] %v14267_v48  ;;  %4532 = vmatmul.mubr.bf16.gmra.mrb[124].mxu1 %v12939_v62  ;;  %12730 = vmatprep.mubr.bf16.mxu0 %v11299_v19  ;;  %v11300_v16 = vcombine.low %v2994_v25, %v2997_v27  ;;  %v3007_v37 = vrot.slane %v11245_v1, 5  ;;  %v3010_v51 = vrot.slane %v11246_v63, 5  ;;  %v14290_v13 = vadd.f32 %v14126_v3, %v14119_v12 }
 0x145   : > { %v14178_v23 = vpop.f32.mrb[34].mxu1  ;;  %v14185_v28 = vpop.f32.mrb[35].mxu0  ;;  %v3001_v60 = vsel %vm13239_vm4, %v11285_v31, %v3000_v32  ;;  %v3002_v9 = vrot.slane %v3000_v32, 4  ;;  %v14294_v62 = vadd.f32 %v14130_v58, %v14124_v4  ;;  %v11251_v15 = vld [vmem:[%s13225_s26 + $0x58] sm:$0xf]  ;;  %v14301_v43 = vadd.f32 %v14136_v50, %v14132_v7 }
 0x146   : > { %v14187_v59 = vpop.f32.mrb[35].mxu1  ;;  %v3009_v25 = vrot.slane %v3007_v37, 4  ;;  %v14305_v1 = vadd.f32 %v14143_v40, %v14134_v44  ;;  %v11287_v3 = vrot.slane %v11247_v26, 9  ;;  %v3014_v4 = vrot.slane %v11248_v36, 5  ;;  %v11250_v63 = vld [vmem:[%s13225_s26 + $0x54] sm:$0xe] }
 0x147   : > { %v3004_v12 = vsel %vm13239_vm4, %v3002_v9, %v3003_v21  ;;  %v3017_v58 = vrot.slane %v11249_v2, 5  ;;  %v3008_v27 = vsel %vm13239_vm4, %v11286_v18, %v3007_v37  ;;  %v11252_v50 = vld [vmem:[%s13225_s26 + $0x5c] sm:$0x1]  ;;  %v3021_v31 = vrot.slane %v11251_v15, 5  ;;  %v11253_v40 = vld [vmem:[%s13225_s26 + $0x60] sm:$0xe] }
 0x148   : > { %12731 = vmatmul.mubr.bf16.vlgmr.msra.gmra.mrb[128].mxu0 %v11300_v16  ;;  %v11301_v19 = vcombine.low %v3001_v60, %v3004_v12  ;;  %v3011_v7 = vsel %vm13239_vm4, %v3009_v25, %v3010_v51  ;;  %v3016_v44 = vrot.slane %v3014_v4, 4  ;;  %v11254_v32 = vld [vmem:[%s13225_s26 + $0x64] sm:$0xf]  ;;  %v3015_v36 = vsel %vm13239_vm4, %v11287_v3, %v3014_v4  ;;  %v11255_v16 = vld [vmem:[%s13225_s26 + $0x68] sm:$0x1] }
 0x149   : > { %v11288_v2 = vrot.slane %v11250_v63, 9  ;;  %v11836_v21 = vadd.f32 %v14169_v45, %v14165_v41  ;;  %v11948_v51 = vadd.f32 %v14171_v10, %v14167_v29  ;;  %v11302_v60 = vcombine.low %v3008_v27, %v3011_v7  ;;  %v14337_v45 = vld [vmem:[%s13225_s26 + $0x6c] sm:$0xe]  ;;  %v14340_v10 = vld [vmem:[%s13225_s26 + $0x70] sm:$0xf] }
 0x14a   : > { %v14196_v55 = vpop.f32.mrb[36].mxu0  ;;  %12734 = vmatprep.mubr.bf16.mxu0 %v11301_v19  ;;  %v3018_v9 = vsel %vm13239_vm4, %v3016_v44, %v3017_v58  ;;  %v11839_v15 = vadd.f32 %v14185_v28, %v14176_v57  ;;  %v11951_v41 = vadd.f32 %v14187_v59, %v14178_v23  ;;  %v3023_v12 = vrot.slane %v3021_v31, 4  ;;  %v11258_v19 = vld [vmem:[%s13225_s26 + $0x74] sm:$0x1]  ;;  %v14356_v27 = vld [vmem:[%s13225_s26 + $0x7c] sm:$0xf] }
 0x14b   : > { %v14194_v24 = vpop.f32.mrb[36].mxu1  ;;  %v14209_v33 = vpop.f32.mrb[37].mxu0  ;;  %v3024_v3 = vrot.slane %v11252_v50, 5  ;;  %v14346_v4 = vadd.f32 %v11948_v51, %v11836_v21  ;;  %v3028_v28 = vrot.slane %v11254_v32, 5  ;;  %v11303_v23 = vcombine.low %v3015_v36, %v3018_v9  ;;  %v14359_v7 = vld [vmem:[%s13225_s26 + $0x88] sm:$0xf] }
 0x14c   : > { %v14198_v17 = vpop.f32.mrb[37].mxu1  ;;  %v14221_v6 = vpop.f32.mrb[38].mxu0  ;;  %v14352_v59 = vadd.f32 %v11951_v41, %v11839_v15  ;;  %v11289_v63 = vrot.slane %v11253_v40, 9  ;;  %v3031_v21 = vrot.slane %v11255_v16, 5  ;;  %v3035_v32 = vrot.slane %v14340_v10, 5 }
 0x14d   : > { %v14211_v30 = vpop.f32.mrb[38].mxu1  ;;  %v14232_v34 = vpop.f32.mrb[39].mxu0  ;;  %17634 = vst [vmem:[#allocation24_spill] sm:$0xff] %v14346_v4  ;;  %v3030_v44 = vrot.slane %v3028_v28, 4  ;;  %v14363_v51 = vld [vmem:[%s13225_s26 + $0x78] sm:$0xe]  ;;  %v11842_v36 = vadd.f32 %v14209_v33, %v14196_v55  ;;  %v11954_v40 = vadd.f32 %v14198_v17, %v14194_v24  ;;  %v3022_v41 = vsel %vm13239_vm4, %v11288_v2, %v3021_v31 }
 0x14e   : > { %v14223_v0 = vpop.f32.mrb[39].mxu1  ;;  %17635 = vst [vmem:[#allocation25_spill] sm:$0xff] %v14352_v59  ;;  %v14366_v4 = vld [vmem:[%s13225_s26 + $0x80] sm:$0x1]  ;;  %v11845_v9 = vadd.f32 %v14232_v34, %v14221_v6  ;;  %v11262_v16 = vld [vmem:[%s13225_s26 + $0x84] sm:$0xe]  ;;  %v3025_v10 = vsel %vm13239_vm4, %v3023_v12, %v3024_v3  ;;  %v3029_v24 = vsel %vm13239_vm4, %v11289_v63, %v3028_v28 }
 0x14f   : > { %v11957_v15 = vadd.f32 %v14223_v0, %v14211_v30  ;;  %v11290_v59 = vrot.slane %v14337_v45, 9  ;;  %v11264_v55 = vld [vmem:[%s13225_s26 + $0x8c] sm:$0x1]  ;;  %v14385_v17 = vadd.f32 %v11954_v40, %v11842_v36  ;;  %v3042_v30 = vrot.slane %v14356_v27, 5  ;;  %v14391_v6 = vld [vmem:[%s13225_s26 + $0x94] sm:$0xf] }
 0x150   : > { %12735 = vmatmul.mubr.bf16.gmra.mrb[132].mxu0 %v11302_v60  ;;  %v3032_v34 = vsel %vm13239_vm4, %v3030_v44, %v3031_v21  ;;  %v3037_v31 = vrot.slane %v3035_v32, 4  ;;  %v3038_v2 = vrot.slane %v11258_v19, 5  ;;  %v3049_v60 = vrot.slane %v14359_v7, 5  ;;  %v11265_v63 = vld [vmem:[%s13225_s26 + $0x90] sm:$0xe] }
 0x151   : > { %12738 = vmatprep.mubr.bf16.mxu0 %v11303_v23  ;;  %17636 = vst [vmem:[#allocation26_spill] sm:$0xff] %v14385_v17  ;;  %v14387_v33 = vadd.f32 %v11957_v15, %v11845_v9  ;;  %v11304_v3 = vcombine.low %v3022_v41, %v3025_v10  ;;  %v11291_v28 = vrot.slane %v14363_v51, 9  ;;  %v3045_v23 = vrot.slane %v14366_v4, 5  ;;  %v11267_v27 = vld [vmem:[%s13225_s26 + $0x98] sm:$0x1] }
 0x152   : > { %v14272_v52 = vpop.f32.mrb[40].mxu0  ;;  %v3044_v44 = vrot.slane %v3042_v30, 4  ;;  %v11292_v21 = vrot.slane %v11262_v16, 9  ;;  %v11305_v51 = vcombine.low %v3029_v24, %v3032_v34  ;;  %v3052_v41 = vrot.slane %v11264_v55, 5  ;;  %v11269_v55 = vld [vmem:[%s13225_s26 + $0xa0] sm:$0xf] }
 0x153   : > { %v14255_v42 = vpop.f32.mrb[40].mxu1  ;;  %v14278_v53 = vpop.f32.mrb[41].mxu0  ;;  %17637 = vst [vmem:[#allocation27_spill] sm:$0xff] %v14387_v33  ;;  %v3051_v17 = vrot.slane %v3049_v60, 4  ;;  %v14435_v34 = vld [vmem:[%s13225_s26 + $0xac] sm:$0xf] }
 0x154   : > { %v14274_v39 = vpop.f32.mrb[41].mxu1  ;;  %v14282_v48 = vpop.f32.mrb[42].mxu0  ;;  %v11848_v19 = vadd.f32 %v14278_v53, %v14272_v52  ;;  %v3056_v52 = vrot.slane %v14391_v6, 5  ;;  %v11268_v53 = vld [vmem:[%s13225_s26 + $0x9c] sm:$0xe] }
 0x155   : > { %v14280_v20 = vpop.f32.mrb[42].mxu1  ;;  %v14297_v22 = vpop.f32.mrb[43].mxu0  ;;  %v11960_v7 = vadd.f32 %v14274_v39, %v14255_v42  ;;  %v3036_v42 = vsel %vm13239_vm4, %v11290_v59, %v3035_v32 }
 0x156   : > { %v14284_v61 = vpop.f32.mrb[43].mxu1  ;;  %v11851_v4 = vadd.f32 %v14297_v22, %v14282_v48  ;;  %v3039_v48 = vsel %vm13239_vm4, %v3037_v31, %v3038_v2  ;;  %v3059_v22 = vrot.slane %v11267_v27, 5  ;;  %v3043_v2 = vsel %vm13239_vm4, %v11291_v28, %v3042_v30  ;;  %v14458_v28 = vld [vmem:[%s13225_s26 + $0xa8] sm:$0xe]  ;;  %v11273_v27 = vld [vmem:[%s13225_s26 + $0xb0] sm:$0x1] }
 0x157   : > { %v11963_v10 = vadd.f32 %v14284_v61, %v14280_v20  ;;  %v14416_v16 = vadd.f32 %v11960_v7, %v11848_v19  ;;  %v11293_v20 = vrot.slane %v11265_v63, 9  ;;  %v3058_v61 = vrot.slane %v3056_v52, 4 }
 0x158   : > { %12739 = vmatmul.mubr.bf16.gmra.mrb[136].mxu0 %v11304_v3  ;;  %v3046_v3 = vsel %vm13239_vm4, %v3044_v44, %v3045_v23  ;;  %v11306_v63 = vcombine.low %v3036_v42, %v3039_v48  ;;  %v14462_v44 = vld [vmem:[%s13225_s26 + $0xb4] sm:$0xe]  ;;  %v14481_v42 = vld [vmem:[%s13225_s26 + $0xc4] sm:$0xf]  ;;  %v3070_v48 = vrot.slane %v14435_v34, 5 }
 0x159   : > { %v14422_v39 = vadd.f32 %v11963_v10, %v11851_v4  ;;  %12742 = vmatprep.mubr.bf16.mxu0 %v11305_v51  ;;  %v11307_v7 = vcombine.low %v3043_v2, %v3046_v3  ;;  %v14472_v4 = vsel %vm13239_vm4, %v3058_v61, %v3059_v22  ;;  %v14475_v10 = vld [vmem:[%s13225_s26 + $0xbc] sm:$0x1]  ;;  %v14497_v2 = vld [vmem:[%s13225_s26 + $0xcc] sm:$0xe] }
 0x15a   : > { %v14326_v18 = vpop.f32.mrb[44].mxu0 }
 0x15b   : > { %v14317_v26 = vpop.f32.mrb[44].mxu1  ;;  %v14342_v29 = vpop.f32.mrb[45].mxu0 }
 0x15c   : > { %v14328_v37 = vpop.f32.mrb[45].mxu1  ;;  %v14348_v57 = vpop.f32.mrb[46].mxu0  ;;  %v11854_v24 = vadd.f32 %v14342_v29, %v14326_v18  ;;  %v14447_v18 = vsel %vm13239_vm4, %v3051_v17, %v3052_v41  ;;  %v14451_v29 = vld [vmem:[%s13225_s26 + $0xb8] sm:$0xf]  ;;  %v3063_v17 = vrot.slane %v11269_v55, 5  ;;  %v14468_v41 = vsel %vm13239_vm4, %v11293_v20, %v3056_v52 }
 0x15d   : > { %v14344_v25 = vpop.f32.mrb[46].mxu1  ;;  %v11856_v50 = vpop.f32.mrb[47].mxu0  ;;  %v11966_v6 = vadd.f32 %v14328_v37, %v14317_v26  ;;  %v14443_v26 = vsel %vm13239_vm4, %v11292_v21, %v3049_v60  ;;  %v11270_v37 = vld [vmem:[%s13225_s26 + $0xa4] sm:$0x1]  ;;  %v11309_v34 = vcombine.low %v14468_v41, %v14472_v4 }
 0x15e   : > { %v14350_v58 = vpop.f32.mrb[47].mxu1  ;;  %v11857_v59 = vadd.f32 %v11856_v50, %v14348_v57  ;;  %v11308_v51 = vcombine.low %v14443_v26, %v14447_v18  ;;  %v3066_v61 = vrot.slane %v11270_v37, 5 }
 0x15f   : > { %v11969_v32 = vadd.f32 %v14350_v58, %v14344_v25  ;;  %v11294_v58 = vrot.slane %v11268_v53, 9  ;;  %v14453_v50 = vadd.f32 %v11966_v6, %v11854_v24  ;;  %v14478_v53 = vld [vmem:[%s13225_s26 + $0xc0] sm:$0xe]  ;;  %v3077_v24 = vrot.slane %v14451_v29, 5 }
 0x160   : > { %12743 = vmatmul.mubr.bf16.gmra.mrb[140].mxu0 %v11306_v63 }
 0x161   : > { %v14455_v30 = vadd.f32 %v11969_v32, %v11857_v59  ;;  %v14490_v20 = vsel %vm13239_vm4, %v11294_v58, %v3063_v17  ;;  %v14494_v32 = vld [vmem:[%s13225_s26 + $0xc8] sm:$0x1]  ;;  %12746 = vmatprep.mubr.bf16.mxu0 %v11307_v7  ;;  %v14510_v26 = vrot.slane %v3077_v24, 4 }
 0x162   : > { %v14398_v45 = vpop.f32.mrb[48].mxu0 }
 0x163   : > { %v14393_v0 = vpop.f32.mrb[48].mxu1  ;;  %v11859_v36 = vpop.f32.mrb[49].mxu0 }
 0x164   : > { %v14400_v12 = vpop.f32.mrb[49].mxu1  ;;  %v11861_v9 = vpop.f32.mrb[50].mxu0  ;;  %v11860_v6 = vadd.f32 %v11859_v36, %v14398_v45  ;;  %v3065_v45 = vrot.slane %v3063_v17, 4  ;;  %v11295_v36 = vrot.slane %v14458_v28, 9 }
 0x165   : > { %v14406_v40 = vpop.f32.mrb[50].mxu1  ;;  %v11862_v33 = vpop.f32.mrb[51].mxu0  ;;  %v11972_v52 = vadd.f32 %v14400_v12, %v14393_v0  ;;  %v3073_v12 = vrot.slane %v11273_v27, 5 }
 0x166   : > { %v11974_v15 = vpop.f32.mrb[51].mxu1  ;;  %v11863_v22 = vadd.f32 %v11862_v33, %v11861_v9 }
 0x167   : > { %v11975_v59 = vadd.f32 %v11974_v15, %v14406_v40  ;;  %v14502_v0 = vadd.f32 %v11972_v52, %v11860_v6  ;;  %v3084_v40 = vrot.slane %v14481_v42, 5  ;;  %v3072_v15 = vrot.slane %v3070_v48, 4 }
 0x168   : > { %v3067_v6 = vsel %vm13239_vm4, %v3065_v45, %v3066_v61  ;;  %v3087_v52 = vrot.slane %v14494_v32, 5  ;;  %v17638_v45 = vld [vmem:[#allocation6_spill] sm:$0xff]  ;;  %12747 = vmatmul.mubr.bf16.gmra.mrb[144].mxu0 %v11308_v51 }
 0x169   : > { %v14505_v33 = vadd.f32 %v11975_v59, %v11863_v22  ;;  %v11298_v22 = vrot.slane %v14497_v2, 9  ;;  %v3086_v37 = vrot.slane %v3084_v40, 4  ;;  %v3074_v61 = vsel %vm13239_vm4, %v3072_v15, %v3073_v12  ;;  %v17645_v15 = vld [vmem:[#allocation13_spill] sm:$0xff]  ;;  %12750 = vmatprep.mubr.bf16.mxu0 %v11309_v34 }
 0x16a   : > { %v11864_v25 = vpop.f32.mrb[52].mxu0  ;;  %v14571_v34 = vadd.f32 %v14206_v11, %v14202_v8  ;;  %v14587_v8 = vadd.f32 %v14294_v62, %v14290_v13  ;;  %v14591_v11 = vadd.f32 %v14305_v1, %v14301_v43  ;;  %v17656_v62 = vrot.slane %v14462_v44, 9 }
 0x16b   : > { %v11976_v31 = vpop.f32.mrb[52].mxu1  ;;  %v11865_v60 = vpop.f32.mrb[53].mxu0  ;;  %v17657_v1 = vrot.slane %v14475_v10, 5  ;;  %v3088_v29 = vsel %vm13239_vm4, %v3086_v37, %v3087_v52 }
 0x16c   : > { %v11977_v57 = vpop.f32.mrb[53].mxu1  ;;  %v11867_v21 = vpop.f32.mrb[54].mxu0  ;;  %v11866_v63 = vadd.f32 %v11865_v60, %v11864_v25  ;;  %v3078_v43 = vsel %vm13239_vm4, %v17656_v62, %v3077_v24 }
 0x16d   : > { %v11979_v23 = vpop.f32.mrb[54].mxu1  ;;  %v11868_v55 = vpop.f32.mrb[55].mxu0  ;;  %v11978_v17 = vadd.f32 %v11977_v57, %v11976_v31 }
 0x16e   : > { %v11980_v19 = vpop.f32.mrb[55].mxu1  ;;  %v11869_v27 = vadd.f32 %v11868_v55, %v11867_v21  ;;  %v4092_v55 = vadd.f32 %v13899_v47, %v13893_v38  ;;  %v17643_v38 = vld [vmem:[#allocation11_spill] sm:$0xff]  ;;  %v17644_v47 = vld [vmem:[#allocation12_spill] sm:$0xff] }
 0x16f   : > { %v11981_v7 = vadd.f32 %v11980_v19, %v11979_v23  ;;  %v14520_v25 = vadd.f32 %v11978_v17, %v11866_v63  ;;  %v3071_v23 = vsel %vm13239_vm4, %v11295_v36, %v3070_v48  ;;  %v17639_v63 = vld [vmem:[#allocation7_spill] sm:$0xff]  ;;  %v17640_v17 = vld [vmem:[#allocation8_spill] sm:$0xff]  ;;  %v17641_v36 = vld [vmem:[#allocation9_spill] sm:$0xff]  ;;  %v14547_v12 = vadd.f32 %v17644_v47, %v17643_v38 }
 0x170   : > { %v14575_v47 = vadd.f32 %v14229_v35, %v14217_v49  ;;  %v11310_v49 = vcombine.low %v14490_v20, %v3067_v6  ;;  %v3081_v20 = vsel %vm13239_vm4, %v14510_v26, %v17657_v1  ;;  %v17658_v6 = vrot.slane %v14478_v53, 9 }
 0x171   : > { %v14522_v31 = vadd.f32 %v11981_v7, %v11869_v27  ;;  %v17646_v27 = vld [vmem:[#allocation14_spill] sm:$0xff]  ;;  %v11312_v44 = vcombine.low %v3078_v43, %v3081_v20 }
 0x172   : > { %v11870_v58 = vpop.f32.mrb[56].mxu0  ;;  %v14551_v7 = vadd.f32 %v17646_v27, %v17645_v15  ;;  %v14579_v15 = vadd.f32 %v14259_v54, %v14245_v14  ;;  %v17655_v27 = vld [vmem:[#allocation23_spill] sm:$0xff]  ;;  %12751 = vmatmul.mubr.bf16.gmra.mrb[148].mxu0 %v11310_v49 }
 0x173   : > { %v11982_v9 = vpop.f32.mrb[56].mxu1  ;;  %v11871_v41 = vpop.f32.mrb[57].mxu0 }
 0x174   : > { %v11983_v28 = vpop.f32.mrb[57].mxu1  ;;  %v11872_v59 = vadd.f32 %v11871_v41, %v11870_v58  ;;  %v11873_v3 = vpop.f32.mrb[58].mxu0  ;;  %v4095_v58 = vadd.f32 %v17638_v45, %v13903_v5  ;;  %v17647_v41 = vld [vmem:[#allocation15_spill] sm:$0xff] }
 0x175   : > { %v11985_v4 = vpop.f32.mrb[58].mxu1  ;;  %v11984_v57 = vadd.f32 %v11983_v28, %v11982_v9  ;;  %v11874_v60 = vpop.f32.mrb[59].mxu0  ;;  %v14536_v9 = vadd.f32 %v17640_v17, %v17639_v63  ;;  %v11281_v28 = vld [vmem:[%s13225_s26 + $0xd0] sm:$0xf]  ;;  %v17653_v63 = vld [vmem:[#allocation21_spill] sm:$0xff]  ;;  %v17654_v17 = vld [vmem:[#allocation22_spill] sm:$0xff] }
 0x176   : > { %v11986_v18 = vpop.f32.mrb[59].mxu1  ;;  %v11875_v21 = vadd.f32 %v11874_v60, %v11873_v3  ;;  %v17642_v3 = vld [vmem:[#allocation10_spill] sm:$0xff] }
 0x177   : > { %v11987_v19 = vadd.f32 %v11986_v18, %v11985_v4  ;;  %v14530_v32 = vadd.f32 %v11984_v57, %v11872_v59  ;;  %v14543_v18 = vadd.f32 %v17642_v3, %v17641_v36  ;;  %v17648_v4 = vld [vmem:[#allocation16_spill] sm:$0xff]  ;;  %v17649_v59 = vld [vmem:[#allocation17_spill] sm:$0xff]  ;;  %v17650_v57 = vld [vmem:[#allocation18_spill] sm:$0xff]  ;;  %v14567_v36 = vadd.f32 %v17654_v17, %v17653_v63 }
 0x178   : > { %v14555_v51 = vadd.f32 %v17648_v4, %v17647_v41  ;;  %v14559_v60 = vadd.f32 %v17650_v57, %v17649_v59  ;;  %v14583_v41 = vadd.f32 %v17655_v27, %v14263_v56  ;;  %v3091_v56 = vrot.slane %v11281_v28, 5 }
 0x179   : > { %v14539_v48 = vadd.f32 %v11987_v19, %v11875_v21  ;;  %v17651_v21 = vld [vmem:[#allocation19_spill] sm:$0xff]  ;;  %v17652_v19 = vld [vmem:[#allocation20_spill] sm:$0xff] }
 0x17a   : > { %v14563_v45 = vadd.f32 %v17652_v19, %v17651_v21  ;;  %v11876_v3 = vpop.f32.mrb[60].mxu0  ;;  %v11311_v21 = vcombine.low %v3071_v23, %v3074_v61  ;;  %v3085_v23 = vsel %vm13239_vm4, %v17658_v6, %v3084_v40  ;;  %v3092_v53 = vsel %vm13239_vm4, %v11298_v22, %v3091_v56 }
 0x17b   : > { %v11988_v5 = vpop.f32.mrb[60].mxu1  ;;  %v11877_v4 = vpop.f32.mrb[61].mxu0  ;;  %v11313_v24 = vcombine.low %v3085_v23, %v3088_v29 }
 0x17c   : > { %v11989_v38 = vpop.f32.mrb[61].mxu1  ;;  %v11878_v35 = vadd.f32 %v11877_v4, %v11876_v3  ;;  %v11879_v14 = vpop.f32.mrb[62].mxu0  ;;  %12754 = vmatprep.mubr.bf16.mxu0 %v11311_v21  ;;  %v3093_v3 = vrot.slane %v3091_v56, 4 }
 0x17d   : > { %v11990_v59 = vadd.f32 %v11989_v38, %v11988_v5  ;;  %v11991_v57 = vpop.f32.mrb[62].mxu1  ;;  %v11880_v19 = vpop.f32.mrb[63].mxu0  ;;  %v11282_v38 = vld [vmem:[%s13225_s26 + $0xd4] sm:$0x1]  ;;  %12755 = vmatmul.mubr.bf16.gmra.mrb[152].mxu0 %v11312_v44 }
 0x17e   : > { %v11992_v54 = vpop.f32.mrb[63].mxu1  ;;  %v11881_v5 = vadd.f32 %v11880_v19, %v11879_v14  ;;  %v3094_v61 = vrot.slane %v11282_v38, 5  ;;  %12758 = vmatprep.mubr.bf16.mxu0 %v11313_v24 }
 0x17f   : > { %v11993_v63 = vadd.f32 %v11992_v54, %v11991_v57  ;;  %v14594_v17 = vadd.f32 %v11990_v59, %v11878_v35 }
 0x180   : > { %v3095_v40 = vsel %vm13239_vm4, %v3093_v3, %v3094_v61 }
 0x181   : > { %v14597_v13 = vadd.f32 %v11993_v63, %v11881_v5  ;;  %v11314_v14 = vcombine.low %v3092_v53, %v3095_v40 }
 0x182   : > { %v12010_v28 = vpop.f32.mrb[64].mxu0 }
 0x183   : > { %v12011_v10 = vpop.f32.mrb[65].mxu0 }
 0x184   : > { %v12012_v27 = vadd.f32 %v12011_v10, %v12010_v28  ;;  %v12013_v4 = vpop.f32.mrb[66].mxu0  ;;  %v12122_v37 = vpop.f32.mrb[64].mxu1 }
 0x185   : > { %v12014_v59 = vpop.f32.mrb[67].mxu0  ;;  %v12123_v57 = vpop.f32.mrb[65].mxu1  ;;  %12759 = vmatmul.mubr.bf16.gmra.mrb[156].mxu0 %v11314_v14 }
 0x186   : > { %v4253_v26 = vadd.f32 %v12012_v27, %v4092_v55  ;;  %v12015_v42 = vadd.f32 %v12014_v59, %v12013_v4  ;;  %v12124_v49 = vadd.f32 %v12123_v57, %v12122_v37  ;;  %v12125_v35 = vpop.f32.mrb[66].mxu1 }
 0x187   : > { %v12126_v54 = vpop.f32.mrb[67].mxu1 }
 0x188   : > { %v4256_v52 = vadd.f32 %v12015_v42, %v4095_v58  ;;  %v12127_v21 = vadd.f32 %v12126_v54, %v12125_v35  ;;  %v14624_v19 = vadd.f32 %v12124_v49, %v4253_v26 }
 0x18a   : > { %v12016_v55 = vpop.f32.mrb[68].mxu0  ;;  %v14626_v63 = vadd.f32 %v12127_v21, %v4256_v52 }
 0x18b   : > { %v12017_v2 = vpop.f32.mrb[69].mxu0 }
 0x18c   : > { %v12018_v5 = vadd.f32 %v12017_v2, %v12016_v55  ;;  %v12019_v22 = vpop.f32.mrb[70].mxu0  ;;  %v12128_v62 = vpop.f32.mrb[68].mxu1 }
 0x18d   : > { %v12020_v56 = vpop.f32.mrb[71].mxu0  ;;  %v12129_v43 = vpop.f32.mrb[69].mxu1 }
 0x18e   : > { %v4261_v38 = vadd.f32 %v12018_v5, %v14536_v9  ;;  %v12021_v58 = vadd.f32 %v12020_v56, %v12019_v22  ;;  %v12130_v20 = vadd.f32 %v12129_v43, %v12128_v62  ;;  %v12131_v6 = vpop.f32.mrb[70].mxu1 }
 0x18f   : > { %v12132_v23 = vpop.f32.mrb[71].mxu1 }
 0x190   : > { %v4264_v1 = vadd.f32 %v12021_v58, %v14543_v18  ;;  %v12133_v29 = vadd.f32 %v12132_v23, %v12131_v6  ;;  %v14630_v44 = vadd.f32 %v12130_v20, %v4261_v38  ;;  %v13076_v6 = vmov 0  }
 0x191   : > { %5002 = vst [vmem:[#allocation3 + $0x18] sm:$0xf] %v13076_v6  ;;  %4996 = vst [vmem:[#allocation3] sm:$0xf] %v13076_v6 }
 0x192   : > { %v12022_v61 = vpop.f32.mrb[72].mxu0  ;;  %v14632_v28 = vadd.f32 %v12133_v29, %v4264_v1  ;;  %4997 = vst [vmem:[#allocation3 + $0x4] sm:$0xf] %v13076_v6  ;;  %4998 = vst [vmem:[#allocation3 + $0x8] sm:$0x1] %v13076_v6 }
 0x193   : > { %v12023_v24 = vpop.f32.mrb[73].mxu0  ;;  %4999 = vst [vmem:[#allocation3 + $0xc] sm:$0xf] %v13076_v6  ;;  %5000 = vst [vmem:[#allocation3 + $0x10] sm:$0xf] %v13076_v6 }
 0x194   : > { %v12024_v3 = vadd.f32 %v12023_v24, %v12022_v61  ;;  %v12025_v10 = vpop.f32.mrb[74].mxu0  ;;  %v12134_v4 = vpop.f32.mrb[72].mxu1  ;;  %5001 = vst [vmem:[#allocation3 + $0x14] sm:$0x1] %v13076_v6  ;;  %5003 = vst [vmem:[#allocation3 + $0x1c] sm:$0xf] %v13076_v6 }
 0x195   : > { %v12026_v27 = vpop.f32.mrb[75].mxu0  ;;  %v12135_v26 = vpop.f32.mrb[73].mxu1  ;;  %5004 = vst [vmem:[#allocation3 + $0x20] sm:$0x1] %v13076_v6  ;;  %5005 = vst [vmem:[#allocation3 + $0x24] sm:$0xf] %v13076_v6 }
 0x196   : > { %v4269_v9 = vadd.f32 %v12024_v3, %v14547_v12  ;;  %v12027_v59 = vadd.f32 %v12026_v27, %v12025_v10  ;;  %v12136_v42 = vadd.f32 %v12135_v26, %v12134_v4  ;;  %v12137_v53 = vpop.f32.mrb[74].mxu1  ;;  %5006 = vst [vmem:[#allocation3 + $0x28] sm:$0xf] %v13076_v6  ;;  %5007 = vst [vmem:[#allocation3 + $0x2c] sm:$0x1] %v13076_v6 }
 0x197   : > { %v12138_v40 = vpop.f32.mrb[75].mxu1  ;;  %5008 = vst [vmem:[#allocation3 + $0x30] sm:$0xf] %v13076_v6  ;;  %5009 = vst [vmem:[#allocation3 + $0x34] sm:$0xf] %v13076_v6 }
 0x198   : > { %v4272_v18 = vadd.f32 %v12027_v59, %v14551_v7  ;;  %v12139_v37 = vadd.f32 %v12138_v40, %v12137_v53  ;;  %v14636_v52 = vadd.f32 %v12136_v42, %v4269_v9  ;;  %5010 = vst [vmem:[#allocation3 + $0x38] sm:$0x1] %v13076_v6  ;;  %5011 = vst [vmem:[#allocation3 + $0x3c] sm:$0xf] %v13076_v6 }
 0x199   : > { %5012 = vst [vmem:[#allocation3 + $0x40] sm:$0xf] %v13076_v6  ;;  %5013 = vst [vmem:[#allocation3 + $0x44] sm:$0x1] %v13076_v6 }
 0x19a   : > { %v12028_v57 = vpop.f32.mrb[76].mxu0  ;;  %v14638_v49 = vadd.f32 %v12139_v37, %v4272_v18  ;;  %5014 = vst [vmem:[#allocation3 + $0x48] sm:$0xf] %v13076_v6  ;;  %5015 = vst [vmem:[#allocation3 + $0x4c] sm:$0xf] %v13076_v6 }
 0x19b   : > { %v12029_v35 = vpop.f32.mrb[77].mxu0  ;;  %5016 = vst [vmem:[#allocation3 + $0x50] sm:$0x1] %v13076_v6  ;;  %5017 = vst [vmem:[#allocation3 + $0x54] sm:$0xf] %v13076_v6 }
 0x19c   : > { %v12030_v14 = vadd.f32 %v12029_v35, %v12028_v57  ;;  %v12031_v54 = vpop.f32.mrb[78].mxu0  ;;  %v12140_v2 = vpop.f32.mrb[76].mxu1  ;;  %5018 = vst [vmem:[#allocation3 + $0x58] sm:$0xf] %v13076_v6  ;;  %5019 = vst [vmem:[#allocation3 + $0x5c] sm:$0x1] %v13076_v6 }
 0x19d   : > { %v12032_v21 = vpop.f32.mrb[79].mxu0  ;;  %v12141_v7 = vpop.f32.mrb[77].mxu1  ;;  %5020 = vst [vmem:[#allocation3 + $0x60] sm:$0xf] %v13076_v6  ;;  %5021 = vst [vmem:[#allocation3 + $0x64] sm:$0xf] %v13076_v6 }
 0x19e   : > { %v4277_v12 = vadd.f32 %v12030_v14, %v14555_v51  ;;  %v12033_v55 = vadd.f32 %v12032_v21, %v12031_v54  ;;  %v12142_v22 = vadd.f32 %v12141_v7, %v12140_v2  ;;  %v12143_v56 = vpop.f32.mrb[78].mxu1  ;;  %5022 = vst [vmem:[#allocation3 + $0x68] sm:$0x1] %v13076_v6  ;;  %5023 = vst [vmem:[#allocation3 + $0x6c] sm:$0xf] %v13076_v6 }
 0x19f   : > { %v12144_v38 = vpop.f32.mrb[79].mxu1  ;;  %5024 = vst [vmem:[#allocation3 + $0x70] sm:$0xf] %v13076_v6  ;;  %5025 = vst [vmem:[#allocation3 + $0x74] sm:$0x1] %v13076_v6 }
 0x1a0   : > { %v4280_v5 = vadd.f32 %v12033_v55, %v14559_v60  ;;  %v12145_v62 = vadd.f32 %v12144_v38, %v12143_v56  ;;  %v14642_v58 = vadd.f32 %v12142_v22, %v4277_v12  ;;  %5026 = vst [vmem:[#allocation3 + $0x78] sm:$0xf] %v13076_v6  ;;  %5027 = vst [vmem:[#allocation3 + $0x7c] sm:$0xf] %v13076_v6 }
 0x1a1   : > { %5028 = vst [vmem:[#allocation3 + $0x80] sm:$0x1] %v13076_v6  ;;  %5029 = vst [vmem:[#allocation3 + $0x84] sm:$0xf] %v13076_v6 }
 0x1a2   : > { %v12034_v43 = vpop.f32.mrb[80].mxu0  ;;  %v14644_v1 = vadd.f32 %v12145_v62, %v4280_v5  ;;  %5030 = vst [vmem:[#allocation3 + $0x88] sm:$0xf] %v13076_v6  ;;  %5031 = vst [vmem:[#allocation3 + $0x8c] sm:$0x1] %v13076_v6 }
 0x1a3   : > { %v12035_v20 = vpop.f32.mrb[81].mxu0  ;;  %5032 = vst [vmem:[#allocation3 + $0x90] sm:$0xf] %v13076_v6  ;;  %5033 = vst [vmem:[#allocation3 + $0x94] sm:$0xf] %v13076_v6 }
 0x1a4   : > { %5034 = vst [vmem:[#allocation3 + $0x98] sm:$0x1] %v13076_v6  ;;  %5035 = vst [vmem:[#allocation3 + $0x9c] sm:$0xf] %v13076_v6  ;;  %v12036_v51 = vadd.f32 %v12035_v20, %v12034_v43  ;;  %v12037_v60 = vpop.f32.mrb[82].mxu0  ;;  %v12146_v61 = vpop.f32.mrb[80].mxu1 }
 0x1a5   : > { %5036 = vst [vmem:[#allocation3 + $0xa0] sm:$0xf] %v13076_v6  ;;  %5037 = vst [vmem:[#allocation3 + $0xa4] sm:$0x1] %v13076_v6  ;;  %v12038_v23 = vpop.f32.mrb[83].mxu0  ;;  %v12147_v3 = vpop.f32.mrb[81].mxu1 }
 0x1a6   : > { %5038 = vst [vmem:[#allocation3 + $0xa8] sm:$0xf] %v13076_v6  ;;  %5039 = vst [vmem:[#allocation3 + $0xac] sm:$0xf] %v13076_v6  ;;  %v4285_v29 = vadd.f32 %v12036_v51, %v14563_v45  ;;  %v12039_v24 = vadd.f32 %v12038_v23, %v12037_v60  ;;  %v12148_v27 = vadd.f32 %v12147_v3, %v12146_v61  ;;  %v12149_v9 = vpop.f32.mrb[82].mxu1 }
 0x1a7   : > { %5040 = vst [vmem:[#allocation3 + $0xb0] sm:$0x1] %v13076_v6  ;;  %5041 = vst [vmem:[#allocation3 + $0xb4] sm:$0xf] %v13076_v6  ;;  %v12150_v4 = vpop.f32.mrb[83].mxu1 }
 0x1a8   : > { %5042 = vst [vmem:[#allocation3 + $0xb8] sm:$0xf] %v13076_v6  ;;  %5043 = vst [vmem:[#allocation3 + $0xbc] sm:$0x1] %v13076_v6  ;;  %v4288_v10 = vadd.f32 %v12039_v24, %v14567_v36  ;;  %v12151_v59 = vadd.f32 %v12150_v4, %v12149_v9  ;;  %v14648_v26 = vadd.f32 %v12148_v27, %v4285_v29 }
 0x1a9   : > { %5044 = vst [vmem:[#allocation3 + $0xc0] sm:$0xf] %v13076_v6  ;;  %5045 = vst [vmem:[#allocation3 + $0xc4] sm:$0xf] %v13076_v6 }
 0x1aa   : > { %5046 = vst [vmem:[#allocation3 + $0xc8] sm:$0x1] %v13076_v6  ;;  %5047 = vst [vmem:[#allocation3 + $0xcc] sm:$0xf] %v13076_v6  ;;  %v14650_v18 = vadd.f32 %v12151_v59, %v4288_v10  ;;  %v12040_v42 = vpop.f32.mrb[84].mxu0 }
 0x1ab   : > { %5048 = vst [vmem:[#allocation3 + $0xd0] sm:$0xf] %v13076_v6  ;;  %5049 = vst [vmem:[#allocation3 + $0xd4] sm:$0x1] %v13076_v6  ;;  %v12041_v53 = vpop.f32.mrb[85].mxu0  ;;  %v12940_v6 = vld [vmem:[%s17558_s2 + $0x40] sm:$0xff]  }
 0x1ac   : > { %v12042_v40 = vadd.f32 %v12041_v53, %v12040_v42  ;;  %v12043_v37 = vpop.f32.mrb[86].mxu0  ;;  %v12152_v57 = vpop.f32.mrb[84].mxu1  ;;  %12242 = vmatprep.subr.bf16.mxu1 %v12940_v6 }
 0x1ad   : > { %v12044_v35 = vpop.f32.mrb[87].mxu0  ;;  %v12153_v54 = vpop.f32.mrb[85].mxu1 }
 0x1ae   : > { %v4293_v45 = vadd.f32 %v12042_v40, %v14571_v34  ;;  %v12045_v14 = vadd.f32 %v12044_v35, %v12043_v37  ;;  %v12154_v21 = vadd.f32 %v12153_v54, %v12152_v57  ;;  %v12155_v36 = vpop.f32.mrb[86].mxu1 }
 0x1af   : > { %v12156_v55 = vpop.f32.mrb[87].mxu1 }
 0x1b0   : > { %v4296_v12 = vadd.f32 %v12045_v14, %v14575_v47  ;;  %v12157_v2 = vadd.f32 %v12156_v55, %v12155_v36  ;;  %v14654_v5 = vadd.f32 %v12154_v21, %v4293_v45  ;;  %v12941_v47 = vld [vmem:[%s17558_s2] sm:$0xff]   ;;  %v12942_v36 = vld [vmem:[%s17558_s2 + $0x48] sm:$0xff]  }
 0x1b1   : > { %12243 = vmatpush3.bf16.msra.mxu1 %v12941_v47 }
 0x1b2   : > { %v12046_v7 = vpop.f32.mrb[88].mxu0  ;;  %v14656_v56 = vadd.f32 %v12157_v2, %v4296_v12  ;;  %v12943_v12 = vld [vmem:[%s17558_s2 + $0x8] sm:$0xff]   ;;  %12244 = vmatprep.subr.bf16.mxu1 %v12942_v36 }
 0x1b3   : > { %v12047_v22 = vpop.f32.mrb[89].mxu0 }
 0x1b4   : > { %v12048_v38 = vadd.f32 %v12047_v22, %v12046_v7  ;;  %v12049_v62 = vpop.f32.mrb[90].mxu0 }
 0x1b5   : > { %v12050_v43 = vpop.f32.mrb[91].mxu0  ;;  %v12158_v51 = vpop.f32.mrb[88].mxu1  ;;  %12245 = vmatpush3.bf16.msra.mxu1 %v12943_v12 }
 0x1b6   : > { %v4301_v20 = vadd.f32 %v12048_v38, %v14579_v15  ;;  %v12051_v34 = vadd.f32 %v12050_v43, %v12049_v62  ;;  %v12159_v23 = vpop.f32.mrb[89].mxu1  ;;  %v17659_v38 = vld [vmem:[#allocation24_spill] sm:$0xff] }
 0x1b7   : > { %v12160_v29 = vadd.f32 %v12159_v23, %v12158_v51  ;;  %v12161_v61 = vpop.f32.mrb[90].mxu1 }
 0x1b8   : > { %v4304_v60 = vadd.f32 %v12051_v34, %v14583_v41  ;;  %v12162_v24 = vpop.f32.mrb[91].mxu1  ;;  %v17660_v34 = vld [vmem:[#allocation25_spill] sm:$0xff] }
 0x1b9   : > { %v12163_v3 = vadd.f32 %v12162_v24, %v12161_v61  ;;  %v14666_v15 = vadd.f32 %v12160_v29, %v4301_v20 }
 0x1bb   : > { %v12052_v10 = vpop.f32.mrb[92].mxu0  ;;  %v14668_v27 = vadd.f32 %v12163_v3, %v4304_v60 }
 0x1bc   : > { %v12053_v9 = vpop.f32.mrb[93].mxu0 }
 0x1bd   : > { %v12054_v4 = vadd.f32 %v12053_v9, %v12052_v10  ;;  %v12055_v59 = vpop.f32.mrb[94].mxu0 }
 0x1be   : > { %v12056_v42 = vpop.f32.mrb[95].mxu0 }
 0x1bf   : > { %v4309_v53 = vadd.f32 %v12054_v4, %v14587_v8  ;;  %v12057_v40 = vadd.f32 %v12056_v42, %v12055_v59  ;;  %v17661_v42 = vld [vmem:[#allocation26_spill] sm:$0xff] }
 0x1c0   : > { %v12164_v41 = vpop.f32.mrb[92].mxu1 }
 0x1c1   : > { %v4312_v37 = vadd.f32 %v12057_v40, %v14591_v11  ;;  %v12165_v57 = vpop.f32.mrb[93].mxu1 }
 0x1c2   : > { %v12166_v35 = vadd.f32 %v12165_v57, %v12164_v41  ;;  %v12167_v45 = vpop.f32.mrb[94].mxu1  ;;  %v12945_v57 = vld [vmem:[%s17558_s2 + $0x10] sm:$0xff]  }
 0x1c3   : > { %v12168_v14 = vpop.f32.mrb[95].mxu1 }
 0x1c4   : > { %v12169_v54 = vadd.f32 %v12168_v14, %v12167_v45  ;;  %v14672_v21 = vadd.f32 %v12166_v35, %v4309_v53  ;;  %v17662_v35 = vld [vmem:[#allocation27_spill] sm:$0xff] }
 0x1c5   : > { %v12058_v8 = vpop.f32.mrb[96].mxu0 }
 0x1c6   : > { %v12059_v55 = vpop.f32.mrb[97].mxu0  ;;  %v14680_v2 = vadd.f32 %v12169_v54, %v4312_v37  ;;  %v12944_v37 = vld [vmem:[%s17558_s2 + $0x50] sm:$0xff]  }
 0x1c7   : > { %v12060_v11 = vadd.f32 %v12059_v55, %v12058_v8  ;;  %v12061_v7 = vpop.f32.mrb[98].mxu0  ;;  %12246 = vmatprep.subr.bf16.mxu1 %v12944_v37 }
 0x1c8   : > { %v12062_v22 = vpop.f32.mrb[99].mxu0  ;;  %12247 = vmatpush3.bf16.msra.mxu1 %v12945_v57 }
 0x1c9   : > { %v4317_v62 = vadd.f32 %v12060_v11, %v17659_v38  ;;  %v12063_v43 = vadd.f32 %v12062_v22, %v12061_v7 }
 0x1ca   : > { %v12170_v20 = vpop.f32.mrb[96].mxu1 }
 0x1cb   : > { %v4320_v6 = vadd.f32 %v12063_v43, %v17660_v34  ;;  %v12171_v47 = vpop.f32.mrb[97].mxu1 }
 0x1cc   : > { %v12172_v51 = vadd.f32 %v12171_v47, %v12170_v20  ;;  %v12173_v60 = vpop.f32.mrb[98].mxu1 }
 0x1cd   : > { %v12174_v23 = vpop.f32.mrb[99].mxu1 }
 0x1ce   : > { %v12175_v29 = vadd.f32 %v12174_v23, %v12173_v60  ;;  %v14684_v61 = vadd.f32 %v12172_v51, %v4317_v62 }
 0x1cf   : > { %v12064_v24 = vpop.f32.mrb[100].mxu0 }
 0x1d0   : > { %v12065_v3 = vpop.f32.mrb[101].mxu0  ;;  %v14686_v10 = vadd.f32 %v12175_v29, %v4320_v6 }
 0x1d1   : > { %v12066_v9 = vadd.f32 %v12065_v3, %v12064_v24  ;;  %v12067_v4 = vpop.f32.mrb[102].mxu0 }
 0x1d2   : > { %v12068_v59 = vpop.f32.mrb[103].mxu0 }
 0x1d3   : > { %v4325_v53 = vadd.f32 %v12066_v9, %v17661_v42  ;;  %v12069_v40 = vadd.f32 %v12068_v59, %v12067_v4 }
 0x1d4   : > { %v12176_v41 = vpop.f32.mrb[100].mxu1 }
 0x1d5   : > { %v4328_v45 = vadd.f32 %v12069_v40, %v17662_v35  ;;  %v12177_v14 = vpop.f32.mrb[101].mxu1 }
 0x1d6   : > { %v12178_v54 = vadd.f32 %v12177_v14, %v12176_v41  ;;  %v12179_v36 = vpop.f32.mrb[102].mxu1 }
 0x1d7   : > { %v12180_v12 = vpop.f32.mrb[103].mxu1 }
 0x1d8   : > { %v12181_v8 = vadd.f32 %v12180_v12, %v12179_v36  ;;  %v14696_v55 = vadd.f32 %v12178_v54, %v4325_v53 }
 0x1da   : > { %v14698_v7 = vadd.f32 %v12181_v8, %v4328_v45 }
 0x1dc   : > { %v12070_v11 = vpop.f32.mrb[104].mxu0 }
 0x1dd   : > { %v12071_v22 = vpop.f32.mrb[105].mxu0 }
 0x1de   : > { %v12072_v38 = vadd.f32 %v12071_v22, %v12070_v11  ;;  %v12073_v62 = vpop.f32.mrb[106].mxu0 }
 0x1df   : > { %v12074_v43 = vpop.f32.mrb[107].mxu0 }
 0x1e0   : > { %v4333_v20 = vadd.f32 %v12072_v38, %v14416_v16  ;;  %v12182_v34 = vpop.f32.mrb[104].mxu1  ;;  %v12075_v6 = vadd.f32 %v12074_v43, %v12073_v62 }
 0x1e1   : > { %v12183_v47 = vpop.f32.mrb[105].mxu1 }
 0x1e2   : > { %v4336_v51 = vadd.f32 %v12075_v6, %v14422_v39  ;;  %v12184_v60 = vadd.f32 %v12183_v47, %v12182_v34  ;;  %v12185_v23 = vpop.f32.mrb[106].mxu1 }
 0x1e3   : > { %v12186_v29 = vpop.f32.mrb[107].mxu1 }
 0x1e4   : > { %v12187_v24 = vadd.f32 %v12186_v29, %v12185_v23  ;;  %v14702_v3 = vadd.f32 %v12184_v60, %v4333_v20 }
 0x1e5   : > { %v12076_v4 = vpop.f32.mrb[108].mxu0 }
 0x1e6   : > { %v14704_v9 = vadd.f32 %v12187_v24, %v4336_v51  ;;  %v12077_v59 = vpop.f32.mrb[109].mxu0 }
 0x1e7   : > { %v12078_v42 = vadd.f32 %v12077_v59, %v12076_v4  ;;  %v12079_v53 = vpop.f32.mrb[110].mxu0 }
 0x1e8   : > { %v12080_v40 = vpop.f32.mrb[111].mxu0 }
 0x1e9   : > { %v4341_v16 = vadd.f32 %v12078_v42, %v14453_v50  ;;  %v12188_v41 = vpop.f32.mrb[108].mxu1  ;;  %v12081_v37 = vadd.f32 %v12080_v40, %v12079_v53 }
 0x1ea   : > { %v12189_v57 = vpop.f32.mrb[109].mxu1 }
 0x1eb   : > { %v4344_v39 = vadd.f32 %v12081_v37, %v14455_v30  ;;  %v12190_v35 = vadd.f32 %v12189_v57, %v12188_v41  ;;  %v12191_v45 = vpop.f32.mrb[110].mxu1 }
 0x1ec   : > { %v12192_v14 = vpop.f32.mrb[111].mxu1 }
 0x1ed   : > { %v12193_v54 = vadd.f32 %v12192_v14, %v12191_v45  ;;  %v14708_v36 = vadd.f32 %v12190_v35, %v4341_v16 }
 0x1ef   : > { %v14710_v12 = vadd.f32 %v12193_v54, %v4344_v39 }
 0x1f1   : > { %v12082_v8 = vpop.f32.mrb[112].mxu0 }
 0x1f2   : > { %v12083_v11 = vpop.f32.mrb[113].mxu0 }
 0x1f3   : > { %v12084_v22 = vadd.f32 %v12083_v11, %v12082_v8  ;;  %v12085_v38 = vpop.f32.mrb[114].mxu0 }
 0x1f4   : > { %v12086_v62 = vpop.f32.mrb[115].mxu0 }
 0x1f5   : > { %v4349_v50 = vadd.f32 %v12084_v22, %v14502_v0  ;;  %v12087_v43 = vadd.f32 %v12086_v62, %v12085_v38  ;;  %v12194_v20 = vpop.f32.mrb[112].mxu1 }
 0x1f6   : > { %v12195_v30 = vpop.f32.mrb[113].mxu1 }
 0x1f7   : > { %v4352_v34 = vadd.f32 %v12087_v43, %v14505_v33  ;;  %v12196_v6 = vadd.f32 %v12195_v30, %v12194_v20  ;;  %v12197_v47 = vpop.f32.mrb[114].mxu1 }
 0x1f8   : > { %v12198_v51 = vpop.f32.mrb[115].mxu1 }
 0x1f9   : > { %v12199_v60 = vadd.f32 %v12198_v51, %v12197_v47  ;;  %v14714_v23 = vadd.f32 %v12196_v6, %v4349_v50 }
 0x1fb   : > { %v14716_v24 = vadd.f32 %v12199_v60, %v4352_v34 }
 0x1fc   : > { %v12088_v29 = vpop.f32.mrb[116].mxu0 }
 0x1fd   : > { %v12089_v4 = vpop.f32.mrb[117].mxu0 }
 0x1fe   : > { %v12090_v59 = vadd.f32 %v12089_v4, %v12088_v29  ;;  %v12091_v42 = vpop.f32.mrb[118].mxu0 }
 0x1ff   : > { %v12092_v53 = vpop.f32.mrb[119].mxu0 }
 0x200   : > { %v4357_v0 = vadd.f32 %v12090_v59, %v14520_v25  ;;  %v12093_v40 = vadd.f32 %v12092_v53, %v12091_v42 }
 0x201   : > { %v12200_v16 = vpop.f32.mrb[116].mxu1 }
 0x202   : > { %v4360_v33 = vadd.f32 %v12093_v40, %v14522_v31  ;;  %v12201_v41 = vpop.f32.mrb[117].mxu1 }
 0x203   : > { %v12202_v37 = vadd.f32 %v12201_v41, %v12200_v16  ;;  %v12203_v57 = vpop.f32.mrb[118].mxu1 }
 0x204   : > { %v12204_v39 = vpop.f32.mrb[119].mxu1 }
 0x205   : > { %v12205_v35 = vadd.f32 %v12204_v39, %v12203_v57  ;;  %v14720_v45 = vadd.f32 %v12202_v37, %v4357_v0 }
 0x207   : > { %v14722_v14 = vadd.f32 %v12205_v35, %v4360_v33  ;;  %v12094_v54 = vpop.f32.mrb[120].mxu0 }
 0x208   : > { %v12095_v8 = vpop.f32.mrb[121].mxu0 }
 0x209   : > { %v12096_v11 = vadd.f32 %v12095_v8, %v12094_v54  ;;  %v12097_v22 = vpop.f32.mrb[122].mxu0 }
 0x20a   : > { %v12098_v38 = vpop.f32.mrb[123].mxu0 }
 0x20b   : > { %v4365_v25 = vadd.f32 %v12096_v11, %v14530_v32  ;;  %v12099_v50 = vadd.f32 %v12098_v38, %v12097_v22 }
 0x20c   : > { %v12206_v62 = vpop.f32.mrb[120].mxu1 }
 0x20d   : > { %v12207_v43 = vpop.f32.mrb[121].mxu1  ;;  %v4368_v31 = vadd.f32 %v12099_v50, %v14539_v48 }
 0x20e   : > { %v12208_v20 = vadd.f32 %v12207_v43, %v12206_v62  ;;  %v12209_v34 = vpop.f32.mrb[122].mxu1 }
 0x20f   : > { %v12210_v30 = vpop.f32.mrb[123].mxu1 }
 0x210   : > { %v12211_v6 = vadd.f32 %v12210_v30, %v12209_v34  ;;  %v14726_v47 = vadd.f32 %v12208_v20, %v4365_v25 }
 0x212   : > { %v14728_v51 = vadd.f32 %v12211_v6, %v4368_v31 }
 0x213   : > { %v12100_v60 = vpop.f32.mrb[124].mxu0 }
 0x214   : > { %v12101_v29 = vpop.f32.mrb[125].mxu0 }
 0x215   : > { %v12102_v4 = vadd.f32 %v12101_v29, %v12100_v60  ;;  %v12103_v59 = vpop.f32.mrb[126].mxu0 }
 0x216   : > { %v12104_v42 = vpop.f32.mrb[127].mxu0 }
 0x217   : > { %v4373_v32 = vadd.f32 %v12102_v4, %v14594_v17  ;;  %v12212_v53 = vpop.f32.mrb[124].mxu1  ;;  %v12105_v0 = vadd.f32 %v12104_v42, %v12103_v59 }
 0x218   : > { %v12213_v40 = vpop.f32.mrb[125].mxu1 }
 0x219   : > { %v4376_v48 = vadd.f32 %v12105_v0, %v14597_v13  ;;  %v12214_v16 = vadd.f32 %v12213_v40, %v12212_v53  ;;  %v12215_v33 = vpop.f32.mrb[126].mxu1 }
 0x21a   : > { %v12216_v41 = vpop.f32.mrb[127].mxu1 }
 0x21b   : > { %v12217_v37 = vadd.f32 %v12216_v41, %v12215_v33  ;;  %v12732_v57 = vpop.f32.mrb[128].mxu0  ;;  %v14732_v39 = vadd.f32 %v12214_v16, %v4373_v32 }
 0x21c   : > { %v14735_v35 = vadd.f32 %v12732_v57, %v14630_v44  ;;  %v4574_v54 = vpop.f32.mrb[129].mxu0 }
 0x21d   : > { %v14738_v8 = vadd.f32 %v4574_v54, %v14624_v19  ;;  %v12733_v17 = vpop.f32.mrb[130].mxu0  ;;  %v14740_v11 = vadd.f32 %v12217_v37, %v4376_v48 }
 0x21e   : > { %v14743_v22 = vadd.f32 %v12733_v17, %v14632_v28  ;;  %v4577_v13 = vpop.f32.mrb[131].mxu0  ;;  %v4742_v62 = vmul.f32 %v14735_v35, %v14735_v35 }
 0x21f   : > { %v14746_v38 = vadd.f32 %v4577_v13, %v14626_v63  ;;  %v4740_v25 = vmul.f32 %v14738_v8, %v14738_v8 }
 0x220   : > { %v4743_v20 = vmul.f32 %v14743_v22, %v14743_v22 }
 0x221   : > { %v4703_v44 = vadd.f32 %v14746_v38, %v14738_v8  ;;  %v4741_v19 = vmul.f32 %v14746_v38, %v14746_v38 }
 0x223   : > { %v4704_v50 = vadd.f32 %v4703_v44, %v14735_v35  ;;  %v4772_v28 = vadd.f32 %v4741_v19, %v4740_v25  ;;  %v12736_v43 = vpop.f32.mrb[132].mxu0 }
 0x224   : > { %v14758_v31 = vadd.f32 %v12736_v43, %v14642_v58  ;;  %v4590_v63 = vpop.f32.mrb[133].mxu0 }
 0x225   : > { %v4773_v34 = vadd.f32 %v4772_v28, %v4742_v62  ;;  %v14763_v30 = vadd.f32 %v4590_v63, %v14636_v52  ;;  %v4705_v6 = vadd.f32 %v4704_v50, %v14743_v22  ;;  %v12737_v60 = vpop.f32.mrb[134].mxu0 }
 0x226   : > { %v14767_v29 = vadd.f32 %v12737_v60, %v14644_v1  ;;  %v4593_v4 = vpop.f32.mrb[135].mxu0  ;;  %v4746_v1 = vmul.f32 %v14758_v31, %v14758_v31 }
 0x227   : > { %v4706_v59 = vadd.f32 %v4705_v6, %v14763_v30  ;;  %v4744_v58 = vmul.f32 %v14763_v30, %v14763_v30  ;;  %v4774_v42 = vadd.f32 %v4773_v34, %v4743_v20  ;;  %v14773_v32 = vadd.f32 %v4593_v4, %v14638_v49 }
 0x228   : > { %v4747_v49 = vmul.f32 %v14767_v29, %v14767_v29 }
 0x229   : > { %v4775_v53 = vadd.f32 %v4774_v42, %v4744_v58  ;;  %v4707_v52 = vadd.f32 %v4706_v59, %v14773_v32  ;;  %v4745_v0 = vmul.f32 %v14773_v32, %v14773_v32 }
 0x22b   : > { %v4708_v40 = vadd.f32 %v4707_v52, %v14758_v31  ;;  %v4776_v48 = vadd.f32 %v4775_v53, %v4745_v0  ;;  %v12740_v16 = vpop.f32.mrb[136].mxu0 }
 0x22c   : > { %v14782_v33 = vadd.f32 %v12740_v16, %v14654_v5  ;;  %v4606_v41 = vpop.f32.mrb[137].mxu0 }
 0x22d   : > { %v4777_v37 = vadd.f32 %v4776_v48, %v4746_v1  ;;  %v14787_v57 = vadd.f32 %v4606_v41, %v14648_v26  ;;  %v4709_v54 = vadd.f32 %v4708_v40, %v14767_v29  ;;  %v12741_v17 = vpop.f32.mrb[138].mxu0 }
 0x22e   : > { %v14791_v13 = vadd.f32 %v12741_v17, %v14656_v56  ;;  %v4609_v25 = vpop.f32.mrb[139].mxu0  ;;  %v4750_v56 = vmul.f32 %v14782_v33, %v14782_v33 }
 0x22f   : > { %v4710_v44 = vadd.f32 %v4709_v54, %v14787_v57  ;;  %v4748_v5 = vmul.f32 %v14787_v57, %v14787_v57  ;;  %v4778_v19 = vadd.f32 %v4777_v37, %v4747_v49  ;;  %v14797_v62 = vadd.f32 %v4609_v25, %v14650_v18 }
 0x230   : > { %v4751_v18 = vmul.f32 %v14791_v13, %v14791_v13 }
 0x231   : > { %v4779_v50 = vadd.f32 %v4778_v19, %v4748_v5  ;;  %v4711_v26 = vadd.f32 %v4710_v44, %v14797_v62  ;;  %v4749_v28 = vmul.f32 %v14797_v62, %v14797_v62 }
 0x233   : > { %v4712_v43 = vadd.f32 %v4711_v26, %v14782_v33  ;;  %v4780_v63 = vadd.f32 %v4779_v50, %v4749_v28  ;;  %v12744_v20 = vpop.f32.mrb[140].mxu0 }
 0x234   : > { %v14806_v34 = vadd.f32 %v12744_v20, %v14672_v21  ;;  %v4622_v6 = vpop.f32.mrb[141].mxu0 }
 0x235   : > { %v4781_v60 = vadd.f32 %v4780_v63, %v4750_v56  ;;  %v14811_v4 = vadd.f32 %v4622_v6, %v14666_v15  ;;  %v4713_v59 = vadd.f32 %v4712_v43, %v14791_v13  ;;  %v12745_v58 = vpop.f32.mrb[142].mxu0 }
 0x236   : > { %v14815_v42 = vadd.f32 %v12745_v58, %v14680_v2  ;;  %v4625_v53 = vpop.f32.mrb[143].mxu0  ;;  %v4754_v2 = vmul.f32 %v14806_v34, %v14806_v34 }
 0x237   : > { %v4714_v52 = vadd.f32 %v4713_v59, %v14811_v4  ;;  %v4752_v21 = vmul.f32 %v14811_v4, %v14811_v4  ;;  %v4782_v0 = vadd.f32 %v4781_v60, %v4751_v18  ;;  %v14821_v1 = vadd.f32 %v4625_v53, %v14668_v27 }
 0x238   : > { %v4755_v27 = vmul.f32 %v14815_v42, %v14815_v42 }
 0x239   : > { %v4783_v40 = vadd.f32 %v4782_v0, %v4752_v21  ;;  %v4715_v15 = vadd.f32 %v4714_v52, %v14821_v1  ;;  %v4753_v48 = vmul.f32 %v14821_v1, %v14821_v1 }
 0x23b   : > { %v4716_v16 = vadd.f32 %v4715_v15, %v14806_v34  ;;  %v4784_v41 = vadd.f32 %v4783_v40, %v4753_v48  ;;  %v12748_v49 = vpop.f32.mrb[144].mxu0 }
 0x23c   : > { %v14830_v37 = vadd.f32 %v12748_v49, %v14696_v55  ;;  %v4638_v54 = vpop.f32.mrb[145].mxu0 }
 0x23d   : > { %v4785_v17 = vadd.f32 %v4784_v41, %v4754_v2  ;;  %v14835_v25 = vadd.f32 %v4638_v54, %v14684_v61  ;;  %v4717_v44 = vadd.f32 %v4716_v16, %v14815_v42  ;;  %v12749_v5 = vpop.f32.mrb[146].mxu0 }
 0x23e   : > { %v14839_v19 = vadd.f32 %v12749_v5, %v14698_v7  ;;  %v4641_v50 = vpop.f32.mrb[147].mxu0  ;;  %v4758_v7 = vmul.f32 %v14830_v37, %v14830_v37 }
 0x23f   : > { %v4718_v26 = vadd.f32 %v4717_v44, %v14835_v25  ;;  %v4756_v55 = vmul.f32 %v14835_v25, %v14835_v25  ;;  %v4786_v28 = vadd.f32 %v4785_v17, %v4755_v27  ;;  %v14845_v56 = vadd.f32 %v4641_v50, %v14686_v10 }
 0x240   : > { %v4759_v10 = vmul.f32 %v14839_v19, %v14839_v19 }
 0x241   : > { %v4787_v43 = vadd.f32 %v4786_v28, %v4756_v55  ;;  %v4719_v61 = vadd.f32 %v4718_v26, %v14845_v56  ;;  %v4757_v63 = vmul.f32 %v14845_v56, %v14845_v56 }
 0x243   : > { %v4720_v20 = vadd.f32 %v4719_v61, %v14830_v37  ;;  %v4788_v6 = vadd.f32 %v4787_v43, %v4757_v63 }
 0x245   : > { %v12752_v18 = vpop.f32.mrb[148].mxu0  ;;  %v4789_v58 = vadd.f32 %v4788_v6, %v4758_v7  ;;  %v4721_v52 = vadd.f32 %v4720_v20, %v14839_v19 }
 0x246   : > { %v14854_v60 = vadd.f32 %v12752_v18, %v14708_v36  ;;  %v4654_v59 = vpop.f32.mrb[149].mxu0  ;;  %v12954_v18 = vld [vmem:[%s17558_s2 + $0x80] sm:$0xff]  }
 0x247   : > { %v14859_v53 = vadd.f32 %v4654_v59, %v14702_v3  ;;  %v12753_v21 = vpop.f32.mrb[150].mxu0  ;;  %v4790_v48 = vadd.f32 %v4789_v58, %v4759_v10 }
 0x248   : > { %v14863_v0 = vadd.f32 %v12753_v21, %v14710_v12  ;;  %v4657_v40 = vpop.f32.mrb[151].mxu0  ;;  %v4762_v12 = vmul.f32 %v14854_v60, %v14854_v60 }
 0x249   : > { %v4722_v15 = vadd.f32 %v4721_v52, %v14859_v53  ;;  %v4760_v36 = vmul.f32 %v14859_v53, %v14859_v53  ;;  %v14869_v2 = vadd.f32 %v4657_v40, %v14704_v9 }
 0x24a   : > { %v4763_v9 = vmul.f32 %v14863_v0, %v14863_v0 }
 0x24b   : > { %v4791_v16 = vadd.f32 %v4790_v48, %v4760_v36  ;;  %v4723_v3 = vadd.f32 %v4722_v15, %v14869_v2  ;;  %v4761_v41 = vmul.f32 %v14869_v2, %v14869_v2 }
 0x24d   : > { %v4724_v49 = vadd.f32 %v4723_v3, %v14854_v60  ;;  %v4792_v54 = vadd.f32 %v4791_v16, %v4761_v41  ;;  %v12956_v3 = vld [vmem:[%s17558_s2 + $0xc8] sm:$0xff]  }
 0x24f   : > { %v4793_v5 = vadd.f32 %v4792_v54, %v4762_v12  ;;  %v4725_v26 = vadd.f32 %v4724_v49, %v14863_v0  ;;  %v12957_v12 = vld [vmem:[%s17558_s2 + $0x88] sm:$0xff]  }
 0x250   : > { %v12756_v27 = vpop.f32.mrb[152].mxu0 }
 0x251   : > { %v14878_v17 = vadd.f32 %v12756_v27, %v14720_v45  ;;  %v4670_v44 = vpop.f32.mrb[153].mxu0  ;;  %v4794_v63 = vadd.f32 %v4793_v5, %v4763_v9  ;;  %v12958_v5 = vld [vmem:[%s17558_s2 + $0xd0] sm:$0xff]  }
 0x252   : > { %v14883_v50 = vadd.f32 %v4670_v44, %v14714_v23  ;;  %v12757_v55 = vpop.f32.mrb[154].mxu0 }
 0x253   : > { %v14887_v28 = vadd.f32 %v12757_v55, %v14722_v14  ;;  %v4673_v43 = vpop.f32.mrb[155].mxu0  ;;  %v12952_v14 = vld [vmem:[%s17558_s2 + $0xc0] sm:$0xff]   ;;  %v4766_v59 = vmul.f32 %v14878_v17, %v14878_v17 }
 0x254   : > { %v4726_v61 = vadd.f32 %v4725_v26, %v14883_v50  ;;  %v4764_v45 = vmul.f32 %v14883_v50, %v14883_v50  ;;  %v14893_v7 = vadd.f32 %v4673_v43, %v14716_v24  ;;  %12354 = vmatprep.subr.bf16.mxu0 %v12952_v14  ;;  %v12959_v26 = vld [vmem:[%s17558_s2 + $0x90] sm:$0xff]   ;;  %v12961_v14 = vld [vmem:[%s17558_s2 + $0x98] sm:$0xff]  }
 0x255   : > { %12355 = vmatpush3.bf16.msra.mxu0 %v12954_v18  ;;  %v4767_v40 = vmul.f32 %v14887_v28, %v14887_v28 }
 0x256   : > { %v4795_v20 = vadd.f32 %v4794_v63, %v4764_v45  ;;  %v4727_v23 = vadd.f32 %v4726_v61, %v14893_v7  ;;  %v4765_v6 = vmul.f32 %v14893_v7, %v14893_v7  ;;  %12356 = vmatprep.subr.bf16.mxu0 %v12956_v3  ;;  %v12946_v61 = vld [vmem:[%s17558_s2 + $0x58] sm:$0xff]   ;;  %v12950_v3 = vld [vmem:[%s17558_s2 + $0x68] sm:$0xff]  }
 0x257   : > { %12248 = vmatprep.subr.bf16.mxu1 %v12946_v61  ;;  %v12970_v61 = vld [vmem:[%s17558_s2 + $0xf8] sm:$0xff]  }
 0x258   : > { %v4728_v24 = vadd.f32 %v4727_v23, %v14878_v17  ;;  %v4796_v10 = vadd.f32 %v4795_v20, %v4765_v6  ;;  %v12760_v58 = vpop.f32.mrb[156].mxu0  ;;  %v12947_v23 = vld [vmem:[%s17558_s2 + $0x18] sm:$0xff]  }
 0x259   : > { %v14908_v52 = vadd.f32 %v12760_v58, %v14732_v39  ;;  %v4686_v21 = vpop.f32.mrb[157].mxu0  ;;  %12357 = vmatpush3.bf16.msra.mxu0 %v12957_v12  ;;  %v12960_v6 = vld [vmem:[%s17558_s2 + $0xd8] sm:$0xff]   ;;  %12249 = vmatpush3.bf16.msra.mxu1 %v12947_v23 }
 0x25a   : > { %v4797_v15 = vadd.f32 %v4796_v10, %v4766_v59  ;;  %v14913_v36 = vadd.f32 %v4686_v21, %v14726_v47  ;;  %v4729_v48 = vadd.f32 %v4728_v24, %v14887_v28  ;;  %v12761_v16 = vpop.f32.mrb[158].mxu0  ;;  %12358 = vmatprep.subr.bf16.mxu0 %v12958_v5  ;;  %v12948_v24 = vld [vmem:[%s17558_s2 + $0x60] sm:$0xff]   ;;  %v12955_v5 = vld [vmem:[%s17558_s2 + $0x30] sm:$0xff]   ;;  %v12965_v23 = vld [vmem:[%s17558_s2 + $0x38] sm:$0xff]  }
 0x25b   : > { %v14920_v41 = vadd.f32 %v12761_v16, %v14740_v11  ;;  %v4689_v39 = vpop.f32.mrb[159].mxu0  ;;  %v12949_v21 = vld [vmem:[%s17558_s2 + $0x20] sm:$0xff]   ;;  %12250 = vmatprep.subr.bf16.mxu1 %v12948_v24 }
 0x25c   : > { %v4730_v49 = vadd.f32 %v4729_v48, %v14913_v36  ;;  %v4768_v47 = vmul.f32 %v14913_v36, %v14913_v36  ;;  %v4798_v54 = vadd.f32 %v4797_v15, %v4767_v40  ;;  %v14929_v27 = vadd.f32 %v4689_v39, %v14728_v51  ;;  %v12962_v40 = vld [vmem:[%s17558_s2 + $0xe0] sm:$0xff]  }
 0x25d   : > { %v4770_v51 = vmul.f32 %v14908_v52, %v14908_v52  ;;  %12359 = vmatpush3.bf16.msra.mxu0 %v12959_v26  ;;  %v4771_v45 = vmul.f32 %v14920_v41, %v14920_v41  ;;  %v12964_v15 = vld [vmem:[%s17558_s2 + $0xa0] sm:$0xff]   ;;  %12251 = vmatpush3.bf16.msra.mxu1 %v12949_v21  ;;  %v12963_v26 = vld [vmem:[%s17558_s2 + $0x78] sm:$0xff]  }
 0x25e   : > { %v4799_v44 = vadd.f32 %v4798_v54, %v4768_v47  ;;  %v4731_v11 = vadd.f32 %v4730_v49, %v14929_v27  ;;  %v4769_v9 = vmul.f32 %v14929_v27, %v14929_v27  ;;  %12360 = vmatprep.subr.bf16.mxu0 %v12960_v6  ;;  %v12951_v49 = vld [vmem:[%s17558_s2 + $0x28] sm:$0xff]   ;;  %12252 = vmatprep.subr.bf16.mxu1 %v12950_v3  ;;  %v12971_v6 = vld [vmem:[%s17558_s2 + $0xb8] sm:$0xff]   ;;  %v12975_v21 = vld [vmem:[%s17558_s2 + $0x140] sm:$0xff]  }
 0x25f   : > { %v12966_v47 = vld [vmem:[%s17558_s2 + $0xe8] sm:$0xff]  }
 0x260   : > { %v4732_v55 = vadd.f32 %v4731_v11, %v14908_v52  ;;  %v4800_v43 = vadd.f32 %v4799_v44, %v4769_v9  ;;  %v12967_v54 = vld [vmem:[%s17558_s2 + $0xa8] sm:$0xff]   ;;  %v12953_v9 = vld [vmem:[%s17558_s2 + $0x70] sm:$0xff]  }
 0x261   : > { %12361 = vmatpush3.bf16.msra.mxu0 %v12961_v14  ;;  %12253 = vmatpush3.bf16.msra.mxu1 %v12951_v49 }
 0x262   : > { %v4733_v63 = vadd.f32 %v4732_v55, %v14920_v41  ;;  %v4801_v20 = vadd.f32 %v4800_v43, %v4770_v51  ;;  %12362 = vmatprep.subr.bf16.mxu0 %v12962_v40  ;;  %v12968_v51 = vld [vmem:[%s17558_s2 + $0xf0] sm:$0xff]   ;;  %12254 = vmatprep.subr.bf16.mxu1 %v12953_v9 }
 0x263   : > { %v12969_v55 = vld [vmem:[%s17558_s2 + $0xb0] sm:$0xff]  }
 0x264   : > { %v4734_v18 = vrot.slane %v4733_v63, 4  ;;  %v4802_v59 = vadd.f32 %v4801_v20, %v4771_v45  ;;  %v5731_v45 = vld [vmem:[#allocation3] sm:$0xf] }
 0x265   : > { %12363 = vmatpush3.bf16.msra.mxu0 %v12964_v15  ;;  %12255 = vmatpush3.bf16.msra.mxu1 %v12955_v5  ;;  %v5780_v14 = vshrl.u32 %v5731_v45, 16 }
 0x266   : > { %v4735_v10 = vadd.f32 %v4734_v18, %v4733_v63  ;;  %v4803_v58 = vrot.slane %v4802_v59, 4  ;;  %12364 = vmatprep.subr.bf16.mxu0 %v12966_v47  ;;  %12256 = vmatprep.subr.bf16.mxu1 %v12963_v26 }
 0x267   : > { %v5782_v49 = vrot.slane %v5780_v14, 4 }
 0x268   : > { %v4736_v48 = vrot.slane %v4735_v10, 2  ;;  %v4804_v16 = vadd.f32 %v4803_v58, %v4802_v59  ;;  %v5783_v58 = vshll.u32 %v5731_v45, 16 }
 0x269   : > { %12365 = vmatpush3.bf16.msra.mxu0 %v12967_v54  ;;  %12257 = vmatpush3.bf16.msra.mxu1 %v12965_v23 }
 0x26a   : > { %v4737_v39 = vadd.f32 %v4736_v48, %v4735_v10  ;;  %v4805_v12 = vrot.slane %v4804_v16, 2  ;;  %12366 = vmatprep.subr.bf16.mxu0 %v12968_v51  ;;  %v5732_v10 = vld [vmem:[#allocation3 + $0x4] sm:$0xf]  ;;  %v5785_v47 = vrot.slane %v5783_v58, 5  ;;  %12466 = vmatprep.subr.bf16.mxu1 %v12975_v21 }
 0x26b   : > { %v5793_v3 = vshrl.u32 %v5732_v10, 16 }
 0x26c   : > { %v4738_v44 = vrot.slane %v4737_v39, 1  ;;  %v4806_v11 = vadd.f32 %v4805_v12, %v4804_v16  ;;  %v5789_v16 = vshll.u32 %v5732_v10, 16 }
 0x26d   : > { %12367 = vmatpush3.bf16.msra.mxu0 %v12969_v55 }
 0x26e   : > { %v4739_v43 = vadd.f32 %v4738_v44, %v4737_v39  ;;  %v4807_v63 = vrot.slane %v4806_v11, 1  ;;  %12368 = vmatprep.subr.bf16.mxu0 %v12970_v61 }
 0x270   : > { %v15000_v20 = vmul.f32 0.00390625, %v4739_v43  ;;  %v4808_v40 = vadd.f32 %v4807_v63, %v4806_v11 }
 0x271   : > { %12369 = vmatpush3.bf16.msra.mxu0 %v12971_v6 }
 0x272   : > { %v4810_v18 = vmul.f32 256.0, %v15000_v20  ;;  %v4852_v59 = vsub.f32 %v14913_v36, %v15000_v20  ;;  %v4853_v24 = vsub.f32 %v14929_v27, %v15000_v20  ;;  %v4833_v48 = vsub.f32 %v14797_v62, %v15000_v20  ;;  %v12987_v36 = vld [vmem:[%s17558_s2 + $0x150] sm:$0xff]  }
 0x273   : > { %v4836_v12 = vsub.f32 %v14811_v4, %v15000_v20  ;;  %v4837_v54 = vsub.f32 %v14821_v1, %v15000_v20  ;;  %v4838_v44 = vsub.f32 %v14806_v34, %v15000_v20  ;;  %v4839_v11 = vsub.f32 %v14815_v42, %v15000_v20 }
 0x274   : > { %v4811_v15 = vmul.f32 %v4810_v18, %v15000_v20  ;;  %v4840_v9 = vsub.f32 %v14835_v25, %v15000_v20  ;;  %v4841_v26 = vsub.f32 %v14845_v56, %v15000_v20  ;;  %v4842_v51 = vsub.f32 %v14830_v37, %v15000_v20  ;;  %v15059_v18 = vld [vmem:[%s323_s16] ss:$0 sm:$0xff] }
 0x275   : > { %v4843_v55 = vsub.f32 %v14839_v19, %v15000_v20  ;;  %v4854_v58 = vsub.f32 %v14908_v52, %v15000_v20  ;;  %v4855_v21 = vsub.f32 %v14920_v41, %v15000_v20  ;;  %v4876_v62 = vmul.f32 %v15059_v18, %v4838_v44 }
 0x276   : > { %v4812_v39 = vsub.f32 %v4808_v40, %v4811_v15  ;;  %v5733_v40 = vld [vmem:[#allocation3 + $0x8] sm:$0x1]  ;;  %v5786_v15 = vor.u32 %v5785_v47, %v5782_v49  ;;  %v4877_v4 = vmul.f32 %v15059_v18, %v4839_v11  ;;  %v4878_v1 = vmul.f32 %v15059_v18, %v4840_v9 }
 0x277   : > { %v5799_v14 = vshll.u32 %v5733_v40, 16  ;;  %v15062_v52 = vmul.f32 %v15059_v18, %v4854_v58  ;;  %v15065_v41 = vmul.f32 %v15059_v18, %v4855_v21  ;;  %v12972_v40 = vld [vmem:[#allocation3] sm:$0xff]   ;;  %v12981_v21 = vld [vmem:[%s17558_s2 + $0x148] sm:$0xff]   ;;  %v4879_v42 = vmul.f32 %v15059_v18, %v4841_v26 }
 0x278   : > { %v4813_v5 = vmul.f32 0.003921569, %v4812_v39  ;;  %v5791_v39 = vrot.slane %v5789_v16, 5  ;;  %v5787_v6 = vrot.slane %v5786_v15, 4  ;;  %v4880_v25 = vmul.f32 %v15059_v18, %v4842_v51 }
 0x279   : > { %v5801_v63 = vrot.slane %v5799_v14, 5  ;;  %v12976_v14 = vld [vmem:[%s17558_s2 + $0x100] sm:$0xff]   ;;  %v17667_v56 = vsub.f32 %v14869_v2, %v15000_v20  ;;  %v17668_v37 = vsub.f32 %v14854_v60, %v15000_v20  ;;  %v17669_v19 = vsub.f32 %v14863_v0, %v15000_v20 }
 0x27a   : > { %v4814_v23 = vmax.f32 %v4813_v5, 0.0  ;;  %v5795_v5 = vrot.slane %v5793_v3, 4  ;;  %v5792_v16 = vsel %vm13248_vm5, %v5787_v6, %v5791_v39  ;;  %v6244_v6 = vld [vmem:[#allocation3 + $0x4] sm:$0xf]  ;;  %v17671_v60 = vsub.f32 %v14893_v7, %v15000_v20 }
 0x27b   : > { %v4883_v11 = vmul.f32 %v15059_v18, %v17667_v56  ;;  %v4884_v9 = vmul.f32 %v15059_v18, %v17668_v37  ;;  %v4885_v26 = vmul.f32 %v15059_v18, %v17669_v19  ;;  %v17672_v0 = vsub.f32 %v14878_v17, %v15000_v20 }
 0x27c   : > { %13060 = vrsqrt.f32 %v4814_v23  ;;  %v5796_v10 = vor.u32 %v5795_v5, %v5791_v39  ;;  %vm4817_vm6 = vcmp.eq.f32.partialorder %v4814_v23, inf  ;;  %v4820_v58 = vand.u32 2147483648, %v4814_v23  ;;  %v6243_v5 = vld [vmem:[#allocation3] sm:$0xe] }
 0x27d   : > { %vm4819_vm7 = vcmp.eq.f32.partialorder %v4814_v23, 0.0  ;;  %v4824_v39 = vsub.f32 %v14738_v8, %v15000_v20  ;;  %v4828_v8 = vsub.f32 %v14763_v30, %v15000_v20  ;;  %v4890_v30 = vmul.f32 %v15059_v18, %v4852_v59 }
 0x27e   : > { %v5797_v3 = vrot.slane %v5796_v10, 4  ;;  %v4887_v2 = vmul.f32 %v15059_v18, %v17671_v60 }
 0x27f   : > { %v4866_v59 = vmul.f32 %v15059_v18, %v4828_v8 }
 0x280   : > { %v5802_v47 = vsel %vm13248_vm5, %v5797_v3, %v5801_v63  ;;  %v4825_v3 = vsub.f32 %v14746_v38, %v15000_v20  ;;  %v4831_v38 = vsub.f32 %v14767_v29, %v15000_v20  ;;  %v4835_v29 = vsub.f32 %v14791_v13, %v15000_v20 }
 0x281   : > { %v11437_v43 = vcombine.low %v5792_v16, %v5802_v47  ;;  %v12982_v16 = vld [vmem:[%s17558_s2 + $0x108] sm:$0xff]   ;;  %v4830_v47 = vsub.f32 %v14758_v31, %v15000_v20  ;;  %v4891_v31 = vmul.f32 %v15059_v18, %v4853_v24 }
 0x283   : > { %9172 = vmatprep.mubr.bf16.mxu1 %v11437_v43  ;;  %v4827_v43 = vsub.f32 %v14743_v22, %v15000_v20  ;;  %v4834_v22 = vsub.f32 %v14782_v33, %v15000_v20  ;;  %v4868_v24 = vmul.f32 %v15059_v18, %v4830_v47 }
 0x284   : > { %9173 = vmatmul.mubr.bf16.vlgmr.msra.gmra.mrb[128].mxu1 %v12972_v40  ;;  %v6245_v40 = vld [vmem:[#allocation3 + $0x8] sm:$0x1] }
 0x285   : > { %12467 = vmatpush3.bf16.msra.mxu1 %v12976_v14  ;;  %v11453_v14 = vrot.slane %v6243_v5, 9  ;;  %v4865_v27 = vmul.f32 %v15059_v18, %v4827_v43  ;;  %v4873_v5 = vmul.f32 %v15059_v18, %v4835_v29  ;;  %v4888_v43 = vmul.f32 %v15059_v18, %v17672_v0 }
 0x286   : > { %v13061_v49 = vpop.eup %13060  ;;  %12468 = vmatprep.subr.bf16.mxu1 %v12981_v21  ;;  %v6344_v21 = vrot.slane %v6245_v40, 5 }
 0x287   : > { %v4816_v61 = vmul.f32 %v13061_v49, %v4814_v23  ;;  %v4829_v49 = vsub.f32 %v14773_v32, %v15000_v20  ;;  %v4862_v32 = vmul.f32 %v15059_v18, %v4824_v39  ;;  %v4872_v39 = vmul.f32 %v15059_v18, %v4834_v22 }
 0x289   : > { %v4818_v15 = vsel %vm4817_vm6, %v4814_v23, %v4816_v61  ;;  %v4826_v61 = vsub.f32 %v14735_v35, %v15000_v20  ;;  %v6341_v23 = vrot.slane %v6244_v6, 5  ;;  %v4832_v35 = vsub.f32 %v14787_v57, %v15000_v20  ;;  %12469 = vmatpush3.bf16.msra.mxu1 %v12982_v16 }
 0x28a   : > { %v4821_v10 = vsel %vm4819_vm7, %v4820_v58, %v4818_v15  ;;  %v4863_v57 = vmul.f32 %v15059_v18, %v4825_v3  ;;  %v4867_v13 = vmul.f32 %v15059_v18, %v4829_v49  ;;  %v12988_v15 = vld [vmem:[%s17558_s2 + $0x110] sm:$0xff]   ;;  %v4869_v6 = vmul.f32 %v15059_v18, %v4831_v38  ;;  %12470 = vmatprep.subr.bf16.mxu1 %v12987_v36 }
 0x28b   : > { %v4822_v63 = vadd.f32 1e-05, %v4821_v10  ;;  %v4864_v33 = vmul.f32 %v15059_v18, %v4826_v61  ;;  %v6343_v58 = vrot.slane %v6341_v23, 4  ;;  %v4870_v10 = vmul.f32 %v15059_v18, %v4832_v35  ;;  %v15195_v61 = vld [vmem:[%s320_s9] ss:$0 sm:$0xff] }
 0x28c   : > { %v4874_v16 = vmul.f32 %v15059_v18, %v4836_v12  ;;  %v4875_v3 = vmul.f32 %v15059_v18, %v4837_v54  ;;  %v15157_v34 = vsel %vm13239_vm4, %v11453_v14, %v6341_v23  ;;  %v4881_v12 = vmul.f32 %v15059_v18, %v4843_v55 }
 0x28d   : > { %13062 = vrcp.f32 %v4822_v63  ;;  %v4871_v63 = vmul.f32 %v15059_v18, %v4833_v48  ;;  %12471 = vmatpush3.bf16.msra.mxu1 %v12988_v15  ;;  %17664 = vst [vmem:[#allocation6_spill] sm:$0xff] %v15157_v34  ;;  %v15161_v48 = vsel %vm13239_vm4, %v6343_v58, %v6344_v21  ;;  %v17666_v54 = vsub.f32 %v14859_v53, %v15000_v20 }
 0x28e   : > { %17665 = vst [vmem:[#allocation7_spill] sm:$0xff] %v15161_v48  ;;  %v17670_v53 = vsub.f32 %v14883_v50, %v15000_v20  ;;  %v17673_v50 = vsub.f32 %v14887_v28, %v15000_v20  ;;  %v5535_v48 = vld [vmem:[#allocation3 + $0x74] sm:$0x1] }
 0x28f   : > { %v4882_v44 = vmul.f32 %v15059_v18, %v17666_v54 }
 0x290   : > { %v4886_v51 = vmul.f32 %v15059_v18, %v17670_v53  ;;  %v4889_v23 = vmul.f32 %v15059_v18, %v17673_v50 }
 0x297   : > { %v13063_v55 = vpop.eup %13062 }
 0x298   : > { %v4922_v49 = vmul.f32 %v13063_v55, %v4890_v30  ;;  %v4923_v47 = vmul.f32 %v13063_v55, %v4891_v31  ;;  %v4894_v40 = vmul.f32 %v13063_v55, %v4862_v32  ;;  %v4895_v7 = vmul.f32 %v13063_v55, %v4863_v57 }
 0x299   : > { %v4896_v38 = vmul.f32 %v13063_v55, %v4864_v33  ;;  %v4897_v35 = vmul.f32 %v13063_v55, %v4865_v27  ;;  %v4898_v22 = vmul.f32 %v13063_v55, %v4866_v59  ;;  %v4899_v14 = vmul.f32 %v13063_v55, %v4867_v13 }
 0x29a   : > { %v4960_v17 = vadd.f32 %v15195_v61, %v4922_v49  ;;  %v4961_v29 = vadd.f32 %v15195_v61, %v4923_v47  ;;  %v4900_v58 = vmul.f32 %v13063_v55, %v4868_v24  ;;  %v4901_v28 = vmul.f32 %v13063_v55, %v4869_v6 }
 0x29b   : > { %v4902_v20 = vmul.f32 %v13063_v55, %v4870_v10  ;;  %v4903_v18 = vmul.f32 %v13063_v55, %v4871_v63  ;;  %v4904_v21 = vmul.f32 %v13063_v55, %v4872_v39  ;;  %v4905_v36 = vmul.f32 %v13063_v55, %v4873_v5 }
 0x29c   : > { %v4992_v15 = vmax.f32 %v4960_v17, 0.0  ;;  %v4993_v54 = vmax.f32 %v4961_v29, 0.0  ;;  %v4906_v30 = vmul.f32 %v13063_v55, %v4874_v16  ;;  %v4907_v31 = vmul.f32 %v13063_v55, %v4875_v3  ;;  %v12993_v3 = vld [vmem:[%s17558_s2 + $0x158] sm:$0xff]  }
 0x29d   : > { %v4908_v32 = vmul.f32 %v13063_v55, %v4876_v62  ;;  %v4909_v57 = vmul.f32 %v13063_v55, %v4877_v4  ;;  %v4910_v33 = vmul.f32 %v13063_v55, %v4878_v1  ;;  %v4911_v27 = vmul.f32 %v13063_v55, %v4879_v42  ;;  %12472 = vmatprep.subr.bf16.mxu1 %v12993_v3 }
 0x29e   : > { %v15213_v59 = vpack.c.bf16 %v4992_v15, %v4992_v15  ;;  %v11767_v13 = vpack.c.bf16 %v4993_v54, %v4993_v54  ;;  %v4912_v56 = vmul.f32 %v13063_v55, %v4880_v25  ;;  %v4913_v37 = vmul.f32 %v13063_v55, %v4881_v12  ;;  %v12994_v25 = vld [vmem:[%s17558_s2 + $0x118] sm:$0xff]   ;;  %v5584_v12 = vld [vmem:[#allocation3 + $0xc8] sm:$0x1] }
 0x29f   : > { %v4914_v19 = vmul.f32 %v13063_v55, %v4882_v44  ;;  %v4915_v24 = vmul.f32 %v13063_v55, %v4883_v11  ;;  %v4916_v6 = vmul.f32 %v13063_v55, %v4884_v9  ;;  %v4917_v10 = vmul.f32 %v13063_v55, %v4885_v26  ;;  %12473 = vmatpush3.bf16.msra.mxu1 %v12994_v25 }
 0x2a0   : > { %v5388_v63 = vshrl.u32 %v15213_v59, 16  ;;  %v5396_v39 = vshrl.u32 %v11767_v13, 16  ;;  %v5399_v5 = vshll.u32 %v11767_v13, 16  ;;  %v5391_v16 = vshll.u32 %v15213_v59, 16 }
 0x2a1   : > { %v4918_v62 = vmul.f32 %v13063_v55, %v4886_v51  ;;  %v4919_v4 = vmul.f32 %v13063_v55, %v4887_v2  ;;  %v4920_v1 = vmul.f32 %v13063_v55, %v4888_v43  ;;  %v4921_v42 = vmul.f32 %v13063_v55, %v4889_v23  ;;  %v5577_v51 = vld [vmem:[#allocation3 + $0xbc] sm:$0x1] }
 0x2a2   : > { %v15229_v44 = vrot.slane %v5388_v63, 7  ;;  %v5398_v11 = vrot.slane %v5396_v39, 7  ;;  %v4924_v9 = vmul.f32 %v13063_v55, %v15062_v52  ;;  %v4925_v26 = vmul.f32 %v13063_v55, %v15065_v41 }
 0x2a3   : > { %v15240_v60 = vadd.f32 %v15195_v61, %v4894_v40  ;;  %v15243_v2 = vadd.f32 %v15195_v61, %v4895_v7  ;;  %v15246_v0 = vadd.f32 %v15195_v61, %v4896_v38  ;;  %v15249_v52 = vadd.f32 %v15195_v61, %v4897_v35 }
 0x2a4   : > { %v5394_v41 = vrot.slane %v15229_v44, 4  ;;  %v5401_v55 = vor.u32 %v5399_v5, %v5398_v11  ;;  %v5403_v43 = vrot.slane %v5398_v11, 4  ;;  %v15253_v50 = vadd.f32 %v15195_v61, %v4898_v22 }
 0x2a5   : > { %v15256_v23 = vadd.f32 %v15195_v61, %v4899_v14  ;;  %v15259_v49 = vadd.f32 %v15195_v61, %v4900_v58  ;;  %v15262_v47 = vadd.f32 %v15195_v61, %v4901_v28  ;;  %v15265_v40 = vadd.f32 %v15195_v61, %v4902_v20 }
 0x2a6   : > { %v5402_v7 = vsel %vm15225_vm11, %v5394_v41, %v5401_v55  ;;  %v5578_v38 = vsel %vm15235_vm12, %v5403_v43, %v5577_v51  ;;  %v15272_v35 = vadd.f32 %v15195_v61, %v4903_v18  ;;  %v15275_v22 = vadd.f32 %v15195_v61, %v4904_v21 }
 0x2a7   : > { %5576 = vst [vmem:[#allocation3 + $0xb8] sm:$0xf] %v5402_v7  ;;  %5579 = vst [vmem:[#allocation3 + $0xbc] sm:$0x1] %v5578_v38  ;;  %v15278_v14 = vadd.f32 %v15195_v61, %v4905_v36  ;;  %v15281_v17 = vadd.f32 %v15195_v61, %v4906_v30  ;;  %v15284_v29 = vadd.f32 %v15195_v61, %v4907_v31  ;;  %v4969_v63 = vmax.f32 %v15256_v23, 0.0  ;;  %v13001_v23 = vld [vmem:[%s17558_s2 + $0x120] sm:$0xff]  }
 0x2a8   : > { %v15287_v58 = vadd.f32 %v15195_v61, %v4908_v32  ;;  %v15290_v28 = vadd.f32 %v15195_v61, %v4909_v57  ;;  %v15293_v20 = vadd.f32 %v15195_v61, %v4910_v33  ;;  %v15296_v18 = vadd.f32 %v15195_v61, %v4911_v27 }
 0x2a9   : > { %v15299_v21 = vadd.f32 %v15195_v61, %v4912_v56  ;;  %v15302_v36 = vadd.f32 %v15195_v61, %v4913_v37  ;;  %v15305_v15 = vadd.f32 %v15195_v61, %v4914_v19  ;;  %v15308_v54 = vadd.f32 %v15195_v61, %v4915_v24 }
 0x2aa   : > { %v15311_v30 = vadd.f32 %v15195_v61, %v4916_v6  ;;  %v15314_v31 = vadd.f32 %v15195_v61, %v4917_v10  ;;  %v15317_v32 = vadd.f32 %v15195_v61, %v4918_v62  ;;  %v15320_v57 = vadd.f32 %v15195_v61, %v4919_v4 }
 0x2ab   : > { %v15323_v33 = vadd.f32 %v15195_v61, %v4920_v1  ;;  %v15326_v27 = vadd.f32 %v15195_v61, %v4921_v42  ;;  %v15329_v13 = vadd.f32 %v15195_v61, %v4924_v9  ;;  %v15332_v56 = vadd.f32 %v15195_v61, %v4925_v26 }
 0x2ac   : > { %v4964_v37 = vmax.f32 %v15240_v60, 0.0  ;;  %v4965_v19 = vmax.f32 %v15243_v2, 0.0  ;;  %v4966_v24 = vmax.f32 %v15246_v0, 0.0  ;;  %v4967_v6 = vmax.f32 %v15249_v52, 0.0  ;;  %v12999_v0 = vld [vmem:[%s17558_s2 + $0x160] sm:$0xff]  }
 0x2ad   : > { %v4968_v10 = vmax.f32 %v15253_v50, 0.0  ;;  %v4970_v39 = vmax.f32 %v15259_v49, 0.0  ;;  %v4971_v5 = vmax.f32 %v15262_v47, 0.0  ;;  %v4972_v3 = vmax.f32 %v15265_v40, 0.0  ;;  %v13000_v52 = vld [vmem:[%s17558_s2 + $0x1c0] sm:$0xff]   ;;  %12474 = vmatprep.subr.bf16.mxu1 %v12999_v0 }
 0x2ae   : > { %v4973_v61 = vmax.f32 %v15272_v35, 0.0  ;;  %v4974_v62 = vmax.f32 %v15275_v22, 0.0  ;;  %v4975_v4 = vmax.f32 %v15278_v14, 0.0  ;;  %v4976_v1 = vmax.f32 %v15281_v17, 0.0  ;;  %12578 = vmatprep.subr.bf16.mxu0 %v13000_v52  ;;  %12475 = vmatpush3.bf16.msra.mxu1 %v13001_v23 }
 0x2af   : > { %v4977_v42 = vmax.f32 %v15284_v29, 0.0  ;;  %v4978_v25 = vmax.f32 %v15287_v58, 0.0  ;;  %v4979_v11 = vmax.f32 %v15290_v28, 0.0  ;;  %v4980_v9 = vmax.f32 %v15293_v20, 0.0 }
 0x2b0   : > { %v4981_v26 = vmax.f32 %v15296_v18, 0.0  ;;  %v4982_v51 = vmax.f32 %v15299_v21, 0.0  ;;  %v4983_v60 = vmax.f32 %v15302_v36, 0.0  ;;  %v4984_v2 = vmax.f32 %v15305_v15, 0.0 }
 0x2b1   : > { %v4985_v41 = vmax.f32 %v15308_v54, 0.0  ;;  %v4986_v55 = vmax.f32 %v15311_v30, 0.0  ;;  %v4987_v43 = vmax.f32 %v15314_v31, 0.0  ;;  %v4988_v50 = vmax.f32 %v15317_v32, 0.0 }
 0x2b2   : > { %v4989_v49 = vmax.f32 %v15320_v57, 0.0  ;;  %v4990_v47 = vmax.f32 %v15323_v33, 0.0  ;;  %v4991_v40 = vmax.f32 %v15326_v27, 0.0  ;;  %v4994_v7 = vmax.f32 %v15329_v13, 0.0 }
 0x2b3   : > { %v4995_v38 = vmax.f32 %v15332_v56, 0.0  ;;  %v11738_v35 = vpack.c.bf16 %v4964_v37, %v4964_v37  ;;  %v11739_v22 = vpack.c.bf16 %v4965_v19, %v4965_v19  ;;  %v11740_v14 = vpack.c.bf16 %v4966_v24, %v4966_v24 }
 0x2b4   : > { %v11741_v17 = vpack.c.bf16 %v4967_v6, %v4967_v6  ;;  %v11742_v29 = vpack.c.bf16 %v4968_v10, %v4968_v10  ;;  %v15373_v58 = vpack.c.bf16 %v4969_v63, %v4969_v63  ;;  %v15375_v28 = vpack.c.bf16 %v4970_v39, %v4970_v39 }
 0x2b5   : > { %v15377_v20 = vpack.c.bf16 %v4971_v5, %v4971_v5  ;;  %v15379_v18 = vpack.c.bf16 %v4972_v3, %v4972_v3  ;;  %v15381_v21 = vpack.c.bf16 %v4973_v61, %v4973_v61  ;;  %v15383_v36 = vpack.c.bf16 %v4974_v62, %v4974_v62 }
 0x2b6   : > { %v15385_v15 = vpack.c.bf16 %v4975_v4, %v4975_v4  ;;  %v15387_v54 = vpack.c.bf16 %v4976_v1, %v4976_v1  ;;  %v15389_v30 = vpack.c.bf16 %v4977_v42, %v4977_v42  ;;  %v15391_v31 = vpack.c.bf16 %v4978_v25, %v4978_v25 }
 0x2b7   : > { %v15393_v32 = vpack.c.bf16 %v4979_v11, %v4979_v11  ;;  %v15395_v57 = vpack.c.bf16 %v4980_v9, %v4980_v9  ;;  %v15397_v33 = vpack.c.bf16 %v4981_v26, %v4981_v26  ;;  %v15399_v27 = vpack.c.bf16 %v4982_v51, %v4982_v51 }
 0x2b8   : > { %v15401_v13 = vpack.c.bf16 %v4983_v60, %v4983_v60  ;;  %v15403_v56 = vpack.c.bf16 %v4984_v2, %v4984_v2  ;;  %v15405_v37 = vpack.c.bf16 %v4985_v41, %v4985_v41  ;;  %v15407_v19 = vpack.c.bf16 %v4986_v55, %v4986_v55 }
 0x2b9   : > { %v15409_v24 = vpack.c.bf16 %v4987_v43, %v4987_v43  ;;  %v15411_v6 = vpack.c.bf16 %v4988_v50, %v4988_v50  ;;  %v15413_v10 = vpack.c.bf16 %v4989_v49, %v4989_v49  ;;  %v15415_v63 = vpack.c.bf16 %v4990_v47, %v4990_v47 }
 0x2ba   : > { %v15417_v39 = vpack.c.bf16 %v4991_v40, %v4991_v40  ;;  %v15419_v5 = vpack.c.bf16 %v4994_v7, %v4994_v7  ;;  %v15421_v3 = vpack.c.bf16 %v4995_v38, %v4995_v38  ;;  %v5150_v61 = vshrl.u32 %v11738_v35, 16 }
 0x2bb   : > { %v5153_v62 = vshll.u32 %v11738_v35, 16  ;;  %v5158_v4 = vshrl.u32 %v11739_v22, 16  ;;  %v5161_v1 = vshll.u32 %v11739_v22, 16  ;;  %v5167_v42 = vshrl.u32 %v11740_v14, 16  ;;  %v13007_v22 = vld [vmem:[%s17558_s2 + $0x168] sm:$0xff]  }
 0x2bc   : > { %v5152_v25 = vrot.slane %v5150_v61, 7  ;;  %v5170_v11 = vshll.u32 %v11740_v14, 16  ;;  %v5175_v9 = vshrl.u32 %v11741_v17, 16  ;;  %v5178_v26 = vshll.u32 %v11741_v17, 16  ;;  %12476 = vmatprep.subr.bf16.mxu1 %v13007_v22 }
 0x2bd   : > { %v15423_v51 = vrot.slane %v5158_v4, 7  ;;  %v5169_v60 = vrot.slane %v5167_v42, 7  ;;  %v5184_v2 = vshrl.u32 %v11742_v29, 16  ;;  %v5187_v0 = vshll.u32 %v11742_v29, 16 }
 0x2be   : > { %v15425_v52 = vor.u32 %v5153_v62, %v5152_v25  ;;  %v5156_v41 = vrot.slane %v5152_v25, 4  ;;  %v15427_v55 = vrot.slane %v5175_v9, 7  ;;  %v5192_v43 = vshrl.u32 %v15373_v58, 16  ;;  %v13009_v62 = vld [vmem:[%s17558_s2 + $0x128] sm:$0xff]   ;;  %v5503_v25 = vld [vmem:[#allocation3 + $0x3c] sm:$0xf] }
 0x2bf   : > { %v5163_v50 = vor.u32 %v5161_v1, %v15423_v51  ;;  %v15432_v49 = vor.u32 %v5170_v11, %v5169_v60  ;;  %v5173_v47 = vrot.slane %v5169_v60, 4  ;;  %v5186_v38 = vrot.slane %v5184_v2, 7  ;;  %12477 = vmatpush3.bf16.msra.mxu1 %v13009_v62 }
 0x2c0   : > { %v5180_v40 = vor.u32 %v5178_v26, %v15427_v55  ;;  %v15436_v35 = vrot.slane %v5192_v43, 7  ;;  %v5195_v17 = vshll.u32 %v15373_v58, 16  ;;  %v5201_v29 = vshrl.u32 %v15375_v28, 16 }
 0x2c1   : > { %v5164_v14 = vsel %vm15225_vm11, %v5156_v41, %v5163_v50  ;;  %v5204_v61 = vshll.u32 %v15375_v28, 16  ;;  %v15451_v1 = vor.u32 %v5187_v0, %v5186_v38  ;;  %v5190_v42 = vrot.slane %v5186_v38, 4 }
 0x2c2   : > { %v5181_v4 = vsel %vm15225_vm11, %v5173_v47, %v5180_v40  ;;  %5476 = vst [vmem:[#allocation3 + $0x10] sm:$0xf] %v5164_v14  ;;  %v5197_v58 = vor.u32 %v5195_v17, %v15436_v35  ;;  %v5203_v11 = vrot.slane %v5201_v29, 7  ;;  %v5209_v9 = vshrl.u32 %v15377_v20, 16 }
 0x2c3   : > { %v5212_v28 = vshll.u32 %v15377_v20, 16  ;;  %5485 = vst [vmem:[#allocation3 + $0x1c] sm:$0xf] %v5181_v4  ;;  %v5218_v26 = vshrl.u32 %v15379_v18, 16  ;;  %v5221_v60 = vshll.u32 %v15379_v18, 16  ;;  %v5226_v2 = vshrl.u32 %v15381_v21, 16 }
 0x2c4   : > { %v5229_v0 = vshll.u32 %v15381_v21, 16  ;;  %v5198_v41 = vsel %vm15225_vm11, %v5190_v42, %v5197_v58  ;;  %v15463_v43 = vor.u32 %v5204_v61, %v5203_v11  ;;  %v5207_v50 = vrot.slane %v5203_v11, 4 }
 0x2c5   : > { %v15465_v47 = vrot.slane %v5209_v9, 7  ;;  %v5220_v40 = vrot.slane %v5218_v26, 7  ;;  %v15467_v20 = vrot.slane %v5226_v2, 7  ;;  %v5235_v38 = vshrl.u32 %v15383_v36, 16  ;;  %5492 = vst [vmem:[#allocation3 + $0x28] sm:$0xf] %v5198_v41 }
 0x2c6   : > { %v5238_v22 = vshll.u32 %v15383_v36, 16  ;;  %v5243_v14 = vshrl.u32 %v15385_v15, 16  ;;  %v5246_v17 = vshll.u32 %v15385_v15, 16  ;;  %v5252_v11 = vshrl.u32 %v15387_v54, 16 }
 0x2c7   : > { %v5214_v18 = vor.u32 %v5212_v28, %v15465_v47  ;;  %v15475_v29 = vor.u32 %v5221_v60, %v5220_v40  ;;  %v5224_v61 = vrot.slane %v5220_v40, 4  ;;  %v5231_v62 = vor.u32 %v5229_v0, %v15467_v20 }
 0x2c8   : > { %v5237_v36 = vrot.slane %v5235_v38, 7  ;;  %v15481_v58 = vrot.slane %v5243_v14, 7  ;;  %v5255_v15 = vshll.u32 %v15387_v54, 16  ;;  %v5260_v28 = vshrl.u32 %v15389_v30, 16 }
 0x2c9   : > { %v5215_v42 = vsel %vm15225_vm11, %v5207_v50, %v5214_v18  ;;  %v5232_v9 = vsel %vm15225_vm11, %v5224_v61, %v5231_v62  ;;  %v5263_v26 = vshll.u32 %v15389_v30, 16  ;;  %v5254_v50 = vrot.slane %v5252_v11, 7 }
 0x2ca   : > { %5499 = vst [vmem:[#allocation3 + $0x34] sm:$0xf] %v5215_v42  ;;  %v15489_v60 = vor.u32 %v5238_v22, %v5237_v36  ;;  %v5241_v2 = vrot.slane %v5237_v36, 4  ;;  %v5248_v0 = vor.u32 %v5246_v17, %v15481_v58  ;;  %5506 = vst [vmem:[#allocation3 + $0x40] sm:$0xf] %v5232_v9  ;;  %v15493_v40 = vrot.slane %v5260_v28, 7 }
 0x2cb   : > { %v5269_v38 = vshrl.u32 %v15391_v31, 16  ;;  %v5272_v54 = vshll.u32 %v15391_v31, 16  ;;  %v5277_v30 = vshrl.u32 %v15393_v32, 16  ;;  %v5280_v22 = vshll.u32 %v15393_v32, 16  ;;  %v5514_v42 = vld [vmem:[#allocation3 + $0x50] sm:$0x1] }
 0x2cc   : > { %v5249_v18 = vsel %vm15225_vm11, %v5241_v2, %v5248_v0  ;;  %v5286_v14 = vshrl.u32 %v15395_v57, 16  ;;  %v15502_v17 = vor.u32 %v5255_v15, %v5254_v50  ;;  %v5258_v61 = vrot.slane %v5254_v50, 4 }
 0x2cd   : > { %v5265_v62 = vor.u32 %v5263_v26, %v15493_v40  ;;  %5513 = vst [vmem:[#allocation3 + $0x4c] sm:$0xf] %v5249_v18  ;;  %v5271_v36 = vrot.slane %v5269_v38, 7  ;;  %v15506_v11 = vrot.slane %v5277_v30, 7  ;;  %v5289_v9 = vshll.u32 %v15395_v57, 16  ;;  %v13015_v26 = vld [vmem:[%s17558_s2 + $0x170] sm:$0xff]  }
 0x2ce   : > { %v5288_v31 = vrot.slane %v5286_v14, 7  ;;  %v5294_v32 = vshrl.u32 %v15397_v33, 16  ;;  %v5297_v15 = vshll.u32 %v15397_v33, 16  ;;  %v5303_v2 = vshrl.u32 %v15399_v27, 16  ;;  %12478 = vmatprep.subr.bf16.mxu1 %v13015_v26 }
 0x2cf   : > { %v5266_v28 = vsel %vm15225_vm11, %v5258_v61, %v5265_v62  ;;  %v15517_v0 = vor.u32 %v5272_v54, %v5271_v36  ;;  %v5275_v50 = vrot.slane %v5271_v36, 4  ;;  %v5282_v38 = vor.u32 %v5280_v22, %v15506_v11  ;;  %v13017_v22 = vld [vmem:[%s17558_s2 + $0x130] sm:$0xff]  }
 0x2d0   : > { %5520 = vst [vmem:[#allocation3 + $0x58] sm:$0xf] %v5266_v28  ;;  %v15521_v18 = vor.u32 %v5289_v9, %v5288_v31  ;;  %v5292_v30 = vrot.slane %v5288_v31, 4  ;;  %v15523_v14 = vrot.slane %v5294_v32, 7  ;;  %v5305_v33 = vrot.slane %v5303_v2, 7  ;;  %12479 = vmatpush3.bf16.msra.mxu1 %v13017_v22 }
 0x2d1   : > { %v5283_v61 = vsel %vm15225_vm11, %v5275_v50, %v5282_v38  ;;  %v5306_v62 = vshll.u32 %v15399_v27, 16  ;;  %v5311_v54 = vshrl.u32 %v15401_v13, 16  ;;  %v5314_v36 = vshll.u32 %v15401_v13, 16 }
 0x2d2   : > { %v5299_v31 = vor.u32 %v5297_v15, %v15523_v14  ;;  %v5309_v28 = vrot.slane %v5305_v33, 4  ;;  %v5320_v32 = vshrl.u32 %v15403_v56, 16  ;;  %5527 = vst [vmem:[#allocation3 + $0x64] sm:$0xf] %v5283_v61  ;;  %v5323_v13 = vshll.u32 %v15403_v56, 16 }
 0x2d3   : > { %v15536_v2 = vor.u32 %v5306_v62, %v5305_v33  ;;  %v15538_v27 = vrot.slane %v5311_v54, 7  ;;  %v5328_v26 = vshrl.u32 %v15405_v37, 16  ;;  %v5331_v15 = vshll.u32 %v15405_v37, 16 }
 0x2d4   : > { %v5300_v50 = vsel %vm15225_vm11, %v5292_v30, %v5299_v31  ;;  %v5322_v38 = vrot.slane %v5320_v32, 7  ;;  %v5337_v8 = vshrl.u32 %v15407_v19, 16  ;;  %v5340_v62 = vshll.u32 %v15407_v19, 16 }
 0x2d5   : > { %v5316_v9 = vor.u32 %v5314_v36, %v15538_v27  ;;  %v15548_v61 = vrot.slane %v5328_v26, 7  ;;  %5534 = vst [vmem:[#allocation3 + $0x70] sm:$0xf] %v5300_v50  ;;  %v5345_v30 = vshrl.u32 %v15409_v24, 16  ;;  %v5348_v32 = vshll.u32 %v15409_v24, 16 }
 0x2d6   : > { %v15551_v56 = vor.u32 %v5323_v13, %v5322_v38  ;;  %v5326_v54 = vrot.slane %v5322_v38, 4  ;;  %v5339_v22 = vrot.slane %v5337_v8, 7  ;;  %v5354_v13 = vshrl.u32 %v15411_v6, 16  ;;  %v5486_v36 = vld [vmem:[#allocation3 + $0x20] sm:$0x1] }
 0x2d7   : > { %v5317_v37 = vsel %vm15225_vm11, %v5309_v28, %v5316_v9  ;;  %v5333_v31 = vor.u32 %v5331_v15, %v15548_v61  ;;  %v15561_v19 = vrot.slane %v5345_v30, 7  ;;  %v5357_v50 = vshll.u32 %v15411_v6, 16 }
 0x2d8   : > { %v15559_v26 = vor.u32 %v5340_v62, %v5339_v22  ;;  %v5343_v33 = vrot.slane %v5339_v22, 4  ;;  %5541 = vst [vmem:[#allocation3 + $0x7c] sm:$0xf] %v5317_v37  ;;  %v5362_v9 = vshrl.u32 %v15413_v10, 16  ;;  %v5365_v28 = vshll.u32 %v15413_v10, 16 }
 0x2d9   : > { %v5334_v8 = vsel %vm15225_vm11, %v5326_v54, %v5333_v31  ;;  %v5350_v38 = vor.u32 %v5348_v32, %v15561_v19  ;;  %v5356_v15 = vrot.slane %v5354_v13, 7  ;;  %v5371_v62 = vshrl.u32 %v15415_v63, 16  ;;  %v5473_v22 = vld [vmem:[#allocation3 + $0xc] sm:$0xf]  ;;  %v5482_v31 = vld [vmem:[#allocation3 + $0x18] sm:$0xf] }
 0x2da   : > { %5548 = vst [vmem:[#allocation3 + $0x88] sm:$0xf] %v5334_v8  ;;  %v15572_v30 = vrot.slane %v5362_v9, 7  ;;  %v5374_v37 = vshll.u32 %v15415_v63, 16  ;;  %v5379_v54 = vshrl.u32 %v15417_v39, 16  ;;  %v5382_v6 = vshll.u32 %v15417_v39, 16 }
 0x2db   : > { %v5479_v10 = vld [vmem:[#allocation3 + $0x14] sm:$0x1]  ;;  %v5351_v32 = vsel %vm15225_vm11, %v5343_v33, %v5350_v38  ;;  %v15579_v24 = vor.u32 %v5357_v50, %v5356_v15  ;;  %v5360_v13 = vrot.slane %v5356_v15, 4  ;;  %v5373_v57 = vrot.slane %v5371_v62, 7  ;;  %v5489_v63 = vld [vmem:[#allocation3 + $0x24] sm:$0xf] }
 0x2dc   : > { %v5493_v9 = vld [vmem:[#allocation3 + $0x2c] sm:$0x1]  ;;  %v5367_v39 = vor.u32 %v5365_v28, %v15572_v30  ;;  %v15589_v41 = vrot.slane %v5379_v54, 7  ;;  %v15594_v33 = vor.u32 %v5391_v16, %v15229_v44  ;;  %5555 = vst [vmem:[#allocation3 + $0x94] sm:$0xf] %v5351_v32  ;;  %v5405_v4 = vshrl.u32 %v15419_v5, 16 }
 0x2dd   : > { %v5496_v50 = vld [vmem:[#allocation3 + $0x30] sm:$0xf]  ;;  %v5500_v38 = vld [vmem:[#allocation3 + $0x38] sm:$0x1]  ;;  %v15596_v15 = vor.u32 %v5374_v37, %v5373_v57  ;;  %v5377_v62 = vrot.slane %v5373_v57, 4  ;;  %v5408_v21 = vshll.u32 %v15419_v5, 16  ;;  %v5474_v45 = vsel %vm15583_vm15, %v15425_v52, %v5473_v22 }
 0x2de   : > { %v5510_v28 = vld [vmem:[#allocation3 + $0x48] sm:$0xf]  ;;  %v5507_v54 = vld [vmem:[#allocation3 + $0x44] sm:$0x1]  ;;  %v5368_v7 = vsel %vm15225_vm11, %v5360_v13, %v5367_v39  ;;  %v5384_v59 = vor.u32 %v5382_v6, %v15589_v41  ;;  %v5413_v44 = vshrl.u32 %v15421_v3, 16  ;;  %v5407_v23 = vrot.slane %v5405_v4, 7 }
 0x2df   : > { %v15605_v37 = vld [vmem:[#allocation3 + $0x60] sm:$0xf]  ;;  %v5517_v57 = vld [vmem:[#allocation3 + $0x54] sm:$0xf]  ;;  %v5521_v32 = vld [vmem:[#allocation3 + $0x5c] sm:$0x1] }
 0x2e0   : > { %v5416_v5 = vshll.u32 %v15421_v3, 16  ;;  %v17680_v46 = vrot.slane %v15423_v51, 4  ;;  %5562 = vst [vmem:[#allocation3 + $0xa0] sm:$0xf] %v5368_v7  ;;  %v5528_v13 = vld [vmem:[#allocation3 + $0x68] sm:$0x1]  ;;  %v5385_v4 = vsel %vm15225_vm11, %v5377_v62, %v5384_v59  ;;  %v5483_v3 = vsel %vm15583_vm15, %v15432_v49, %v5482_v31 }
 0x2e1   : > { %v15615_v39 = vld [vmem:[#allocation3 + $0x78] sm:$0xf]  ;;  %v5531_v16 = vld [vmem:[#allocation3 + $0x6c] sm:$0xf]  ;;  %v15619_v34 = vrot.slane %v5413_v44, 7  ;;  %v17681_v51 = vrot.slane %v15427_v55, 4  ;;  %v5490_v55 = vsel %vm15583_vm15, %v15451_v1, %v5489_v63  ;;  %v5497_v1 = vsel %vm15583_vm15, %v15463_v43, %v5496_v50 }
 0x2e2   : > { %v5480_v6 = vsel %vm15235_vm12, %v17680_v46, %v5479_v10  ;;  %5475 = vst [vmem:[#allocation3 + $0xc] sm:$0xf] %v5474_v45  ;;  %v13026_v52 = vld [vmem:[%s17558_s2 + $0x178] sm:$0xff]   ;;  %v5542_v7 = vld [vmem:[#allocation3 + $0x80] sm:$0x1]  ;;  %v15633_v45 = vor.u32 %v5408_v21, %v5407_v23  ;;  %v5411_v59 = vrot.slane %v5407_v23, 4  ;;  %v5511_v50 = vsel %vm15583_vm15, %v15489_v60, %v5510_v28 }
 0x2e3   : > { %5481 = vst [vmem:[#allocation3 + $0x14] sm:$0x1] %v5480_v6  ;;  %v5487_v46 = vsel %vm15235_vm12, %v17681_v51, %v5486_v36  ;;  %v15631_v22 = vld [vmem:[#allocation3 + $0x90] sm:$0xf]  ;;  %v5545_v10 = vld [vmem:[#allocation3 + $0x84] sm:$0xf]  ;;  %v5418_v21 = vor.u32 %v5416_v5, %v15619_v34  ;;  %12480 = vmatprep.subr.bf16.mxu1 %v13026_v52 }
 0x2e4   : > { %v5549_v62 = vld [vmem:[#allocation3 + $0x8c] sm:$0x1]  ;;  %5484 = vst [vmem:[#allocation3 + $0x18] sm:$0xf] %v5483_v3  ;;  %5488 = vst [vmem:[#allocation3 + $0x20] sm:$0x1] %v5487_v46  ;;  %v5504_v3 = vsel %vm15583_vm15, %v15475_v29, %v5503_v25  ;;  %v5518_v25 = vsel %vm15583_vm15, %v15502_v17, %v5517_v57 }
 0x2e5   : > { %v17682_v49 = vrot.slane %v15436_v35, 4  ;;  %5569 = vst [vmem:[#allocation3 + $0xac] sm:$0xf] %v5385_v4  ;;  %v5556_v31 = vld [vmem:[#allocation3 + $0x98] sm:$0x1]  ;;  %v5420_v23 = vrot.slane %v15619_v34, 4 }
 0x2e6   : > { %v15642_v44 = vld [vmem:[#allocation3 + $0xa8] sm:$0xf]  ;;  %v5559_v6 = vld [vmem:[#allocation3 + $0x9c] sm:$0xf]  ;;  %5491 = vst [vmem:[#allocation3 + $0x24] sm:$0xf] %v5490_v55  ;;  %v5419_v55 = vsel %vm15225_vm11, %v5411_v59, %v5418_v21 }
 0x2e7   : > { %v5494_v36 = vsel %vm15235_vm12, %v17682_v49, %v5493_v9  ;;  %v17683_v35 = vrot.slane %v15465_v47, 4  ;;  %v13028_v9 = vld [vmem:[%s17558_s2 + $0x138] sm:$0xff]   ;;  %v5570_v4 = vld [vmem:[#allocation3 + $0xb0] sm:$0x1]  ;;  %v5563_v5 = vld [vmem:[#allocation3 + $0xa4] sm:$0x1] }
 0x2e8   : > { %5495 = vst [vmem:[#allocation3 + $0x2c] sm:$0x1] %v5494_v36  ;;  %5498 = vst [vmem:[#allocation3 + $0x30] sm:$0xf] %v5497_v1  ;;  %v17684_v43 = vrot.slane %v15467_v20, 4  ;;  %v17686_v20 = vrot.slane %v15493_v40, 4  ;;  %12481 = vmatpush3.bf16.msra.mxu1 %v13028_v9  ;;  %v5532_v40 = vsel %vm15583_vm15, %v15521_v18, %v5531_v16  ;;  %v5553_v16 = vsel %vm15583_vm15, %v15559_v26, %v15631_v22 }
 0x2e9   : > { %v5501_v63 = vsel %vm15235_vm12, %v17683_v35, %v5500_v38  ;;  %v17685_v38 = vrot.slane %v15481_v58, 4  ;;  %v5580_v46 = vld [vmem:[#allocation3 + $0xc0] sm:$0xf]  ;;  %v5573_v52 = vld [vmem:[#allocation3 + $0xb4] sm:$0xf]  ;;  %v5525_v58 = vsel %vm15583_vm15, %v15517_v0, %v15605_v37  ;;  %v17687_v60 = vrot.slane %v15506_v11, 4 }
 0x2ea   : > { %5502 = vst [vmem:[#allocation3 + $0x38] sm:$0x1] %v5501_v63  ;;  %v5508_v47 = vsel %vm15235_vm12, %v17684_v43, %v5507_v54  ;;  %5505 = vst [vmem:[#allocation3 + $0x3c] sm:$0xf] %v5504_v3  ;;  %v5522_v29 = vsel %vm15235_vm12, %v17686_v20, %v5521_v32  ;;  %v5539_v0 = vsel %vm15583_vm15, %v15536_v2, %v15615_v39  ;;  %v13002_v11 = vld [vmem:[%s17558_s2 + $0x180] sm:$0xff]   ;;  %v17689_v18 = vrot.slane %v15538_v27, 4 }
 0x2eb   : > { %v5515_v51 = vsel %vm15235_vm12, %v17685_v38, %v5514_v42  ;;  %5509 = vst [vmem:[#allocation3 + $0x44] sm:$0x1] %v5508_v47  ;;  %5512 = vst [vmem:[#allocation3 + $0x48] sm:$0xf] %v5511_v50  ;;  %v5529_v17 = vsel %vm15235_vm12, %v17687_v60, %v5528_v13  ;;  %v17688_v42 = vrot.slane %v15523_v14, 4  ;;  %v17690_v2 = vrot.slane %v15548_v61, 4 }
 0x2ec   : > { %5516 = vst [vmem:[#allocation3 + $0x50] sm:$0x1] %v5515_v51  ;;  %5519 = vst [vmem:[#allocation3 + $0x54] sm:$0xf] %v5518_v25  ;;  %v5543_v14 = vsel %vm15235_vm12, %v17689_v18, %v5542_v7  ;;  %v5735_v37 = vld [vmem:[#allocation3 + $0x10] sm:$0xf]  ;;  %v5560_v32 = vsel %vm15583_vm15, %v15579_v24, %v5559_v6  ;;  %v5567_v39 = vsel %vm15583_vm15, %v15596_v15, %v15642_v44 }
 0x2ed   : > { %5523 = vst [vmem:[#allocation3 + $0x5c] sm:$0x1] %v5522_v29  ;;  %5526 = vst [vmem:[#allocation3 + $0x60] sm:$0xf] %v5525_v58  ;;  %v5536_v28 = vsel %vm15235_vm12, %v17688_v42, %v5535_v48  ;;  %v5546_v48 = vsel %vm15583_vm15, %v15551_v56, %v5545_v10  ;;  %v5550_v54 = vsel %vm15235_vm12, %v17690_v2, %v5549_v62  ;;  %v6247_v57 = vld [vmem:[#allocation3 + $0x10] sm:$0xf] }
 0x2ee   : > { %5583 = vst [vmem:[#allocation3 + $0xc4] sm:$0xf] %v5419_v55  ;;  %5530 = vst [vmem:[#allocation3 + $0x68] sm:$0x1] %v5529_v17  ;;  %v13008_v27 = vld [vmem:[%s17558_s2 + $0x1c8] sm:$0xff]   ;;  %v17691_v61 = vrot.slane %v15561_v19, 4  ;;  %v5581_v10 = vsel %vm15583_vm15, %v15633_v45, %v5580_v46  ;;  %v5585_v15 = vsel %vm15235_vm12, %v5420_v23, %v5584_v12 }
 0x2ef   : > { %5533 = vst [vmem:[#allocation3 + $0x6c] sm:$0xf] %v5532_v40  ;;  %5537 = vst [vmem:[#allocation3 + $0x74] sm:$0x1] %v5536_v28  ;;  %v17692_v26 = vrot.slane %v15572_v30, 4  ;;  %v12973_v7 = vld [vmem:[#allocation3 + $0xc] sm:$0xff]   ;;  %v5574_v30 = vsel %vm15583_vm15, %v15594_v33, %v5573_v52 }
 0x2f0   : > { %5540 = vst [vmem:[#allocation3 + $0x78] sm:$0xf] %v5539_v0  ;;  %5544 = vst [vmem:[#allocation3 + $0x80] sm:$0x1] %v5543_v14  ;;  %v5557_v56 = vsel %vm15235_vm12, %v17691_v61, %v5556_v31  ;;  %v5734_v22 = vld [vmem:[#allocation3 + $0xc] sm:$0xf]  ;;  %9333 = vmatprep.mubr.bf16.mxu0 %v12973_v7 }
 0x2f1   : > { %5547 = vst [vmem:[#allocation3 + $0x84] sm:$0xf] %v5546_v48  ;;  %5551 = vst [vmem:[#allocation3 + $0x8c] sm:$0x1] %v5550_v54  ;;  %v5564_v13 = vsel %vm15235_vm12, %v17692_v26, %v5563_v5  ;;  %v17693_v19 = vrot.slane %v15589_v41, 4  ;;  %v12974_v62 = vld [vmem:[#allocation3 + $0x18] sm:$0xff]  }
 0x2f2   : > { %5554 = vst [vmem:[#allocation3 + $0x90] sm:$0xf] %v5553_v16  ;;  %5558 = vst [vmem:[#allocation3 + $0x98] sm:$0x1] %v5557_v56  ;;  %v5736_v59 = vld [vmem:[#allocation3 + $0x14] sm:$0x1] }
 0x2f3   : > { %5561 = vst [vmem:[#allocation3 + $0x9c] sm:$0xf] %v5560_v32  ;;  %5565 = vst [vmem:[#allocation3 + $0xa4] sm:$0x1] %v5564_v13  ;;  %v5571_v24 = vsel %vm15235_vm12, %v17693_v19, %v5570_v4  ;;  %v5738_v49 = vld [vmem:[#allocation3 + $0x1c] sm:$0xf] }
 0x2f4   : > { %5568 = vst [vmem:[#allocation3 + $0xa8] sm:$0xf] %v5567_v39  ;;  %5572 = vst [vmem:[#allocation3 + $0xb0] sm:$0x1] %v5571_v24  ;;  %v5804_v41 = vshrl.u32 %v5734_v22, 16  ;;  %v5807_v36 = vshll.u32 %v5734_v22, 16 }
 0x2f5   : > { %5575 = vst [vmem:[#allocation3 + $0xb4] sm:$0xf] %v5574_v30  ;;  %5582 = vst [vmem:[#allocation3 + $0xc0] sm:$0xf] %v5581_v10  ;;  %v5813_v33 = vshll.u32 %v5735_v37, 16  ;;  %v5817_v31 = vshrl.u32 %v5735_v37, 16 }
 0x2f6   : > { %5586 = vst [vmem:[#allocation3 + $0xc8] sm:$0x1] %v5585_v15  ;;  %v6246_v44 = vld [vmem:[#allocation3 + $0xc] sm:$0xe]  ;;  %v17695_v45 = vld [vmem:[#allocation7_spill] sm:$0xff]  ;;  %v5823_v34 = vshll.u32 %v5736_v59, 16 }
 0x2f7   : > { %v17694_v8 = vld [vmem:[#allocation6_spill] sm:$0xff]  ;;  %v6248_v53 = vld [vmem:[#allocation3 + $0x14] sm:$0x1]  ;;  %v11454_v21 = vrot.slane %v6246_v44, 9  ;;  %v6348_v23 = vrot.slane %v6247_v57, 5  ;;  %v5806_v35 = vrot.slane %v5804_v41, 4 }
 0x2f8   : > { %v17696_v6 = vcombine.low %v17694_v8, %v17695_v45  ;;  %v13010_v1 = vld [vmem:[%s17558_s2 + $0x188] sm:$0xff]   ;;  %v5809_v63 = vrot.slane %v5807_v36, 5  ;;  %v5815_v9 = vrot.slane %v5813_v33, 5  ;;  %v5819_v4 = vrot.slane %v5817_v31, 4  ;;  %v6250_v38 = vld [vmem:[#allocation3 + $0x1c] sm:$0xf] }
 0x2f9   : > { %v5825_v5 = vrot.slane %v5823_v34, 5  ;;  %v6349_v43 = vsel %vm13239_vm4, %v11454_v21, %v6348_v23  ;;  %v6350_v47 = vrot.slane %v6348_v23, 4  ;;  %v6351_v50 = vrot.slane %v6248_v53, 5  ;;  %v13016_v51 = vld [vmem:[%s17558_s2 + $0x1d0] sm:$0xff]   ;;  %v5737_v55 = vld [vmem:[#allocation3 + $0x18] sm:$0xf] }
 0x2fa   : > { %9334 = vmatmul.mubr.bf16.vlgmr.msra.gmra.mrb[160].mxu0 %v17696_v6  ;;  %v5810_v46 = vor.u32 %v5809_v63, %v5806_v35  ;;  %v5820_v52 = vor.u32 %v5819_v4, %v5815_v9  ;;  %v5739_v25 = vld [vmem:[#allocation3 + $0x20] sm:$0x1]  ;;  %v5837_v20 = vshll.u32 %v5738_v49, 16  ;;  %v5841_v29 = vshrl.u32 %v5738_v49, 16  ;;  %v13018_v58 = vld [vmem:[%s17558_s2 + $0x190] sm:$0xff]   ;;  %v13021_v28 = vld [vmem:[%s17558_s2 + $0x1d8] sm:$0xff]  }
 0x2fb   : > { %9341 = vmatprep.mubr.bf16.mxu0 %v12974_v62  ;;  %12579 = vmatpush3.bf16.msra.mxu0 %v13002_v11  ;;  %v6352_v12 = vsel %vm13239_vm4, %v6350_v47, %v6351_v50  ;;  %v5828_v60 = vshrl.u32 %v5737_v55, 16  ;;  %v5831_v17 = vshll.u32 %v5737_v55, 16  ;;  %v5847_v40 = vshll.u32 %v5739_v25, 16  ;;  %v6249_v42 = vld [vmem:[#allocation3 + $0x18] sm:$0xe]  ;;  %v12978_v14 = vld [vmem:[#allocation3 + $0x24] sm:$0xff]  }
 0x2fc   : > { %12580 = vmatprep.subr.bf16.mxu0 %v13008_v27  ;;  %v5811_v0 = vrot.slane %v5810_v46, 4  ;;  %v5821_v11 = vrot.slane %v5820_v52, 4  ;;  %v11470_v18 = vcombine.low %v6349_v43, %v6352_v12  ;;  %v5839_v48 = vrot.slane %v5837_v20, 5  ;;  %v6251_v2 = vld [vmem:[#allocation3 + $0x20] sm:$0x1]  ;;  %v13022_v10 = vld [vmem:[%s17558_s2 + $0x198] sm:$0xff]  }
 0x2fd   : > { %v5741_v54 = vld [vmem:[#allocation3 + $0x28] sm:$0xf]  ;;  %v5830_v16 = vrot.slane %v5828_v60, 4  ;;  %v5833_v37 = vrot.slane %v5831_v17, 5  ;;  %v5843_v57 = vrot.slane %v5841_v29, 4  ;;  %v5849_v27 = vrot.slane %v5847_v40, 5 }
 0x2fe   : > { %v5816_v56 = vsel %vm13248_vm5, %v5811_v0, %v5815_v9  ;;  %v5826_v32 = vsel %vm13248_vm5, %v5821_v11, %v5825_v5  ;;  %v11455_v26 = vrot.slane %v6249_v42, 9  ;;  %v6355_v13 = vrot.slane %v6250_v38, 5  ;;  %v5740_v39 = vld [vmem:[#allocation3 + $0x24] sm:$0xf]  ;;  %v5742_v30 = vld [vmem:[#allocation3 + $0x2c] sm:$0x1] }
 0x2ff   : > { %12581 = vmatpush3.bf16.msra.mxu0 %v13010_v1  ;;  %v11438_v7 = vcombine.low %v5816_v56, %v5826_v32  ;;  %v5834_v22 = vor.u32 %v5833_v37, %v5830_v16  ;;  %v5844_v19 = vor.u32 %v5843_v57, %v5839_v48  ;;  %v6358_v24 = vrot.slane %v6251_v2, 5  ;;  %v13023_v15 = vld [vmem:[%s17558_s2 + $0x1e0] sm:$0xff]   ;;  %v12977_v62 = vld [vmem:[#allocation3 + $0xc] sm:$0xff]   ;;  %v6253_v31 = vld [vmem:[#allocation3 + $0x28] sm:$0xf] }
 0x300   : > { %12582 = vmatprep.subr.bf16.mxu0 %v13016_v51  ;;  %v6356_v59 = vsel %vm13239_vm4, %v11455_v26, %v6355_v13  ;;  %v6357_v49 = vrot.slane %v6355_v13, 4  ;;  %v5852_v41 = vshrl.u32 %v5740_v39, 16  ;;  %v5855_v36 = vshll.u32 %v5740_v39, 16  ;;  %v6252_v33 = vld [vmem:[#allocation3 + $0x24] sm:$0xe]  ;;  %v13029_v50 = vld [vmem:[%s17558_s2 + $0x1e8] sm:$0xff]  }
 0x301   : > { %v6254_v44 = vld [vmem:[#allocation3 + $0x2c] sm:$0x1]  ;;  %9180 = vmatprep.mubr.bf16.mxu1 %v11438_v7  ;;  %v5835_v8 = vrot.slane %v5834_v22, 4  ;;  %v5845_v45 = vrot.slane %v5844_v19, 4  ;;  %v5861_v6 = vshll.u32 %v5741_v54, 16  ;;  %v5865_v34 = vshrl.u32 %v5741_v54, 16 }
 0x302   : > { %9342 = vmatmul.mubr.bf16.gmra.mrb[164].mxu0 %v11470_v18  ;;  %v5744_v53 = vld [vmem:[#allocation3 + $0x34] sm:$0xf]  ;;  %9181 = vmatmul.mubr.bf16.gmra.mrb[132].mxu1 %v12977_v62  ;;  %v6359_v21 = vsel %vm13239_vm4, %v6357_v49, %v6358_v24  ;;  %v5854_v23 = vrot.slane %v5852_v41, 4  ;;  %v5857_v1 = vrot.slane %v5855_v36, 5  ;;  %v5871_v35 = vshll.u32 %v5742_v30, 16  ;;  %v13027_v47 = vld [vmem:[%s17558_s2 + $0x1a0] sm:$0xff]  }
 0x303   : > { %9349 = vmatprep.mubr.bf16.mxu0 %v12978_v14  ;;  %12583 = vmatpush3.bf16.msra.mxu0 %v13018_v58  ;;  %v5840_v63 = vsel %vm13248_vm5, %v5835_v8, %v5839_v48  ;;  %v5850_v9 = vsel %vm13248_vm5, %v5845_v45, %v5849_v27  ;;  %v11471_v4 = vcombine.low %v6356_v59, %v6359_v21  ;;  %v5863_v5 = vrot.slane %v5861_v6, 5  ;;  %v5743_v43 = vld [vmem:[#allocation3 + $0x30] sm:$0xf]  ;;  %v5745_v55 = vld [vmem:[#allocation3 + $0x38] sm:$0x1]  ;;  %v12984_v41 = vld [vmem:[#allocation3 + $0x3c] sm:$0xff]  }
 0x304   : > { %12584 = vmatprep.subr.bf16.mxu0 %v13021_v28  ;;  %v11439_v38 = vcombine.low %v5840_v63, %v5850_v9  ;;  %v5858_v51 = vor.u32 %v5857_v1, %v5854_v23  ;;  %v5867_v46 = vrot.slane %v5865_v34, 4  ;;  %v5873_v52 = vrot.slane %v5871_v35, 5  ;;  %v6255_v25 = vld [vmem:[#allocation3 + $0x30] sm:$0xe]  ;;  %v6256_v48 = vld [vmem:[#allocation3 + $0x34] sm:$0xf] }
 0x305   : > { %v11456_v20 = vrot.slane %v6252_v33, 9  ;;  %v6362_v29 = vrot.slane %v6253_v31, 5  ;;  %v6365_v58 = vrot.slane %v6254_v44, 5  ;;  %v5876_v12 = vshrl.u32 %v5743_v43, 16  ;;  %v12980_v60 = vld [vmem:[#allocation3 + $0x30] sm:$0xff]   ;;  %v12979_v2 = vld [vmem:[#allocation3 + $0x18] sm:$0xff]  }
 0x306   : > { %9188 = vmatprep.mubr.bf16.mxu1 %v11439_v38  ;;  %v5859_v17 = vrot.slane %v5858_v51, 4  ;;  %v5868_v40 = vor.u32 %v5867_v46, %v5863_v5  ;;  %v5879_v42 = vshll.u32 %v5743_v43, 16  ;;  %v5885_v28 = vshll.u32 %v5744_v53, 16  ;;  %v6257_v27 = vld [vmem:[#allocation3 + $0x38] sm:$0x1]  ;;  %v12983_v51 = vld [vmem:[#allocation3 + $0x24] sm:$0xff]  }
 0x307   : > { %12585 = vmatpush3.bf16.msra.mxu0 %v13022_v10  ;;  %v6363_v0 = vsel %vm13239_vm4, %v11456_v20, %v6362_v29  ;;  %v6364_v11 = vrot.slane %v6362_v29, 4  ;;  %v5878_v18 = vrot.slane %v5876_v12, 4  ;;  %v5889_v14 = vshrl.u32 %v5744_v53, 16  ;;  %v5746_v39 = vld [vmem:[#allocation3 + $0x3c] sm:$0xf] }
 0x308   : > { %12586 = vmatprep.subr.bf16.mxu0 %v13023_v15  ;;  %v5864_v54 = vsel %vm13248_vm5, %v5859_v17, %v5863_v5  ;;  %v5869_v16 = vrot.slane %v5868_v40, 4  ;;  %v5881_v37 = vrot.slane %v5879_v42, 5  ;;  %v5887_v57 = vrot.slane %v5885_v28, 5  ;;  %v5747_v30 = vld [vmem:[#allocation3 + $0x40] sm:$0xf] }
 0x309   : > { %v6366_v56 = vsel %vm13239_vm4, %v6364_v11, %v6365_v58  ;;  %v5891_v32 = vrot.slane %v5889_v14, 4  ;;  %v5895_v26 = vshll.u32 %v5745_v55, 16  ;;  %v11457_v13 = vrot.slane %v6255_v25, 9  ;;  %v5748_v49 = vld [vmem:[#allocation3 + $0x44] sm:$0x1] }
 0x30a   : > { %9350 = vmatmul.mubr.bf16.gmra.mrb[168].mxu0 %v11471_v4  ;;  %9189 = vmatmul.mubr.bf16.gmra.mrb[136].mxu1 %v12979_v2  ;;  %v5874_v7 = vsel %vm13248_vm5, %v5869_v16, %v5873_v52  ;;  %v11472_v22 = vcombine.low %v6363_v0, %v6366_v56  ;;  %v5882_v19 = vor.u32 %v5881_v37, %v5878_v18  ;;  %v6369_v24 = vrot.slane %v6256_v48, 5  ;;  %v6258_v8 = vld [vmem:[#allocation3 + $0x3c] sm:$0xe]  ;;  %v6259_v45 = vld [vmem:[#allocation3 + $0x40] sm:$0xf] }
 0x30b   : > { %9357 = vmatprep.mubr.bf16.mxu0 %v12980_v60  ;;  %12587 = vmatpush3.bf16.msra.mxu0 %v13027_v47  ;;  %v11440_v10 = vcombine.low %v5864_v54, %v5874_v7  ;;  %v5892_v15 = vor.u32 %v5891_v32, %v5887_v57  ;;  %v5897_v62 = vrot.slane %v5895_v26, 5  ;;  %v6372_v59 = vrot.slane %v6257_v27, 5  ;;  %v6260_v23 = vld [vmem:[#allocation3 + $0x44] sm:$0x1]  ;;  %v5749_v4 = vld [vmem:[#allocation3 + $0x48] sm:$0xf] }
 0x30c   : > { %12588 = vmatprep.subr.bf16.mxu0 %v13029_v50  ;;  %v5883_v36 = vrot.slane %v5882_v19, 4  ;;  %v6370_v33 = vsel %vm13239_vm4, %v11457_v13, %v6369_v24  ;;  %v6371_v31 = vrot.slane %v6369_v24, 4  ;;  %v5900_v44 = vshrl.u32 %v5746_v39, 16  ;;  %v5750_v38 = vld [vmem:[#allocation3 + $0x4c] sm:$0xf] }
 0x30d   : > { %9196 = vmatprep.mubr.bf16.mxu1 %v11440_v10  ;;  %v5893_v6 = vrot.slane %v5892_v15, 4  ;;  %v5903_v34 = vshll.u32 %v5746_v39, 16  ;;  %v5909_v53 = vshll.u32 %v5747_v30, 16  ;;  %v5913_v21 = vshrl.u32 %v5747_v30, 16  ;;  %v5751_v20 = vld [vmem:[#allocation3 + $0x50] sm:$0x1] }
 0x30e   : > { %v5888_v1 = vsel %vm13248_vm5, %v5883_v36, %v5887_v57  ;;  %v6373_v35 = vsel %vm13239_vm4, %v6371_v31, %v6372_v59  ;;  %v5902_v63 = vrot.slane %v5900_v44, 4  ;;  %v5919_v9 = vshll.u32 %v5748_v49, 16  ;;  %v6261_v17 = vld [vmem:[#allocation3 + $0x48] sm:$0xe]  ;;  %v6262_v11 = vld [vmem:[#allocation3 + $0x4c] sm:$0xf] }
 0x30f   : > { %v5898_v5 = vsel %vm13248_vm5, %v5893_v6, %v5897_v62  ;;  %v11473_v43 = vcombine.low %v6370_v33, %v6373_v35  ;;  %v5905_v47 = vrot.slane %v5903_v34, 5  ;;  %v5911_v50 = vrot.slane %v5909_v53, 5  ;;  %v6263_v18 = vld [vmem:[#allocation3 + $0x50] sm:$0x1]  ;;  %v5752_v39 = vld [vmem:[#allocation3 + $0x54] sm:$0xf] }
 0x310   : > { %v11441_v46 = vcombine.low %v5888_v1, %v5898_v5  ;;  %v5915_v52 = vrot.slane %v5913_v21, 4  ;;  %v5921_v55 = vrot.slane %v5919_v9, 5  ;;  %v11458_v25 = vrot.slane %v6258_v8, 9  ;;  %v12986_v7 = vld [vmem:[#allocation3 + $0x48] sm:$0xff]   ;;  %v5753_v10 = vld [vmem:[#allocation3 + $0x58] sm:$0xf] }
 0x311   : > { %v5906_v29 = vor.u32 %v5905_v47, %v5902_v63  ;;  %v6376_v58 = vrot.slane %v6259_v45, 5  ;;  %v6379_v12 = vrot.slane %v6260_v23, 5  ;;  %v5924_v60 = vshrl.u32 %v5749_v4, 16  ;;  %v12985_v15 = vld [vmem:[#allocation3 + $0x30] sm:$0xff]   ;;  %v5754_v31 = vld [vmem:[#allocation3 + $0x5c] sm:$0x1] }
 0x312   : > { %9358 = vmatmul.mubr.bf16.gmra.mrb[172].mxu0 %v11472_v22  ;;  %9197 = vmatmul.mubr.bf16.gmra.mrb[140].mxu1 %v12983_v51  ;;  %v5916_v40 = vor.u32 %v5915_v52, %v5911_v50  ;;  %v5927_v42 = vshll.u32 %v5749_v4, 16  ;;  %v5933_v28 = vshll.u32 %v5750_v38, 16  ;;  %v5937_v0 = vshrl.u32 %v5750_v38, 16  ;;  %v6265_v45 = vld [vmem:[#allocation3 + $0x58] sm:$0xf] }
 0x313   : > { %9365 = vmatprep.mubr.bf16.mxu0 %v12984_v41  ;;  %9204 = vmatprep.mubr.bf16.mxu1 %v11441_v46  ;;  %v5907_v14 = vrot.slane %v5906_v29, 4  ;;  %v15809_v48 = vsel %vm13239_vm4, %v11458_v25, %v6376_v58  ;;  %v6378_v2 = vrot.slane %v6376_v58, 4  ;;  %v5926_v54 = vrot.slane %v5924_v60, 4  ;;  %v6264_v23 = vld [vmem:[#allocation3 + $0x54] sm:$0xe] }
 0x314   : > { %v5917_v16 = vrot.slane %v5916_v40, 4  ;;  %v5929_v37 = vrot.slane %v5927_v42, 5  ;;  %v5935_v57 = vrot.slane %v5933_v28, 5  ;;  %v5939_v27 = vrot.slane %v5937_v0, 4  ;;  %v5756_v1 = vld [vmem:[#allocation3 + $0x64] sm:$0xf] }
 0x315   : > { %v5912_v56 = vsel %vm13248_vm5, %v5907_v14, %v5911_v50  ;;  %v6380_v32 = vsel %vm13239_vm4, %v6378_v2, %v6379_v12  ;;  %v5943_v26 = vshll.u32 %v5751_v20, 16  ;;  %v11459_v13 = vrot.slane %v6261_v17, 9  ;;  %v6266_v5 = vld [vmem:[#allocation3 + $0x5c] sm:$0x1]  ;;  %v5757_v20 = vld [vmem:[#allocation3 + $0x68] sm:$0x1] }
 0x316   : > { %v5922_v22 = vsel %vm13248_vm5, %v5917_v16, %v5921_v55  ;;  %v11474_v19 = vcombine.low %v15809_v48, %v6380_v32  ;;  %v5930_v24 = vor.u32 %v5929_v37, %v5926_v54  ;;  %v5940_v30 = vor.u32 %v5939_v27, %v5935_v57  ;;  %v12990_v29 = vld [vmem:[#allocation3 + $0x54] sm:$0xff]   ;;  %v6267_v40 = vld [vmem:[#allocation3 + $0x60] sm:$0xe]  ;;  %v6269_v14 = vld [vmem:[#allocation3 + $0x68] sm:$0x1] }
 0x317   : > { %v11442_v62 = vcombine.low %v5912_v56, %v5922_v22  ;;  %v5945_v59 = vrot.slane %v5943_v26, 5  ;;  %v6383_v49 = vrot.slane %v6262_v11, 5  ;;  %v6386_v41 = vrot.slane %v6263_v18, 5  ;;  %v6268_v18 = vld [vmem:[#allocation3 + $0x64] sm:$0xf] }
 0x318   : > { %v5931_v36 = vrot.slane %v5930_v24, 4  ;;  %v5941_v33 = vrot.slane %v5940_v30, 4  ;;  %v5948_v44 = vshrl.u32 %v5752_v39, 16  ;;  %v5951_v8 = vshll.u32 %v5752_v39, 16  ;;  %v5758_v48 = vld [vmem:[#allocation3 + $0x6c] sm:$0xf] }
 0x319   : > { %v15820_v6 = vsel %vm13239_vm4, %v11459_v13, %v6383_v49  ;;  %v6385_v34 = vrot.slane %v6383_v49, 4  ;;  %v5957_v53 = vshll.u32 %v5753_v10, 16  ;;  %v5961_v21 = vshrl.u32 %v5753_v10, 16 }
 0x31a   : > { %9366 = vmatmul.mubr.bf16.gmra.mrb[176].mxu0 %v11473_v43  ;;  %9205 = vmatmul.mubr.bf16.gmra.mrb[144].mxu1 %v12985_v15  ;;  %v5936_v35 = vsel %vm13248_vm5, %v5931_v36, %v5935_v57  ;;  %v5946_v63 = vsel %vm13248_vm5, %v5941_v33, %v5945_v59  ;;  %v5950_v9 = vrot.slane %v5948_v44, 4  ;;  %v5953_v4 = vrot.slane %v5951_v8, 5  ;;  %v5755_v43 = vld [vmem:[#allocation3 + $0x60] sm:$0xf]  ;;  %v6270_v59 = vld [vmem:[#allocation3 + $0x6c] sm:$0xe] }
 0x31b   : > { %9373 = vmatprep.mubr.bf16.mxu0 %v12986_v7  ;;  %9212 = vmatprep.mubr.bf16.mxu1 %v11442_v62  ;;  %v11443_v47 = vcombine.low %v5936_v35, %v5946_v63  ;;  %v15828_v50 = vsel %vm13239_vm4, %v6385_v34, %v6386_v41  ;;  %v5959_v38 = vrot.slane %v5957_v53, 5  ;;  %v5963_v51 = vrot.slane %v5961_v21, 4  ;;  %v12989_v57 = vld [vmem:[#allocation3 + $0x3c] sm:$0xff]   ;;  %v5760_v62 = vld [vmem:[#allocation3 + $0x74] sm:$0x1] }
 0x31c   : > { %v11475_v46 = vcombine.low %v15820_v6, %v15828_v50  ;;  %v5954_v52 = vor.u32 %v5953_v4, %v5950_v9  ;;  %v5967_v55 = vshll.u32 %v5754_v31, 16  ;;  %v11460_v25 = vrot.slane %v6264_v23, 9  ;;  %v6271_v23 = vld [vmem:[#allocation3 + $0x70] sm:$0xf] }
 0x31d   : > { %v5964_v58 = vor.u32 %v5963_v51, %v5959_v38  ;;  %v6390_v12 = vrot.slane %v6265_v45, 5  ;;  %v6393_v60 = vrot.slane %v6266_v5, 5  ;;  %v5972_v17 = vshrl.u32 %v5755_v43, 16  ;;  %v6272_v5 = vld [vmem:[#allocation3 + $0x74] sm:$0x1] }
 0x31e   : > { %v5955_v42 = vrot.slane %v5954_v52, 4  ;;  %v5969_v28 = vrot.slane %v5967_v55, 5  ;;  %v5975_v0 = vshll.u32 %v5755_v43, 16  ;;  %v5981_v11 = vshll.u32 %v5756_v1, 16  ;;  %v5762_v43 = vld [vmem:[#allocation3 + $0x7c] sm:$0xf] }
 0x31f   : > { %v5965_v2 = vrot.slane %v5964_v58, 4  ;;  %v15834_v54 = vsel %vm13239_vm4, %v11460_v25, %v6390_v12  ;;  %v6392_v16 = vrot.slane %v6390_v12, 4  ;;  %v5974_v37 = vrot.slane %v5972_v17, 4  ;;  %v5761_v55 = vld [vmem:[#allocation3 + $0x78] sm:$0xf] }
 0x320   : > { %v5960_v27 = vsel %vm13248_vm5, %v5955_v42, %v5959_v38  ;;  %v5977_v56 = vrot.slane %v5975_v0, 5  ;;  %v5983_v32 = vrot.slane %v5981_v11, 5  ;;  %v5985_v26 = vshrl.u32 %v5756_v1, 16  ;;  %v12992_v1 = vld [vmem:[#allocation3 + $0x60] sm:$0xff]  }
 0x321   : > { %v5970_v13 = vsel %vm13248_vm5, %v5965_v2, %v5969_v28  ;;  %v15842_v39 = vsel %vm13239_vm4, %v6392_v16, %v6393_v60  ;;  %v5991_v7 = vshll.u32 %v5757_v20, 16  ;;  %v11461_v22 = vrot.slane %v6267_v40, 9  ;;  %v5763_v12 = vld [vmem:[#allocation3 + $0x80] sm:$0x1] }
 0x322   : > { %9374 = vmatmul.mubr.bf16.gmra.mrb[180].mxu0 %v11474_v19  ;;  %v5759_v19 = vld [vmem:[#allocation3 + $0x70] sm:$0xf]  ;;  %9213 = vmatmul.mubr.bf16.gmra.mrb[148].mxu1 %v12989_v57  ;;  %v11444_v24 = vcombine.low %v5960_v27, %v5970_v13  ;;  %v11476_v30 = vcombine.low %v15834_v54, %v15842_v39  ;;  %v5978_v10 = vor.u32 %v5977_v56, %v5974_v37  ;;  %v5987_v15 = vrot.slane %v5985_v26, 4  ;;  %v6273_v27 = vld [vmem:[#allocation3 + $0x78] sm:$0xe] }
 0x323   : > { %9381 = vmatprep.mubr.bf16.mxu0 %v12990_v29  ;;  %9220 = vmatprep.mubr.bf16.mxu1 %v11443_v47  ;;  %v5993_v49 = vrot.slane %v5991_v7, 5  ;;  %v6397_v41 = vrot.slane %v6268_v18, 5  ;;  %v6400_v36 = vrot.slane %v6269_v14, 5  ;;  %v5996_v33 = vshrl.u32 %v5758_v48, 16  ;;  %v12991_v47 = vld [vmem:[#allocation3 + $0x48] sm:$0xff]   ;;  %v13034_v54 = vld [vmem:[%s17558_s2 + $0x1f8] sm:$0xff]  }
 0x324   : > { %v5979_v31 = vrot.slane %v5978_v10, 4  ;;  %v5988_v44 = vor.u32 %v5987_v15, %v5983_v32  ;;  %v5999_v8 = vshll.u32 %v5758_v48, 16  ;;  %v6005_v45 = vshll.u32 %v5759_v19, 16  ;;  %v6274_v14 = vld [vmem:[#allocation3 + $0x7c] sm:$0xf]  ;;  %v13031_v48 = vld [vmem:[%s17558_s2 + $0x1f0] sm:$0xff]  }
 0x325   : > { %v15848_v6 = vsel %vm13239_vm4, %v11461_v22, %v6397_v41  ;;  %v6399_v34 = vrot.slane %v6397_v41, 4  ;;  %v5998_v53 = vrot.slane %v5996_v33, 4  ;;  %v6009_v21 = vshrl.u32 %v5759_v19, 16  ;;  %v5765_v56 = vld [vmem:[#allocation3 + $0x88] sm:$0xf] }
 0x326   : > { %v5984_v35 = vsel %vm13248_vm5, %v5979_v31, %v5983_v32  ;;  %v5989_v63 = vrot.slane %v5988_v44, 4  ;;  %v6001_v9 = vrot.slane %v5999_v8, 5  ;;  %v6007_v4 = vrot.slane %v6005_v45, 5  ;;  %v6275_v22 = vld [vmem:[#allocation3 + $0x80] sm:$0x1] }
 0x327   : > { %v15854_v50 = vsel %vm13239_vm4, %v6399_v34, %v6400_v36  ;;  %v6011_v38 = vrot.slane %v6009_v21, 4  ;;  %v6015_v51 = vshll.u32 %v5760_v62, 16  ;;  %v11462_v52 = vrot.slane %v6270_v59, 9  ;;  %v5764_v19 = vld [vmem:[#allocation3 + $0x84] sm:$0xf]  ;;  %v12995_v59 = vld [vmem:[#allocation3 + $0x54] sm:$0xff]  }
 0x328   : > { %v5994_v25 = vsel %vm13248_vm5, %v5989_v63, %v5993_v49  ;;  %v11477_v20 = vcombine.low %v15848_v6, %v15854_v50  ;;  %v6002_v29 = vor.u32 %v6001_v9, %v5998_v53  ;;  %v6404_v58 = vrot.slane %v6271_v23, 5  ;;  %v12996_v49 = vld [vmem:[#allocation3 + $0x6c] sm:$0xff]   ;;  %v6276_v9 = vld [vmem:[#allocation3 + $0x84] sm:$0xe] }
 0x329   : > { %v15863_v60 = vcombine.low %v5984_v35, %v5994_v25  ;;  %v6012_v17 = vor.u32 %v6011_v38, %v6007_v4  ;;  %v6017_v40 = vrot.slane %v6015_v51, 5  ;;  %v6407_v42 = vrot.slane %v6272_v5, 5  ;;  %v5766_v34 = vld [vmem:[#allocation3 + $0x8c] sm:$0x1]  ;;  %v13033_v21 = vld [vmem:[%s17558_s2 + $0x1b0] sm:$0xff]  }
 0x32a   : > { %9382 = vmatmul.mubr.bf16.gmra.mrb[184].mxu0 %v11475_v46  ;;  %v13030_v46 = vld [vmem:[%s17558_s2 + $0x1a8] sm:$0xff]   ;;  %9221 = vmatmul.mubr.bf16.gmra.mrb[152].mxu1 %v12991_v47  ;;  %v6003_v28 = vrot.slane %v6002_v29, 4  ;;  %v15867_v0 = vsel %vm13239_vm4, %v11462_v52, %v6404_v58  ;;  %v6406_v11 = vrot.slane %v6404_v58, 4  ;;  %v6020_v18 = vshrl.u32 %v5761_v55, 16  ;;  %v13035_v47 = vld [vmem:[%s17558_s2 + $0x1b8] sm:$0xff]  }
 0x32b   : > { %9389 = vmatprep.mubr.bf16.mxu0 %v12992_v1  ;;  %12589 = vmatpush3.bf16.msra.mxu0 %v13030_v46  ;;  %v6013_v2 = vrot.slane %v6012_v17, 4  ;;  %v6023_v16 = vshll.u32 %v5761_v55, 16  ;;  %v6029_v37 = vshll.u32 %v5762_v43, 16  ;;  %v6033_v57 = vshrl.u32 %v5762_v43, 16  ;;  %v6277_v43 = vld [vmem:[#allocation3 + $0x88] sm:$0xf] }
 0x32c   : > { %9228 = vmatprep.mubr.bf16.mxu1 %v11444_v24  ;;  %v6008_v32 = vsel %vm13248_vm5, %v6003_v28, %v6007_v4  ;;  %v15876_v26 = vsel %vm13239_vm4, %v6406_v11, %v6407_v42  ;;  %v6022_v13 = vrot.slane %v6020_v18, 4  ;;  %v6039_v7 = vshll.u32 %v5763_v12, 16  ;;  %12590 = vmatprep.subr.bf16.mxu0 %v13031_v48  ;;  %v6278_v25 = vld [vmem:[#allocation3 + $0x8c] sm:$0x1]  ;;  %v5767_v17 = vld [vmem:[#allocation3 + $0x90] sm:$0xf] }
 0x32d   : > { %v6018_v24 = vsel %vm13248_vm5, %v6013_v2, %v6017_v40  ;;  %v11478_v10 = vcombine.low %v15867_v0, %v15876_v26  ;;  %v6025_v15 = vrot.slane %v6023_v16, 5  ;;  %v6031_v62 = vrot.slane %v6029_v37, 5  ;;  %v5768_v40 = vld [vmem:[#allocation3 + $0x94] sm:$0xf]  ;;  %v5769_v37 = vld [vmem:[#allocation3 + $0x98] sm:$0x1] }
 0x32e   : > { %v15882_v41 = vcombine.low %v6008_v32, %v6018_v24  ;;  %v6035_v36 = vrot.slane %v6033_v57, 4  ;;  %v6041_v33 = vrot.slane %v6039_v7, 5  ;;  %v11463_v31 = vrot.slane %v6273_v27, 9  ;;  %v12997_v57 = vld [vmem:[#allocation3 + $0x60] sm:$0xff]   ;;  %v6279_v7 = vld [vmem:[#allocation3 + $0x90] sm:$0xe] }
 0x32f   : > { %v6026_v44 = vor.u32 %v6025_v15, %v6022_v13  ;;  %v6411_v8 = vrot.slane %v6274_v14, 5  ;;  %v6414_v45 = vrot.slane %v6275_v22, 5  ;;  %v6044_v53 = vshrl.u32 %v5764_v19, 16  ;;  %12591 = vmatpush3.bf16.msra.mxu0 %v13033_v21  ;;  %v6280_v22 = vld [vmem:[#allocation3 + $0x94] sm:$0xf] }
 0x330   : > { %v6036_v23 = vor.u32 %v6035_v36, %v6031_v62  ;;  %v6047_v1 = vshll.u32 %v5764_v19, 16  ;;  %v6053_v35 = vshll.u32 %v5765_v56, 16  ;;  %v6057_v63 = vshrl.u32 %v5765_v56, 16  ;;  %12592 = vmatprep.subr.bf16.mxu0 %v13034_v54  ;;  %v5775_v26 = vld [vmem:[#allocation3 + $0xb0] sm:$0x1] }
 0x331   : > { %v6027_v39 = vrot.slane %v6026_v44, 4  ;;  %v6413_v4 = vrot.slane %v6411_v8, 4  ;;  %v6046_v5 = vrot.slane %v6044_v53, 4  ;;  %v6063_v12 = vshll.u32 %v5766_v34, 16  ;;  %v5771_v34 = vld [vmem:[#allocation3 + $0xa0] sm:$0xf] }
 0x332   : > { %9390 = vmatmul.mubr.bf16.gmra.mrb[188].mxu0 %v11476_v30  ;;  %v15895_v30 = vsel %vm13239_vm4, %v11463_v31, %v6411_v8  ;;  %9229 = vmatmul.mubr.bf16.gmra.mrb[156].mxu1 %v12995_v59  ;;  %v6037_v38 = vrot.slane %v6036_v23, 4  ;;  %v6049_v51 = vrot.slane %v6047_v1, 5  ;;  %v6055_v52 = vrot.slane %v6053_v35, 5  ;;  %v6281_v59 = vld [vmem:[#allocation3 + $0x98] sm:$0x1] }
 0x333   : > { %9397 = vmatprep.mubr.bf16.mxu0 %v12996_v49  ;;  %v6059_v55 = vrot.slane %v6057_v63, 4  ;;  %9236 = vmatprep.mubr.bf16.mxu1 %v15863_v60  ;;  %v6032_v29 = vsel %vm13248_vm5, %v6027_v39, %v6031_v62  ;;  %v15905_v58 = vsel %vm13239_vm4, %v6413_v4, %v6414_v45  ;;  %v11464_v46 = vrot.slane %v6276_v9, 9  ;;  %v12998_v60 = vld [vmem:[#allocation3 + $0x78] sm:$0xff]   ;;  %v15923_v49 = vld [vmem:[%s17558_s2 + $0x200] sm:$0xff]  }
 0x334   : > { %v6042_v42 = vsel %vm13248_vm5, %v6037_v38, %v6041_v33  ;;  %v11479_v28 = vcombine.low %v15895_v30, %v15905_v58  ;;  %v6050_v11 = vor.u32 %v6049_v51, %v6046_v5  ;;  %v6065_v48 = vrot.slane %v6063_v12, 5  ;;  %12593 = vmatpush3.bf16.msra.mxu0 %v13035_v47  ;;  %v5770_v33 = vld [vmem:[#allocation3 + $0x9c] sm:$0xf]  ;;  %12762 = vmatprep.subr.bf16.mxu1 %v15923_v49  ;;  %v5772_v35 = vld [vmem:[#allocation3 + $0xa4] sm:$0x1] }
 0x335   : > { %v6060_v18 = vor.u32 %v6059_v55, %v6055_v52  ;;  %v15911_v14 = vcombine.low %v6032_v29, %v6042_v42  ;;  %v6418_v2 = vrot.slane %v6277_v43, 5  ;;  %v6421_v16 = vrot.slane %v6278_v25, 5  ;;  %v6282_v4 = vld [vmem:[#allocation3 + $0x9c] sm:$0xe]  ;;  %v6283_v51 = vld [vmem:[#allocation3 + $0xa0] sm:$0xf] }
 0x336   : > { %v6051_v27 = vrot.slane %v6050_v11, 4  ;;  %v6068_v32 = vshrl.u32 %v5767_v17, 16  ;;  %v6071_v13 = vshll.u32 %v5767_v17, 16  ;;  %v6077_v15 = vshll.u32 %v5768_v40, 16  ;;  %v5773_v11 = vld [vmem:[#allocation3 + $0xa8] sm:$0xf] }
 0x337   : > { %v6061_v56 = vrot.slane %v6060_v18, 4  ;;  %v15918_v19 = vsel %vm13239_vm4, %v11464_v46, %v6418_v2  ;;  %v6420_v24 = vrot.slane %v6418_v2, 4  ;;  %v6081_v62 = vshrl.u32 %v5768_v40, 16  ;;  %v13004_v46 = vld [vmem:[#allocation3 + $0x84] sm:$0xff]  }
 0x338   : > { %v6056_v36 = vsel %vm13248_vm5, %v6051_v27, %v6055_v52  ;;  %v6070_v50 = vrot.slane %v6068_v32, 4  ;;  %v6079_v8 = vrot.slane %v6077_v15, 5  ;;  %v6087_v23 = vshll.u32 %v5769_v37, 16  ;;  %v6284_v52 = vld [vmem:[#allocation3 + $0xa4] sm:$0x1]  ;;  %v13003_v37 = vld [vmem:[#allocation3 + $0x6c] sm:$0xff]  }
 0x339   : > { %v6066_v6 = vsel %vm13248_vm5, %v6061_v56, %v6065_v48  ;;  %v15933_v44 = vsel %vm13239_vm4, %v6420_v24, %v6421_v16  ;;  %v6083_v45 = vrot.slane %v6081_v62, 4  ;;  %v11465_v1 = vrot.slane %v6279_v7, 9  ;;  %v5774_v16 = vld [vmem:[#allocation3 + $0xac] sm:$0xf] }
 0x33a   : > { %9398 = vmatmul.mubr.bf16.gmra.mrb[192].mxu0 %v11477_v20  ;;  %v6073_v20 = vrot.slane %v6071_v13, 5  ;;  %v15929_v31 = vcombine.low %v6056_v36, %v6066_v6  ;;  %9237 = vmatmul.mubr.bf16.gmra.mrb[160].mxu1 %v12997_v57  ;;  %v11480_v53 = vcombine.low %v15918_v19, %v15933_v44  ;;  %v6425_v9 = vrot.slane %v6280_v22, 5  ;;  %v6285_v22 = vld [vmem:[#allocation3 + $0xa8] sm:$0xe]  ;;  %v6286_v36 = vld [vmem:[#allocation3 + $0xac] sm:$0xf] }
 0x33b   : > { %9405 = vmatprep.mubr.bf16.mxu0 %v12998_v60  ;;  %9244 = vmatprep.mubr.bf16.mxu1 %v15882_v41  ;;  %v6084_v63 = vor.u32 %v6083_v45, %v6079_v8  ;;  %v6428_v54 = vrot.slane %v6281_v59, 5  ;;  %v6092_v39 = vshrl.u32 %v5770_v33, 16  ;;  %v6089_v43 = vrot.slane %v6087_v23, 5 }
 0x33c   : > { %v6074_v21 = vor.u32 %v6073_v20, %v6070_v50  ;;  %v6095_v47 = vshll.u32 %v5770_v33, 16  ;;  %v6101_v38 = vshll.u32 %v5771_v34, 16  ;;  %v15941_v25 = vsel %vm13239_vm4, %v11465_v1, %v6425_v9  ;;  %v5776_v1 = vld [vmem:[#allocation3 + $0xb4] sm:$0xf] }
 0x33d   : > { %v6085_v55 = vrot.slane %v6084_v63, 4  ;;  %v6427_v29 = vrot.slane %v6425_v9, 4  ;;  %v6094_v12 = vrot.slane %v6092_v39, 4  ;;  %v6105_v42 = vshrl.u32 %v5771_v34, 16 }
 0x33e   : > { %v6075_v5 = vrot.slane %v6074_v21, 4  ;;  %v6097_v17 = vrot.slane %v6095_v47, 5  ;;  %v6103_v40 = vrot.slane %v6101_v38, 5  ;;  %v6111_v48 = vshll.u32 %v5772_v35, 16  ;;  %v5777_v47 = vld [vmem:[#allocation3 + $0xb8] sm:$0xf] }
 0x33f   : > { %v6090_v18 = vsel %vm13248_vm5, %v6085_v55, %v6089_v43  ;;  %v15952_v60 = vsel %vm13239_vm4, %v6427_v29, %v6428_v54  ;;  %v11466_v2 = vrot.slane %v6282_v4, 9  ;;  %v6107_v0 = vrot.slane %v6105_v42, 4  ;;  %v13006_v54 = vld [vmem:[#allocation3 + $0x90] sm:$0xff]   ;;  %v5778_v29 = vld [vmem:[#allocation3 + $0xbc] sm:$0x1] }
 0x340   : > { %v6080_v41 = vsel %vm13248_vm5, %v6075_v5, %v6079_v8  ;;  %v11481_v27 = vcombine.low %v15941_v25, %v15952_v60  ;;  %v6098_v56 = vor.u32 %v6097_v17, %v6094_v12  ;;  %v6432_v32 = vrot.slane %v6283_v51, 5  ;;  %v6287_v8 = vld [vmem:[#allocation3 + $0xb0] sm:$0x1]  ;;  %v13005_v12 = vld [vmem:[#allocation3 + $0x78] sm:$0xff]  }
 0x341   : > { %v15954_v57 = vcombine.low %v6080_v41, %v6090_v18  ;;  %v6435_v13 = vrot.slane %v6284_v52, 5  ;;  %v6116_v7 = vshrl.u32 %v5773_v11, 16  ;;  %v6108_v15 = vor.u32 %v6107_v0, %v6103_v40  ;;  %v6289_v42 = vld [vmem:[#allocation3 + $0xb8] sm:$0xf]  ;;  %v7191_v25 = vld [vmem:[#allocation3 + $0x1c] sm:$0xf] }
 0x342   : > { %9406 = vmatmul.mubr.bf16.gmra.mrb[196].mxu0 %v11478_v10  ;;  %v6113_v10 = vrot.slane %v6111_v48, 5  ;;  %9245 = vmatmul.mubr.bf16.gmra.mrb[164].mxu1 %v13003_v37  ;;  %v6099_v24 = vrot.slane %v6098_v56, 4  ;;  %v6119_v62 = vshll.u32 %v5773_v11, 16  ;;  %v6125_v59 = vshll.u32 %v5774_v16, 16  ;;  %v6290_v56 = vld [vmem:[#allocation3 + $0xbc] sm:$0x1] }
 0x343   : > { %9413 = vmatprep.mubr.bf16.mxu0 %v13004_v46  ;;  %9252 = vmatprep.mubr.bf16.mxu1 %v15911_v14  ;;  %v15961_v6 = vsel %vm13239_vm4, %v11466_v2, %v6432_v32  ;;  %v6434_v50 = vrot.slane %v6432_v32, 4  ;;  %v6118_v20 = vrot.slane %v6116_v7, 4  ;;  %v6129_v33 = vshrl.u32 %v5774_v16, 16  ;;  %v7620_v0 = vld [vmem:[#allocation3 + $0x18] sm:$0xf] }
 0x344   : > { %v6104_v45 = vsel %vm13248_vm5, %v6099_v24, %v6103_v40  ;;  %v6109_v34 = vrot.slane %v6108_v15, 4  ;;  %v6121_v21 = vrot.slane %v6119_v62, 5  ;;  %v6127_v23 = vrot.slane %v6125_v59, 5  ;;  %v7621_v7 = vld [vmem:[#allocation3 + $0x1c] sm:$0xf] }
 0x345   : > { %v15967_v35 = vsel %vm13239_vm4, %v6434_v50, %v6435_v13  ;;  %v6131_v14 = vrot.slane %v6129_v33, 4  ;;  %v6135_v63 = vshll.u32 %v5775_v26, 16  ;;  %v11467_v9 = vrot.slane %v6285_v22, 9  ;;  %v7622_v59 = vld [vmem:[#allocation3 + $0x20] sm:$0x1] }
 0x346   : > { %v6114_v39 = vsel %vm13248_vm5, %v6109_v34, %v6113_v10  ;;  %v11482_v4 = vcombine.low %v15961_v6, %v15967_v35  ;;  %v6122_v5 = vor.u32 %v6121_v21, %v6118_v20  ;;  %v6439_v43 = vrot.slane %v6286_v36, 5 }
 0x347   : > { %v15976_v38 = vcombine.low %v6104_v45, %v6114_v39  ;;  %v6132_v51 = vor.u32 %v6131_v14, %v6127_v23  ;;  %v6137_v52 = vrot.slane %v6135_v63, 5  ;;  %v6442_v55 = vrot.slane %v6287_v8, 5  ;;  %v7188_v39 = vld [vmem:[#allocation3 + $0x10] sm:$0xf] }
 0x348   : > { %v6123_v46 = vrot.slane %v6122_v5, 4  ;;  %v15980_v41 = vsel %vm13239_vm4, %v11467_v9, %v6439_v43  ;;  %v6441_v17 = vrot.slane %v6439_v43, 4  ;;  %v6140_v40 = vshrl.u32 %v5776_v1, 16 }
 0x349   : > { %v6133_v11 = vrot.slane %v6132_v51, 4  ;;  %v6143_v18 = vshll.u32 %v5776_v1, 16  ;;  %v6149_v30 = vshll.u32 %v5777_v47, 16  ;;  %v6153_v58 = vshrl.u32 %v5777_v47, 16  ;;  %v13011_v1 = vld [vmem:[#allocation3 + $0x84] sm:$0xff]  }
 0x34a   : > { %9414 = vmatmul.mubr.bf16.gmra.mrb[200].mxu0 %v11479_v28  ;;  %v6288_v28 = vld [vmem:[#allocation3 + $0xb4] sm:$0xe]  ;;  %9253 = vmatmul.mubr.bf16.gmra.mrb[168].mxu1 %v13005_v12  ;;  %v6128_v48 = vsel %vm13248_vm5, %v6123_v46, %v6127_v23  ;;  %v15986_v2 = vsel %vm13239_vm4, %v6441_v17, %v6442_v55  ;;  %v6142_v16 = vrot.slane %v6140_v40, 4  ;;  %v6159_v37 = vshll.u32 %v5778_v29, 16  ;;  %v7187_v23 = vld [vmem:[#allocation3 + $0xc] sm:$0xe] }
 0x34b   : > { %9421 = vmatprep.mubr.bf16.mxu0 %v13006_v54  ;;  %9260 = vmatprep.mubr.bf16.mxu1 %v15929_v31  ;;  %v6138_v26 = vsel %vm13248_vm5, %v6133_v11, %v6137_v52  ;;  %v11483_v10 = vcombine.low %v15980_v41, %v15986_v2  ;;  %v6145_v32 = vrot.slane %v6143_v18, 5  ;;  %v6151_v13 = vrot.slane %v6149_v30, 5  ;;  %v13012_v31 = vld [vmem:[#allocation3 + $0x9c] sm:$0xff]   ;;  %v7189_v52 = vld [vmem:[#allocation3 + $0x14] sm:$0x1] }
 0x34c   : > { %v15993_v22 = vcombine.low %v6128_v48, %v6138_v26  ;;  %v6155_v24 = vrot.slane %v6153_v58, 4  ;;  %v6161_v15 = vrot.slane %v6159_v37, 5  ;;  %v11468_v62 = vrot.slane %v6288_v28, 9  ;;  %v6675_v29 = vld [vmem:[#allocation3 + $0xc] sm:$0xf] }
 0x34d   : > { %v6146_v36 = vor.u32 %v6145_v32, %v6142_v16  ;;  %v6446_v50 = vrot.slane %v6289_v42, 5  ;;  %v6449_v20 = vrot.slane %v6290_v56, 5  ;;  %v7669_v33 = vshrl.u32 %v7620_v0, 16  ;;  %v6676_v42 = vld [vmem:[#allocation3 + $0x10] sm:$0xf] }
 0x34e   : > { %v6156_v8 = vor.u32 %v6155_v24, %v6151_v13  ;;  %v7672_v45 = vshll.u32 %v7620_v0, 16  ;;  %v7678_v34 = vshll.u32 %v7621_v7, 16  ;;  %v7682_v21 = vshrl.u32 %v7621_v7, 16  ;;  %v6677_v28 = vld [vmem:[#allocation3 + $0x14] sm:$0x1]  ;;  %v13014_v24 = vld [vmem:[#allocation3 + $0xa8] sm:$0xff]  }
 0x34f   : > { %v6147_v14 = vrot.slane %v6146_v36, 4  ;;  %v16000_v63 = vsel %vm13239_vm4, %v11468_v62, %v6446_v50  ;;  %v6448_v9 = vrot.slane %v6446_v50, 4  ;;  %v7671_v54 = vrot.slane %v7669_v33, 4  ;;  %v7623_v48 = vld [vmem:[#allocation3 + $0x24] sm:$0xf]  ;;  %v13013_v50 = vld [vmem:[#allocation3 + $0x90] sm:$0xff]  }
 0x350   : > { %v6157_v5 = vrot.slane %v6156_v8, 4  ;;  %v7674_v43 = vrot.slane %v7672_v45, 5  ;;  %v7680_v47 = vrot.slane %v7678_v34, 5  ;;  %v7684_v51 = vrot.slane %v7682_v21, 4  ;;  %v7624_v36 = vld [vmem:[#allocation3 + $0x28] sm:$0xf] }
 0x351   : > { %v6152_v55 = vsel %vm13248_vm5, %v6147_v14, %v6151_v13  ;;  %v16006_v19 = vsel %vm13239_vm4, %v6448_v9, %v6449_v20  ;;  %v7688_v44 = vshll.u32 %v7622_v59, 16  ;;  %v7285_v30 = vrot.slane %v7188_v39, 5  ;;  %v7625_v45 = vld [vmem:[#allocation3 + $0x2c] sm:$0x1]  ;;  %v7190_v14 = vld [vmem:[#allocation3 + $0x18] sm:$0xe] }
 0x352   : > { %9422 = vmatmul.mubr.bf16.gmra.mrb[204].mxu0 %v11480_v53  ;;  %v11517_v53 = vrot.slane %v7187_v23, 9  ;;  %9261 = vmatmul.mubr.bf16.gmra.mrb[172].mxu1 %v13011_v1  ;;  %v6162_v12 = vsel %vm13248_vm5, %v6157_v5, %v6161_v15  ;;  %v11484_v46 = vcombine.low %v16000_v63, %v16006_v19  ;;  %v7675_v17 = vor.u32 %v7674_v43, %v7671_v54  ;;  %v7192_v39 = vld [vmem:[#allocation3 + $0x20] sm:$0x1]  ;;  %v6683_v41 = vld [vmem:[#allocation3 + $0x2c] sm:$0x1] }
 0x353   : > { %9429 = vmatprep.mubr.bf16.mxu0 %v13012_v31  ;;  %v7685_v40 = vor.u32 %v7684_v51, %v7680_v47  ;;  %9268 = vmatprep.mubr.bf16.mxu1 %v15954_v57  ;;  %v16013_v11 = vcombine.low %v6152_v55, %v6162_v12  ;;  %v7690_v18 = vrot.slane %v7688_v44, 5  ;;  %v7288_v58 = vrot.slane %v7189_v52, 5  ;;  %v6678_v52 = vld [vmem:[#allocation3 + $0x18] sm:$0xf]  ;;  %v6679_v12 = vld [vmem:[#allocation3 + $0x1c] sm:$0xf] }
 0x354   : > { %v7676_v16 = vrot.slane %v7675_v17, 4  ;;  %v6724_v56 = vshrl.u32 %v6675_v29, 16  ;;  %v6727_v0 = vshll.u32 %v6675_v29, 16  ;;  %v16017_v26 = vsel %vm13239_vm4, %v11517_v53, %v7285_v30  ;;  %v6685_v63 = vld [vmem:[#allocation3 + $0x34] sm:$0xf] }
 0x355   : > { %v7686_v37 = vrot.slane %v7685_v40, 4  ;;  %v7287_v32 = vrot.slane %v7285_v30, 4  ;;  %v6733_v13 = vshll.u32 %v6676_v42, 16  ;;  %v6737_v7 = vshrl.u32 %v6676_v42, 16 }
 0x356   : > { %v7681_v57 = vsel %vm13248_vm5, %v7676_v16, %v7680_v47  ;;  %v6726_v62 = vrot.slane %v6724_v56, 4  ;;  %v6729_v59 = vrot.slane %v6727_v0, 5  ;;  %v6743_v23 = vshll.u32 %v6677_v28, 16  ;;  %v6680_v16 = vld [vmem:[#allocation3 + $0x20] sm:$0x1] }
 0x357   : > { %v7691_v15 = vsel %vm13248_vm5, %v7686_v37, %v7690_v18  ;;  %v16030_v33 = vsel %vm13239_vm4, %v7287_v32, %v7288_v58  ;;  %v6735_v31 = vrot.slane %v6733_v13, 5  ;;  %v6739_v8 = vrot.slane %v6737_v7, 4  ;;  %v13020_v37 = vld [vmem:[#allocation3 + $0xb4] sm:$0xff]   ;;  %v7626_v13 = vld [vmem:[#allocation3 + $0x30] sm:$0xf]  ;;  %v16072_v2 = vpop.f32.mrb[128].mxu1 }
 0x358   : > { %v16026_v20 = vcombine.low %v7681_v57, %v7691_v15  ;;  %v11533_v34 = vcombine.low %v16017_v26, %v16030_v33  ;;  %v6730_v21 = vor.u32 %v6729_v59, %v6726_v62  ;;  %v7693_v1 = vshrl.u32 %v7623_v48, 16  ;;  %v7627_v62 = vld [vmem:[#allocation3 + $0x34] sm:$0xf]  ;;  %v13019_v59 = vld [vmem:[#allocation3 + $0x9c] sm:$0xff]  }
 0x359   : > { %v6740_v60 = vor.u32 %v6739_v8, %v6735_v31  ;;  %v7702_v9 = vshll.u32 %v7624_v36, 16  ;;  %v7706_v54 = vshrl.u32 %v7624_v36, 16  ;;  %v6745_v43 = vrot.slane %v6743_v23, 5  ;;  %v7193_v23 = vld [vmem:[#allocation3 + $0x24] sm:$0xe] }
 0x35a   : > { %9430 = vmatmul.mubr.bf16.gmra.mrb[208].mxu0 %v11481_v27  ;;  %v7696_v27 = vshll.u32 %v7623_v48, 16  ;;  %9269 = vmatmul.mubr.bf16.gmra.mrb[176].mxu1 %v13013_v50  ;;  %v6731_v5 = vrot.slane %v6730_v21, 4  ;;  %v7695_v47 = vrot.slane %v7693_v1, 4  ;;  %v7712_v51 = vshll.u32 %v7625_v45, 16  ;;  %v7628_v45 = vld [vmem:[#allocation3 + $0x38] sm:$0x1] }
 0x35b   : > { %9437 = vmatprep.mubr.bf16.mxu0 %v13014_v24  ;;  %9276 = vmatprep.mubr.bf16.mxu1 %v15976_v38  ;;  %v6741_v55 = vrot.slane %v6740_v60, 4  ;;  %v7704_v53 = vrot.slane %v7702_v9, 5  ;;  %v7708_v29 = vrot.slane %v7706_v54, 4  ;;  %v11518_v42 = vrot.slane %v7190_v14, 9  ;;  %v7194_v1 = vld [vmem:[#allocation3 + $0x28] sm:$0xf] }
 0x35c   : > { %v7698_v44 = vrot.slane %v7696_v27, 5  ;;  %v6736_v17 = vsel %vm13248_vm5, %v6731_v5, %v6735_v31  ;;  %v7714_v40 = vrot.slane %v7712_v51, 5  ;;  %v7292_v18 = vrot.slane %v7191_v25, 5  ;;  %v7195_v9 = vld [vmem:[#allocation3 + $0x2c] sm:$0x1] }
 0x35d   : > { %v6746_v30 = vsel %vm13248_vm5, %v6741_v55, %v6745_v43  ;;  %v7709_v28 = vor.u32 %v7708_v29, %v7704_v53  ;;  %v7295_v48 = vrot.slane %v7192_v39, 5  ;;  %v6748_v32 = vshrl.u32 %v6678_v52, 16 }
 0x35e   : > { %v7699_v58 = vor.u32 %v7698_v44, %v7695_v47  ;;  %v16039_v38 = vcombine.low %v6736_v17, %v6746_v30  ;;  %v16043_v56 = vsel %vm13239_vm4, %v11518_v42, %v7292_v18  ;;  %v7294_v0 = vrot.slane %v7292_v18, 4  ;;  %v6681_v47 = vld [vmem:[#allocation3 + $0x24] sm:$0xf] }
 0x35f   : > { %v7710_v24 = vrot.slane %v7709_v28, 4  ;;  %v6751_v57 = vshll.u32 %v6678_v52, 16  ;;  %v6757_v15 = vshll.u32 %v6679_v12, 16  ;;  %v6750_v50 = vrot.slane %v6748_v32, 4 }
 0x360   : > { %v7700_v7 = vrot.slane %v7699_v58, 4  ;;  %v16050_v36 = vsel %vm13239_vm4, %v7294_v0, %v7295_v48  ;;  %v6761_v31 = vshrl.u32 %v6679_v12, 16  ;;  %v6767_v8 = vshll.u32 %v6680_v16, 16  ;;  %v6682_v16 = vld [vmem:[#allocation3 + $0x28] sm:$0xf] }
 0x361   : > { %v7715_v6 = vsel %vm13248_vm5, %v7710_v24, %v7714_v40  ;;  %v11534_v35 = vcombine.low %v16043_v56, %v16050_v36  ;;  %v6759_v25 = vrot.slane %v6757_v15, 5  ;;  %v7717_v39 = vshrl.u32 %v7626_v13, 16  ;;  %v13025_v40 = vld [vmem:[#allocation3 + $0xc0] sm:$0xff]   ;;  %v13024_v0 = vld [vmem:[#allocation3 + $0xa8] sm:$0xff]  }
 0x362   : > { %9438 = vmatmul.mubr.bf16.gmra.mrb[212].mxu0 %v11482_v4  ;;  %v7705_v21 = vsel %vm13248_vm5, %v7700_v7, %v7704_v53  ;;  %v6753_v4 = vrot.slane %v6751_v57, 5  ;;  %9277 = vmatmul.mubr.bf16.gmra.mrb[180].mxu1 %v13019_v59  ;;  %v6763_v60 = vrot.slane %v6761_v31, 4  ;;  %v6769_v27 = vrot.slane %v6767_v8, 5  ;;  %v7629_v59 = vld [vmem:[#allocation3 + $0x3c] sm:$0xf] }
 0x363   : > { %9445 = vmatprep.mubr.bf16.mxu0 %v13020_v37  ;;  %v16058_v14 = vcombine.low %v7705_v21, %v7715_v6  ;;  %9284 = vmatprep.mubr.bf16.mxu1 %v15993_v22  ;;  %v7720_v5 = vshll.u32 %v7626_v13, 16  ;;  %v7726_v43 = vshll.u32 %v7627_v62, 16  ;;  %v7730_v52 = vshrl.u32 %v7627_v62, 16  ;;  %v7630_v6 = vld [vmem:[#allocation3 + $0x40] sm:$0xf] }
 0x364   : > { %v6754_v54 = vor.u32 %v6753_v4, %v6750_v50  ;;  %v6764_v51 = vor.u32 %v6763_v60, %v6759_v25  ;;  %v7736_v55 = vshll.u32 %v7628_v45, 16  ;;  %v11519_v44 = vrot.slane %v7193_v23, 9  ;;  %v16076_v50 = vpop.f32.mrb[129].mxu1 }
 0x365   : > { %v7719_v29 = vrot.slane %v7717_v39, 4  ;;  %v7722_v12 = vrot.slane %v7720_v5, 5  ;;  %v7728_v17 = vrot.slane %v7726_v43, 5  ;;  %v7732_v18 = vrot.slane %v7730_v52, 4  ;;  %v16082_v4 = vpop.f32.mrb[130].mxu1 }
 0x366   : > { %v6755_v53 = vrot.slane %v6754_v54, 4  ;;  %v6765_v42 = vrot.slane %v6764_v51, 4  ;;  %v7738_v30 = vrot.slane %v7736_v55, 5  ;;  %v7299_v58 = vrot.slane %v7194_v1, 5 }
 0x367   : > { %v7723_v28 = vor.u32 %v7722_v12, %v7719_v29  ;;  %v7302_v48 = vrot.slane %v7195_v9, 5  ;;  %v6772_v37 = vshrl.u32 %v6681_v47, 16  ;;  %v7733_v13 = vor.u32 %v7732_v18, %v7728_v17  ;;  %v7196_v9 = vld [vmem:[#allocation3 + $0x30] sm:$0xe] }
 0x368   : > { %v6760_v22 = vsel %vm13248_vm5, %v6755_v53, %v6759_v25  ;;  %v6770_v32 = vsel %vm13248_vm5, %v6765_v42, %v6769_v27  ;;  %v16070_v7 = vsel %vm13239_vm4, %v11519_v44, %v7299_v58  ;;  %v7301_v24 = vrot.slane %v7299_v58, 4  ;;  %v7631_v27 = vld [vmem:[#allocation3 + $0x44] sm:$0x1]  ;;  %v7197_v44 = vld [vmem:[#allocation3 + $0x34] sm:$0xf] }
 0x369   : > { %v7724_v57 = vrot.slane %v7723_v28, 4  ;;  %v6774_v15 = vrot.slane %v6772_v37, 4  ;;  %v6775_v62 = vshll.u32 %v6681_v47, 16  ;;  %v7734_v31 = vrot.slane %v7733_v13, 4  ;;  %v16091_v47 = vpop.f32.mrb[131].mxu1  ;;  %v13032_v42 = vld [vmem:[#allocation3 + $0xb4] sm:$0xff]  }
 0x36a   : > { %9446 = vmatmul.mubr.bf16.gmra.mrb[216].mxu0 %v11483_v10  ;;  %v16074_v10 = vcombine.low %v6760_v22, %v6770_v32  ;;  %9285 = vmatmul.mubr.bf16.gmra.mrb[184].mxu1 %v13024_v0  ;;  %v16080_v8 = vsel %vm13239_vm4, %v7301_v24, %v7302_v48  ;;  %v6781_v45 = vshll.u32 %v6682_v16, 16  ;;  %v6785_v21 = vshrl.u32 %v6682_v16, 16  ;;  %v6684_v0 = vld [vmem:[#allocation3 + $0x30] sm:$0xf] }
 0x36b   : > { %9453 = vmatprep.mubr.bf16.mxu0 %v13025_v40  ;;  %9292 = vmatprep.mubr.bf16.mxu1 %v16013_v11  ;;  %v7729_v23 = vsel %vm13248_vm5, %v7724_v57, %v7728_v17  ;;  %v11535_v1 = vcombine.low %v16070_v7, %v16080_v8  ;;  %v6777_v25 = vrot.slane %v6775_v62, 5  ;;  %v6791_v60 = vshll.u32 %v6683_v41, 16  ;;  %v7198_v40 = vld [vmem:[#allocation3 + $0x38] sm:$0x1] }
 0x36c   : > { %v7739_v54 = vsel %vm13248_vm5, %v7734_v31, %v7738_v30  ;;  %v6783_v39 = vrot.slane %v6781_v45, 5  ;;  %v6787_v5 = vrot.slane %v6785_v21, 4  ;;  %v7741_v43 = vshrl.u32 %v7629_v59, 16  ;;  %v7632_v21 = vld [vmem:[#allocation3 + $0x48] sm:$0xf] }
 0x36d   : > { %v16093_v51 = vcombine.low %v7729_v23, %v7739_v54  ;;  %v6778_v11 = vor.u32 %v6777_v25, %v6774_v15  ;;  %v6793_v52 = vrot.slane %v6791_v60, 5  ;;  %v7744_v55 = vshll.u32 %v7629_v59, 16  ;;  %v6686_v15 = vld [vmem:[#allocation3 + $0x38] sm:$0x1]  ;;  %v7633_v54 = vld [vmem:[#allocation3 + $0x4c] sm:$0xf] }
 0x36e   : > { %v6788_v53 = vor.u32 %v6787_v5, %v6783_v39  ;;  %v7743_v29 = vrot.slane %v7741_v43, 4  ;;  %v7750_v12 = vshll.u32 %v7630_v6, 16  ;;  %v7754_v17 = vshrl.u32 %v7630_v6, 16  ;;  %v13036_v6 = vld [vmem:[#allocation3 + $0x18] sm:$0xff]  }
 0x36f   : > { %v6779_v18 = vrot.slane %v6778_v11, 4  ;;  %v7746_v30 = vrot.slane %v7744_v55, 5  ;;  %v7760_v58 = vshll.u32 %v7631_v27, 16  ;;  %v11520_v22 = vrot.slane %v7196_v9, 9 }
 0x370   : > { %v6789_v28 = vrot.slane %v6788_v53, 4  ;;  %v7752_v48 = vrot.slane %v7750_v12, 5  ;;  %v7756_v16 = vrot.slane %v7754_v17, 4  ;;  %v7306_v37 = vrot.slane %v7197_v44, 5  ;;  %v7199_v12 = vld [vmem:[#allocation3 + $0x3c] sm:$0xe] }
 0x371   : > { %v6784_v32 = vsel %vm13248_vm5, %v6779_v18, %v6783_v39  ;;  %v7747_v13 = vor.u32 %v7746_v30, %v7743_v29  ;;  %v7762_v24 = vrot.slane %v7760_v58, 5  ;;  %v7309_v41 = vrot.slane %v7198_v40, 5  ;;  %v7200_v17 = vld [vmem:[#allocation3 + $0x40] sm:$0xf]  ;;  %v13040_v40 = vld [vmem:[%s17558_s2 + $0x208] sm:$0xff]  }
 0x372   : > { %9454 = vmatmul.mubr.bf16.gmra.mrb[220].mxu0 %v11484_v46  ;;  %9293 = vmatmul.mubr.bf16.gmra.mrb[188].mxu1 %v13032_v42  ;;  %v6794_v19 = vsel %vm13248_vm5, %v6789_v28, %v6793_v52  ;;  %v7757_v46 = vor.u32 %v7756_v16, %v7752_v48  ;;  %v7308_v57 = vrot.slane %v7306_v37, 4  ;;  %v6796_v31 = vshrl.u32 %v6684_v0, 16  ;;  %v7634_v52 = vld [vmem:[#allocation3 + $0x50] sm:$0x1] }
 0x373   : > { %9655 = vmatprep.mubr.bf16.mxu0 %v16026_v20  ;;  %v16105_v20 = vsel %vm13239_vm4, %v11520_v22, %v7306_v37  ;;  %9494 = vmatprep.mubr.bf16.mxu1 %v11533_v34  ;;  %v16110_v62 = vcombine.low %v6784_v32, %v6794_v19  ;;  %v7748_v59 = vrot.slane %v7747_v13, 4  ;;  %v6799_v45 = vshll.u32 %v6684_v0, 16  ;;  %v7201_v22 = vld [vmem:[#allocation3 + $0x44] sm:$0x1]  ;;  %v6687_v0 = vld [vmem:[#allocation3 + $0x3c] sm:$0xf] }
 0x374   : > { %v7758_v23 = vrot.slane %v7757_v46, 4  ;;  %v16114_v25 = vsel %vm13239_vm4, %v7308_v57, %v7309_v41  ;;  %v6805_v60 = vshll.u32 %v6685_v63, 16  ;;  %v6809_v27 = vshrl.u32 %v6685_v63, 16  ;;  %v13043_v41 = vld [vmem:[%s17558_s2 + $0x210] sm:$0xff]   ;;  %v6688_v57 = vld [vmem:[#allocation3 + $0x40] sm:$0xf] }
 0x375   : > { %v7753_v9 = vsel %vm13248_vm5, %v7748_v59, %v7752_v48  ;;  %v11536_v26 = vcombine.low %v16105_v20, %v16114_v25  ;;  %v6798_v33 = vrot.slane %v6796_v31, 4  ;;  %v6801_v34 = vrot.slane %v6799_v45, 5  ;;  %v6693_v20 = vld [vmem:[#allocation3 + $0x54] sm:$0xf] }
 0x376   : > { %v7763_v39 = vsel %vm13248_vm5, %v7758_v23, %v7762_v24  ;;  %v6807_v5 = vrot.slane %v6805_v60, 5  ;;  %v6811_v43 = vrot.slane %v6809_v27, 4  ;;  %v6815_v11 = vshll.u32 %v6686_v15, 16  ;;  %v6689_v15 = vld [vmem:[#allocation3 + $0x44] sm:$0x1] }
 0x377   : > { %v16122_v55 = vcombine.low %v7753_v9, %v7763_v39  ;;  %v6802_v44 = vor.u32 %v6801_v34, %v6798_v33  ;;  %v7765_v53 = vshrl.u32 %v7632_v21, 16  ;;  %v7768_v29 = vshll.u32 %v7632_v21, 16  ;;  %v7635_v33 = vld [vmem:[#allocation3 + $0x54] sm:$0xf]  ;;  %v13046_v34 = vld [vmem:[%s17558_s2 + $0x218] sm:$0xff]  }
 0x378   : > { %v6812_v42 = vor.u32 %v6811_v43, %v6807_v5  ;;  %v6817_v18 = vrot.slane %v6815_v11, 5  ;;  %v7774_v30 = vshll.u32 %v7633_v54, 16  ;;  %v7778_v58 = vshrl.u32 %v7633_v54, 16  ;;  %v7636_v11 = vld [vmem:[#allocation3 + $0x58] sm:$0xf] }
 0x379   : > { %v6803_v28 = vrot.slane %v6802_v44, 4  ;;  %v7767_v48 = vrot.slane %v7765_v53, 4  ;;  %v7770_v16 = vrot.slane %v7768_v29, 5  ;;  %v7784_v37 = vshll.u32 %v7634_v52, 16  ;;  %v7637_v52 = vld [vmem:[#allocation3 + $0x5c] sm:$0x1] }
 0x37a   : > { %9656 = vmatmul.mubr.bf16.vlgmr.msra.gmra.mrb[224].mxu0 %v13036_v6  ;;  %9495 = vmatmul.mubr.bf16.vlgmr.msra.gmra.mrb[192].mxu1 %v16039_v38  ;;  %v6813_v32 = vrot.slane %v6812_v42, 4  ;;  %v7776_v13 = vrot.slane %v7774_v30, 5  ;;  %v7780_v24 = vrot.slane %v7778_v58, 4  ;;  %v7313_v38 = vrot.slane %v7200_v17, 5  ;;  %v13038_v6 = vld [vmem:[#allocation3 + $0x24] sm:$0xff]  }
 0x37b   : > { %9663 = vmatprep.mubr.bf16.mxu0 %v16058_v14  ;;  %v11521_v14 = vrot.slane %v7199_v12, 9  ;;  %9502 = vmatprep.mubr.bf16.mxu1 %v11534_v35  ;;  %v6808_v63 = vsel %vm13248_vm5, %v6803_v28, %v6807_v5  ;;  %v7771_v19 = vor.u32 %v7770_v16, %v7767_v48  ;;  %v7786_v46 = vrot.slane %v7784_v37, 5  ;;  %v7202_v17 = vld [vmem:[#allocation3 + $0x48] sm:$0xe] }
 0x37c   : > { %12763 = vmatpush3.bf16.msra.mxu1 %v15923_v49  ;;  %v6818_v59 = vsel %vm13248_vm5, %v6813_v32, %v6817_v18  ;;  %v7781_v31 = vor.u32 %v7780_v24, %v7776_v13  ;;  %v7316_v45 = vrot.slane %v7201_v22, 5  ;;  %v6820_v21 = vshrl.u32 %v6687_v0, 16  ;;  %v7204_v22 = vld [vmem:[#allocation3 + $0x50] sm:$0x1]  ;;  %v6690_v37 = vld [vmem:[#allocation3 + $0x48] sm:$0xf] }
 0x37d   : > { %12764 = vmatprep.subr.bf16.mxu1 %v13040_v40  ;;  %v16140_v56 = vcombine.low %v6808_v63, %v6818_v59  ;;  %v7772_v36 = vrot.slane %v7771_v19, 4  ;;  %v16144_v49 = vsel %vm13239_vm4, %v11521_v14, %v7313_v38  ;;  %v7315_v35 = vrot.slane %v7313_v38, 4  ;;  %v13049_v14 = vld [vmem:[%s17558_s2 + $0x220] sm:$0xff]   ;;  %v13039_v38 = vld [vmem:[#allocation3 + $0x30] sm:$0xff]  }
 0x37e   : > { %v7782_v23 = vrot.slane %v7781_v31, 4  ;;  %v6822_v60 = vrot.slane %v6820_v21, 4  ;;  %v6823_v27 = vshll.u32 %v6687_v0, 16  ;;  %v6829_v9 = vshll.u32 %v6688_v57, 16 }
 0x37f   : > { %v7777_v54 = vsel %vm13248_vm5, %v7772_v36, %v7776_v13  ;;  %v16153_v39 = vsel %vm13239_vm4, %v7315_v35, %v7316_v45  ;;  %v6833_v5 = vshrl.u32 %v6688_v57, 16  ;;  %v6839_v43 = vshll.u32 %v6689_v15, 16  ;;  %v6692_v35 = vld [vmem:[#allocation3 + $0x50] sm:$0x1] }
 0x380   : > { %12765 = vmatpush3.bf16.msra.mxu1 %v13040_v40  ;;  %v7787_v44 = vsel %vm13248_vm5, %v7782_v23, %v7786_v46  ;;  %v11537_v53 = vcombine.low %v16144_v49, %v16153_v39  ;;  %v6825_v29 = vrot.slane %v6823_v27, 5  ;;  %v6831_v12 = vrot.slane %v6829_v9, 5  ;;  %v7203_v40 = vld [vmem:[#allocation3 + $0x4c] sm:$0xf] }
 0x381   : > { %12766 = vmatprep.subr.bf16.mxu1 %v13043_v41  ;;  %v16160_v42 = vcombine.low %v7777_v54, %v7787_v44  ;;  %v6835_v18 = vrot.slane %v6833_v5, 4  ;;  %v6841_v30 = vrot.slane %v6839_v43, 5  ;;  %v7789_v58 = vshrl.u32 %v7635_v33, 16  ;;  %v7638_v54 = vld [vmem:[#allocation3 + $0x60] sm:$0xf]  ;;  %v13052_v5 = vld [vmem:[%s17558_s2 + $0x228] sm:$0xff]  }
 0x382   : > { %9664 = vmatmul.mubr.bf16.gmra.mrb[228].mxu0 %v13038_v6  ;;  %9503 = vmatmul.mubr.bf16.gmra.mrb[196].mxu1 %v16074_v10  ;;  %v7792_v28 = vshll.u32 %v7635_v33, 16  ;;  %v7798_v48 = vshll.u32 %v7636_v11, 16  ;;  %v7802_v16 = vshrl.u32 %v7636_v11, 16  ;;  %v7808_v13 = vshll.u32 %v7637_v52, 16  ;;  %v7639_v44 = vld [vmem:[#allocation3 + $0x64] sm:$0xf] }
 0x383   : > { %9671 = vmatprep.mubr.bf16.mxu0 %v16093_v51  ;;  %v6826_v51 = vor.u32 %v6825_v29, %v6822_v60  ;;  %9510 = vmatprep.mubr.bf16.mxu1 %v11535_v1  ;;  %v6836_v0 = vor.u32 %v6835_v18, %v6831_v12  ;;  %v7791_v32 = vrot.slane %v7789_v58, 4  ;;  %v11522_v24 = vrot.slane %v7202_v17, 9  ;;  %v7205_v18 = vld [vmem:[#allocation3 + $0x54] sm:$0xe] }
 0x384   : > { %12767 = vmatpush3.bf16.msra.mxu1 %v13043_v41  ;;  %v7794_v10 = vrot.slane %v7792_v28, 5  ;;  %v7800_v19 = vrot.slane %v7798_v48, 5  ;;  %v7804_v46 = vrot.slane %v7802_v16, 4  ;;  %v7810_v15 = vrot.slane %v7808_v13, 5  ;;  %v6691_v41 = vld [vmem:[#allocation3 + $0x4c] sm:$0xf] }
 0x385   : > { %v6827_v63 = vrot.slane %v6826_v51, 4  ;;  %12768 = vmatprep.subr.bf16.mxu1 %v13046_v34  ;;  %v6837_v57 = vrot.slane %v6836_v0, 4  ;;  %v7320_v59 = vrot.slane %v7203_v40, 5  ;;  %v7323_v7 = vrot.slane %v7204_v22, 5  ;;  %v7640_v40 = vld [vmem:[#allocation3 + $0x68] sm:$0x1] }
 0x386   : > { %v7795_v1 = vor.u32 %v7794_v10, %v7791_v32  ;;  %v7805_v31 = vor.u32 %v7804_v46, %v7800_v19  ;;  %v6844_v45 = vshrl.u32 %v6690_v37, 16  ;;  %v6847_v23 = vshll.u32 %v6690_v37, 16  ;;  %v7206_v28 = vld [vmem:[#allocation3 + $0x58] sm:$0xf]  ;;  %v7207_v32 = vld [vmem:[#allocation3 + $0x5c] sm:$0x1] }
 0x387   : > { %v6832_v8 = vsel %vm13248_vm5, %v6827_v63, %v6831_v12  ;;  %v6842_v21 = vsel %vm13248_vm5, %v6837_v57, %v6841_v30  ;;  %v16175_v6 = vsel %vm13239_vm4, %v11522_v24, %v7320_v59  ;;  %v7322_v36 = vrot.slane %v7320_v59, 4  ;;  %v13055_v30 = vld [vmem:[%s17558_s2 + $0x230] sm:$0xff]   ;;  %v13041_v13 = vld [vmem:[#allocation3 + $0x3c] sm:$0xff]   ;;  %v6694_v57 = vld [vmem:[#allocation3 + $0x58] sm:$0xf] }
 0x388   : > { %12769 = vmatpush3.bf16.msra.mxu1 %v13046_v34  ;;  %v16178_v60 = vcombine.low %v6832_v8, %v6842_v21  ;;  %v7796_v27 = vrot.slane %v7795_v1, 4  ;;  %v7806_v9 = vrot.slane %v7805_v31, 4  ;;  %v6846_v33 = vrot.slane %v6844_v45, 4  ;;  %v13058_v45 = vld [vmem:[%s17558_s2 + $0x238] sm:$0xff]  }
 0x389   : > { %12770 = vmatprep.subr.bf16.mxu1 %v13049_v14  ;;  %v16185_v43 = vsel %vm13239_vm4, %v7322_v36, %v7323_v7  ;;  %v6849_v11 = vrot.slane %v6847_v23, 5  ;;  %v6853_v52 = vshll.u32 %v6691_v41, 16  ;;  %v6857_v34 = vshrl.u32 %v6691_v41, 16 }
 0x38a   : > { %9672 = vmatmul.mubr.bf16.gmra.mrb[232].mxu0 %v13039_v38  ;;  %9511 = vmatmul.mubr.bf16.gmra.mrb[200].mxu1 %v16110_v62  ;;  %v7811_v29 = vsel %vm13248_vm5, %v7806_v9, %v7810_v15  ;;  %v11538_v12 = vcombine.low %v16175_v6, %v16185_v43  ;;  %v6863_v17 = vshll.u32 %v6692_v35, 16  ;;  %v7813_v16 = vshrl.u32 %v7638_v54, 16  ;;  %v6695_v35 = vld [vmem:[#allocation3 + $0x5c] sm:$0x1] }
 0x38b   : > { %9679 = vmatprep.mubr.bf16.mxu0 %v16122_v55  ;;  %v7801_v55 = vsel %vm13248_vm5, %v7796_v27, %v7800_v19  ;;  %9518 = vmatprep.mubr.bf16.mxu1 %v11536_v26  ;;  %v6850_v58 = vor.u32 %v6849_v11, %v6846_v33  ;;  %v6855_v22 = vrot.slane %v6853_v52, 5  ;;  %v6859_v51 = vrot.slane %v6857_v34, 4 }
 0x38c   : > { %v16200_v62 = vcombine.low %v7801_v55, %v7811_v29  ;;  %12771 = vmatpush3.bf16.msra.mxu1 %v13049_v14  ;;  %v6865_v48 = vrot.slane %v6863_v17, 5  ;;  %v7816_v37 = vshll.u32 %v7638_v54, 16  ;;  %v7822_v0 = vshll.u32 %v7639_v44, 16 }
 0x38d   : > { %12772 = vmatprep.subr.bf16.mxu1 %v13052_v5  ;;  %v6851_v24 = vrot.slane %v6850_v58, 4  ;;  %v6860_v63 = vor.u32 %v6859_v51, %v6855_v22  ;;  %v7826_v10 = vshrl.u32 %v7639_v44, 16  ;;  %v7832_v19 = vshll.u32 %v7640_v40, 16  ;;  %v7642_v40 = vld [vmem:[#allocation3 + $0x70] sm:$0xf] }
 0x38e   : > { %v7815_v25 = vrot.slane %v7813_v16, 4  ;;  %v7818_v26 = vrot.slane %v7816_v37, 5  ;;  %v7824_v46 = vrot.slane %v7822_v0, 5  ;;  %v11523_v38 = vrot.slane %v7205_v18, 9  ;;  %v13042_v18 = vld [vmem:[#allocation3 + $0x48] sm:$0xff]  }
 0x38f   : > { %v6856_v14 = vsel %vm13248_vm5, %v6851_v24, %v6855_v22  ;;  %v6861_v15 = vrot.slane %v6860_v63, 4  ;;  %v7828_v59 = vrot.slane %v7826_v10, 4  ;;  %v7834_v7 = vrot.slane %v7832_v19, 5  ;;  %v7208_v22 = vld [vmem:[#allocation3 + $0x60] sm:$0xe] }
 0x390   : > { %12773 = vmatpush3.bf16.msra.mxu1 %v13052_v5  ;;  %v7819_v8 = vor.u32 %v7818_v26, %v7815_v25  ;;  %v7327_v1 = vrot.slane %v7206_v28, 5  ;;  %v7330_v31 = vrot.slane %v7207_v32, 5  ;;  %v6868_v41 = vshrl.u32 %v6693_v20, 16  ;;  %v7641_v5 = vld [vmem:[#allocation3 + $0x6c] sm:$0xf] }
 0x391   : > { %12774 = vmatprep.subr.bf16.mxu1 %v13055_v30  ;;  %v6866_v21 = vsel %vm13248_vm5, %v6861_v15, %v6865_v48  ;;  %v7829_v36 = vor.u32 %v7828_v59, %v7824_v46  ;;  %v6871_v23 = vshll.u32 %v6693_v20, 16  ;;  %v6877_v27 = vshll.u32 %v6694_v57, 16  ;;  %v7209_v37 = vld [vmem:[#allocation3 + $0x64] sm:$0xf]  ;;  %v7210_v63 = vld [vmem:[#allocation3 + $0x68] sm:$0x1] }
 0x392   : > { %9680 = vmatmul.mubr.bf16.gmra.mrb[236].mxu0 %v13041_v13  ;;  %9519 = vmatmul.mubr.bf16.gmra.mrb[204].mxu1 %v16140_v56  ;;  %v16211_v9 = vcombine.low %v6856_v14, %v6866_v21  ;;  %v16215_v33 = vsel %vm13239_vm4, %v11523_v38, %v7327_v1  ;;  %v7329_v54 = vrot.slane %v7327_v1, 4  ;;  %v6870_v52 = vrot.slane %v6868_v41, 4  ;;  %v6696_v26 = vld [vmem:[#allocation3 + $0x60] sm:$0xf]  ;;  %v6697_v15 = vld [vmem:[#allocation3 + $0x64] sm:$0xf] }
 0x393   : > { %9687 = vmatprep.mubr.bf16.mxu0 %v16160_v42  ;;  %v7820_v42 = vrot.slane %v7819_v8, 4  ;;  %9526 = vmatprep.mubr.bf16.mxu1 %v11537_v53  ;;  %v7830_v11 = vrot.slane %v7829_v36, 4  ;;  %v6873_v34 = vrot.slane %v6871_v23, 5  ;;  %v6879_v44 = vrot.slane %v6877_v27, 5  ;;  %v7644_v36 = vld [vmem:[#allocation3 + $0x78] sm:$0xf] }
 0x394   : > { %12775 = vmatpush3.bf16.msra.mxu1 %v13055_v30  ;;  %v16224_v55 = vsel %vm13239_vm4, %v7329_v54, %v7330_v31  ;;  %v6881_v29 = vshrl.u32 %v6694_v57, 16  ;;  %v6887_v17 = vshll.u32 %v6695_v35, 16  ;;  %v7643_v30 = vld [vmem:[#allocation3 + $0x74] sm:$0x1]  ;;  %v7837_v58 = vshrl.u32 %v7641_v5, 16 }
 0x395   : > { %v7825_v56 = vsel %vm13248_vm5, %v7820_v42, %v7824_v46  ;;  %12776 = vmatprep.subr.bf16.mxu1 %v13058_v45  ;;  %v7835_v49 = vsel %vm13248_vm5, %v7830_v11, %v7834_v7  ;;  %v11539_v39 = vcombine.low %v16215_v33, %v16224_v55  ;;  %v6874_v53 = vor.u32 %v6873_v34, %v6870_v52  ;;  %v6698_v31 = vld [vmem:[#allocation3 + $0x68] sm:$0x1]  ;;  %v13044_v42 = vld [vmem:[#allocation3 + $0x54] sm:$0xff]  }
 0x396   : > { %v11571_v51 = vcombine.low %v7825_v56, %v7835_v49  ;;  %v6883_v28 = vrot.slane %v6881_v29, 4  ;;  %v6889_v48 = vrot.slane %v6887_v17, 5  ;;  %v7840_v16 = vshll.u32 %v7641_v5, 16  ;;  %v7646_v56 = vld [vmem:[#allocation3 + $0x80] sm:$0x1] }
 0x397   : > { %v6875_v0 = vrot.slane %v6874_v53, 4  ;;  %v7839_v32 = vrot.slane %v7837_v58, 4  ;;  %v7846_v13 = vshll.u32 %v7642_v40, 16  ;;  %v7850_v24 = vshrl.u32 %v7642_v40, 16  ;;  %v7211_v49 = vld [vmem:[#allocation3 + $0x6c] sm:$0xe] }
 0x398   : > { %12777 = vmatpush3.bf16.msra.mxu1 %v13058_v45  ;;  %v6884_v10 = vor.u32 %v6883_v28, %v6879_v44  ;;  %v7842_v19 = vrot.slane %v7840_v16, 5  ;;  %v7856_v20 = vshll.u32 %v7643_v30, 16  ;;  %v11524_v25 = vrot.slane %v7208_v22, 9  ;;  %v7212_v28 = vld [vmem:[#allocation3 + $0x70] sm:$0xf] }
 0x399   : > { %v6880_v46 = vsel %vm13248_vm5, %v6875_v0, %v6879_v44  ;;  %v7848_v38 = vrot.slane %v7846_v13, 5  ;;  %v7852_v57 = vrot.slane %v7850_v24, 4  ;;  %v7334_v14 = vrot.slane %v7209_v37, 5  ;;  %v6699_v13 = vld [vmem:[#allocation3 + $0x6c] sm:$0xf] }
 0x39a   : > { %9688 = vmatmul.mubr.bf16.gmra.mrb[240].mxu0 %v13042_v18  ;;  %9527 = vmatmul.mubr.bf16.gmra.mrb[208].mxu1 %v16178_v60  ;;  %v6885_v59 = vrot.slane %v6884_v10, 4  ;;  %v7843_v7 = vor.u32 %v7842_v19, %v7839_v32  ;;  %v7858_v8 = vrot.slane %v7856_v20, 5  ;;  %v7337_v1 = vrot.slane %v7210_v63, 5  ;;  %v6700_v20 = vld [vmem:[#allocation3 + $0x70] sm:$0xf] }
 0x39b   : > { %9695 = vmatprep.mubr.bf16.mxu0 %v16200_v62  ;;  %9534 = vmatprep.mubr.bf16.mxu1 %v11538_v12  ;;  %v7853_v62 = vor.u32 %v7852_v57, %v7848_v38  ;;  %v16239_v41 = vsel %vm13239_vm4, %v11524_v25, %v7334_v14  ;;  %v7336_v45 = vrot.slane %v7334_v14, 4  ;;  %v6892_v21 = vshrl.u32 %v6696_v26, 16  ;;  %v7645_v12 = vld [vmem:[#allocation3 + $0x7c] sm:$0xf] }
 0x39c   : > { %v6890_v60 = vsel %vm13248_vm5, %v6885_v59, %v6889_v48  ;;  %v7844_v35 = vrot.slane %v7843_v7, 4  ;;  %v6895_v23 = vshll.u32 %v6696_v26, 16  ;;  %v6901_v27 = vshll.u32 %v6697_v15, 16  ;;  %v7213_v48 = vld [vmem:[#allocation3 + $0x74] sm:$0x1] }
 0x39d   : > { %v16243_v54 = vcombine.low %v6880_v46, %v6890_v60  ;;  %v7854_v5 = vrot.slane %v7853_v62, 4  ;;  %v16247_v6 = vsel %vm13239_vm4, %v7336_v45, %v7337_v1  ;;  %v6894_v43 = vrot.slane %v6892_v21, 4 }
 0x39e   : > { %v7849_v11 = vsel %vm13248_vm5, %v7844_v35, %v7848_v38  ;;  %v11540_v52 = vcombine.low %v16239_v41, %v16247_v6  ;;  %v6897_v34 = vrot.slane %v6895_v23, 5  ;;  %v6903_v44 = vrot.slane %v6901_v27, 5  ;;  %v7647_v35 = vld [vmem:[#allocation3 + $0x84] sm:$0xf] }
 0x39f   : > { %v7859_v29 = vsel %vm13248_vm5, %v7854_v5, %v7858_v8  ;;  %v6905_v17 = vshrl.u32 %v6697_v15, 16  ;;  %v6911_v40 = vshll.u32 %v6698_v31, 16  ;;  %v7861_v18 = vshrl.u32 %v7644_v36, 16 }
 0x3a0   : > { %v11572_v53 = vcombine.low %v7849_v11, %v7859_v29  ;;  %v6898_v30 = vor.u32 %v6897_v34, %v6894_v43  ;;  %v7864_v58 = vshll.u32 %v7644_v36, 16  ;;  %v7870_v22 = vshll.u32 %v7645_v12, 16  ;;  %v6701_v36 = vld [vmem:[#allocation3 + $0x74] sm:$0x1]  ;;  %v7648_v43 = vld [vmem:[#allocation3 + $0x88] sm:$0xf] }
 0x3a1   : > { %v6907_v16 = vrot.slane %v6905_v17, 4  ;;  %v6913_v37 = vrot.slane %v6911_v40, 5  ;;  %v7863_v0 = vrot.slane %v7861_v18, 4  ;;  %v7874_v32 = vshrl.u32 %v7645_v12, 16  ;;  %v7649_v12 = vld [vmem:[#allocation3 + $0x8c] sm:$0x1] }
 0x3a2   : > { %9696 = vmatmul.mubr.bf16.gmra.mrb[244].mxu0 %v13044_v42  ;;  %9535 = vmatmul.mubr.bf16.gmra.mrb[212].mxu1 %v16211_v9  ;;  %v6899_v24 = vrot.slane %v6898_v30, 4  ;;  %v7866_v63 = vrot.slane %v7864_v58, 5  ;;  %v7872_v10 = vrot.slane %v7870_v22, 5  ;;  %v7880_v19 = vshll.u32 %v7646_v56, 16  ;;  %v13045_v9 = vld [vmem:[#allocation3 + $0x60] sm:$0xff]  }
 0x3a3   : > { %9703 = vmatprep.mubr.bf16.mxu0 %v11571_v51  ;;  %9542 = vmatprep.mubr.bf16.mxu1 %v11539_v39  ;;  %v6908_v51 = vor.u32 %v6907_v16, %v6903_v44  ;;  %v7876_v25 = vrot.slane %v7874_v32, 4  ;;  %v11525_v26 = vrot.slane %v7211_v49, 9  ;;  %v7341_v46 = vrot.slane %v7212_v28, 5  ;;  %v13047_v49 = vld [vmem:[#allocation3 + $0x6c] sm:$0xff]   ;;  %v7214_v28 = vld [vmem:[#allocation3 + $0x78] sm:$0xe] }
 0x3a4   : > { %v6904_v38 = vsel %vm13248_vm5, %v6899_v24, %v6903_v44  ;;  %v7867_v57 = vor.u32 %v7866_v63, %v7863_v0  ;;  %v7882_v14 = vrot.slane %v7880_v19, 5  ;;  %v7344_v15 = vrot.slane %v7213_v48, 5  ;;  %v7215_v48 = vld [vmem:[#allocation3 + $0x7c] sm:$0xf]  ;;  %v6702_v19 = vld [vmem:[#allocation3 + $0x78] sm:$0xf] }
 0x3a5   : > { %v6909_v59 = vrot.slane %v6908_v51, 4  ;;  %v7877_v7 = vor.u32 %v7876_v25, %v7872_v10  ;;  %v16263_v8 = vsel %vm13239_vm4, %v11525_v26, %v7341_v46  ;;  %v7343_v1 = vrot.slane %v7341_v46, 4  ;;  %v6703_v51 = vld [vmem:[#allocation3 + $0x7c] sm:$0xf] }
 0x3a6   : > { %v7868_v33 = vrot.slane %v7867_v57, 4  ;;  %v6916_v55 = vshrl.u32 %v6699_v13, 16  ;;  %v6919_v39 = vshll.u32 %v6699_v13, 16  ;;  %v6925_v31 = vshll.u32 %v6700_v20, 16  ;;  %v6704_v57 = vld [vmem:[#allocation3 + $0x80] sm:$0x1] }
 0x3a7   : > { %v6914_v62 = vsel %vm13248_vm5, %v6909_v59, %v6913_v37  ;;  %v7878_v45 = vrot.slane %v7877_v7, 4  ;;  %v16269_v21 = vsel %vm13239_vm4, %v7343_v1, %v7344_v15  ;;  %v6929_v60 = vshrl.u32 %v6700_v20, 16 }
 0x3a8   : > { %v11508_v23 = vcombine.low %v6904_v38, %v6914_v62  ;;  %v7873_v27 = vsel %vm13248_vm5, %v7868_v33, %v7872_v10  ;;  %v11541_v42 = vcombine.low %v16263_v8, %v16269_v21  ;;  %v6918_v5 = vrot.slane %v6916_v55, 4  ;;  %v7651_v21 = vld [vmem:[#allocation3 + $0x94] sm:$0xf] }
 0x3a9   : > { %v7883_v11 = vsel %vm13248_vm5, %v7878_v45, %v7882_v14  ;;  %v6921_v34 = vrot.slane %v6919_v39, 5  ;;  %v6927_v44 = vrot.slane %v6925_v31, 5  ;;  %v6931_v56 = vrot.slane %v6929_v60, 4  ;;  %v7650_v45 = vld [vmem:[#allocation3 + $0x90] sm:$0xf] }
 0x3aa   : > { %9704 = vmatmul.mubr.bf16.gmra.mrb[248].mxu0 %v13045_v9  ;;  %9543 = vmatmul.mubr.bf16.gmra.mrb[216].mxu1 %v16243_v54  ;;  %v11573_v29 = vcombine.low %v7873_v27, %v7883_v11  ;;  %v6935_v17 = vshll.u32 %v6701_v36, 16  ;;  %v7885_v40 = vshrl.u32 %v7647_v35, 16  ;;  %v7888_v18 = vshll.u32 %v7647_v35, 16  ;;  %v7216_v54 = vld [vmem:[#allocation3 + $0x80] sm:$0x1] }
 0x3ab   : > { %9711 = vmatprep.mubr.bf16.mxu0 %v11572_v53  ;;  %9550 = vmatprep.mubr.bf16.mxu1 %v11540_v52  ;;  %v6922_v53 = vor.u32 %v6921_v34, %v6918_v5  ;;  %v6932_v30 = vor.u32 %v6931_v56, %v6927_v44  ;;  %v7894_v58 = vshll.u32 %v7648_v43, 16  ;;  %v7898_v22 = vshrl.u32 %v7648_v43, 16  ;;  %v7652_v5 = vld [vmem:[#allocation3 + $0x98] sm:$0x1]  ;;  %v7217_v43 = vld [vmem:[#allocation3 + $0x84] sm:$0xe] }
 0x3ac   : > { %v6937_v16 = vrot.slane %v6935_v17, 5  ;;  %v7887_v37 = vrot.slane %v7885_v40, 4  ;;  %v7890_v0 = vrot.slane %v7888_v18, 5  ;;  %v7904_v32 = vshll.u32 %v7649_v12, 16  ;;  %v13048_v56 = vld [vmem:[#allocation3 + $0x78] sm:$0xff]  }
 0x3ad   : > { %v6923_v13 = vrot.slane %v6922_v53, 4  ;;  %v6933_v24 = vrot.slane %v6932_v30, 4  ;;  %v7896_v63 = vrot.slane %v7894_v58, 5  ;;  %v7900_v10 = vrot.slane %v7898_v22, 4  ;;  %v6705_v22 = vld [vmem:[#allocation3 + $0x84] sm:$0xf] }
 0x3ae   : > { %v7891_v20 = vor.u32 %v7890_v0, %v7887_v37  ;;  %v7906_v41 = vrot.slane %v7904_v32, 5  ;;  %v11526_v6 = vrot.slane %v7214_v28, 9  ;;  %v7348_v52 = vrot.slane %v7215_v48, 5 }
 0x3af   : > { %v6928_v25 = vsel %vm13248_vm5, %v6923_v13, %v6927_v44  ;;  %v6938_v26 = vsel %vm13248_vm5, %v6933_v24, %v6937_v16  ;;  %v7901_v46 = vor.u32 %v7900_v10, %v7896_v63  ;;  %v7351_v38 = vrot.slane %v7216_v54, 5  ;;  %v7218_v44 = vld [vmem:[#allocation3 + $0x88] sm:$0xf] }
 0x3b0   : > { %v11509_v14 = vcombine.low %v6928_v25, %v6938_v26  ;;  %v7892_v15 = vrot.slane %v7891_v20, 4  ;;  %v7349_v9 = vsel %vm13239_vm4, %v11526_v6, %v7348_v52  ;;  %v7350_v59 = vrot.slane %v7348_v52, 4  ;;  %v6707_v25 = vld [vmem:[#allocation3 + $0x8c] sm:$0x1] }
 0x3b1   : > { %v7902_v7 = vrot.slane %v7901_v46, 4  ;;  %v6940_v8 = vshrl.u32 %v6702_v19, 16  ;;  %v6943_v1 = vshll.u32 %v6702_v19, 16  ;;  %v6949_v33 = vshll.u32 %v6703_v51, 16  ;;  %v6706_v19 = vld [vmem:[#allocation3 + $0x88] sm:$0xf] }
 0x3b2   : > { %9712 = vmatmul.mubr.bf16.gmra.mrb[252].mxu0 %v13047_v49  ;;  %9551 = vmatmul.mubr.bf16.gmra.mrb[220].mxu1 %v11508_v23  ;;  %v7897_v55 = vsel %vm13248_vm5, %v7892_v15, %v7896_v63  ;;  %v7352_v39 = vsel %vm13239_vm4, %v7350_v59, %v7351_v38  ;;  %v6953_v31 = vshrl.u32 %v6703_v51, 16  ;;  %v6959_v62 = vshll.u32 %v6704_v57, 16  ;;  %v7219_v49 = vld [vmem:[#allocation3 + $0x8c] sm:$0x1]  ;;  %v7653_v15 = vld [vmem:[#allocation3 + $0x9c] sm:$0xf] }
 0x3b3   : > { %9719 = vmatprep.mubr.bf16.mxu0 %v11573_v29  ;;  %9558 = vmatprep.mubr.bf16.mxu1 %v11541_v42  ;;  %v7907_v36 = vsel %vm13248_vm5, %v7902_v7, %v7906_v41  ;;  %v11542_v60 = vcombine.low %v7349_v9, %v7352_v39  ;;  %v6942_v35 = vrot.slane %v6940_v8, 4  ;;  %v6945_v27 = vrot.slane %v6943_v1, 5  ;;  %v13050_v9 = vld [vmem:[#allocation3 + $0x84] sm:$0xff]  }
 0x3b4   : > { %v11574_v23 = vcombine.low %v7897_v55, %v7907_v36  ;;  %v6951_v12 = vrot.slane %v6949_v33, 5  ;;  %v6955_v11 = vrot.slane %v6953_v31, 4  ;;  %v6961_v34 = vrot.slane %v6959_v62, 5  ;;  %v7654_v31 = vld [vmem:[#allocation3 + $0xa0] sm:$0xf] }
 0x3b5   : > { %v6946_v29 = vor.u32 %v6945_v27, %v6942_v35  ;;  %v7909_v17 = vshrl.u32 %v7650_v45, 16  ;;  %v7912_v40 = vshll.u32 %v7650_v45, 16  ;;  %v7918_v18 = vshll.u32 %v7651_v21, 16  ;;  %v7655_v62 = vld [vmem:[#allocation3 + $0xa4] sm:$0x1] }
 0x3b6   : > { %v6956_v42 = vor.u32 %v6955_v11, %v6951_v12  ;;  %v7922_v53 = vshrl.u32 %v7651_v21, 16  ;;  %v7928_v30 = vshll.u32 %v7652_v5, 16  ;;  %v11527_v58 = vrot.slane %v7217_v43, 9  ;;  %v7220_v35 = vld [vmem:[#allocation3 + $0x90] sm:$0xe] }
 0x3b7   : > { %v6947_v28 = vrot.slane %v6946_v29, 4  ;;  %v7911_v48 = vrot.slane %v7909_v17, 4  ;;  %v7914_v16 = vrot.slane %v7912_v40, 5  ;;  %v7920_v37 = vrot.slane %v7918_v18, 5  ;;  %v7222_v29 = vld [vmem:[#allocation3 + $0x98] sm:$0x1] }
 0x3b8   : > { %v6957_v0 = vrot.slane %v6956_v42, 4  ;;  %v7924_v32 = vrot.slane %v7922_v53, 4  ;;  %v7930_v54 = vrot.slane %v7928_v30, 5  ;;  %v7355_v13 = vrot.slane %v7218_v44, 5 }
 0x3b9   : > { %v6952_v24 = vsel %vm13248_vm5, %v6947_v28, %v6951_v12  ;;  %v7915_v63 = vor.u32 %v7914_v16, %v7911_v48  ;;  %v7358_v10 = vrot.slane %v7219_v49, 5  ;;  %v6964_v20 = vshrl.u32 %v6705_v22, 16  ;;  %v7221_v12 = vld [vmem:[#allocation3 + $0x94] sm:$0xf] }
 0x3ba   : > { %9720 = vmatmul.mubr.bf16.gmra.mrb[0].mxu0 %v13048_v56  ;;  %9559 = vmatmul.mubr.bf16.gmra.mrb[224].mxu1 %v11509_v14  ;;  %v6962_v41 = vsel %vm13248_vm5, %v6957_v0, %v6961_v34  ;;  %v7925_v6 = vor.u32 %v7924_v32, %v7920_v37  ;;  %v7356_v52 = vsel %vm13239_vm4, %v11527_v58, %v7355_v13  ;;  %v7357_v51 = vrot.slane %v7355_v13, 4 }
 0x3bb   : > { %9727 = vmatprep.mubr.bf16.mxu0 %v11574_v23  ;;  %9566 = vmatprep.mubr.bf16.mxu1 %v11542_v60  ;;  %v11510_v26 = vcombine.low %v6952_v24, %v6962_v41  ;;  %v7916_v46 = vrot.slane %v7915_v63, 4  ;;  %v6966_v38 = vrot.slane %v6964_v20, 4  ;;  %v6967_v57 = vshll.u32 %v6705_v22, 16  ;;  %v6709_v24 = vld [vmem:[#allocation3 + $0x94] sm:$0xf] }
 0x3bc   : > { %v7926_v59 = vrot.slane %v7925_v6, 4  ;;  %v7359_v14 = vsel %vm13239_vm4, %v7357_v51, %v7358_v10  ;;  %v6973_v7 = vshll.u32 %v6706_v19, 16  ;;  %v6977_v8 = vshrl.u32 %v6706_v19, 16  ;;  %v13051_v63 = vld [vmem:[#allocation3 + $0x90] sm:$0xff]   ;;  %v6710_v6 = vld [vmem:[#allocation3 + $0x98] sm:$0x1] }
 0x3bd   : > { %v7921_v1 = vsel %vm13248_vm5, %v7916_v46, %v7920_v37  ;;  %v11543_v33 = vcombine.low %v7356_v52, %v7359_v14  ;;  %v6969_v55 = vrot.slane %v6967_v57, 5  ;;  %v6983_v39 = vshll.u32 %v6707_v25, 16  ;;  %v6708_v37 = vld [vmem:[#allocation3 + $0x90] sm:$0xf]  ;;  %v7656_v46 = vld [vmem:[#allocation3 + $0xa8] sm:$0xf] }
 0x3be   : > { %v7931_v45 = vsel %vm13248_vm5, %v7926_v59, %v7930_v54  ;;  %v6975_v21 = vrot.slane %v6973_v7, 5  ;;  %v6979_v36 = vrot.slane %v6977_v8, 4  ;;  %v7933_v60 = vshrl.u32 %v7653_v15, 16  ;;  %v7657_v59 = vld [vmem:[#allocation3 + $0xac] sm:$0xf] }
 0x3bf   : > { %v11575_v27 = vcombine.low %v7921_v1, %v7931_v45  ;;  %v6970_v5 = vor.u32 %v6969_v55, %v6966_v38  ;;  %v6985_v43 = vrot.slane %v6983_v39, 5  ;;  %v7936_v23 = vshll.u32 %v7653_v15, 16  ;;  %v7658_v14 = vld [vmem:[#allocation3 + $0xb0] sm:$0x1]  ;;  %v7223_v55 = vld [vmem:[#allocation3 + $0x9c] sm:$0xe] }
 0x3c0   : > { %v6980_v11 = vor.u32 %v6979_v36, %v6975_v21  ;;  %v7935_v34 = vrot.slane %v7933_v60, 4  ;;  %v7942_v44 = vshll.u32 %v7654_v31, 16  ;;  %v7946_v56 = vshrl.u32 %v7654_v31, 16  ;;  %v7224_v36 = vld [vmem:[#allocation3 + $0xa0] sm:$0xf] }
 0x3c1   : > { %v6971_v17 = vrot.slane %v6970_v5, 4  ;;  %v7938_v40 = vrot.slane %v7936_v23, 5  ;;  %v7952_v18 = vshll.u32 %v7655_v62, 16  ;;  %v11528_v49 = vrot.slane %v7220_v35, 9  ;;  %v7225_v23 = vld [vmem:[#allocation3 + $0xa4] sm:$0x1] }
 0x3c2   : > { %9728 = vmatmul.mubr.bf16.gmra.mrb[4].mxu0 %v13050_v9  ;;  %9567 = vmatmul.mubr.bf16.gmra.mrb[228].mxu1 %v11510_v26  ;;  %v6981_v42 = vrot.slane %v6980_v11, 4  ;;  %v7944_v53 = vrot.slane %v7942_v44, 5  ;;  %v7948_v30 = vrot.slane %v7946_v56, 4  ;;  %v7362_v58 = vrot.slane %v7221_v12, 5 }
 0x3c3   : > { %9735 = vmatprep.mubr.bf16.mxu0 %v11575_v27  ;;  %9574 = vmatprep.mubr.bf16.mxu1 %v11543_v33  ;;  %v6976_v22 = vsel %vm13248_vm5, %v6971_v17, %v6975_v21  ;;  %v7939_v28 = vor.u32 %v7938_v40, %v7935_v34  ;;  %v7954_v48 = vrot.slane %v7952_v18, 5  ;;  %v7365_v16 = vrot.slane %v7222_v29, 5  ;;  %v6711_v29 = vld [vmem:[#allocation3 + $0x9c] sm:$0xf] }
 0x3c4   : > { %v6986_v0 = vsel %vm13248_vm5, %v6981_v42, %v6985_v43  ;;  %v7949_v32 = vor.u32 %v7948_v30, %v7944_v53  ;;  %v7363_v54 = vsel %vm13239_vm4, %v11528_v49, %v7362_v58  ;;  %v7364_v13 = vrot.slane %v7362_v58, 4  ;;  %v13053_v40 = vld [vmem:[#allocation3 + $0x9c] sm:$0xff]  }
 0x3c5   : > { %v11511_v10 = vcombine.low %v6976_v22, %v6986_v0  ;;  %v7940_v19 = vrot.slane %v7939_v28, 4  ;;  %v12260_v20 = vadd.f32 %v16076_v50, %v16072_v2  ;;  %v12263_v41 = vadd.f32 %v16091_v47, %v16082_v4 }
 0x3c6   : > { %v7950_v52 = vrot.slane %v7949_v32, 4  ;;  %v7366_v51 = vsel %vm13239_vm4, %v7364_v13, %v7365_v16  ;;  %v6988_v25 = vshrl.u32 %v6708_v37, 16  ;;  %v6991_v26 = vshll.u32 %v6708_v37, 16  ;;  %v6712_v32 = vld [vmem:[#allocation3 + $0xa0] sm:$0xf] }
 0x3c7   : > { %v7945_v38 = vsel %vm13248_vm5, %v7940_v19, %v7944_v53  ;;  %v11544_v57 = vcombine.low %v7363_v54, %v7366_v51  ;;  %v6997_v15 = vshll.u32 %v6709_v24, 16  ;;  %v7001_v9 = vshrl.u32 %v6709_v24, 16 }
 0x3c8   : > { %v7955_v2 = vsel %vm13248_vm5, %v7950_v52, %v7954_v48  ;;  %v6990_v50 = vrot.slane %v6988_v25, 4  ;;  %v6993_v4 = vrot.slane %v6991_v26, 5  ;;  %v7007_v47 = vshll.u32 %v6710_v6, 16 }
 0x3c9   : > { %v11576_v7 = vcombine.low %v7945_v38, %v7955_v2  ;;  %v6999_v8 = vrot.slane %v6997_v15, 5  ;;  %v7003_v1 = vrot.slane %v7001_v9, 4  ;;  %v7957_v33 = vshrl.u32 %v7656_v46, 16 }
 0x3ca   : > { %9736 = vmatmul.mubr.bf16.gmra.mrb[8].mxu0 %v13051_v63  ;;  %9575 = vmatmul.mubr.bf16.gmra.mrb[232].mxu1 %v11511_v10  ;;  %v6994_v31 = vor.u32 %v6993_v4, %v6990_v50  ;;  %v7009_v62 = vrot.slane %v7007_v47, 5  ;;  %v7960_v45 = vshll.u32 %v7656_v46, 16  ;;  %v7966_v21 = vshll.u32 %v7657_v59, 16  ;;  %v6713_v63 = vld [vmem:[#allocation3 + $0xa4] sm:$0x1] }
 0x3cb   : > { %9743 = vmatprep.mubr.bf16.mxu0 %v11576_v7  ;;  %9582 = vmatprep.mubr.bf16.mxu1 %v11544_v57  ;;  %v7004_v35 = vor.u32 %v7003_v1, %v6999_v8  ;;  %v7959_v27 = vrot.slane %v7957_v33, 4  ;;  %v7970_v5 = vshrl.u32 %v7657_v59, 16  ;;  %v7976_v43 = vshll.u32 %v7658_v14, 16  ;;  %v7660_v50 = vld [vmem:[#allocation3 + $0xb8] sm:$0xf] }
 0x3cc   : > { %v6995_v34 = vrot.slane %v6994_v31, 4  ;;  %v7962_v44 = vrot.slane %v7960_v45, 5  ;;  %v7968_v56 = vrot.slane %v7966_v21, 5  ;;  %v11529_v53 = vrot.slane %v7223_v55, 9  ;;  %v7661_v1 = vld [vmem:[#allocation3 + $0xbc] sm:$0x1] }
 0x3cd   : > { %v12370_v39 = vpop.f32.mrb[160].mxu0  ;;  %v7005_v18 = vrot.slane %v7004_v35, 4  ;;  %v7972_v49 = vrot.slane %v7970_v5, 4  ;;  %v7978_v42 = vrot.slane %v7976_v43, 5  ;;  %v7369_v37 = vrot.slane %v7224_v36, 5 }
 0x3ce   : > { %v12371_v60 = vpop.f32.mrb[161].mxu0  ;;  %v7000_v22 = vsel %vm13248_vm5, %v6995_v34, %v6999_v8  ;;  %v7963_v28 = vor.u32 %v7962_v44, %v7959_v27  ;;  %v7372_v0 = vrot.slane %v7225_v23, 5  ;;  %v7012_v10 = vshrl.u32 %v6711_v29, 16  ;;  %v7226_v36 = vld [vmem:[#allocation3 + $0xa8] sm:$0xe] }
 0x3cf   : > { %v12372_v12 = vadd.f32 %v12371_v60, %v12370_v39  ;;  %v12373_v11 = vpop.f32.mrb[162].mxu0  ;;  %v7010_v48 = vsel %vm13248_vm5, %v7005_v18, %v7009_v62  ;;  %v7973_v16 = vor.u32 %v7972_v49, %v7968_v56  ;;  %v7371_v6 = vrot.slane %v7369_v37, 4  ;;  %v13054_v39 = vld [vmem:[#allocation3 + $0xa8] sm:$0xff]  }
 0x3d0   : > { %v12374_v17 = vpop.f32.mrb[163].mxu0  ;;  %v11512_v13 = vcombine.low %v7000_v22, %v7010_v48  ;;  %v7964_v24 = vrot.slane %v7963_v28, 4  ;;  %v7015_v52 = vshll.u32 %v6711_v29, 16  ;;  %v7014_v26 = vrot.slane %v7012_v10, 4  ;;  %v7227_v23 = vld [vmem:[#allocation3 + $0xac] sm:$0xf] }
 0x3d1   : > { %v16321_v30 = vadd.f32 %v12372_v12, %v12260_v20  ;;  %v12375_v58 = vadd.f32 %v12374_v17, %v12373_v11  ;;  %v7974_v19 = vrot.slane %v7973_v16, 4  ;;  %v7370_v20 = vsel %vm13239_vm4, %v11529_v53, %v7369_v37  ;;  %v7228_v29 = vld [vmem:[#allocation3 + $0xb0] sm:$0x1] }
 0x3d2   : > { %9744 = vmatmul.mubr.bf16.gmra.mrb[12].mxu0 %v13053_v40  ;;  %9583 = vmatmul.mubr.bf16.gmra.mrb[236].mxu1 %v11512_v13  ;;  %v7969_v51 = vsel %vm13248_vm5, %v7964_v24, %v7968_v56  ;;  %v7021_v46 = vshll.u32 %v6712_v32, 16  ;;  %v7025_v38 = vshrl.u32 %v6712_v32, 16  ;;  %v7373_v15 = vsel %vm13239_vm4, %v7371_v6, %v7372_v0  ;;  %v6714_v13 = vld [vmem:[#allocation3 + $0xa8] sm:$0xf]  ;;  %v6715_v6 = vld [vmem:[#allocation3 + $0xac] sm:$0xf] }
 0x3d3   : > { %v16327_v54 = vadd.f32 %v12375_v58, %v12263_v41  ;;  %v7659_v41 = vld [vmem:[#allocation3 + $0xb4] sm:$0xf]  ;;  %v7979_v57 = vsel %vm13248_vm5, %v7974_v19, %v7978_v42  ;;  %v7017_v59 = vrot.slane %v7015_v52, 5  ;;  %v7031_v2 = vshll.u32 %v6713_v63, 16 }
 0x3d4   : > { %v11577_v4 = vcombine.low %v7969_v51, %v7979_v57  ;;  %v11545_v47 = vcombine.low %v7370_v20, %v7373_v15  ;;  %v7023_v8 = vrot.slane %v7021_v46, 5  ;;  %v7027_v62 = vrot.slane %v7025_v38, 4 }
 0x3d5   : > { %v12376_v25 = vpop.f32.mrb[164].mxu0  ;;  %v12264_v33 = vpop.f32.mrb[132].mxu1  ;;  %v7018_v31 = vor.u32 %v7017_v59, %v7014_v26  ;;  %v7033_v45 = vrot.slane %v7031_v2, 5  ;;  %v7981_v21 = vshrl.u32 %v7659_v41, 16  ;;  %v7984_v27 = vshll.u32 %v7659_v41, 16 }
 0x3d6   : > { %v12377_v9 = vpop.f32.mrb[165].mxu0  ;;  %9751 = vmatprep.mubr.bf16.mxu0 %v11577_v4  ;;  %9590 = vmatprep.mubr.bf16.mxu1 %v11545_v47  ;;  %v12265_v60 = vpop.f32.mrb[133].mxu1  ;;  %v7990_v5 = vshll.u32 %v7660_v50, 16  ;;  %v7994_v43 = vshrl.u32 %v7660_v50, 16  ;;  %v7028_v44 = vor.u32 %v7027_v62, %v7023_v8  ;;  %v8000_v42 = vshll.u32 %v7661_v1, 16 }
 0x3d7   : > { %v12378_v14 = vadd.f32 %v12377_v9, %v12376_v25  ;;  %v12379_v7 = vpop.f32.mrb[166].mxu0  ;;  %v12266_v12 = vadd.f32 %v12265_v60, %v12264_v33  ;;  %v12267_v11 = vpop.f32.mrb[134].mxu1  ;;  %v7019_v34 = vrot.slane %v7018_v31, 4  ;;  %v7983_v56 = vrot.slane %v7981_v21, 4  ;;  %v7663_v62 = vld [vmem:[#allocation3 + $0xc4] sm:$0xf] }
 0x3d8   : > { %v12380_v55 = vpop.f32.mrb[167].mxu0  ;;  %v12268_v17 = vpop.f32.mrb[135].mxu1  ;;  %v7986_v40 = vrot.slane %v7984_v27, 5  ;;  %v7992_v18 = vrot.slane %v7990_v5, 5  ;;  %v7996_v49 = vrot.slane %v7994_v43, 4  ;;  %v7029_v28 = vrot.slane %v7028_v44, 4 }
 0x3d9   : > { %v12381_v35 = vadd.f32 %v12380_v55, %v12379_v7  ;;  %v16337_v53 = vadd.f32 %v12378_v14, %v12266_v12  ;;  %v12269_v58 = vadd.f32 %v12268_v17, %v12267_v11  ;;  %v7024_v22 = vsel %vm13248_vm5, %v7019_v34, %v7023_v8  ;;  %v6716_v14 = vld [vmem:[#allocation3 + $0xb0] sm:$0x1]  ;;  %v7662_v8 = vld [vmem:[#allocation3 + $0xc0] sm:$0xf]  ;;  %v7664_v12 = vld [vmem:[#allocation3 + $0xc8] sm:$0x1] }
 0x3da   : > { %9752 = vmatmul.mubr.bf16.gmra.mrb[16].mxu0 %v13054_v39  ;;  %v7987_v48 = vor.u32 %v7986_v40, %v7983_v56  ;;  %v7997_v16 = vor.u32 %v7996_v49, %v7992_v18  ;;  %v8002_v37 = vrot.slane %v8000_v42, 5  ;;  %v11530_v0 = vrot.slane %v7226_v36, 9  ;;  %v13056_v36 = vld [vmem:[#allocation3 + $0xb4] sm:$0xff]  }
 0x3db   : > { %v16341_v24 = vadd.f32 %v12381_v35, %v12269_v58  ;;  %v7034_v63 = vsel %vm13248_vm5, %v7029_v28, %v7033_v45  ;;  %v7376_v10 = vrot.slane %v7227_v23, 5  ;;  %v7379_v19 = vrot.slane %v7228_v29, 5  ;;  %v7229_v34 = vld [vmem:[#allocation3 + $0xb4] sm:$0xe]  ;;  %v7230_v40 = vld [vmem:[#allocation3 + $0xb8] sm:$0xf] }
 0x3dc   : > { %v11513_v52 = vcombine.low %v7024_v22, %v7034_v63  ;;  %v7988_v51 = vrot.slane %v7987_v48, 4  ;;  %v7998_v25 = vrot.slane %v7997_v16, 4  ;;  %v7036_v9 = vshrl.u32 %v6714_v13, 16  ;;  %v7231_v28 = vld [vmem:[#allocation3 + $0xbc] sm:$0x1] }
 0x3dd   : > { %v12382_v32 = vpop.f32.mrb[168].mxu0  ;;  %v7377_v38 = vsel %vm13239_vm4, %v11530_v0, %v7376_v10  ;;  %v7378_v41 = vrot.slane %v7376_v10, 4  ;;  %v12270_v57 = vpop.f32.mrb[136].mxu1  ;;  %v7039_v59 = vshll.u32 %v6714_v13, 16  ;;  %v7045_v7 = vshll.u32 %v6715_v6, 16 }
 0x3de   : > { %v12383_v20 = vpop.f32.mrb[169].mxu0  ;;  %9591 = vmatmul.mubr.bf16.gmra.mrb[240].mxu1 %v11513_v52  ;;  %v7993_v2 = vsel %vm13248_vm5, %v7988_v51, %v7992_v18  ;;  %v8003_v50 = vsel %vm13248_vm5, %v7998_v25, %v8002_v37  ;;  %v12271_v4 = vpop.f32.mrb[137].mxu1  ;;  %v7038_v31 = vrot.slane %v7036_v9, 4  ;;  %v7049_v27 = vshrl.u32 %v6715_v6, 16 }
 0x3df   : > { %v12384_v26 = vadd.f32 %v12383_v20, %v12382_v32  ;;  %v12385_v46 = vpop.f32.mrb[170].mxu0  ;;  %v11578_v1 = vcombine.low %v7993_v2, %v8003_v50  ;;  %v7380_v33 = vsel %vm13239_vm4, %v7378_v41, %v7379_v19  ;;  %v12272_v55 = vadd.f32 %v12271_v4, %v12270_v57  ;;  %v12273_v39 = vpop.f32.mrb[138].mxu1 }
 0x3e0   : > { %v12386_v15 = vpop.f32.mrb[171].mxu0  ;;  %v11546_v45 = vcombine.low %v7377_v38, %v7380_v33  ;;  %v12274_v21 = vpop.f32.mrb[139].mxu1  ;;  %v7041_v60 = vrot.slane %v7039_v59, 5  ;;  %v7047_v35 = vrot.slane %v7045_v7, 5  ;;  %v7055_v23 = vshll.u32 %v6716_v14, 16 }
 0x3e1   : > { %v12387_v47 = vadd.f32 %v12386_v15, %v12385_v46  ;;  %9759 = vmatprep.mubr.bf16.mxu0 %v11578_v1  ;;  %v16353_v5 = vadd.f32 %v12384_v26, %v12272_v55  ;;  %v12275_v43 = vadd.f32 %v12274_v21, %v12273_v39  ;;  %v8005_v11 = vshrl.u32 %v7662_v8, 16  ;;  %v6717_v7 = vld [vmem:[#allocation3 + $0xb4] sm:$0xf] }
 0x3e2   : > { %9598 = vmatprep.mubr.bf16.mxu1 %v11546_v45  ;;  %9760 = vmatmul.mubr.bf16.gmra.mrb[20].mxu0 %v13056_v36  ;;  %v7042_v44 = vor.u32 %v7041_v60, %v7038_v31  ;;  %v7051_v56 = vrot.slane %v7049_v27, 4  ;;  %v8008_v29 = vshll.u32 %v7662_v8, 16  ;;  %v8014_v17 = vshll.u32 %v7663_v62, 16  ;;  %v6718_v8 = vld [vmem:[#allocation3 + $0xb8] sm:$0xf] }
 0x3e3   : > { %v16355_v49 = vadd.f32 %v12387_v47, %v12275_v43  ;;  %v7057_v42 = vrot.slane %v7055_v23, 5  ;;  %v8007_v58 = vrot.slane %v8005_v11, 4  ;;  %v8018_v22 = vshrl.u32 %v7663_v62, 16  ;;  %v6719_v31 = vld [vmem:[#allocation3 + $0xbc] sm:$0x1] }
 0x3e4   : > { %v7043_v16 = vrot.slane %v7042_v44, 4  ;;  %v7052_v37 = vor.u32 %v7051_v56, %v7047_v35  ;;  %v8010_v0 = vrot.slane %v8008_v29, 5  ;;  %v8016_v32 = vrot.slane %v8014_v17, 5  ;;  %v7232_v60 = vld [vmem:[#allocation3 + $0xc0] sm:$0xe] }
 0x3e5   : > { %v12388_v18 = vpop.f32.mrb[172].mxu0  ;;  %v8020_v63 = vrot.slane %v8018_v22, 4  ;;  %v8024_v10 = vshll.u32 %v7664_v12, 16  ;;  %v11531_v19 = vrot.slane %v7229_v34, 9  ;;  %v7383_v20 = vrot.slane %v7230_v40, 5  ;;  %v12276_v6 = vpop.f32.mrb[140].mxu1 }
 0x3e6   : > { %v12389_v48 = vpop.f32.mrb[173].mxu0  ;;  %v7048_v51 = vsel %vm13248_vm5, %v7043_v16, %v7047_v35  ;;  %v7053_v25 = vrot.slane %v7052_v37, 4  ;;  %v8011_v26 = vor.u32 %v8010_v0, %v8007_v58  ;;  %v7386_v46 = vrot.slane %v7231_v28, 5  ;;  %v12277_v38 = vpop.f32.mrb[141].mxu1  ;;  %v7233_v35 = vld [vmem:[#allocation3 + $0xc4] sm:$0xf] }
 0x3e7   : > { %v12391_v13 = vpop.f32.mrb[174].mxu0  ;;  %v8021_v41 = vor.u32 %v8020_v63, %v8016_v32  ;;  %v8026_v57 = vrot.slane %v8024_v10, 5  ;;  %v7384_v15 = vsel %vm13239_vm4, %v11531_v19, %v7383_v20  ;;  %v7385_v9 = vrot.slane %v7383_v20, 4  ;;  %v12279_v59 = vpop.f32.mrb[142].mxu1  ;;  %v7234_v34 = vld [vmem:[#allocation3 + $0xc8] sm:$0x1] }
 0x3e8   : > { %v12392_v52 = vpop.f32.mrb[175].mxu0  ;;  %v7058_v2 = vsel %vm13248_vm5, %v7053_v25, %v7057_v42  ;;  %v8012_v50 = vrot.slane %v8011_v26, 4  ;;  %v12390_v4 = vadd.f32 %v12389_v48, %v12388_v18  ;;  %v12278_v47 = vadd.f32 %v12277_v38, %v12276_v6  ;;  %v12280_v14 = vpop.f32.mrb[143].mxu1  ;;  %v13057_v17 = vld [vmem:[#allocation3 + $0xc0] sm:$0xff]  }
 0x3e9   : > { %v11514_v1 = vcombine.low %v7048_v51, %v7058_v2  ;;  %v8022_v33 = vrot.slane %v8021_v41, 4  ;;  %v7387_v55 = vsel %vm13239_vm4, %v7385_v9, %v7386_v46  ;;  %v12393_v39 = vadd.f32 %v12392_v52, %v12391_v13  ;;  %v6720_v58 = vld [vmem:[#allocation3 + $0xc0] sm:$0xf]  ;;  %v6721_v26 = vld [vmem:[#allocation3 + $0xc4] sm:$0xf] }
 0x3ea   : > { %v8017_v62 = vsel %vm13248_vm5, %v8012_v50, %v8016_v32  ;;  %v11547_v45 = vcombine.low %v7384_v15, %v7387_v55  ;;  %v16367_v21 = vadd.f32 %v12390_v4, %v12278_v47  ;;  %v12281_v36 = vadd.f32 %v12280_v14, %v12279_v59  ;;  %v6722_v50 = vld [vmem:[#allocation3 + $0xc8] sm:$0x1]  ;;  %v7665_v47 = vld [vmem:[#allocation3 + $0xcc] sm:$0xf] }
 0x3eb   : > { %9599 = vmatmul.mubr.bf16.gmra.mrb[244].mxu1 %v11514_v1  ;;  %v8027_v43 = vsel %vm13248_vm5, %v8022_v33, %v8026_v57  ;;  %v7060_v23 = vshrl.u32 %v6717_v7, 16  ;;  %v7063_v12 = vshll.u32 %v6717_v7, 16  ;;  %v7069_v11 = vshll.u32 %v6718_v8, 16  ;;  %v7666_v33 = vld [vmem:[#allocation3 + $0xd0] sm:$0xf] }
 0x3ec   : > { %v11579_v56 = vcombine.low %v8017_v62, %v8027_v43  ;;  %9606 = vmatprep.mubr.bf16.mxu1 %v11547_v45  ;;  %v16371_v29 = vadd.f32 %v12393_v39, %v12281_v36  ;;  %v7073_v40 = vshrl.u32 %v6718_v8, 16  ;;  %v7079_v18 = vshll.u32 %v6719_v31, 16  ;;  %v7667_v36 = vld [vmem:[#allocation3 + $0xd4] sm:$0x1] }
 0x3ed   : > { %v12394_v27 = vpop.f32.mrb[176].mxu0  ;;  %v7062_v22 = vrot.slane %v7060_v23, 4  ;;  %v7065_v28 = vrot.slane %v7063_v12, 5  ;;  %v7071_v48 = vrot.slane %v7069_v11, 5  ;;  %v11532_v16 = vrot.slane %v7232_v60, 9  ;;  %v12282_v37 = vpop.f32.mrb[144].mxu1 }
 0x3ee   : > { %v12395_v44 = vpop.f32.mrb[177].mxu0  ;;  %9767 = vmatprep.mubr.bf16.mxu0 %v11579_v56  ;;  %v7075_v32 = vrot.slane %v7073_v40, 4  ;;  %v7081_v13 = vrot.slane %v7079_v18, 5  ;;  %v7390_v63 = vrot.slane %v7233_v35, 5  ;;  %v7393_v10 = vrot.slane %v7234_v34, 5  ;;  %v12283_v19 = vpop.f32.mrb[145].mxu1 }
 0x3ef   : > { %v12397_v42 = vpop.f32.mrb[178].mxu0  ;;  %9768 = vmatmul.mubr.bf16.gmra.mrb[24].mxu0 %v13057_v17  ;;  %v7066_v20 = vor.u32 %v7065_v28, %v7062_v22  ;;  %v12396_v6 = vadd.f32 %v12395_v44, %v12394_v27  ;;  %v12284_v52 = vadd.f32 %v12283_v19, %v12282_v37  ;;  %v12285_v51 = vpop.f32.mrb[146].mxu1  ;;  %v7084_v15 = vshrl.u32 %v6720_v58, 16  ;;  %v8132_v60 = vld [vmem:[#allocation3 + $0x18] sm:$0xe] }
 0x3f0   : > { %v12398_v0 = vpop.f32.mrb[179].mxu0  ;;  %v7076_v46 = vor.u32 %v7075_v32, %v7071_v48  ;;  %v7391_v38 = vsel %vm13239_vm4, %v11532_v16, %v7390_v63  ;;  %v7392_v41 = vrot.slane %v7390_v63, 4  ;;  %v12286_v57 = vpop.f32.mrb[147].mxu1  ;;  %v7087_v4 = vshll.u32 %v6720_v58, 16  ;;  %v8133_v11 = vld [vmem:[#allocation3 + $0x1c] sm:$0xf] }
 0x3f1   : > { %v12399_v25 = vadd.f32 %v12398_v0, %v12397_v42  ;;  %v7067_v9 = vrot.slane %v7066_v20, 4  ;;  %v16375_v59 = vadd.f32 %v12396_v6, %v12284_v52  ;;  %v12287_v2 = vadd.f32 %v12286_v57, %v12285_v51  ;;  %v8134_v18 = vld [vmem:[#allocation3 + $0x20] sm:$0x1] }
 0x3f2   : > { %v7077_v14 = vrot.slane %v7076_v46, 4  ;;  %v7394_v7 = vsel %vm13239_vm4, %v7392_v41, %v7393_v10  ;;  %v7086_v8 = vrot.slane %v7084_v15, 4  ;;  %v7093_v1 = vshll.u32 %v6721_v26, 16 }
 0x3f3   : > { %v7072_v39 = vsel %vm13248_vm5, %v7067_v9, %v7071_v48  ;;  %v11548_v31 = vcombine.low %v7391_v38, %v7394_v7  ;;  %v16381_v62 = vadd.f32 %v12399_v25, %v12287_v2  ;;  %v7089_v45 = vrot.slane %v7087_v4, 5 }
 0x3f4   : > { %v7082_v27 = vsel %vm13248_vm5, %v7077_v14, %v7081_v13  ;;  %v7095_v43 = vrot.slane %v7093_v1, 5  ;;  %v7097_v23 = vshrl.u32 %v6721_v26, 16  ;;  %v7103_v12 = vshll.u32 %v6722_v50, 16 }
 0x3f5   : > { %v12400_v55 = vpop.f32.mrb[180].mxu0  ;;  %v11515_v44 = vcombine.low %v7072_v39, %v7082_v27  ;;  %v7090_v56 = vor.u32 %v7089_v45, %v7086_v8  ;;  %v8029_v17 = vshrl.u32 %v7665_v47, 16  ;;  %v8032_v40 = vshll.u32 %v7665_v47, 16  ;;  %v12288_v42 = vpop.f32.mrb[148].mxu1  ;;  %v8136_v45 = vld [vmem:[#allocation3 + $0x28] sm:$0xf] }
 0x3f6   : > { %v12401_v35 = vpop.f32.mrb[181].mxu0  ;;  %v7099_v22 = vrot.slane %v7097_v23, 4  ;;  %v7105_v28 = vrot.slane %v7103_v12, 5  ;;  %v8038_v48 = vshll.u32 %v7666_v33, 16  ;;  %v8042_v16 = vshrl.u32 %v7666_v33, 16  ;;  %v12289_v37 = vpop.f32.mrb[149].mxu1 }
 0x3f7   : > { %v12403_v34 = vpop.f32.mrb[182].mxu0  ;;  %9607 = vmatmul.mubr.bf16.gmra.mrb[248].mxu1 %v11515_v44  ;;  %v7091_v0 = vrot.slane %v7090_v56, 4  ;;  %v8031_v32 = vrot.slane %v8029_v17, 4  ;;  %v8034_v13 = vrot.slane %v8032_v40, 5  ;;  %v8048_v63 = vshll.u32 %v7667_v36, 16  ;;  %v12291_v10 = vpop.f32.mrb[150].mxu1 }
 0x3f8   : > { %v12404_v58 = vpop.f32.mrb[183].mxu0  ;;  %9614 = vmatprep.mubr.bf16.mxu1 %v11548_v31  ;;  %v7100_v19 = vor.u32 %v7099_v22, %v7095_v43  ;;  %v8040_v20 = vrot.slane %v8038_v48, 5  ;;  %v8044_v6 = vrot.slane %v8042_v16, 4  ;;  %v11581_v52 = vrot.slane %v8132_v60, 9  ;;  %v12292_v51 = vpop.f32.mrb[151].mxu1  ;;  %v13059_v56 = vld [vmem:[#allocation3 + $0xcc] sm:$0xff]  }
 0x3f9   : > { %v7096_v25 = vsel %vm13248_vm5, %v7091_v0, %v7095_v43  ;;  %v8035_v26 = vor.u32 %v8034_v13, %v8031_v32  ;;  %v8050_v46 = vrot.slane %v8048_v63, 5  ;;  %v8230_v38 = vrot.slane %v8133_v11, 5  ;;  %v8135_v31 = vld [vmem:[#allocation3 + $0x24] sm:$0xe]  ;;  %v8137_v43 = vld [vmem:[#allocation3 + $0x2c] sm:$0x1] }
 0x3fa   : > { %v7101_v41 = vrot.slane %v7100_v19, 4  ;;  %v8045_v57 = vor.u32 %v8044_v6, %v8040_v20  ;;  %v8233_v15 = vrot.slane %v8134_v18, 5  ;;  %v12402_v9 = vadd.f32 %v12401_v35, %v12400_v55  ;;  %v8139_v23 = vld [vmem:[#allocation3 + $0x34] sm:$0xf]  ;;  %v8138_v40 = vld [vmem:[#allocation3 + $0x30] sm:$0xe] }
 0x3fb   : > { %v8036_v50 = vrot.slane %v8035_v26, 4  ;;  %v8231_v4 = vsel %vm13239_vm4, %v11581_v52, %v8230_v38  ;;  %v8232_v47 = vrot.slane %v8230_v38, 4  ;;  %v12290_v14 = vadd.f32 %v12289_v37, %v12288_v42  ;;  %v8142_v63 = vld [vmem:[#allocation3 + $0x40] sm:$0xf]  ;;  %v8145_v52 = vld [vmem:[#allocation3 + $0x4c] sm:$0xf] }
 0x3fc   : > { %v7106_v8 = vsel %vm13248_vm5, %v7101_v41, %v7105_v28  ;;  %v8046_v1 = vrot.slane %v8045_v57, 4  ;;  %v12405_v33 = vadd.f32 %v12404_v58, %v12403_v34  ;;  %v12293_v39 = vadd.f32 %v12292_v51, %v12291_v10  ;;  %v8140_v28 = vld [vmem:[#allocation3 + $0x38] sm:$0x1] }
 0x3fd   : > { %v12406_v2 = vpop.f32.mrb[184].mxu0  ;;  %v11516_v60 = vcombine.low %v7096_v25, %v7106_v8  ;;  %v8041_v55 = vsel %vm13248_vm5, %v8036_v50, %v8040_v20  ;;  %v8234_v35 = vsel %vm13239_vm4, %v8232_v47, %v8233_v15  ;;  %v16395_v27 = vadd.f32 %v12402_v9, %v12290_v14  ;;  %v12294_v12 = vpop.f32.mrb[152].mxu1  ;;  %v8143_v8 = vld [vmem:[#allocation3 + $0x44] sm:$0x1] }
 0x3fe   : > { %v12407_v7 = vpop.f32.mrb[185].mxu0  ;;  %v8051_v34 = vsel %vm13248_vm5, %v8046_v1, %v8050_v46  ;;  %v11597_v44 = vcombine.low %v8231_v4, %v8234_v35  ;;  %v16399_v17 = vadd.f32 %v12405_v33, %v12293_v39  ;;  %v12295_v18 = vpop.f32.mrb[153].mxu1  ;;  %v11582_v58 = vrot.slane %v8135_v31, 9 }
 0x3ff   : > { %v12409_v36 = vpop.f32.mrb[186].mxu0  ;;  %9615 = vmatmul.mubr.bf16.gmra.mrb[252].mxu1 %v11516_v60  ;;  %v11580_v42 = vcombine.low %v8041_v55, %v8051_v34  ;;  %v8237_v22 = vrot.slane %v8136_v45, 5  ;;  %v12297_v48 = vpop.f32.mrb[154].mxu1  ;;  %v8240_v16 = vrot.slane %v8137_v43, 5  ;;  %v8244_v37 = vrot.slane %v8139_v23, 5 }
 0x400   : > { %v12410_v11 = vpop.f32.mrb[187].mxu0  ;;  %12778 = vmatprep.mubr.bf16.mxu1 %v11597_v44  ;;  %v12408_v0 = vadd.f32 %v12407_v7, %v12406_v2  ;;  %v12296_v32 = vadd.f32 %v12295_v18, %v12294_v12  ;;  %v12298_v13 = vpop.f32.mrb[155].mxu1  ;;  %v11583_v19 = vrot.slane %v8138_v40, 9  ;;  %v8247_v25 = vrot.slane %v8140_v28, 5  ;;  %v8141_v7 = vld [vmem:[#allocation3 + $0x3c] sm:$0xe] }
 0x401   : > { %9775 = vmatprep.mubr.bf16.mxu0 %v11580_v42  ;;  %v8239_v10 = vrot.slane %v8237_v22, 4  ;;  %v12411_v20 = vadd.f32 %v12410_v11, %v12409_v36  ;;  %v12299_v6 = vadd.f32 %v12298_v13, %v12297_v48  ;;  %v8246_v51 = vrot.slane %v8244_v37, 4  ;;  %v8144_v45 = vld [vmem:[#allocation3 + $0x48] sm:$0xe]  ;;  %v8146_v36 = vld [vmem:[#allocation3 + $0x50] sm:$0x1] }
 0x402   : > { %9776 = vmatmul.mubr.bf16.gmra.mrb[28].mxu0 %v13059_v56  ;;  %v16401_v26 = vadd.f32 %v12408_v0, %v12296_v32  ;;  %v8251_v57 = vrot.slane %v8142_v63, 5  ;;  %v8238_v9 = vsel %vm13239_vm4, %v11582_v58, %v8237_v22  ;;  %v8258_v50 = vrot.slane %v8145_v52, 5  ;;  %v8148_v11 = vld [vmem:[#allocation3 + $0x58] sm:$0xf]  ;;  %v8151_v40 = vld [vmem:[#allocation3 + $0x64] sm:$0xf] }
 0x403   : > { %v8241_v38 = vsel %vm13239_vm4, %v8239_v10, %v8240_v16  ;;  %v16405_v41 = vadd.f32 %v12411_v20, %v12299_v6  ;;  %v8248_v2 = vsel %vm13239_vm4, %v8246_v51, %v8247_v25  ;;  %v8245_v14 = vsel %vm13239_vm4, %v11583_v19, %v8244_v37  ;;  %v8147_v52 = vld [vmem:[#allocation3 + $0x54] sm:$0xe]  ;;  %v8149_v51 = vld [vmem:[#allocation3 + $0x5c] sm:$0x1] }
 0x404   : > { %v11598_v47 = vcombine.low %v8238_v9, %v8241_v38  ;;  %v11599_v39 = vcombine.low %v8245_v14, %v8248_v2  ;;  %v8253_v31 = vrot.slane %v8251_v57, 4  ;;  %v8260_v43 = vrot.slane %v8258_v50, 4  ;;  %v8150_v9 = vld [vmem:[#allocation3 + $0x60] sm:$0xe]  ;;  %v8152_v2 = vld [vmem:[#allocation3 + $0x68] sm:$0x1] }
 0x405   : > { %v12412_v46 = vpop.f32.mrb[188].mxu0  ;;  %v12300_v1 = vpop.f32.mrb[156].mxu1  ;;  %v11584_v34 = vrot.slane %v8141_v7, 9  ;;  %v8254_v44 = vrot.slane %v8143_v8, 5  ;;  %v11585_v18 = vrot.slane %v8144_v45, 9  ;;  %v8261_v42 = vrot.slane %v8146_v36, 5 }
 0x406   : > { %v12413_v15 = vpop.f32.mrb[189].mxu0  ;;  %v12301_v55 = vpop.f32.mrb[157].mxu1  ;;  %v8265_v48 = vrot.slane %v8148_v11, 5  ;;  %v8272_v32 = vrot.slane %v8151_v40, 5  ;;  %v8154_v8 = vld [vmem:[#allocation3 + $0x70] sm:$0xf] }
 0x407   : > { %v12415_v4 = vpop.f32.mrb[190].mxu0  ;;  %v12414_v60 = vadd.f32 %v12413_v15, %v12412_v46  ;;  %12779 = vmatmul.mubr.bf16.vlgmr.msra.gmra.mrb[0].mxu1 %v11598_v47  ;;  %v12302_v23 = vadd.f32 %v12301_v55, %v12300_v1  ;;  %v12303_v12 = vpop.f32.mrb[158].mxu1  ;;  %v8255_v28 = vsel %vm13239_vm4, %v8253_v31, %v8254_v44  ;;  %v8262_v37 = vsel %vm13239_vm4, %v8260_v43, %v8261_v42 }
 0x408   : > { %v12416_v33 = vpop.f32.mrb[191].mxu0  ;;  %12782 = vmatprep.mubr.bf16.mxu1 %v11599_v39  ;;  %v12304_v56 = vpop.f32.mrb[159].mxu1  ;;  %v8252_v63 = vsel %vm13239_vm4, %v11584_v34, %v8251_v57  ;;  %v8259_v6 = vsel %vm13239_vm4, %v11585_v18, %v8258_v50  ;;  %v8267_v15 = vrot.slane %v8265_v48, 4  ;;  %v8274_v14 = vrot.slane %v8272_v32, 4  ;;  %v8157_v50 = vld [vmem:[#allocation3 + $0x7c] sm:$0xf] }
 0x409   : > { %v12417_v35 = vadd.f32 %v12416_v33, %v12415_v4  ;;  %v16413_v58 = vadd.f32 %v12414_v60, %v12302_v23  ;;  %v12305_v22 = vadd.f32 %v12304_v56, %v12303_v12  ;;  %v11600_v20 = vcombine.low %v8252_v63, %v8255_v28  ;;  %v8155_v28 = vld [vmem:[#allocation3 + $0x74] sm:$0x1] }
 0x40a   : > { %v11601_v38 = vcombine.low %v8259_v6, %v8262_v37  ;;  %v11586_v1 = vrot.slane %v8147_v52, 9  ;;  %v8268_v33 = vrot.slane %v8149_v51, 5  ;;  %v11587_v31 = vrot.slane %v8150_v9, 9 }
 0x40b   : > { %v16419_v0 = vadd.f32 %v12417_v35, %v12305_v22  ;;  %v8275_v45 = vrot.slane %v8152_v2, 5  ;;  %v8279_v35 = vrot.slane %v8154_v8, 5  ;;  %v8286_v11 = vrot.slane %v8157_v50, 5  ;;  %v8153_v22 = vld [vmem:[#allocation3 + $0x6c] sm:$0xe] }
 0x40c   : > { %v8269_v55 = vsel %vm13239_vm4, %v8267_v15, %v8268_v33  ;;  %v8266_v44 = vsel %vm13239_vm4, %v11586_v1, %v8265_v48  ;;  %v8273_v42 = vsel %vm13239_vm4, %v11587_v31, %v8272_v32  ;;  %v8163_v32 = vld [vmem:[#allocation3 + $0x94] sm:$0xf] }
 0x40d   : > { %v12418_v16 = vpop.f32.mrb[192].mxu0  ;;  %v12306_v25 = vpop.f32.mrb[160].mxu1  ;;  %v8276_v23 = vsel %vm13239_vm4, %v8274_v14, %v8275_v45  ;;  %v11602_v18 = vcombine.low %v8266_v44, %v8269_v55  ;;  %v8281_v63 = vrot.slane %v8279_v35, 4  ;;  %v8288_v52 = vrot.slane %v8286_v11, 4 }
 0x40e   : > { %v12419_v13 = vpop.f32.mrb[193].mxu0  ;;  %v12307_v4 = vpop.f32.mrb[161].mxu1  ;;  %v8300_v33 = vrot.slane %v8163_v32, 5 }
 0x40f   : > { %v12420_v10 = vadd.f32 %v12419_v13, %v12418_v16  ;;  %v12421_v19 = vpop.f32.mrb[194].mxu0  ;;  %12783 = vmatmul.mubr.bf16.gmra.mrb[4].mxu1 %v11600_v20  ;;  %v12308_v7 = vadd.f32 %v12307_v4, %v12306_v25  ;;  %v12309_v57 = vpop.f32.mrb[162].mxu1  ;;  %v11603_v13 = vcombine.low %v8273_v42, %v8276_v23  ;;  %v8160_v25 = vld [vmem:[#allocation3 + $0x88] sm:$0xf]  ;;  %v8161_v23 = vld [vmem:[#allocation3 + $0x8c] sm:$0x1] }
 0x410   : > { %v12422_v46 = vpop.f32.mrb[195].mxu0  ;;  %12786 = vmatprep.mubr.bf16.mxu1 %v11601_v38  ;;  %v12310_v39 = vpop.f32.mrb[163].mxu1  ;;  %v8282_v38 = vrot.slane %v8155_v28, 5  ;;  %v8164_v42 = vld [vmem:[#allocation3 + $0x98] sm:$0x1] }
 0x411   : > { %v12423_v47 = vadd.f32 %v12422_v46, %v12421_v19  ;;  %v16425_v36 = vadd.f32 %v12420_v10, %v12308_v7  ;;  %v12311_v60 = vadd.f32 %v12310_v39, %v12309_v57  ;;  %v8156_v10 = vld [vmem:[#allocation3 + $0x78] sm:$0xe]  ;;  %v8158_v19 = vld [vmem:[#allocation3 + $0x80] sm:$0x1]  ;;  %v11588_v46 = vrot.slane %v8153_v22, 9 }
 0x412   : > { %v11589_v9 = vrot.slane %v8156_v10, 9  ;;  %v8289_v2 = vrot.slane %v8158_v19, 5  ;;  %v8283_v14 = vsel %vm13239_vm4, %v8281_v63, %v8282_v38  ;;  %v8293_v7 = vrot.slane %v8160_v25, 5 }
 0x413   : > { %v16431_v12 = vadd.f32 %v12423_v47, %v12311_v60  ;;  %v8280_v50 = vsel %vm13239_vm4, %v11588_v46, %v8279_v35  ;;  %v8296_v10 = vrot.slane %v8161_v23, 5  ;;  %v8170_v23 = vld [vmem:[#allocation3 + $0xb0] sm:$0x1] }
 0x414   : > { %v8290_v8 = vsel %vm13239_vm4, %v8288_v52, %v8289_v2  ;;  %v11604_v60 = vcombine.low %v8280_v50, %v8283_v14  ;;  %v8287_v55 = vsel %vm13239_vm4, %v11589_v9, %v8286_v11  ;;  %v8169_v11 = vld [vmem:[#allocation3 + $0xac] sm:$0xf]  ;;  %v8167_v50 = vld [vmem:[#allocation3 + $0xa4] sm:$0x1] }
 0x415   : > { %v12424_v43 = vpop.f32.mrb[196].mxu0  ;;  %v12312_v16 = vpop.f32.mrb[164].mxu1  ;;  %v8314_v32 = vrot.slane %v8169_v11, 5 }
 0x416   : > { %v12425_v34 = vpop.f32.mrb[197].mxu0  ;;  %v12313_v20 = vpop.f32.mrb[165].mxu1 }
 0x417   : > { %v12426_v56 = vadd.f32 %v12425_v34, %v12424_v43  ;;  %v12427_v40 = vpop.f32.mrb[198].mxu0  ;;  %12787 = vmatmul.mubr.bf16.gmra.mrb[8].mxu1 %v11602_v18  ;;  %v12314_v51 = vadd.f32 %v12313_v20, %v12312_v16  ;;  %v12315_v48 = vpop.f32.mrb[166].mxu1  ;;  %v8159_v43 = vld [vmem:[#allocation3 + $0x84] sm:$0xe]  ;;  %v8162_v18 = vld [vmem:[#allocation3 + $0x90] sm:$0xe] }
 0x418   : > { %v12428_v37 = vpop.f32.mrb[199].mxu0  ;;  %12790 = vmatprep.mubr.bf16.mxu1 %v11603_v13  ;;  %v12316_v15 = vpop.f32.mrb[167].mxu1  ;;  %v8302_v16 = vrot.slane %v8300_v33, 4  ;;  %v8166_v13 = vld [vmem:[#allocation3 + $0xa0] sm:$0xf]  ;;  %v11590_v63 = vrot.slane %v8159_v43, 9 }
 0x419   : > { %v12429_v6 = vadd.f32 %v12428_v37, %v12427_v40  ;;  %v16437_v4 = vadd.f32 %v12426_v56, %v12314_v51  ;;  %v12317_v47 = vadd.f32 %v12316_v15, %v12315_v48  ;;  %v11605_v56 = vcombine.low %v8287_v55, %v8290_v8  ;;  %v8168_v43 = vld [vmem:[#allocation3 + $0xa8] sm:$0xe] }
 0x41a   : > { %v8295_v40 = vrot.slane %v8293_v7, 4  ;;  %v11591_v20 = vrot.slane %v8162_v18, 9  ;;  %v8307_v25 = vrot.slane %v8166_v13, 5  ;;  %v8294_v2 = vsel %vm13239_vm4, %v11590_v63, %v8293_v7  ;;  %v8172_v18 = vld [vmem:[#allocation3 + $0xb8] sm:$0xf] }
 0x41b   : > { %v16443_v1 = vadd.f32 %v12429_v6, %v12317_v47  ;;  %v8303_v6 = vrot.slane %v8164_v42, 5 }
 0x41c   : > { %v8297_v48 = vsel %vm13239_vm4, %v8295_v40, %v8296_v10  ;;  %v8301_v8 = vsel %vm13239_vm4, %v11591_v20, %v8300_v33  ;;  %v8309_v55 = vrot.slane %v8307_v25, 4  ;;  %v8175_v33 = vld [vmem:[#allocation3 + $0xc4] sm:$0xf]  ;;  %v8321_v10 = vrot.slane %v8172_v18, 5 }
 0x41d   : > { %v12430_v57 = vpop.f32.mrb[200].mxu0  ;;  %v12318_v34 = vpop.f32.mrb[168].mxu1  ;;  %v8304_v38 = vsel %vm13239_vm4, %v8302_v16, %v8303_v6  ;;  %v11593_v16 = vrot.slane %v8168_v43, 9  ;;  %v8328_v6 = vrot.slane %v8175_v33, 5  ;;  %v8179_v33 = vld [vmem:[#allocation3 + $0xd4] sm:$0x1] }
 0x41e   : > { %v12431_v39 = vpop.f32.mrb[201].mxu0  ;;  %v12319_v22 = vpop.f32.mrb[169].mxu1 }
 0x41f   : > { %v12432_v31 = vadd.f32 %v12431_v39, %v12430_v57  ;;  %v12433_v45 = vpop.f32.mrb[202].mxu0  ;;  %12791 = vmatmul.mubr.bf16.gmra.mrb[12].mxu1 %v11604_v60  ;;  %v12320_v37 = vadd.f32 %v12319_v22, %v12318_v34  ;;  %v12321_v35 = vpop.f32.mrb[170].mxu1  ;;  %v11606_v57 = vcombine.low %v8294_v2, %v8297_v48  ;;  %v8165_v39 = vld [vmem:[#allocation3 + $0x9c] sm:$0xe]  ;;  %v11607_v60 = vcombine.low %v8301_v8, %v8304_v38 }
 0x420   : > { %v12434_v44 = vpop.f32.mrb[203].mxu0  ;;  %12794 = vmatprep.mubr.bf16.mxu1 %v11605_v56  ;;  %v12322_v19 = vpop.f32.mrb[171].mxu1  ;;  %v8316_v56 = vrot.slane %v8314_v32, 4  ;;  %v11592_v42 = vrot.slane %v8165_v39, 9  ;;  %v8310_v22 = vrot.slane %v8167_v50, 5 }
 0x421   : > { %v12435_v28 = vadd.f32 %v12434_v44, %v12433_v45  ;;  %v16449_v52 = vadd.f32 %v12432_v31, %v12320_v37  ;;  %v12323_v51 = vadd.f32 %v12322_v19, %v12321_v35  ;;  %v8317_v37 = vrot.slane %v8170_v23, 5  ;;  %v8178_v39 = vld [vmem:[#allocation3 + $0xd0] sm:$0xf] }
 0x422   : > { %v8311_v63 = vsel %vm13239_vm4, %v8309_v55, %v8310_v22  ;;  %v8308_v48 = vsel %vm13239_vm4, %v11592_v42, %v8307_v25  ;;  %v8330_v25 = vrot.slane %v8328_v6, 4 }
 0x423   : > { %v16455_v15 = vadd.f32 %v12435_v28, %v12323_v51  ;;  %v8318_v11 = vsel %vm13239_vm4, %v8316_v56, %v8317_v37  ;;  %v11608_v2 = vcombine.low %v8308_v48, %v8311_v63 }
 0x425   : > { %v12436_v46 = vpop.f32.mrb[204].mxu0  ;;  %v12324_v31 = vpop.f32.mrb[172].mxu1 }
 0x426   : > { %v12437_v9 = vpop.f32.mrb[205].mxu0  ;;  %v12325_v34 = vpop.f32.mrb[173].mxu1 }
 0x427   : > { %v12438_v47 = vadd.f32 %v12437_v9, %v12436_v46  ;;  %v12439_v14 = vpop.f32.mrb[206].mxu0  ;;  %12795 = vmatmul.mubr.bf16.gmra.mrb[16].mxu1 %v11606_v57  ;;  %v12326_v40 = vadd.f32 %v12325_v34, %v12324_v31  ;;  %v12327_v7 = vpop.f32.mrb[174].mxu1  ;;  %v8171_v46 = vld [vmem:[#allocation3 + $0xb4] sm:$0xe]  ;;  %v8323_v31 = vrot.slane %v8321_v10, 4 }
 0x428   : > { %v12440_v45 = vpop.f32.mrb[207].mxu0  ;;  %12798 = vmatprep.mubr.bf16.mxu1 %v11607_v60  ;;  %v12328_v28 = vpop.f32.mrb[175].mxu1  ;;  %v8176_v60 = vld [vmem:[#allocation3 + $0xc8] sm:$0x1]  ;;  %v11594_v23 = vrot.slane %v8171_v46, 9  ;;  %v8338_v46 = vrot.slane %v8179_v33, 5 }
 0x429   : > { %v12441_v44 = vadd.f32 %v12440_v45, %v12439_v14  ;;  %v16461_v35 = vadd.f32 %v12438_v47, %v12326_v40  ;;  %v12329_v13 = vadd.f32 %v12328_v28, %v12327_v7  ;;  %v8315_v47 = vsel %vm13239_vm4, %v11593_v16, %v8314_v32  ;;  %v8173_v14 = vld [vmem:[#allocation3 + $0xbc] sm:$0x1]  ;;  %v8174_v45 = vld [vmem:[#allocation3 + $0xc0] sm:$0xe]  ;;  %v8177_v28 = vld [vmem:[#allocation3 + $0xcc] sm:$0xe] }
 0x42a   : > { %v11609_v50 = vcombine.low %v8315_v47, %v8318_v11  ;;  %v8324_v56 = vrot.slane %v8173_v14, 5  ;;  %v8335_v7 = vrot.slane %v8178_v39, 5  ;;  %v11595_v32 = vrot.slane %v8174_v45, 9 }
 0x42b   : > { %v16467_v20 = vadd.f32 %v12441_v44, %v12329_v13  ;;  %v8331_v18 = vrot.slane %v8176_v60, 5  ;;  %v8322_v13 = vsel %vm13239_vm4, %v11594_v23, %v8321_v10 }
 0x42c   : > { %v8325_v16 = vsel %vm13239_vm4, %v8323_v31, %v8324_v56  ;;  %v8337_v48 = vrot.slane %v8335_v7, 4  ;;  %v8329_v47 = vsel %vm13239_vm4, %v11595_v32, %v8328_v6 }
 0x42d   : > { %v12442_v19 = vpop.f32.mrb[208].mxu0  ;;  %v12330_v57 = vpop.f32.mrb[176].mxu1  ;;  %v8332_v63 = vsel %vm13239_vm4, %v8330_v25, %v8331_v18 }
 0x42e   : > { %v12443_v51 = vpop.f32.mrb[209].mxu0  ;;  %v12331_v55 = vpop.f32.mrb[177].mxu1  ;;  %v8339_v60 = vsel %vm13239_vm4, %v8337_v48, %v8338_v46 }
 0x42f   : > { %v12444_v38 = vadd.f32 %v12443_v51, %v12442_v19  ;;  %v12445_v9 = vpop.f32.mrb[210].mxu0  ;;  %12799 = vmatmul.mubr.bf16.gmra.mrb[20].mxu1 %v11608_v2  ;;  %v12332_v34 = vadd.f32 %v12331_v55, %v12330_v57  ;;  %v12333_v44 = vpop.f32.mrb[178].mxu1  ;;  %v11596_v51 = vrot.slane %v8177_v28, 9  ;;  %v11610_v2 = vcombine.low %v8322_v13, %v8325_v16 }
 0x430   : > { %v12446_v8 = vpop.f32.mrb[211].mxu0  ;;  %12802 = vmatprep.mubr.bf16.mxu1 %v11609_v50  ;;  %v12334_v40 = vpop.f32.mrb[179].mxu1 }
 0x431   : > { %v12447_v43 = vadd.f32 %v12446_v8, %v12445_v9  ;;  %v16473_v42 = vadd.f32 %v12444_v38, %v12332_v34  ;;  %v12335_v22 = vadd.f32 %v12334_v40, %v12333_v44  ;;  %v11611_v8 = vcombine.low %v8329_v47, %v8332_v63 }
 0x432   : > { %v8336_v45 = vsel %vm13239_vm4, %v11596_v51, %v8335_v7 }
 0x433   : > { %v16481_v19 = vadd.f32 %v12447_v43, %v12335_v22  ;;  %v11612_v25 = vcombine.low %v8336_v45, %v8339_v60 }
 0x435   : > { %v12448_v37 = vpop.f32.mrb[212].mxu0  ;;  %v12336_v14 = vpop.f32.mrb[180].mxu1 }
 0x436   : > { %v12449_v11 = vpop.f32.mrb[213].mxu0  ;;  %v12337_v39 = vpop.f32.mrb[181].mxu1 }
 0x437   : > { %v12450_v38 = vadd.f32 %v12449_v11, %v12448_v37  ;;  %v12451_v9 = vpop.f32.mrb[214].mxu0  ;;  %12803 = vmatmul.mubr.bf16.gmra.mrb[24].mxu1 %v11610_v2  ;;  %v12338_v50 = vadd.f32 %v12337_v39, %v12336_v14  ;;  %v12339_v31 = vpop.f32.mrb[182].mxu1 }
 0x438   : > { %v12452_v57 = vpop.f32.mrb[215].mxu0  ;;  %12806 = vmatprep.mubr.bf16.mxu1 %v11611_v8  ;;  %v12340_v55 = vpop.f32.mrb[183].mxu1 }
 0x439   : > { %v12453_v10 = vadd.f32 %v12452_v57, %v12451_v9  ;;  %v16489_v43 = vadd.f32 %v12450_v38, %v12338_v50  ;;  %v12341_v23 = vadd.f32 %v12340_v55, %v12339_v31 }
 0x43b   : > { %v16491_v34 = vadd.f32 %v12453_v10, %v12341_v23 }
 0x43d   : > { %v12454_v6 = vpop.f32.mrb[216].mxu0  ;;  %v12342_v32 = vpop.f32.mrb[184].mxu1 }
 0x43e   : > { %v12455_v44 = vpop.f32.mrb[217].mxu0  ;;  %v12343_v22 = vpop.f32.mrb[185].mxu1 }
 0x43f   : > { %v12456_v56 = vadd.f32 %v12455_v44, %v12454_v6  ;;  %v12457_v40 = vpop.f32.mrb[218].mxu0  ;;  %12807 = vmatmul.mubr.bf16.gmra.mrb[28].mxu1 %v11612_v25  ;;  %v12344_v7 = vadd.f32 %v12343_v22, %v12342_v32  ;;  %v12345_v33 = vpop.f32.mrb[186].mxu1 }
 0x440   : > { %v12458_v18 = vpop.f32.mrb[219].mxu0  ;;  %v12346_v3 = vpop.f32.mrb[187].mxu1 }
 0x441   : > { %v12459_v28 = vadd.f32 %v12458_v18, %v12457_v40  ;;  %v16493_v16 = vadd.f32 %v12456_v56, %v12344_v7  ;;  %v12347_v37 = vadd.f32 %v12346_v3, %v12345_v33 }
 0x443   : > { %v16495_v63 = vadd.f32 %v12459_v28, %v12347_v37 }
 0x445   : > { %v12460_v13 = vpop.f32.mrb[220].mxu0  ;;  %v12348_v46 = vpop.f32.mrb[188].mxu1 }
 0x446   : > { %v12461_v11 = vpop.f32.mrb[221].mxu0  ;;  %v12349_v9 = vpop.f32.mrb[189].mxu1 }
 0x447   : > { %v12462_v51 = vadd.f32 %v12461_v11, %v12460_v13  ;;  %v12463_v48 = vpop.f32.mrb[222].mxu0  ;;  %v12350_v47 = vadd.f32 %v12349_v9, %v12348_v46  ;;  %v12351_v14 = vpop.f32.mrb[190].mxu1 }
 0x448   : > { %v12464_v38 = vpop.f32.mrb[223].mxu0  ;;  %v12352_v57 = vpop.f32.mrb[191].mxu1 }
 0x449   : > { %v12465_v2 = vadd.f32 %v12464_v38, %v12463_v48  ;;  %v16497_v8 = vadd.f32 %v12462_v51, %v12350_v47  ;;  %v12353_v39 = vadd.f32 %v12352_v57, %v12351_v14 }
 0x44b   : > { %v16499_v50 = vadd.f32 %v12465_v2, %v12353_v39 }
 0x44d   : > { %v12594_v10 = vpop.f32.mrb[224].mxu0  ;;  %v12482_v55 = vpop.f32.mrb[192].mxu1 }
 0x44e   : > { %v12595_v31 = vpop.f32.mrb[225].mxu0  ;;  %v12483_v6 = vpop.f32.mrb[193].mxu1 }
 0x44f   : > { %v12596_v45 = vadd.f32 %v12595_v31, %v12594_v10  ;;  %v12597_v60 = vpop.f32.mrb[226].mxu0  ;;  %v12484_v44 = vadd.f32 %v12483_v6, %v12482_v55  ;;  %v12485_v56 = vpop.f32.mrb[194].mxu1 }
 0x450   : > { %v12598_v23 = vpop.f32.mrb[227].mxu0  ;;  %v12486_v40 = vpop.f32.mrb[195].mxu1 }
 0x451   : > { %v12599_v25 = vadd.f32 %v12598_v23, %v12597_v60  ;;  %v9497_v32 = vadd.f32 %v12484_v44, %v16321_v30  ;;  %v12487_v18 = vadd.f32 %v12486_v40, %v12485_v56 }
 0x453   : > { %v9500_v28 = vadd.f32 %v12487_v18, %v16327_v54  ;;  %v16507_v60 = vadd.f32 %v12596_v45, %v9497_v32 }
 0x455   : > { %v12600_v22 = vpop.f32.mrb[228].mxu0  ;;  %v12488_v37 = vpop.f32.mrb[196].mxu1 }
 0x456   : > { %v12601_v7 = vpop.f32.mrb[229].mxu0  ;;  %v12489_v11 = vpop.f32.mrb[197].mxu1 }
 0x457   : > { %v12602_v33 = vadd.f32 %v12601_v7, %v12600_v22  ;;  %v12603_v3 = vpop.f32.mrb[230].mxu0  ;;  %v12490_v48 = vadd.f32 %v12489_v11, %v12488_v37  ;;  %v12491_v46 = vpop.f32.mrb[198].mxu1 }
 0x458   : > { %v12604_v13 = vpop.f32.mrb[231].mxu0  ;;  %v12492_v38 = vpop.f32.mrb[199].mxu1 }
 0x459   : > { %v12605_v51 = vadd.f32 %v12604_v13, %v12603_v3  ;;  %v9505_v9 = vadd.f32 %v12490_v48, %v16337_v53  ;;  %v12493_v2 = vadd.f32 %v12492_v38, %v12491_v46  ;;  %v16511_v53 = vadd.f32 %v12599_v25, %v9500_v28 }
 0x45b   : > { %v9508_v30 = vadd.f32 %v12493_v2, %v16341_v24  ;;  %v16505_v57 = vadd.f32 %v12602_v33, %v9505_v9 }
 0x45d   : > { %v12606_v47 = vpop.f32.mrb[232].mxu0  ;;  %v12494_v10 = vpop.f32.mrb[200].mxu1  ;;  %v16509_v6 = vadd.f32 %v12605_v51, %v9508_v30 }
 0x45e   : > { %v12607_v14 = vpop.f32.mrb[233].mxu0  ;;  %v12495_v55 = vpop.f32.mrb[201].mxu1 }
 0x45f   : > { %v12608_v54 = vadd.f32 %v12607_v14, %v12606_v47  ;;  %v12609_v39 = vpop.f32.mrb[234].mxu0  ;;  %v12496_v44 = vadd.f32 %v12495_v55, %v12494_v10  ;;  %v12497_v56 = vpop.f32.mrb[202].mxu1 }
 0x460   : > { %v12610_v31 = vpop.f32.mrb[235].mxu0  ;;  %v12498_v40 = vpop.f32.mrb[203].mxu1 }
 0x461   : > { %v12611_v23 = vadd.f32 %v12610_v31, %v12609_v39  ;;  %v9513_v24 = vadd.f32 %v12496_v44, %v16353_v5  ;;  %v12499_v18 = vadd.f32 %v12498_v40, %v12497_v56 }
 0x463   : > { %v9516_v7 = vadd.f32 %v12499_v18, %v16355_v49  ;;  %v16515_v13 = vadd.f32 %v12608_v54, %v9513_v24 }
 0x465   : > { %v12612_v22 = vpop.f32.mrb[236].mxu0  ;;  %v12500_v45 = vpop.f32.mrb[204].mxu1  ;;  %v16517_v28 = vadd.f32 %v12611_v23, %v9516_v7 }
 0x466   : > { %v12613_v33 = vpop.f32.mrb[237].mxu0  ;;  %v12501_v11 = vpop.f32.mrb[205].mxu1 }
 0x467   : > { %v12614_v3 = vadd.f32 %v12613_v33, %v12612_v22  ;;  %v12615_v37 = vpop.f32.mrb[238].mxu0  ;;  %v12502_v48 = vadd.f32 %v12501_v11, %v12500_v45  ;;  %v12503_v46 = vpop.f32.mrb[206].mxu1 }
 0x468   : > { %v12616_v32 = vpop.f32.mrb[239].mxu0  ;;  %v12504_v25 = vpop.f32.mrb[207].mxu1 }
 0x469   : > { %v12617_v51 = vadd.f32 %v12616_v32, %v12615_v37  ;;  %v9521_v5 = vadd.f32 %v12502_v48, %v16367_v21  ;;  %v12505_v38 = vadd.f32 %v12504_v25, %v12503_v46 }
 0x46b   : > { %v9524_v49 = vadd.f32 %v12505_v38, %v16371_v29  ;;  %v16521_v47 = vadd.f32 %v12614_v3, %v9521_v5 }
 0x46d   : > { %v12618_v9 = vpop.f32.mrb[240].mxu0  ;;  %v12506_v54 = vpop.f32.mrb[208].mxu1  ;;  %v16523_v10 = vadd.f32 %v12617_v51, %v9524_v49 }
 0x46e   : > { %v12619_v2 = vpop.f32.mrb[241].mxu0  ;;  %v12507_v31 = vpop.f32.mrb[209].mxu1 }
 0x46f   : > { %v12620_v30 = vadd.f32 %v12619_v2, %v12618_v9  ;;  %v12621_v14 = vpop.f32.mrb[242].mxu0  ;;  %v12508_v44 = vadd.f32 %v12507_v31, %v12506_v54  ;;  %v12509_v23 = vpop.f32.mrb[210].mxu1 }
 0x470   : > { %v12622_v39 = vpop.f32.mrb[243].mxu0  ;;  %v12510_v56 = vpop.f32.mrb[211].mxu1 }
 0x471   : > { %v12623_v55 = vadd.f32 %v12622_v39, %v12621_v14  ;;  %v9529_v21 = vadd.f32 %v12508_v44, %v16375_v59  ;;  %v12511_v40 = vadd.f32 %v12510_v56, %v12509_v23 }
 0x473   : > { %v9532_v29 = vadd.f32 %v12511_v40, %v16381_v62  ;;  %v16527_v22 = vadd.f32 %v12620_v30, %v9529_v21 }
 0x475   : > { %v12624_v24 = vpop.f32.mrb[244].mxu0  ;;  %v12512_v3 = vpop.f32.mrb[212].mxu1  ;;  %v16529_v45 = vadd.f32 %v12623_v55, %v9532_v29 }
 0x476   : > { %v12625_v18 = vpop.f32.mrb[245].mxu0  ;;  %v12513_v32 = vpop.f32.mrb[213].mxu1 }
 0x477   : > { %v12626_v7 = vadd.f32 %v12625_v18, %v12624_v24  ;;  %v12627_v33 = vpop.f32.mrb[246].mxu0  ;;  %v12514_v51 = vadd.f32 %v12513_v32, %v12512_v3  ;;  %v12515_v48 = vpop.f32.mrb[214].mxu1 }
 0x478   : > { %v12628_v37 = vpop.f32.mrb[247].mxu0  ;;  %v12516_v46 = vpop.f32.mrb[215].mxu1 }
 0x479   : > { %v12629_v11 = vadd.f32 %v12628_v37, %v12627_v33  ;;  %v9537_v59 = vadd.f32 %v12514_v51, %v16395_v27  ;;  %v12517_v25 = vadd.f32 %v12516_v46, %v12515_v48 }
 0x47b   : > { %v9540_v62 = vadd.f32 %v12517_v25, %v16399_v17  ;;  %v16533_v9 = vadd.f32 %v12626_v7, %v9537_v59 }
 0x47d   : > { %v12630_v5 = vpop.f32.mrb[248].mxu0  ;;  %v12518_v30 = vpop.f32.mrb[216].mxu1  ;;  %v16535_v54 = vadd.f32 %v12629_v11, %v9540_v62 }
 0x47e   : > { %v12631_v38 = vpop.f32.mrb[249].mxu0  ;;  %v12519_v39 = vpop.f32.mrb[217].mxu1 }
 0x47f   : > { %v12632_v49 = vadd.f32 %v12631_v38, %v12630_v5  ;;  %v12633_v2 = vpop.f32.mrb[250].mxu0  ;;  %v12520_v55 = vadd.f32 %v12519_v39, %v12518_v30  ;;  %v12521_v44 = vpop.f32.mrb[218].mxu1 }
 0x480   : > { %v12634_v14 = vpop.f32.mrb[251].mxu0  ;;  %v12522_v23 = vpop.f32.mrb[219].mxu1 }
 0x481   : > { %v12635_v31 = vadd.f32 %v12634_v14, %v12633_v2  ;;  %v9545_v27 = vadd.f32 %v12520_v55, %v16401_v26  ;;  %v12523_v56 = vadd.f32 %v12522_v23, %v12521_v44 }
 0x483   : > { %v9548_v17 = vadd.f32 %v12523_v56, %v16405_v41  ;;  %v16539_v24 = vadd.f32 %v12632_v49, %v9545_v27 }
 0x485   : > { %v12636_v21 = vpop.f32.mrb[252].mxu0  ;;  %v12524_v7 = vpop.f32.mrb[220].mxu1  ;;  %v16541_v3 = vadd.f32 %v12635_v31, %v9548_v17 }
 0x486   : > { %v12637_v40 = vpop.f32.mrb[253].mxu0  ;;  %v12525_v37 = vpop.f32.mrb[221].mxu1 }
 0x487   : > { %v12638_v29 = vadd.f32 %v12637_v40, %v12636_v21  ;;  %v12639_v18 = vpop.f32.mrb[254].mxu0  ;;  %v12526_v11 = vadd.f32 %v12525_v37, %v12524_v7  ;;  %v12527_v51 = vpop.f32.mrb[222].mxu1 }
 0x488   : > { %v12640_v33 = vpop.f32.mrb[255].mxu0  ;;  %v12528_v48 = vpop.f32.mrb[223].mxu1 }
 0x489   : > { %v12641_v32 = vadd.f32 %v12640_v33, %v12639_v18  ;;  %v9553_v26 = vadd.f32 %v12526_v11, %v16413_v58  ;;  %v12529_v46 = vadd.f32 %v12528_v48, %v12527_v51 }
 0x48b   : > { %v9556_v41 = vadd.f32 %v12529_v46, %v16419_v0  ;;  %v16545_v5 = vadd.f32 %v12638_v29, %v9553_v26 }
 0x48d   : > { %v12642_v59 = vpop.f32.mrb[0].mxu0  ;;  %v12530_v49 = vpop.f32.mrb[224].mxu1  ;;  %v16547_v30 = vadd.f32 %v12641_v32, %v9556_v41 }
 0x48e   : > { %v12643_v25 = vpop.f32.mrb[1].mxu0  ;;  %v12531_v14 = vpop.f32.mrb[225].mxu1 }
 0x48f   : > { %v12644_v62 = vadd.f32 %v12643_v25, %v12642_v59  ;;  %v12645_v38 = vpop.f32.mrb[2].mxu0  ;;  %v12532_v31 = vadd.f32 %v12531_v14, %v12530_v49  ;;  %v12533_v55 = vpop.f32.mrb[226].mxu1 }
 0x490   : > { %v12646_v2 = vpop.f32.mrb[3].mxu0  ;;  %v12534_v44 = vpop.f32.mrb[227].mxu1 }
 0x491   : > { %v12647_v39 = vadd.f32 %v12646_v2, %v12645_v38  ;;  %v9561_v58 = vadd.f32 %v12532_v31, %v16425_v36  ;;  %v12535_v23 = vadd.f32 %v12534_v44, %v12533_v55 }
 0x493   : > { %v9564_v0 = vadd.f32 %v12535_v23, %v16431_v12  ;;  %v16551_v21 = vadd.f32 %v12644_v62, %v9561_v58 }
 0x495   : > { %v12648_v27 = vpop.f32.mrb[4].mxu0  ;;  %v12536_v29 = vpop.f32.mrb[228].mxu1  ;;  %v16553_v7 = vadd.f32 %v12647_v39, %v9564_v0 }
 0x496   : > { %v12649_v56 = vpop.f32.mrb[5].mxu0  ;;  %v12537_v33 = vpop.f32.mrb[229].mxu1 }
 0x497   : > { %v12650_v17 = vadd.f32 %v12649_v56, %v12648_v27  ;;  %v12651_v40 = vpop.f32.mrb[6].mxu0  ;;  %v12538_v32 = vadd.f32 %v12537_v33, %v12536_v29  ;;  %v12539_v11 = vpop.f32.mrb[230].mxu1 }
 0x498   : > { %v12652_v18 = vpop.f32.mrb[7].mxu0  ;;  %v12540_v51 = vpop.f32.mrb[231].mxu1 }
 0x499   : > { %v12653_v37 = vadd.f32 %v12652_v18, %v12651_v40  ;;  %v9569_v36 = vadd.f32 %v12538_v32, %v16437_v4  ;;  %v12541_v48 = vadd.f32 %v12540_v51, %v12539_v11 }
 0x49b   : > { %v9572_v12 = vadd.f32 %v12541_v48, %v16443_v1  ;;  %v16557_v59 = vadd.f32 %v12650_v17, %v9569_v36 }
 0x49d   : > { %v12654_v26 = vpop.f32.mrb[8].mxu0  ;;  %v12542_v62 = vpop.f32.mrb[232].mxu1  ;;  %v16559_v49 = vadd.f32 %v12653_v37, %v9572_v12 }
 0x49e   : > { %v12655_v46 = vpop.f32.mrb[9].mxu0  ;;  %v12543_v2 = vpop.f32.mrb[233].mxu1 }
 0x49f   : > { %v12656_v41 = vadd.f32 %v12655_v46, %v12654_v26  ;;  %v12657_v25 = vpop.f32.mrb[10].mxu0  ;;  %v12544_v39 = vadd.f32 %v12543_v2, %v12542_v62  ;;  %v12545_v31 = vpop.f32.mrb[234].mxu1 }
 0x4a0   : > { %v12658_v38 = vpop.f32.mrb[11].mxu0  ;;  %v12546_v55 = vpop.f32.mrb[235].mxu1 }
 0x4a1   : > { %v12659_v14 = vadd.f32 %v12658_v38, %v12657_v25  ;;  %v9577_v4 = vadd.f32 %v12544_v39, %v16449_v52  ;;  %v12547_v44 = vadd.f32 %v12546_v55, %v12545_v31 }
 0x4a3   : > { %v9580_v1 = vadd.f32 %v12547_v44, %v16455_v15  ;;  %v16563_v27 = vadd.f32 %v12656_v41, %v9577_v4 }
 0x4a5   : > { %v12660_v58 = vpop.f32.mrb[12].mxu0  ;;  %v12548_v17 = vpop.f32.mrb[236].mxu1  ;;  %v16565_v29 = vadd.f32 %v12659_v14, %v9580_v1 }
 0x4a6   : > { %v12661_v23 = vpop.f32.mrb[13].mxu0  ;;  %v12549_v18 = vpop.f32.mrb[237].mxu1 }
 0x4a7   : > { %v12662_v0 = vadd.f32 %v12661_v23, %v12660_v58  ;;  %v12663_v56 = vpop.f32.mrb[14].mxu0  ;;  %v12550_v37 = vadd.f32 %v12549_v18, %v12548_v17  ;;  %v12551_v32 = vpop.f32.mrb[238].mxu1 }
 0x4a8   : > { %v12664_v40 = vpop.f32.mrb[15].mxu0  ;;  %v12552_v11 = vpop.f32.mrb[239].mxu1 }
 0x4a9   : > { %v12665_v33 = vadd.f32 %v12664_v40, %v12663_v56  ;;  %v9585_v52 = vadd.f32 %v12550_v37, %v16461_v35  ;;  %v12553_v51 = vadd.f32 %v12552_v11, %v12551_v32 }
 0x4ab   : > { %v9588_v15 = vadd.f32 %v12553_v51, %v16467_v20  ;;  %v16569_v26 = vadd.f32 %v12662_v0, %v9585_v52 }
 0x4ad   : > { %v12666_v36 = vpop.f32.mrb[16].mxu0  ;;  %v16571_v25 = vadd.f32 %v12665_v33, %v9588_v15 }
 0x4ae   : > { %v12667_v48 = vpop.f32.mrb[17].mxu0 }
 0x4af   : > { %v12668_v12 = vadd.f32 %v12667_v48, %v12666_v36  ;;  %v12669_v46 = vpop.f32.mrb[18].mxu0 }
 0x4b0   : > { %v12670_v41 = vpop.f32.mrb[19].mxu0 }
 0x4b1   : > { %v12671_v62 = vadd.f32 %v12670_v41, %v12669_v46  ;;  %v12554_v38 = vpop.f32.mrb[240].mxu1 }
 0x4b2   : > { %v12555_v2 = vpop.f32.mrb[241].mxu1 }
 0x4b3   : > { %v12556_v14 = vadd.f32 %v12555_v2, %v12554_v38  ;;  %v12557_v39 = vpop.f32.mrb[242].mxu1 }
 0x4b4   : > { %v12558_v31 = vpop.f32.mrb[243].mxu1 }
 0x4b5   : > { %v9593_v35 = vadd.f32 %v12556_v14, %v16473_v42  ;;  %v12559_v55 = vadd.f32 %v12558_v31, %v12557_v39  ;;  %v12672_v4 = vpop.f32.mrb[20].mxu0 }
 0x4b6   : > { %v12673_v44 = vpop.f32.mrb[21].mxu0 }
 0x4b7   : > { %v9596_v20 = vadd.f32 %v12559_v55, %v16481_v19  ;;  %v12674_v58 = vadd.f32 %v12673_v44, %v12672_v4  ;;  %v12675_v1 = vpop.f32.mrb[22].mxu0  ;;  %v16575_v23 = vadd.f32 %v12668_v12, %v9593_v35 }
 0x4b8   : > { %v12676_v0 = vpop.f32.mrb[23].mxu0 }
 0x4b9   : > { %v12677_v56 = vadd.f32 %v12676_v0, %v12675_v1  ;;  %v16577_v17 = vadd.f32 %v12671_v62, %v9596_v20 }
 0x4be   : > { %v12560_v40 = vpop.f32.mrb[244].mxu1 }
 0x4bf   : > { %v12561_v18 = vpop.f32.mrb[245].mxu1 }
 0x4c0   : > { %v12562_v33 = vadd.f32 %v12561_v18, %v12560_v40  ;;  %v12563_v37 = vpop.f32.mrb[246].mxu1 }
 0x4c1   : > { %v12564_v32 = vpop.f32.mrb[247].mxu1 }
 0x4c2   : > { %v9601_v42 = vadd.f32 %v12562_v33, %v16489_v43  ;;  %v12565_v11 = vadd.f32 %v12564_v32, %v12563_v37  ;;  %v12678_v52 = vpop.f32.mrb[24].mxu0 }
 0x4c3   : > { %v12679_v51 = vpop.f32.mrb[25].mxu0 }
 0x4c4   : > { %v9604_v19 = vadd.f32 %v12565_v11, %v16491_v34  ;;  %v12680_v36 = vadd.f32 %v12679_v51, %v12678_v52  ;;  %v12681_v15 = vpop.f32.mrb[26].mxu0  ;;  %v16581_v48 = vadd.f32 %v12674_v58, %v9601_v42 }
 0x4c5   : > { %v12682_v12 = vpop.f32.mrb[27].mxu0 }
 0x4c6   : > { %v12683_v46 = vadd.f32 %v12682_v12, %v12681_v15  ;;  %v16583_v41 = vadd.f32 %v12677_v56, %v9604_v19 }
 0x4ca   : > { %v12566_v62 = vpop.f32.mrb[248].mxu1 }
 0x4cb   : > { %v12567_v38 = vpop.f32.mrb[249].mxu1 }
 0x4cc   : > { %v12568_v2 = vadd.f32 %v12567_v38, %v12566_v62  ;;  %v12569_v14 = vpop.f32.mrb[250].mxu1  ;;  %v11687_v38 = vld [vmem:[%s13225_s26 + $0xc] sm:$0xf] }
 0x4cd   : > { %v12570_v39 = vpop.f32.mrb[251].mxu1 }
 0x4ce   : > { %v9609_v43 = vadd.f32 %v12568_v2, %v16493_v16  ;;  %v12571_v31 = vadd.f32 %v12570_v39, %v12569_v14  ;;  %v10257_v39 = vshrl.u32 %v11687_v38, 16 }
 0x4d0   : > { %v9612_v35 = vadd.f32 %v12571_v31, %v16495_v63  ;;  %v16587_v55 = vadd.f32 %v12680_v36, %v9609_v43  ;;  %v10260_v31 = vshll.u32 %v11687_v38, 16 }
 0x4d2   : > { %v12572_v34 = vpop.f32.mrb[252].mxu1  ;;  %v16589_v4 = vadd.f32 %v12683_v46, %v9612_v35 }
 0x4d3   : > { %v12573_v44 = vpop.f32.mrb[253].mxu1 }
 0x4d4   : > { %v12574_v20 = vadd.f32 %v12573_v44, %v12572_v34  ;;  %v12575_v58 = vpop.f32.mrb[254].mxu1 }
 0x4d5   : > { %v12684_v1 = vpop.f32.mrb[28].mxu0  ;;  %v12576_v0 = vpop.f32.mrb[255].mxu1 }
 0x4d6   : > { %v9617_v56 = vadd.f32 %v12574_v20, %v16497_v8  ;;  %v12577_v40 = vadd.f32 %v12576_v0, %v12575_v58  ;;  %v12685_v18 = vpop.f32.mrb[29].mxu0 }
 0x4d7   : > { %v12686_v33 = vadd.f32 %v12685_v18, %v12684_v1  ;;  %v12687_v37 = vpop.f32.mrb[30].mxu0 }
 0x4d8   : > { %v9620_v16 = vadd.f32 %v12577_v40, %v16499_v50  ;;  %v12688_v63 = vpop.f32.mrb[31].mxu0 }
 0x4d9   : > { %v12689_v32 = vadd.f32 %v12688_v63, %v12687_v37  ;;  %v16593_v42 = vadd.f32 %v12686_v33, %v9617_v56  ;;  %v10259_v56 = vrot.slane %v10257_v39, 4 }
 0x4da   : > { %v12780_v11 = vpop.f32.mrb[0].mxu1 }
 0x4db   : > { %v16596_v52 = vadd.f32 %v12780_v11, %v16505_v57  ;;  %v9818_v51 = vpop.f32.mrb[1].mxu1  ;;  %v16598_v19 = vadd.f32 %v12689_v32, %v9620_v16 }
 0x4dc   : > { %v16601_v8 = vadd.f32 %v9818_v51, %v16507_v60  ;;  %v12781_v36 = vpop.f32.mrb[2].mxu1 }
 0x4dd   : > { %v16604_v15 = vadd.f32 %v12781_v36, %v16509_v6  ;;  %v9821_v50 = vpop.f32.mrb[3].mxu1  ;;  %v9986_v60 = vmul.f32 %v16596_v52, %v16596_v52 }
 0x4de   : > { %v16607_v12 = vadd.f32 %v9821_v50, %v16511_v53  ;;  %v9984_v46 = vmul.f32 %v16601_v8, %v16601_v8 }
 0x4df   : > { %v9987_v35 = vmul.f32 %v16604_v15, %v16604_v15 }
 0x4e0   : > { %v9947_v57 = vadd.f32 %v16607_v12, %v16601_v8  ;;  %v9985_v62 = vmul.f32 %v16607_v12, %v16607_v12 }
 0x4e2   : > { %v9948_v6 = vadd.f32 %v9947_v57, %v16596_v52  ;;  %v10016_v2 = vadd.f32 %v9985_v62, %v9984_v46  ;;  %v12784_v14 = vpop.f32.mrb[4].mxu1 }
 0x4e3   : > { %v16620_v53 = vadd.f32 %v12784_v14, %v16521_v47  ;;  %v9834_v43 = vpop.f32.mrb[5].mxu1  ;;  %v10262_v47 = vrot.slane %v10260_v31, 5 }
 0x4e4   : > { %v10017_v34 = vadd.f32 %v10016_v2, %v9986_v60  ;;  %v16625_v44 = vadd.f32 %v9834_v43, %v16515_v13  ;;  %v9949_v20 = vadd.f32 %v9948_v6, %v16604_v15  ;;  %v12785_v58 = vpop.f32.mrb[6].mxu1 }
 0x4e5   : > { %v16629_v1 = vadd.f32 %v12785_v58, %v16523_v10  ;;  %v9837_v0 = vpop.f32.mrb[7].mxu1  ;;  %v11688_v10 = vld [vmem:[%s13225_s26 + $0x10] sm:$0xf]  ;;  %v10263_v32 = vor.u32 %v10262_v47, %v10259_v56  ;;  %v9990_v11 = vmul.f32 %v16620_v53, %v16620_v53 }
 0x4e6   : > { %v9950_v40 = vadd.f32 %v9949_v20, %v16625_v44  ;;  %v9988_v18 = vmul.f32 %v16625_v44, %v16625_v44  ;;  %v10018_v33 = vadd.f32 %v10017_v34, %v9987_v35  ;;  %v16635_v37 = vadd.f32 %v9837_v0, %v16517_v28  ;;  %v11689_v0 = vld [vmem:[%s13225_s26 + $0x14] sm:$0x1] }
 0x4e7   : > { %v9991_v46 = vmul.f32 %v16629_v1, %v16629_v1  ;;  %v10266_v2 = vshll.u32 %v11688_v10, 16  ;;  %v10264_v43 = vrot.slane %v10263_v32, 4  ;;  %v10270_v31 = vshrl.u32 %v11688_v10, 16 }
 0x4e8   : > { %v10019_v13 = vadd.f32 %v10018_v33, %v9988_v18  ;;  %v9951_v16 = vadd.f32 %v9950_v40, %v16635_v37  ;;  %v9989_v63 = vmul.f32 %v16635_v37, %v16635_v37 }
 0x4e9   : > { %v10268_v56 = vrot.slane %v10266_v2, 5 }
 0x4ea   : > { %v9952_v51 = vadd.f32 %v9951_v16, %v16620_v53  ;;  %v10020_v36 = vadd.f32 %v10019_v13, %v9989_v63  ;;  %v12788_v50 = vpop.f32.mrb[8].mxu1  ;;  %v11690_v13 = vld [vmem:[%s13225_s26 + $0x18] sm:$0xf]  ;;  %v10272_v16 = vrot.slane %v10270_v31, 4 }
 0x4eb   : > { %v16647_v28 = vadd.f32 %v12788_v50, %v16533_v9  ;;  %v9850_v57 = vpop.f32.mrb[9].mxu1  ;;  %v10281_v2 = vshrl.u32 %v11690_v13, 16 }
 0x4ec   : > { %v10021_v62 = vadd.f32 %v10020_v36, %v9990_v11  ;;  %v16650_v38 = vadd.f32 %v9850_v57, %v16527_v22  ;;  %v9953_v60 = vadd.f32 %v9952_v51, %v16629_v1  ;;  %v12789_v6 = vpop.f32.mrb[10].mxu1  ;;  %v10276_v11 = vshll.u32 %v11689_v0, 16 }
 0x4ed   : > { %v16654_v14 = vadd.f32 %v12789_v6, %v16535_v54  ;;  %v9853_v39 = vpop.f32.mrb[11].mxu1  ;;  %v9994_v47 = vmul.f32 %v16647_v28, %v16647_v28  ;;  %v10273_v57 = vor.u32 %v10272_v16, %v10268_v56  ;;  %v11691_v6 = vld [vmem:[%s13225_s26 + $0x1c] sm:$0xf] }
 0x4ee   : > { %v9954_v9 = vadd.f32 %v9953_v60, %v16650_v38  ;;  %v9992_v35 = vmul.f32 %v16650_v38, %v16650_v38  ;;  %v10022_v34 = vadd.f32 %v10021_v62, %v9991_v46  ;;  %v16660_v22 = vadd.f32 %v9853_v39, %v16529_v45 }
 0x4ef   : > { %v10269_v45 = vsel %vm13248_vm5, %v10264_v43, %v10268_v56  ;;  %v9995_v63 = vmul.f32 %v16654_v14, %v16654_v14  ;;  %v11693_v56 = vld [vmem:[%s13225_s26 + $0x24] sm:$0xf] }
 0x4f0   : > { %v10023_v20 = vadd.f32 %v10022_v34, %v9992_v35  ;;  %v9955_v58 = vadd.f32 %v9954_v9, %v16660_v22  ;;  %v9993_v54 = vmul.f32 %v16660_v22, %v16660_v22  ;;  %v11692_v9 = vld [vmem:[%s13225_s26 + $0x20] sm:$0x1]  ;;  %v16694_v35 = vrot.slane %v10273_v57, 4 }
 0x4f1   : > { %v10283_v34 = vrot.slane %v10281_v2, 4  ;;  %v10305_v57 = vshrl.u32 %v11693_v56, 16 }
 0x4f2   : > { %v9956_v40 = vadd.f32 %v9955_v58, %v16647_v28  ;;  %v10024_v18 = vadd.f32 %v10023_v20, %v9993_v54  ;;  %v12792_v33 = vpop.f32.mrb[12].mxu1  ;;  %17700 = vst [vmem:[#allocation9_spill] sm:$0xff] %v16694_v35  ;;  %v10284_v20 = vshll.u32 %v11690_v13, 16  ;;  %v11713_v35 = vld [vmem:[%s13225_s26 + $0x74] sm:$0x1] }
 0x4f3   : > { %v16675_v10 = vadd.f32 %v12792_v33, %v16545_v5  ;;  %v9866_v32 = vpop.f32.mrb[13].mxu1  ;;  %v16685_v5 = vunpack.c.l.bf16 %v10269_v45  ;;  %v10300_v33 = vshll.u32 %v11692_v9, 16  ;;  %v11694_v9 = vld [vmem:[%s13225_s26 + $0x28] sm:$0xf] }
 0x4f4   : > { %v10025_v51 = vadd.f32 %v10024_v18, %v9994_v47  ;;  %v16678_v36 = vadd.f32 %v9866_v32, %v16539_v24  ;;  %v9957_v50 = vadd.f32 %v9956_v40, %v16654_v14  ;;  %v12793_v46 = vpop.f32.mrb[14].mxu1  ;;  %v10290_v47 = vshll.u32 %v11691_v6, 16 }
 0x4f5   : > { %v16682_v62 = vadd.f32 %v12793_v46, %v16547_v30  ;;  %v9869_v60 = vpop.f32.mrb[15].mxu1  ;;  %17699 = vst [vmem:[#allocation8_spill] sm:$0xff] %v16685_v5  ;;  %v16696_v30 = vrot.slane %v10276_v11, 5  ;;  %v9998_v40 = vmul.f32 %v16675_v10, %v16675_v10  ;;  %v10294_v18 = vshrl.u32 %v11691_v6, 16 }
 0x4f6   : > { %v9958_v39 = vadd.f32 %v9957_v50, %v16678_v36  ;;  %v9996_v43 = vmul.f32 %v16678_v36, %v16678_v36  ;;  %v10026_v24 = vadd.f32 %v10025_v51, %v9995_v63  ;;  %v16691_v31 = vadd.f32 %v9869_v60, %v16541_v3 }
 0x4f7   : > { %17701 = vst [vmem:[#allocation10_spill] sm:$0xff] %v16696_v30  ;;  %v10286_v3 = vrot.slane %v10284_v20, 5  ;;  %v9999_v45 = vmul.f32 %v16682_v62, %v16682_v62  ;;  %v16707_v32 = vrot.slane %v10290_v47, 5  ;;  %v10296_v46 = vrot.slane %v10294_v18, 4 }
 0x4f8   : > { %v10027_v58 = vadd.f32 %v10026_v24, %v9996_v43  ;;  %v9959_v54 = vadd.f32 %v9958_v39, %v16691_v31  ;;  %v9997_v0 = vmul.f32 %v16691_v31, %v16691_v31  ;;  %v10307_v18 = vrot.slane %v10305_v57, 4 }
 0x4f9   : > { %17702 = vst [vmem:[#allocation11_spill] sm:$0xff] %v16707_v32  ;;  %v10287_v50 = vor.u32 %v10286_v3, %v10283_v34  ;;  %v10297_v20 = vor.u32 %v10296_v46, %v16707_v32  ;;  %v10318_v46 = vshrl.u32 %v11694_v9, 16 }
 0x4fa   : > { %v9960_v16 = vadd.f32 %v9959_v54, %v16675_v10  ;;  %v10028_v13 = vadd.f32 %v10027_v58, %v9997_v0  ;;  %v12796_v63 = vpop.f32.mrb[16].mxu1 }
 0x4fb   : > { %v16710_v11 = vadd.f32 %v12796_v63, %v16557_v59  ;;  %v9882_v51 = vpop.f32.mrb[17].mxu1  ;;  %v16724_v34 = vrot.slane %v10287_v50, 4  ;;  %v16738_v3 = vrot.slane %v10297_v20, 4  ;;  %v10314_v50 = vshll.u32 %v11694_v9, 16 }
 0x4fc   : > { %v10029_v60 = vadd.f32 %v10028_v13, %v9998_v40  ;;  %v16713_v6 = vadd.f32 %v9882_v51, %v16551_v21  ;;  %v9961_v2 = vadd.f32 %v9960_v16, %v16682_v62  ;;  %v12797_v39 = vpop.f32.mrb[18].mxu1  ;;  %v16727_v21 = vrot.slane %v10300_v33, 5  ;;  %v11696_v51 = vld [vmem:[%s13225_s26 + $0x30] sm:$0xf]  ;;  %v17821_v61 = vld [vmem:[#allocation8_spill] sm:$0xff] }
 0x4fd   : > { %v16721_v59 = vadd.f32 %v12797_v39, %v16559_v49  ;;  %v9885_v24 = vpop.f32.mrb[19].mxu1  ;;  %17703 = vst [vmem:[#allocation12_spill] sm:$0xff] %v16724_v34  ;;  %v11695_v49 = vld [vmem:[%s13225_s26 + $0x2c] sm:$0x1]  ;;  %v10002_v40 = vmul.f32 %v16710_v11, %v16710_v11  ;;  %17705 = vst [vmem:[#allocation14_spill] sm:$0xff] %v16738_v3  ;;  %v10308_v16 = vshll.u32 %v11693_v56, 16 }
 0x4fe   : > { %17704 = vst [vmem:[#allocation13_spill] sm:$0xff] %v16727_v21  ;;  %v9962_v58 = vadd.f32 %v9961_v2, %v16713_v6  ;;  %v10000_v54 = vmul.f32 %v16713_v6, %v16713_v6  ;;  %v10030_v0 = vadd.f32 %v10029_v60, %v9999_v45  ;;  %v16733_v47 = vadd.f32 %v9885_v24, %v16553_v7  ;;  %v11699_v56 = vld [vmem:[%s13225_s26 + $0x3c] sm:$0xf] }
 0x4ff   : > { %v10003_v7 = vmul.f32 %v16721_v59, %v16721_v59  ;;  %v10310_v45 = vrot.slane %v10308_v16, 5  ;;  %v10324_v60 = vshll.u32 %v11695_v49, 16  ;;  %v16751_v24 = vrot.slane %v10314_v50, 5 }
 0x500   : > { %v10031_v13 = vadd.f32 %v10030_v0, %v10000_v54  ;;  %v9963_v33 = vadd.f32 %v9962_v58, %v16733_v47  ;;  %v10001_v63 = vmul.f32 %v16733_v47, %v16733_v47  ;;  %v10320_v0 = vrot.slane %v10318_v46, 4 }
 0x501   : > { %17706 = vst [vmem:[#allocation15_spill] sm:$0xff] %v16751_v24  ;;  %v10311_v54 = vor.u32 %v10310_v45, %v10307_v18  ;;  %v10329_v9 = vshrl.u32 %v11696_v51, 16  ;;  %v11697_v18 = vld [vmem:[%s13225_s26 + $0x34] sm:$0xf] }
 0x502   : > { %v9964_v2 = vadd.f32 %v9963_v33, %v16710_v11  ;;  %v10032_v39 = vadd.f32 %v10031_v13, %v10001_v63  ;;  %v12800_v57 = vpop.f32.mrb[20].mxu1  ;;  %v10332_v63 = vshll.u32 %v11696_v51, 16  ;;  %v10338_v43 = vshll.u32 %v11697_v18, 16 }
 0x503   : > { %v16754_v20 = vadd.f32 %v12800_v57, %v16569_v26  ;;  %v9898_v58 = vpop.f32.mrb[21].mxu1  ;;  %v16768_v45 = vrot.slane %v10311_v54, 4  ;;  %v10331_v54 = vrot.slane %v10329_v9, 4  ;;  %v10356_v51 = vshll.u32 %v11699_v56, 16 }
 0x504   : > { %v10033_v49 = vadd.f32 %v10032_v39, %v10002_v40  ;;  %v16757_v16 = vadd.f32 %v9898_v58, %v16563_v27  ;;  %v9965_v13 = vadd.f32 %v9964_v2, %v16721_v59  ;;  %v12801_v33 = vpop.f32.mrb[22].mxu1  ;;  %v10321_v40 = vor.u32 %v10320_v0, %v16751_v24 }
 0x505   : > { %v16765_v26 = vadd.f32 %v12801_v33, %v16571_v25  ;;  %v9901_v50 = vpop.f32.mrb[23].mxu1  ;;  %17707 = vst [vmem:[#allocation16_spill] sm:$0xff] %v16768_v45  ;;  %v16771_v27 = vrot.slane %v10324_v60, 5  ;;  %v11698_v25 = vld [vmem:[%s13225_s26 + $0x38] sm:$0x1]  ;;  %v10006_v58 = vmul.f32 %v16754_v20, %v16754_v20 }
 0x506   : > { %v9966_v46 = vadd.f32 %v9965_v13, %v16757_v16  ;;  %v10004_v2 = vmul.f32 %v16757_v16, %v16757_v16  ;;  %v10034_v39 = vadd.f32 %v10033_v49, %v10003_v7  ;;  %v16777_v57 = vadd.f32 %v9901_v50, %v16565_v29 }
 0x507   : > { %17708 = vst [vmem:[#allocation17_spill] sm:$0xff] %v16771_v27  ;;  %v16782_v33 = vrot.slane %v10321_v40, 4  ;;  %v10007_v29 = vmul.f32 %v16765_v26, %v16765_v26  ;;  %v10334_v7 = vrot.slane %v10332_v63, 5  ;;  %v10342_v49 = vshrl.u32 %v11697_v18, 16  ;;  %v11702_v27 = vld [vmem:[%s13225_s26 + $0x48] sm:$0xf] }
 0x508   : > { %v10035_v0 = vadd.f32 %v10034_v39, %v10004_v2  ;;  %v9967_v60 = vadd.f32 %v9966_v46, %v16777_v57  ;;  %v10005_v13 = vmul.f32 %v16777_v57, %v16777_v57  ;;  %v10348_v50 = vshll.u32 %v11698_v25, 16 }
 0x509   : > { %17709 = vst [vmem:[#allocation18_spill] sm:$0xff] %v16782_v33  ;;  %v16795_v46 = vrot.slane %v10338_v43, 5  ;;  %v10335_v21 = vor.u32 %v10334_v7, %v10331_v54  ;;  %v10344_v63 = vrot.slane %v10342_v49, 4  ;;  %v10353_v18 = vshrl.u32 %v11699_v56, 16  ;;  %v11700_v54 = vld [vmem:[%s13225_s26 + $0x40] sm:$0xf] }
 0x50a   : > { %v9968_v5 = vadd.f32 %v9967_v60, %v16754_v20  ;;  %v10036_v40 = vadd.f32 %v10035_v0, %v10005_v13  ;;  %v12804_v9 = vpop.f32.mrb[24].mxu1  ;;  %v10362_v33 = vshll.u32 %v11700_v54, 16 }
 0x50b   : > { %17710 = vst [vmem:[#allocation19_spill] sm:$0xff] %v16795_v46  ;;  %v16798_v2 = vadd.f32 %v12804_v9, %v16581_v48  ;;  %v9914_v39 = vpop.f32.mrb[25].mxu1  ;;  %v16812_v7 = vrot.slane %v10335_v21, 4  ;;  %v10355_v21 = vrot.slane %v10353_v18, 4 }
 0x50c   : > { %v10037_v25 = vadd.f32 %v10036_v40, %v10006_v58  ;;  %v16801_v0 = vadd.f32 %v9914_v39, %v16575_v23  ;;  %v9969_v60 = vadd.f32 %v9968_v5, %v16765_v26  ;;  %v12805_v13 = vpop.f32.mrb[26].mxu1  ;;  %v10345_v58 = vor.u32 %v10344_v63, %v16795_v46  ;;  %v11707_v46 = vld [vmem:[%s13225_s26 + $0x5c] sm:$0x1] }
 0x50d   : > { %v16809_v48 = vadd.f32 %v12805_v13, %v16583_v41  ;;  %v9917_v9 = vpop.f32.mrb[27].mxu1  ;;  %17711 = vst [vmem:[#allocation20_spill] sm:$0xff] %v16812_v7  ;;  %v16815_v23 = vrot.slane %v10348_v50, 5  ;;  %v11701_v41 = vld [vmem:[%s13225_s26 + $0x44] sm:$0x1]  ;;  %v10010_v13 = vmul.f32 %v16798_v2, %v16798_v2 }
 0x50e   : > { %v9970_v5 = vadd.f32 %v9969_v60, %v16801_v0  ;;  %v10008_v49 = vmul.f32 %v16801_v0, %v16801_v0  ;;  %v10038_v40 = vadd.f32 %v10037_v25, %v10007_v29  ;;  %v16821_v39 = vadd.f32 %v9917_v9, %v16577_v17 }
 0x50f   : > { %17712 = vst [vmem:[#allocation21_spill] sm:$0xff] %v16815_v23  ;;  %v16826_v43 = vrot.slane %v10345_v58, 4  ;;  %v10011_v17 = vmul.f32 %v16809_v48, %v16809_v48  ;;  %v10358_v29 = vrot.slane %v10356_v51, 5  ;;  %v10366_v25 = vshrl.u32 %v11700_v54, 16 }
 0x510   : > { %v10039_v63 = vadd.f32 %v10038_v40, %v10008_v49  ;;  %v9971_v50 = vadd.f32 %v9970_v5, %v16821_v39  ;;  %v10009_v60 = vmul.f32 %v16821_v39, %v16821_v39  ;;  %v10372_v9 = vshll.u32 %v11701_v41, 16 }
 0x511   : > { %17713 = vst [vmem:[#allocation22_spill] sm:$0xff] %v16826_v43  ;;  %v16839_v5 = vrot.slane %v10362_v33, 5  ;;  %v10359_v45 = vor.u32 %v10358_v29, %v10355_v21  ;;  %v10368_v51 = vrot.slane %v10366_v25, 4  ;;  %v10377_v54 = vshrl.u32 %v11702_v27, 16  ;;  %v11703_v21 = vld [vmem:[%s13225_s26 + $0x4c] sm:$0xf] }
 0x512   : > { %v9972_v24 = vadd.f32 %v9971_v50, %v16798_v2  ;;  %v10040_v58 = vadd.f32 %v10039_v63, %v10009_v60  ;;  %v12808_v18 = vpop.f32.mrb[28].mxu1  ;;  %v10390_v43 = vshrl.u32 %v11703_v21, 16 }
 0x513   : > { %17714 = vst [vmem:[#allocation23_spill] sm:$0xff] %v16839_v5  ;;  %v16842_v49 = vadd.f32 %v12808_v18, %v16593_v42  ;;  %v9930_v40 = vpop.f32.mrb[29].mxu1  ;;  %v16856_v29 = vrot.slane %v10359_v45, 4 }
 0x514   : > { %v10041_v41 = vadd.f32 %v10040_v58, %v10010_v13  ;;  %v16845_v50 = vadd.f32 %v9930_v40, %v16587_v55  ;;  %v9973_v63 = vadd.f32 %v9972_v24, %v16809_v48  ;;  %v12809_v60 = vpop.f32.mrb[30].mxu1  ;;  %v10369_v55 = vor.u32 %v10368_v51, %v16839_v5 }
 0x515   : > { %v16853_v42 = vadd.f32 %v12809_v60, %v16598_v19  ;;  %v9933_v18 = vpop.f32.mrb[31].mxu1  ;;  %17716 = vst [vmem:[#allocation25_spill] sm:$0xff] %v16856_v29  ;;  %v16859_v13 = vrot.slane %v10372_v9, 5  ;;  %v10014_v19 = vmul.f32 %v16842_v49, %v16842_v49  ;;  %v11705_v60 = vld [vmem:[%s13225_s26 + $0x54] sm:$0xf]  ;;  %v10379_v51 = vrot.slane %v10377_v54, 4 }
 0x516   : > { %v9974_v24 = vadd.f32 %v9973_v63, %v16845_v50  ;;  %v10012_v25 = vmul.f32 %v16845_v50, %v16845_v50  ;;  %v10042_v58 = vadd.f32 %v10041_v41, %v10011_v17  ;;  %v16865_v40 = vadd.f32 %v9933_v18, %v16589_v4  ;;  %v11704_v17 = vld [vmem:[%s13225_s26 + $0x50] sm:$0x1]  ;;  %v11706_v4 = vld [vmem:[%s13225_s26 + $0x58] sm:$0xf]  ;;  %v11708_v29 = vld [vmem:[%s13225_s26 + $0x60] sm:$0xf] }
 0x517   : > { %17715 = vst [vmem:[#allocation24_spill] sm:$0xff] %v16853_v42  ;;  %17717 = vst [vmem:[#allocation26_spill] sm:$0xff] %v16859_v13  ;;  %v10015_v45 = vmul.f32 %v16853_v42, %v16853_v42  ;;  %v10380_v9 = vshll.u32 %v11702_v27, 16  ;;  %v10386_v41 = vshll.u32 %v11703_v21, 16  ;;  %v16881_v23 = vrot.slane %v10369_v55, 4 }
 0x518   : > { %v10043_v33 = vadd.f32 %v10042_v58, %v10012_v25  ;;  %v9975_v63 = vadd.f32 %v9974_v24, %v16865_v40  ;;  %v10013_v56 = vmul.f32 %v16865_v40, %v16865_v40  ;;  %v10401_v58 = vshrl.u32 %v11705_v60, 16 }
 0x519   : > { %17718 = vst [vmem:[#allocation27_spill] sm:$0xff] %v16881_v23  ;;  %v10382_v54 = vrot.slane %v10380_v9, 5  ;;  %v16884_v24 = vrot.slane %v10386_v41, 5  ;;  %v10392_v3 = vrot.slane %v10390_v43, 4  ;;  %v10396_v32 = vshll.u32 %v11704_v17, 16 }
 0x51a   : > { %v9976_v27 = vadd.f32 %v9975_v63, %v16842_v49  ;;  %v10044_v25 = vadd.f32 %v10043_v33, %v10013_v56  ;;  %v10404_v34 = vshll.u32 %v11705_v60, 16  ;;  %v10403_v55 = vrot.slane %v10401_v58, 4  ;;  %v11709_v17 = vld [vmem:[%s13225_s26 + $0x64] sm:$0xf]  ;;  %v11711_v58 = vld [vmem:[%s13225_s26 + $0x6c] sm:$0xf] }
 0x51b   : > { %17719 = vst [vmem:[#allocation6_spill] sm:$0xff] %v16884_v24  ;;  %v10383_v7 = vor.u32 %v10382_v54, %v10379_v51  ;;  %v10410_v5 = vshll.u32 %v11706_v4, 16  ;;  %v10393_v21 = vor.u32 %v10392_v3, %v16884_v24  ;;  %v10414_v33 = vshrl.u32 %v11706_v4, 16 }
 0x51c   : > { %v9977_v30 = vadd.f32 %v9976_v27, %v16853_v42  ;;  %v10045_v18 = vadd.f32 %v10044_v25, %v10014_v19  ;;  %v10406_v56 = vrot.slane %v10404_v34, 5  ;;  %v10420_v43 = vshll.u32 %v11707_v46, 16 }
 0x51d   : > { %v16889_v9 = vrot.slane %v10383_v7, 4  ;;  %v16892_v51 = vrot.slane %v10410_v5, 5  ;;  %v16895_v60 = vrot.slane %v10393_v21, 4  ;;  %v16897_v19 = vrot.slane %v10396_v32, 5 }
 0x51e   : > { %v9978_v63 = vrot.slane %v9977_v30, 4  ;;  %v10046_v41 = vadd.f32 %v10045_v18, %v10015_v45  ;;  %v10407_v54 = vor.u32 %v10406_v56, %v10403_v55  ;;  %v10416_v27 = vrot.slane %v10414_v33, 4  ;;  %v11710_v45 = vld [vmem:[%s13225_s26 + $0x68] sm:$0x1] }
 0x51f   : > { %17720 = vst [vmem:[#allocation7_spill] sm:$0xff] %v16889_v9  ;;  %v10425_v3 = vshrl.u32 %v11708_v29, 16  ;;  %v16909_v5 = vrot.slane %v10420_v43, 5  ;;  %v10428_v4 = vshll.u32 %v11708_v29, 16  ;;  %v10434_v21 = vshll.u32 %v11709_v17, 16 }
 0x520   : > { %v9979_v7 = vadd.f32 %v9978_v63, %v9977_v30  ;;  %v10047_v25 = vrot.slane %v10046_v41, 4  ;;  %v10417_v32 = vor.u32 %v10416_v27, %v16892_v51  ;;  %v16916_v33 = vrot.slane %v10407_v54, 4  ;;  %v11712_v43 = vld [vmem:[%s13225_s26 + $0x70] sm:$0xf] }
 0x521   : > { %17721 = vst [vmem:[#allocation4_spill] sm:$0xff] %v16909_v5  ;;  %v10427_v55 = vrot.slane %v10425_v3, 4  ;;  %v10430_v63 = vrot.slane %v10428_v4, 5  ;;  %v10438_v46 = vshrl.u32 %v11709_v17, 16  ;;  %v16919_v24 = vrot.slane %v10434_v21, 5 }
 0x522   : > { %v9980_v30 = vrot.slane %v9979_v7, 2  ;;  %v10048_v18 = vadd.f32 %v10047_v25, %v10046_v41  ;;  %v10444_v29 = vshll.u32 %v11710_v45, 16  ;;  %v16921_v41 = vrot.slane %v10417_v32, 4  ;;  %v17172_v5 = vld [vmem:[%s13225_s26 + $0xac] sm:$0xf] }
 0x523   : > { %17722 = vst [vmem:[#allocation5_spill] sm:$0xff] %v16919_v24  ;;  %v10431_v25 = vor.u32 %v10430_v63, %v10427_v55  ;;  %v10440_v3 = vrot.slane %v10438_v46, 4  ;;  %v10449_v9 = vshrl.u32 %v11711_v58, 16  ;;  %v10452_v54 = vshll.u32 %v11711_v58, 16 }
 0x524   : > { %v9981_v34 = vadd.f32 %v9980_v30, %v9979_v7  ;;  %v10049_v27 = vrot.slane %v10048_v18, 2  ;;  %v16924_v42 = vrot.slane %v10444_v29, 5  ;;  %v10458_v4 = vshll.u32 %v11712_v43, 16 }
 0x525   : > { %v16926_v56 = vrot.slane %v10431_v25, 4  ;;  %v10441_v17 = vor.u32 %v10440_v3, %v16919_v24  ;;  %v16929_v7 = vrot.slane %v10449_v9, 4  ;;  %v16931_v32 = vrot.slane %v10452_v54, 5 }
 0x526   : > { %v9982_v13 = vrot.slane %v9981_v34, 1  ;;  %v10050_v23 = vadd.f32 %v10049_v27, %v10048_v18  ;;  %17723 = vst [vmem:[#allocation28_spill] sm:$0xff] %v16924_v42  ;;  %v10462_v55 = vshrl.u32 %v11712_v43, 16  ;;  %v10468_v9 = vshll.u32 %v11713_v35, 16 }
 0x527   : > { %17724 = vst [vmem:[#allocation29_spill] sm:$0xff] %v16926_v56  ;;  %v16941_v58 = vrot.slane %v10441_v17, 4  ;;  %v10455_v43 = vor.u32 %v16931_v32, %v16929_v7 }
 0x528   : > { %v9983_v30 = vadd.f32 %v9982_v13, %v9981_v34  ;;  %v10051_v45 = vrot.slane %v10050_v23, 1  ;;  %v16949_v34 = vrot.slane %v10458_v4, 5  ;;  %v16957_v35 = vrot.slane %v10462_v55, 4 }
 0x529   : > { %17725 = vst [vmem:[#allocation30_spill] sm:$0xff] %v16941_v58 }
 0x52a   : > { %v10052_v21 = vadd.f32 %v10051_v45, %v10050_v23  ;;  %v16943_v63 = vmul.f32 0.00390625, %v9983_v30  ;;  %17726 = vst [vmem:[#allocation31_spill] sm:$0xff] %v16949_v34  ;;  %v16959_v23 = vrot.slane %v10468_v9, 5 }
 0x52c   : > { %17727 = vst [vmem:[#allocation32_spill] sm:$0xff] %v16959_v23  ;;  %v10054_v29 = vmul.f32 256.0, %v16943_v63  ;;  %v10068_v25 = vsub.f32 %v16601_v8, %v16943_v63  ;;  %v10069_v3 = vsub.f32 %v16607_v12, %v16943_v63  ;;  %v10070_v54 = vsub.f32 %v16596_v52, %v16943_v63 }
 0x52d   : > { %v10071_v17 = vsub.f32 %v16604_v15, %v16943_v63  ;;  %v10072_v4 = vsub.f32 %v16625_v44, %v16943_v63  ;;  %v10073_v30 = vsub.f32 %v16635_v37, %v16943_v63  ;;  %v10074_v45 = vsub.f32 %v16620_v53, %v16943_v63 }
 0x52e   : > { %v10055_v8 = vmul.f32 %v10054_v29, %v16943_v63  ;;  %v10075_v12 = vsub.f32 %v16629_v1, %v16943_v63  ;;  %v10076_v52 = vsub.f32 %v16650_v38, %v16943_v63  ;;  %v10077_v15 = vsub.f32 %v16660_v22, %v16943_v63  ;;  %v11714_v29 = vld [vmem:[%s13225_s26 + $0x78] sm:$0xf] }
 0x52f   : > { %v10078_v44 = vsub.f32 %v16647_v28, %v16943_v63  ;;  %v10079_v53 = vsub.f32 %v16654_v14, %v16943_v63  ;;  %v10080_v1 = vsub.f32 %v16678_v36, %v16943_v63  ;;  %v10081_v37 = vsub.f32 %v16691_v31, %v16943_v63 }
 0x530   : > { %v10056_v38 = vsub.f32 %v10052_v21, %v10055_v8  ;;  %v10082_v22 = vsub.f32 %v16675_v10, %v16943_v63  ;;  %v10083_v55 = vsub.f32 %v16682_v62, %v16943_v63  ;;  %v10084_v28 = vsub.f32 %v16713_v6, %v16943_v63  ;;  %v11685_v21 = vld [vmem:[%s329_s20] ss:$0 sm:$0xff] }
 0x531   : > { %v10085_v14 = vsub.f32 %v16733_v47, %v16943_v63  ;;  %v10086_v9 = vsub.f32 %v16710_v11, %v16943_v63  ;;  %v10087_v36 = vsub.f32 %v16721_v59, %v16943_v63  ;;  %v10088_v31 = vsub.f32 %v16757_v16, %v16943_v63 }
 0x532   : > { %v10057_v10 = vmul.f32 0.003921569, %v10056_v38  ;;  %v10089_v62 = vsub.f32 %v16777_v57, %v16943_v63  ;;  %v10090_v6 = vsub.f32 %v16754_v20, %v16943_v63  ;;  %v10091_v47 = vsub.f32 %v16765_v26, %v16943_v63  ;;  %v17728_v38 = vld [vmem:[#allocation24_spill] sm:$0xff] }
 0x533   : > { %v10092_v11 = vsub.f32 %v16801_v0, %v16943_v63  ;;  %v10093_v59 = vsub.f32 %v16821_v39, %v16943_v63  ;;  %v10094_v16 = vsub.f32 %v16798_v2, %v16943_v63  ;;  %v10095_v8 = vsub.f32 %v16809_v48, %v16943_v63 }
 0x534   : > { %v17024_v57 = vmax.f32 %v10057_v10, 0.0  ;;  %v10096_v20 = vsub.f32 %v16845_v50, %v16943_v63  ;;  %v10097_v26 = vsub.f32 %v16865_v40, %v16943_v63  ;;  %v10098_v0 = vsub.f32 %v16842_v49, %v16943_v63 }
 0x535   : > { %v10099_v39 = vsub.f32 %v17728_v38, %v16943_v63  ;;  %v17034_v27 = vmul.f32 %v11685_v21, %v10068_v25  ;;  %v10473_v2 = vshrl.u32 %v11714_v29, 16  ;;  %v10476_v13 = vshll.u32 %v11714_v29, 16 }
 0x536   : > { %13064 = vrsqrt.f32 %v17024_v57  ;;  %v17038_v10 = vmul.f32 %v11685_v21, %v10069_v3  ;;  %v17040_v50 = vmul.f32 %v11685_v21, %v10070_v54  ;;  %v17042_v18 = vmul.f32 %v11685_v21, %v10071_v17 }
 0x537   : > { %v17044_v40 = vmul.f32 %v11685_v21, %v10072_v4  ;;  %v17046_v49 = vmul.f32 %v11685_v21, %v10073_v30  ;;  %v17048_v46 = vmul.f32 %v11685_v21, %v10074_v45  ;;  %v17050_v63 = vmul.f32 %v11685_v21, %v10075_v12 }
 0x538   : > { %v17052_v25 = vmul.f32 %v11685_v21, %v10076_v52  ;;  %v17054_v29 = vmul.f32 %v11685_v21, %v10077_v15  ;;  %v17056_v38 = vmul.f32 %v11685_v21, %v10078_v44  ;;  %v17058_v3 = vmul.f32 %v11685_v21, %v10079_v53 }
 0x539   : > { %v17060_v54 = vmul.f32 %v11685_v21, %v10080_v1  ;;  %v17062_v17 = vmul.f32 %v11685_v21, %v10081_v37  ;;  %v17064_v4 = vmul.f32 %v11685_v21, %v10082_v22  ;;  %vm10061_vm0 = vcmp.eq.f32.partialorder %v17024_v57, inf }
 0x53a   : > { %v17067_v30 = vmul.f32 %v11685_v21, %v10083_v55  ;;  %v17069_v45 = vmul.f32 %v11685_v21, %v10084_v28  ;;  %v17071_v12 = vmul.f32 %v11685_v21, %v10085_v14  ;;  %v17073_v52 = vmul.f32 %v11685_v21, %v10086_v9  ;;  %v11715_v14 = vld [vmem:[%s13225_s26 + $0x7c] sm:$0xf]  ;;  %v11716_v9 = vld [vmem:[%s13225_s26 + $0x80] sm:$0x1] }
 0x53b   : > { %vm10063_vm1 = vcmp.eq.f32.partialorder %v17024_v57, 0.0  ;;  %v17076_v15 = vmul.f32 %v11685_v21, %v10087_v36  ;;  %v17078_v44 = vmul.f32 %v11685_v21, %v10088_v31  ;;  %v17080_v53 = vmul.f32 %v11685_v21, %v10089_v62 }
 0x53c   : > { %v17082_v1 = vmul.f32 %v11685_v21, %v10090_v6  ;;  %v17084_v37 = vmul.f32 %v11685_v21, %v10091_v47  ;;  %v17086_v22 = vmul.f32 %v11685_v21, %v10092_v11  ;;  %v17088_v55 = vmul.f32 %v11685_v21, %v10093_v59  ;;  %v11717_v6 = vld [vmem:[%s13225_s26 + $0x84] sm:$0xf] }
 0x53d   : > { %v17090_v28 = vmul.f32 %v11685_v21, %v10094_v16  ;;  %v17094_v48 = vmul.f32 %v11685_v21, %v10095_v8  ;;  %v17096_v36 = vmul.f32 %v11685_v21, %v10096_v20  ;;  %v17098_v31 = vmul.f32 %v11685_v21, %v10097_v26 }
 0x53e   : > { %v17100_v62 = vmul.f32 %v11685_v21, %v10098_v0  ;;  %v17103_v47 = vmul.f32 %v11685_v21, %v10099_v39  ;;  %v17108_v11 = vrot.slane %v10455_v43, 4  ;;  %v10465_v59 = vor.u32 %v16957_v35, %v16949_v34  ;;  %v11718_v0 = vld [vmem:[%s13225_s26 + $0x88] sm:$0xf]  ;;  %v11719_v35 = vld [vmem:[%s13225_s26 + $0x8c] sm:$0x1] }
 0x53f   : > { %v10475_v16 = vrot.slane %v10473_v2, 4  ;;  %v10478_v8 = vrot.slane %v10476_v13, 5  ;;  %v10482_v20 = vshll.u32 %v11715_v14, 16  ;;  %v10486_v42 = vshrl.u32 %v11715_v14, 16  ;;  %v11722_v34 = vld [vmem:[%s13225_s26 + $0x98] sm:$0x1] }
 0x540   : > { %17729 = vst [vmem:[#allocation24_spill] sm:$0xff] %v17108_v11  ;;  %v10492_v26 = vshll.u32 %v11716_v9, 16  ;;  %v13065_v58 = vpop.eup %13064  ;;  %v17117_v39 = vrot.slane %v10465_v59, 4  ;;  %v10497_v7 = vshrl.u32 %v11717_v6, 16  ;;  %v10500_v32 = vshll.u32 %v11717_v6, 16 }
 0x541   : > { %v10060_v43 = vmul.f32 %v13065_v58, %v17024_v57  ;;  %v10479_v13 = vor.u32 %v10478_v8, %v10475_v16  ;;  %v17121_v2 = vrot.slane %v10482_v20, 5  ;;  %v10488_v14 = vrot.slane %v10486_v42, 4  ;;  %v11720_v6 = vld [vmem:[%s13225_s26 + $0x90] sm:$0xf]  ;;  %v11723_v11 = vld [vmem:[%s13225_s26 + $0x9c] sm:$0xf] }
 0x542   : > { %17730 = vst [vmem:[#allocation33_spill] sm:$0xff] %v17117_v39  ;;  %v17127_v24 = vrot.slane %v10492_v26, 5  ;;  %v10499_v59 = vrot.slane %v10497_v7, 4  ;;  %v10502_v21 = vrot.slane %v10500_v32, 5  ;;  %v10506_v8 = vshll.u32 %v11718_v0, 16 }
 0x543   : > { %17731 = vst [vmem:[#allocation34_spill] sm:$0xff] %v17121_v2  ;;  %v10062_v58 = vsel %vm10061_vm0, %v17024_v57, %v10060_v43  ;;  %v17133_v16 = vrot.slane %v10479_v13, 4  ;;  %v10489_v42 = vor.u32 %v10488_v14, %v17121_v2  ;;  %v17734_v20 = vand.u32 2147483648, %v17024_v57  ;;  %v11721_v26 = vld [vmem:[%s13225_s26 + $0x94] sm:$0xf] }
 0x544   : > { %17732 = vst [vmem:[#allocation35_spill] sm:$0xff] %v17127_v24  ;;  %v10503_v7 = vor.u32 %v10502_v21, %v10499_v59  ;;  %v10510_v32 = vshrl.u32 %v11718_v0, 16  ;;  %v10516_v23 = vshll.u32 %v11719_v35, 16  ;;  %v17148_v14 = vrot.slane %v10506_v8, 5  ;;  %v11724_v21 = vld [vmem:[%s13225_s26 + $0xa0] sm:$0xf] }
 0x545   : > { %17733 = vst [vmem:[#allocation36_spill] sm:$0xff] %v17133_v16  ;;  %v10065_v9 = vsel %vm10063_vm1, %v17734_v20, %v10062_v58  ;;  %v17146_v13 = vrot.slane %v10489_v42, 4  ;;  %v10521_v0 = vshrl.u32 %v11720_v6, 16  ;;  %v10530_v59 = vshll.u32 %v11721_v26, 16  ;;  %v11726_v35 = vld [vmem:[%s13225_s26 + $0xa8] sm:$0xf] }
 0x546   : > { %v10066_v39 = vadd.f32 1e-05, %v10065_v9  ;;  %17736 = vst [vmem:[#allocation38_spill] sm:$0xff] %v17148_v14  ;;  %v17151_v57 = vrot.slane %v10503_v7, 4  ;;  %v10512_v58 = vrot.slane %v10510_v32, 4  ;;  %v17153_v20 = vrot.slane %v10516_v23, 5 }
 0x547   : > { %17735 = vst [vmem:[#allocation37_spill] sm:$0xff] %v17146_v13  ;;  %v10524_v9 = vshll.u32 %v11720_v6, 16  ;;  %v10523_v8 = vrot.slane %v10521_v0, 4  ;;  %v10534_v7 = vshrl.u32 %v11721_v26, 16  ;;  %v11725_v32 = vld [vmem:[%s13225_s26 + $0xa4] sm:$0x1] }
 0x548   : > { %17737 = vst [vmem:[#allocation39_spill] sm:$0xff] %v17151_v57  ;;  %13066 = vrcp.f32 %v10066_v39  ;;  %v10513_v23 = vor.u32 %v10512_v58, %v17148_v14  ;;  %v17166_v43 = vrot.slane %v10530_v59, 5  ;;  %v10540_v2 = vshll.u32 %v11722_v34, 16 }
 0x549   : > { %v10526_v39 = vrot.slane %v10524_v9, 5  ;;  %v10545_v16 = vshrl.u32 %v11723_v11, 16  ;;  %v10536_v24 = vrot.slane %v10534_v7, 4  ;;  %v10548_v13 = vshll.u32 %v11723_v11, 16  ;;  %v17184_v11 = vld [vmem:[%s13225_s26 + $0xb0] sm:$0x1] }
 0x54a   : > { %17738 = vst [vmem:[#allocation40_spill] sm:$0xff] %v17166_v43  ;;  %v17169_v6 = vrot.slane %v10513_v23, 4  ;;  %v10554_v56 = vshll.u32 %v11724_v21, 16  ;;  %v17174_v58 = vrot.slane %v10540_v2, 5  ;;  %v10558_v0 = vshrl.u32 %v11724_v21, 16 }
 0x54b   : > { %v10527_v42 = vor.u32 %v10526_v39, %v10523_v8  ;;  %v10547_v26 = vrot.slane %v10545_v16, 4  ;;  %v10537_v9 = vor.u32 %v10536_v24, %v17166_v43  ;;  %v10550_v59 = vrot.slane %v10548_v13, 5  ;;  %v17189_v39 = vld [vmem:[%s13225_s26 + $0xb4] sm:$0xf] }
 0x54c   : > { %17739 = vst [vmem:[#allocation41_spill] sm:$0xff] %v17174_v58  ;;  %v17181_v23 = vrot.slane %v10554_v56, 5  ;;  %v10560_v14 = vrot.slane %v10558_v0, 4  ;;  %v10564_v8 = vshll.u32 %v11725_v32, 16  ;;  %v10569_v2 = vshrl.u32 %v11726_v35, 16 }
 0x54d   : > { %v17186_v7 = vrot.slane %v10527_v42, 4  ;;  %v17191_v16 = vrot.slane %v10537_v9, 4  ;;  %v10551_v21 = vor.u32 %v10550_v59, %v10547_v26  ;;  %v10572_v57 = vshll.u32 %v11726_v35, 16 }
 0x54e   : > { %v10578_v34 = vshll.u32 %v17172_v5, 16  ;;  %v10561_v56 = vor.u32 %v10560_v14, %v17181_v23  ;;  %v17199_v13 = vrot.slane %v10564_v8, 5  ;;  %v17201_v42 = vrot.slane %v10569_v2, 4 }
 0x54f   : > { %17740 = vst [vmem:[#allocation42_spill] sm:$0xff] %v17191_v16  ;;  %v17207_v26 = vrot.slane %v10551_v21, 4  ;;  %v17209_v35 = vrot.slane %v10572_v57, 5  ;;  %v11686_v16 = vld [vmem:[%s326_s23] ss:$0 sm:$0xff] }
 0x550   : > { %v17211_v0 = vrot.slane %v10578_v34, 5  ;;  %v17213_v59 = vrot.slane %v10561_v56, 4 }
 0x552   : > { %v13067_v9 = vpop.eup %13066 }
 0x553   : > { %v10138_v24 = vmul.f32 %v13067_v9, %v17034_v27  ;;  %v10139_v32 = vmul.f32 %v13067_v9, %v17038_v10  ;;  %v10140_v21 = vmul.f32 %v13067_v9, %v17040_v50  ;;  %v10141_v57 = vmul.f32 %v13067_v9, %v17042_v18 }
 0x554   : > { %v10142_v34 = vmul.f32 %v13067_v9, %v17044_v40  ;;  %v10143_v58 = vmul.f32 %v13067_v9, %v17046_v49  ;;  %v10144_v56 = vmul.f32 %v13067_v9, %v17048_v46  ;;  %v10145_v14 = vmul.f32 %v13067_v9, %v17050_v63 }
 0x555   : > { %v10146_v27 = vmul.f32 %v13067_v9, %v17052_v25  ;;  %v10147_v10 = vmul.f32 %v13067_v9, %v17054_v29  ;;  %v10148_v50 = vmul.f32 %v13067_v9, %v17056_v38  ;;  %v10149_v18 = vmul.f32 %v13067_v9, %v17058_v3 }
 0x556   : > { %v10150_v40 = vmul.f32 %v13067_v9, %v17060_v54  ;;  %v10151_v49 = vmul.f32 %v13067_v9, %v17062_v17  ;;  %v10152_v46 = vmul.f32 %v13067_v9, %v17064_v4  ;;  %v10153_v63 = vmul.f32 %v13067_v9, %v17067_v30 }
 0x557   : > { %v10154_v2 = vmul.f32 %v13067_v9, %v17069_v45  ;;  %v10155_v8 = vmul.f32 %v13067_v9, %v17071_v12  ;;  %v10156_v25 = vmul.f32 %v13067_v9, %v17073_v52  ;;  %v10157_v29 = vmul.f32 %v13067_v9, %v17076_v15 }
 0x558   : > { %v10158_v38 = vmul.f32 %v13067_v9, %v17078_v44  ;;  %v10159_v3 = vmul.f32 %v13067_v9, %v17080_v53  ;;  %v10160_v54 = vmul.f32 %v13067_v9, %v17082_v1  ;;  %v10161_v17 = vmul.f32 %v13067_v9, %v17084_v37 }
 0x559   : > { %v10162_v4 = vmul.f32 %v13067_v9, %v17086_v22  ;;  %v10163_v30 = vmul.f32 %v13067_v9, %v17088_v55  ;;  %v10164_v45 = vmul.f32 %v13067_v9, %v17090_v28  ;;  %v10165_v12 = vmul.f32 %v13067_v9, %v17094_v48 }
 0x55a   : > { %v10166_v52 = vmul.f32 %v13067_v9, %v17096_v36  ;;  %v10167_v15 = vmul.f32 %v13067_v9, %v17098_v31  ;;  %v10168_v44 = vmul.f32 %v13067_v9, %v17100_v62  ;;  %v10169_v53 = vmul.f32 %v13067_v9, %v17103_v47 }
 0x55b   : > { %v17254_v43 = vadd.f32 %v11686_v16, %v10138_v24  ;;  %v17256_v1 = vadd.f32 %v11686_v16, %v10139_v32  ;;  %v17258_v37 = vadd.f32 %v11686_v16, %v10140_v21  ;;  %v17260_v22 = vadd.f32 %v11686_v16, %v10141_v57 }
 0x55c   : > { %v17262_v55 = vadd.f32 %v11686_v16, %v10142_v34  ;;  %v17264_v28 = vadd.f32 %v11686_v16, %v10143_v58  ;;  %v17266_v48 = vadd.f32 %v11686_v16, %v10144_v56  ;;  %v17268_v36 = vadd.f32 %v11686_v16, %v10145_v14 }
 0x55d   : > { %v17270_v31 = vadd.f32 %v11686_v16, %v10146_v27  ;;  %v17272_v62 = vadd.f32 %v11686_v16, %v10147_v10  ;;  %v17274_v47 = vadd.f32 %v11686_v16, %v10148_v50  ;;  %v17276_v24 = vadd.f32 %v11686_v16, %v10149_v18 }
 0x55e   : > { %v17278_v32 = vadd.f32 %v11686_v16, %v10150_v40  ;;  %v17280_v9 = vadd.f32 %v11686_v16, %v10151_v49  ;;  %v17282_v21 = vadd.f32 %v11686_v16, %v10152_v46  ;;  %v17284_v58 = vadd.f32 %v11686_v16, %v10153_v63  ;;  %v11730_v46 = vld [vmem:[%s13225_s26 + $0xb8] sm:$0xf] }
 0x55f   : > { %v17286_v57 = vadd.f32 %v11686_v16, %v10154_v2  ;;  %v17288_v14 = vadd.f32 %v11686_v16, %v10155_v8  ;;  %v17290_v34 = vadd.f32 %v11686_v16, %v10156_v25  ;;  %v17292_v56 = vadd.f32 %v11686_v16, %v10157_v29 }
 0x560   : > { %v17294_v27 = vadd.f32 %v11686_v16, %v10158_v38  ;;  %v17296_v10 = vadd.f32 %v11686_v16, %v10159_v3  ;;  %v17298_v50 = vadd.f32 %v11686_v16, %v10160_v54  ;;  %v17300_v18 = vadd.f32 %v11686_v16, %v10161_v17  ;;  %v11731_v3 = vld [vmem:[%s13225_s26 + $0xbc] sm:$0x1]  ;;  %v11732_v54 = vld [vmem:[%s13225_s26 + $0xc0] sm:$0xf] }
 0x561   : > { %17741 = vst [vmem:[#allocation43_spill] sm:$0xff] %v17290_v34  ;;  %17742 = vst [vmem:[#allocation44_spill] sm:$0xff] %v17292_v56  ;;  %v17302_v40 = vadd.f32 %v11686_v16, %v10162_v4  ;;  %v17304_v2 = vadd.f32 %v11686_v16, %v10163_v30  ;;  %v17306_v8 = vadd.f32 %v11686_v16, %v10164_v45  ;;  %v17755_v45 = vshrl.u32 %v17172_v5, 16 }
 0x562   : > { %17743 = vst [vmem:[#allocation45_spill] sm:$0xff] %v17294_v27  ;;  %17744 = vst [vmem:[#allocation46_spill] sm:$0xff] %v17296_v10  ;;  %v17308_v49 = vadd.f32 %v11686_v16, %v10165_v12  ;;  %v17311_v63 = vadd.f32 %v11686_v16, %v10166_v52  ;;  %v17313_v25 = vadd.f32 %v11686_v16, %v10167_v15  ;;  %v17756_v12 = vshll.u32 %v17184_v11, 16 }
 0x563   : > { %17745 = vst [vmem:[#allocation47_spill] sm:$0xff] %v17298_v50  ;;  %17746 = vst [vmem:[#allocation48_spill] sm:$0xff] %v17300_v18  ;;  %v17315_v29 = vadd.f32 %v11686_v16, %v10168_v44  ;;  %v17317_v38 = vadd.f32 %v11686_v16, %v10169_v53  ;;  %v10575_v30 = vor.u32 %v17209_v35, %v17201_v42  ;;  %v10584_v16 = vrot.slane %v17755_v45, 4  ;;  %v11734_v42 = vld [vmem:[%s13225_s26 + $0xc8] sm:$0x1] }
 0x564   : > { %17747 = vst [vmem:[#allocation49_spill] sm:$0xff] %v17302_v40  ;;  %17748 = vst [vmem:[#allocation50_spill] sm:$0xff] %v17304_v2  ;;  %v17335_v52 = vrot.slane %v17756_v12, 5  ;;  %v17757_v15 = vshrl.u32 %v17189_v39, 16  ;;  %v10596_v53 = vshll.u32 %v17189_v39, 16  ;;  %v10602_v17 = vshll.u32 %v11730_v46, 16 }
 0x565   : > { %17749 = vst [vmem:[#allocation51_spill] sm:$0xff] %v17306_v8  ;;  %17750 = vst [vmem:[#allocation52_spill] sm:$0xff] %v17308_v49  ;;  %v10585_v4 = vor.u32 %v10584_v16, %v17211_v0  ;;  %v10617_v45 = vshrl.u32 %v11732_v54, 16  ;;  %v10620_v49 = vshll.u32 %v11732_v54, 16 }
 0x566   : > { %17751 = vst [vmem:[#allocation53_spill] sm:$0xff] %v17311_v63  ;;  %17752 = vst [vmem:[#allocation54_spill] sm:$0xff] %v17313_v25  ;;  %v10595_v44 = vrot.slane %v17757_v15, 4  ;;  %v10606_v25 = vshrl.u32 %v11730_v46, 16  ;;  %v10612_v63 = vshll.u32 %v11731_v3, 16  ;;  %v10598_v35 = vrot.slane %v10596_v53, 5 }
 0x567   : > { %17753 = vst [vmem:[#allocation55_spill] sm:$0xff] %v17315_v29  ;;  %17754 = vst [vmem:[#allocation56_spill] sm:$0xff] %v17317_v38  ;;  %v11733_v38 = vld [vmem:[%s13225_s26 + $0xc4] sm:$0xf]  ;;  %v10576_v29 = vrot.slane %v10575_v30, 4  ;;  %v10604_v5 = vrot.slane %v10602_v17, 5 }
 0x568   : > { %v10586_v12 = vrot.slane %v10585_v4, 4  ;;  %v10608_v15 = vrot.slane %v10606_v25, 4  ;;  %v10614_v8 = vrot.slane %v10612_v63, 5  ;;  %v10599_v39 = vor.u32 %v10598_v35, %v10595_v44  ;;  %v17761_v35 = vld [vmem:[#allocation12_spill] sm:$0xff]  ;;  %s11737_s26 = sshll.u32 %s17837_s25, 8 }
 0x569   : > { %v10581_v11 = vsel %vm13248_vm5, %v10576_v29, %v17211_v0  ;;  %v10619_v2 = vrot.slane %v10617_v45, 4  ;;  %v10622_v40 = vrot.slane %v10620_v49, 5  ;;  %v10626_v30 = vshll.u32 %v11733_v38, 16  ;;  %v17758_v0 = vld [vmem:[#allocation9_spill] sm:$0xff]  ;;  %v17759_v29 = vld [vmem:[#allocation10_spill] sm:$0xff]  ;;  %v17762_v45 = vld [vmem:[#allocation11_spill] sm:$0xff]  ;;  %s17486_s28 = scalar_lea.vmem %s17563_s7, %s11737_s26 }
 0x56a   : > { %v10591_v46 = vsel %vm13248_vm5, %v10586_v12, %v17335_v52  ;;  %v10609_v3 = vor.u32 %v10608_v15, %v10604_v5  ;;  %v10630_v16 = vshrl.u32 %v11733_v38, 16  ;;  %v10636_v17 = vshll.u32 %v11734_v42, 16  ;;  %v17765_v42 = vld [vmem:[#allocation13_spill] sm:$0xff] }
 0x56b   : > { %v10600_v53 = vrot.slane %v10599_v39, 4  ;;  %v10623_v54 = vor.u32 %v10622_v40, %v10619_v2  ;;  %v10628_v18 = vrot.slane %v10626_v30, 5  ;;  %v17760_v25 = vsel %vm13248_vm5, %v17758_v0, %v17759_v29  ;;  %v17764_v2 = vld [vmem:[#allocation14_spill] sm:$0xff]  ;;  %v17767_v30 = vld [vmem:[#allocation16_spill] sm:$0xff] }
 0x56c   : > { %v10673_v63 = vunpack.c.l.bf16 %v17760_v25  ;;  %v10610_v4 = vrot.slane %v10609_v3, 4  ;;  %v10632_v44 = vrot.slane %v10630_v16, 4  ;;  %v10638_v49 = vrot.slane %v10636_v17, 5  ;;  %v17768_v3 = vld [vmem:[#allocation15_spill] sm:$0xff] }
 0x56d   : > { %v17763_v52 = vsel %vm13248_vm5, %v17761_v35, %v17762_v45  ;;  %v10605_v38 = vsel %vm13248_vm5, %v10600_v53, %v10604_v5  ;;  %v10624_v40 = vrot.slane %v10623_v54, 4  ;;  %v17766_v15 = vsel %vm13248_vm5, %v17764_v2, %v17765_v42  ;;  %v17770_v5 = vld [vmem:[#allocation18_spill] sm:$0xff]  ;;  %v17771_v53 = vld [vmem:[#allocation17_spill] sm:$0xff]  ;;  %v17773_v35 = vld [vmem:[#allocation20_spill] sm:$0xff] }
 0x56e   : > { %v10674_v12 = vunpack.c.l.bf16 %v17763_v52  ;;  %v10675_v39 = vunpack.c.l.bf16 %v17766_v15  ;;  %v17769_v16 = vsel %vm13248_vm5, %v17767_v30, %v17768_v3  ;;  %v10615_v0 = vsel %vm13248_vm5, %v10610_v4, %v10614_v8  ;;  %v17774_v45 = vld [vmem:[#allocation19_spill] sm:$0xff]  ;;  %v17776_v8 = vld [vmem:[#allocation22_spill] sm:$0xff]  ;;  %v17777_v4 = vld [vmem:[#allocation21_spill] sm:$0xff] }
 0x56f   : > { %v10676_v17 = vunpack.c.l.bf16 %v17769_v16  ;;  %v10633_v29 = vor.u32 %v10632_v44, %v10628_v18  ;;  %v17772_v54 = vsel %vm13248_vm5, %v17770_v5, %v17771_v53  ;;  %v17775_v52 = vsel %vm13248_vm5, %v17773_v35, %v17774_v45  ;;  %v17779_v30 = vld [vmem:[#allocation25_spill] sm:$0xff]  ;;  %v17780_v3 = vld [vmem:[#allocation23_spill] sm:$0xff] }
 0x570   : > { %v10677_v25 = vunpack.c.l.bf16 %v17772_v54  ;;  %v10678_v2 = vunpack.c.l.bf16 %v17775_v52  ;;  %v10629_v42 = vsel %vm13248_vm5, %v10624_v40, %v10628_v18  ;;  %v17778_v44 = vsel %vm13248_vm5, %v17776_v8, %v17777_v4  ;;  %v17782_v53 = vld [vmem:[#allocation27_spill] sm:$0xff]  ;;  %v17783_v54 = vld [vmem:[#allocation26_spill] sm:$0xff] }
 0x571   : > { %v10679_v15 = vunpack.c.l.bf16 %v17778_v44  ;;  %v17781_v16 = vsel %vm13248_vm5, %v17779_v30, %v17780_v3  ;;  %v17784_v35 = vsel %vm13248_vm5, %v17782_v53, %v17783_v54  ;;  %v10634_v52 = vrot.slane %v10633_v29, 4  ;;  %v17785_v18 = vld [vmem:[#allocation7_spill] sm:$0xff]  ;;  %v17786_v40 = vld [vmem:[#allocation6_spill] sm:$0xff]  ;;  %v17790_v29 = vld [vmem:[#allocation4_spill] sm:$0xff] }
 0x572   : > { %v10680_v5 = vunpack.c.l.bf16 %v17781_v16  ;;  %v10681_v45 = vunpack.c.l.bf16 %v17784_v35  ;;  %v17787_v50 = vsel %vm13248_vm5, %v17785_v18, %v17786_v40  ;;  %v17788_v4 = vsel %vm13248_vm5, %v16895_v60, %v16897_v19  ;;  %v17793_v54 = vld [vmem:[#allocation5_spill] sm:$0xff]  ;;  %v17795_v60 = vld [vmem:[#allocation30_spill] sm:$0xff]  ;;  %v17796_v19 = vld [vmem:[#allocation28_spill] sm:$0xff] }
 0x573   : > { %v10682_v8 = vunpack.c.l.bf16 %v17787_v50  ;;  %v10683_v44 = vunpack.c.l.bf16 %v17788_v4  ;;  %v17789_v30 = vsel %vm13248_vm5, %v16916_v33, %v16892_v51  ;;  %v17791_v16 = vsel %vm13248_vm5, %v16921_v41, %v17790_v29  ;;  %v17792_v50 = vld [vmem:[#allocation29_spill] sm:$0xff]  ;;  %v17798_v51 = vld [vmem:[#allocation24_spill] sm:$0xff]  ;;  %v17799_v33 = vld [vmem:[#allocation31_spill] sm:$0xff] }
 0x574   : > { %v10684_v3 = vunpack.c.l.bf16 %v17789_v30  ;;  %v10685_v53 = vunpack.c.l.bf16 %v17791_v16  ;;  %v17794_v35 = vsel %vm13248_vm5, %v17792_v50, %v17793_v54  ;;  %v17797_v40 = vsel %vm13248_vm5, %v17795_v60, %v17796_v19  ;;  %v17801_v29 = vld [vmem:[#allocation33_spill] sm:$0xff]  ;;  %v17802_v16 = vld [vmem:[#allocation32_spill] sm:$0xff]  ;;  %v17805_v60 = vld [vmem:[#allocation34_spill] sm:$0xff] }
 0x575   : > { %v10686_v18 = vunpack.c.l.bf16 %v17794_v35  ;;  %v10687_v4 = vunpack.c.l.bf16 %v17797_v40  ;;  %v17800_v30 = vsel %vm13248_vm5, %v17798_v51, %v17799_v33  ;;  %v10639_v41 = vsel %vm13248_vm5, %v10634_v52, %v10638_v49  ;;  %v17804_v35 = vld [vmem:[#allocation36_spill] sm:$0xff]  ;;  %v17807_v51 = vld [vmem:[#allocation37_spill] sm:$0xff]  ;;  %v17808_v33 = vld [vmem:[#allocation35_spill] sm:$0xff] }
 0x576   : > { %v10688_v10 = vunpack.c.l.bf16 %v17800_v30  ;;  %v17803_v50 = vsel %vm13248_vm5, %v17801_v29, %v17802_v16  ;;  %v17806_v19 = vsel %vm13248_vm5, %v17804_v35, %v17805_v60  ;;  %v17809_v30 = vsel %vm13248_vm5, %v17807_v51, %v17808_v33  ;;  %v17810_v49 = vld [vmem:[#allocation39_spill] sm:$0xff]  ;;  %v17811_v52 = vld [vmem:[#allocation38_spill] sm:$0xff]  ;;  %v17817_v51 = vld [vmem:[#allocation41_spill] sm:$0xff] }
 0x577   : > { %v10689_v54 = vunpack.c.l.bf16 %v17803_v50  ;;  %v10690_v40 = vunpack.c.l.bf16 %v17806_v19  ;;  %v10691_v27 = vunpack.c.l.bf16 %v17809_v30  ;;  %v17812_v56 = vsel %vm13248_vm5, %v17810_v49, %v17811_v52  ;;  %v17814_v50 = vld [vmem:[#allocation40_spill] sm:$0xff]  ;;  %v17816_v19 = vld [vmem:[#allocation42_spill] sm:$0xff] }
 0x578   : > { %v10692_v34 = vunpack.c.l.bf16 %v17812_v56  ;;  %v17813_v29 = vsel %vm13248_vm5, %v17169_v6, %v17153_v20  ;;  %v17815_v35 = vsel %vm13248_vm5, %v17186_v7, %v17814_v50  ;;  %v17818_v33 = vsel %vm13248_vm5, %v17816_v19, %v17817_v51 }
 0x579   : > { %v10693_v16 = vunpack.c.l.bf16 %v17813_v29  ;;  %v10694_v60 = vunpack.c.l.bf16 %v17815_v35  ;;  %v10695_v30 = vunpack.c.l.bf16 %v17818_v33  ;;  %v17819_v56 = vsel %vm13248_vm5, %v17207_v26, %v17181_v23 }
 0x57a   : > { %v10696_v49 = vunpack.c.l.bf16 %v17819_v56  ;;  %v17820_v20 = vsel %vm13248_vm5, %v17213_v59, %v17199_v13  ;;  %v10698_v7 = vunpack.c.l.bf16 %v10581_v11  ;;  %v10699_v52 = vunpack.c.l.bf16 %v10591_v46 }
 0x57b   : > { %v10697_v6 = vunpack.c.l.bf16 %v17820_v20  ;;  %v10700_v29 = vunpack.c.l.bf16 %v10605_v38  ;;  %v10701_v50 = vunpack.c.l.bf16 %v10615_v0  ;;  %v10702_v35 = vunpack.c.l.bf16 %v10629_v42 }
 0x57c   : > { %v10703_v23 = vunpack.c.l.bf16 %v10639_v41  ;;  %v10704_v26 = vadd.f32 %v17821_v61, %v17254_v43  ;;  %v10705_v13 = vadd.f32 %v10673_v63, %v17256_v1  ;;  %v10706_v59 = vadd.f32 %v10674_v12, %v17258_v37  ;;  %v17825_v63 = vld [vmem:[#allocation46_spill] sm:$0xff]  ;;  %v17835_v41 = vld [vmem:[#allocation56_spill] sm:$0xff] }
 0x57d   : > { %v10707_v11 = vadd.f32 %v10675_v39, %v17260_v22  ;;  %v10708_v46 = vadd.f32 %v10676_v17, %v17262_v55  ;;  %v10709_v38 = vadd.f32 %v10677_v25, %v17264_v28  ;;  %v10710_v0 = vadd.f32 %v10678_v2, %v17266_v48  ;;  %v17826_v39 = vld [vmem:[#allocation47_spill] sm:$0xff]  ;;  %v17829_v25 = vld [vmem:[#allocation50_spill] sm:$0xff] }
 0x57e   : > { %v10711_v42 = vadd.f32 %v10679_v15, %v17268_v36  ;;  %v10712_v43 = vadd.f32 %v10680_v5, %v17270_v31  ;;  %v10713_v1 = vadd.f32 %v10681_v45, %v17272_v62  ;;  %v10714_v37 = vadd.f32 %v10682_v8, %v17274_v47  ;;  %10736 = vst [vmem:[%s17486_s28] sm:$0xff] %v10704_v26  ;;  %v17822_v47 = vld [vmem:[#allocation43_spill] sm:$0xff]  ;;  %v17831_v5 = vld [vmem:[#allocation52_spill] sm:$0xff]  ;;  %v17832_v8 = vld [vmem:[#allocation53_spill] sm:$0xff] }
 0x57f   : > { %v10715_v22 = vadd.f32 %v10683_v44, %v17276_v24  ;;  %10737 = vst [vmem:[%s17486_s28 + $0x8] sm:$0xff] %v10705_v13  ;;  %10738 = vst [vmem:[%s17486_s28 + $0x10] sm:$0xff] %v10706_v59  ;;  %v10716_v55 = vadd.f32 %v10684_v3, %v17278_v32  ;;  %v10717_v28 = vadd.f32 %v10685_v53, %v17280_v9  ;;  %v17823_v32 = vld [vmem:[#allocation44_spill] sm:$0xff]  ;;  %v17833_v3 = vld [vmem:[#allocation54_spill] sm:$0xff] }
 0x580   : > { %10739 = vst [vmem:[%s17486_s28 + $0x18] sm:$0xff] %v10707_v11  ;;  %v10718_v48 = vadd.f32 %v10686_v18, %v17282_v21  ;;  %v10719_v36 = vadd.f32 %v10687_v4, %v17284_v58  ;;  %10740 = vst [vmem:[%s17486_s28 + $0x20] sm:$0xff] %v10708_v46  ;;  %v10720_v31 = vadd.f32 %v10688_v10, %v17286_v57  ;;  %v17824_v21 = vld [vmem:[#allocation45_spill] sm:$0xff]  ;;  %v17827_v10 = vld [vmem:[#allocation48_spill] sm:$0xff] }
 0x581   : > { %10741 = vst [vmem:[%s17486_s28 + $0x28] sm:$0xff] %v10709_v38  ;;  %10742 = vst [vmem:[%s17486_s28 + $0x30] sm:$0xff] %v10710_v0  ;;  %v10721_v62 = vadd.f32 %v10689_v54, %v17288_v14  ;;  %v10722_v24 = vadd.f32 %v10690_v40, %v17822_v47  ;;  %v10723_v9 = vadd.f32 %v10691_v27, %v17823_v32  ;;  %v17828_v27 = vld [vmem:[#allocation49_spill] sm:$0xff]  ;;  %v17834_v18 = vld [vmem:[#allocation55_spill] sm:$0xff] }
 0x582   : > { %10743 = vst [vmem:[%s17486_s28 + $0x38] sm:$0xff] %v10711_v42  ;;  %10744 = vst [vmem:[%s17486_s28 + $0x40] sm:$0xff] %v10712_v43  ;;  %v10724_v58 = vadd.f32 %v10692_v34, %v17824_v21  ;;  %v10725_v12 = vadd.f32 %v10693_v16, %v17825_v63  ;;  %v10726_v57 = vadd.f32 %v10694_v60, %v17826_v39  ;;  %v17830_v34 = vld [vmem:[#allocation51_spill] sm:$0xff] }
 0x583   : > { %10745 = vst [vmem:[%s17486_s28 + $0x48] sm:$0xff] %v10713_v1  ;;  %10746 = vst [vmem:[%s17486_s28 + $0x50] sm:$0xff] %v10714_v37  ;;  %v10727_v14 = vadd.f32 %v10695_v30, %v17827_v10  ;;  %v10728_v17 = vadd.f32 %v10696_v49, %v17828_v27  ;;  %v10729_v2 = vadd.f32 %v10697_v6, %v17829_v25 }
 0x584   : > { %10747 = vst [vmem:[%s17486_s28 + $0x58] sm:$0xff] %v10715_v22  ;;  %10748 = vst [vmem:[%s17486_s28 + $0x60] sm:$0xff] %v10716_v55  ;;  %v10730_v15 = vadd.f32 %v10698_v7, %v17830_v34  ;;  %v10731_v45 = vadd.f32 %v10699_v52, %v17831_v5  ;;  %v10732_v44 = vadd.f32 %v10700_v29, %v17832_v8 }
 0x585   : > { %10749 = vst [vmem:[%s17486_s28 + $0x68] sm:$0xff] %v10717_v28  ;;  %10750 = vst [vmem:[%s17486_s28 + $0x70] sm:$0xff] %v10718_v48  ;;  %v10733_v53 = vadd.f32 %v10701_v50, %v17833_v3  ;;  %v10734_v4 = vadd.f32 %v10702_v35, %v17834_v18  ;;  %v10735_v54 = vadd.f32 %v10703_v23, %v17835_v41 }
 0x586   : > { %10751 = vst [vmem:[%s17486_s28 + $0x78] sm:$0xff] %v10719_v36  ;;  %10752 = vst [vmem:[%s17486_s28 + $0x80] sm:$0xff] %v10720_v31 }
 0x587   : > { %10753 = vst [vmem:[%s17486_s28 + $0x88] sm:$0xff] %v10721_v62  ;;  %10754 = vst [vmem:[%s17486_s28 + $0x90] sm:$0xff] %v10722_v24 }
 0x588   : > { %10755 = vst [vmem:[%s17486_s28 + $0x98] sm:$0xff] %v10723_v9  ;;  %10756 = vst [vmem:[%s17486_s28 + $0xa0] sm:$0xff] %v10724_v58 }
 0x589   : > { %10757 = vst [vmem:[%s17486_s28 + $0xa8] sm:$0xff] %v10725_v12  ;;  %10758 = vst [vmem:[%s17486_s28 + $0xb0] sm:$0xff] %v10726_v57 }
 0x58a   : > { %10759 = vst [vmem:[%s17486_s28 + $0xb8] sm:$0xff] %v10727_v14  ;;  %10760 = vst [vmem:[%s17486_s28 + $0xc0] sm:$0xff] %v10728_v17 }
 0x58b   : > { %10761 = vst [vmem:[%s17486_s28 + $0xc8] sm:$0xff] %v10729_v2  ;;  %10762 = vst [vmem:[%s17486_s28 + $0xd0] sm:$0xff] %v10730_v15 }
 0x58c   : > { %10763 = vst [vmem:[%s17486_s28 + $0xd8] sm:$0xff] %v10731_v45  ;;  %10764 = vst [vmem:[%s17486_s28 + $0xe0] sm:$0xff] %v10732_v44 }
 0x58d   : > { %10765 = vst [vmem:[%s17486_s28 + $0xe8] sm:$0xff] %v10733_v53  ;;  %10766 = vst [vmem:[%s17486_s28 + $0xf0] sm:$0xff] %v10734_v4 }
 0x58e   : > { %10767 = vst [vmem:[%s17486_s28 + $0xf8] sm:$0xff] %v10735_v54 }
 0x58f PF: > { %s17_s24 = sadd.s32 1, %s13074_s24  }
 0x590   : > { %p14_p4 = scmp.ge.s32.totalorder %s17_s24, 4  }
 0x592   :  { %16 = sbr.rel (!%p14_p4) target bundleno = 1 (0x1), region = 94 }

</bundles_post_ra>
